<compile_context>
chip_gen: v7x
topology: tpu7x:2x2x1
jax: 0.10.0
libtpu: 0.0.40
codegen_flags: <defaults>
</compile_context>

<pallas_src>
import functools

import jax
import jax.numpy as jnp
from jax.experimental import pallas as pl
from jax.experimental.pallas import tpu as pltpu


def _round_up(x, m):
    return (x + m - 1) // m * m


def _fused_head_kernel(x_ref, wh_ref, bh_ref, wo_ref, bo_ref, o_ref,
                       xa_ref, xb_ref, *, H, W, C, Cin, Co, R):
    """One batch image per grid step.

    x_ref:  (1, H, W, Cin) f32   input activation (NHWC)
    wh_ref: (4, 9, C, C)   bf16  conv1..conv4 per-tap weights (channel padded)
    bh_ref: (4, 1, C)      f32   conv1..conv4 biases (zero padded)
    wo_ref: (9, C, Co)     bf16  fused reg++centerness per-tap weights
    bo_ref: (1, Co)        f32   fused output bias
    o_ref:  (1, H*W, Co)   f32   lane-dense output slab
    xa_ref/xb_ref: (H+2, Wp, C) bf16  ping-pong padded activations (Wp % 8 == 0)
    """
    n_strips = H // R

    def zero_halo(buf):
        wp = buf.shape[1]
        buf[0:1, :, :] = jnp.zeros((1, wp, C), jnp.bfloat16)
        buf[H + 1:H + 2, :, :] = jnp.zeros((1, wp, C), jnp.bfloat16)
        buf[1:H + 1, 0:1, :] = jnp.zeros((H, 1, C), jnp.bfloat16)
        buf[1:H + 1, W + 1:W + 2, :] = jnp.zeros((H, 1, C), jnp.bfloat16)

    # Zero only what is ever read but never overwritten: the 1-element halo
    # ring of both buffers, plus (before layer 1 only) the padded channel
    # tail of buffer A's interior when the real input has Cin < C channels.
    if Cin < C:
        xa_ref[...] = jnp.zeros_like(xa_ref)   # covers halo ring + channel tail
    else:
        zero_halo(xa_ref)
    zero_halo(xb_ref)

    # Input image -> bf16 interior of buffer A (in-kernel zero padding).
    xa_ref[1:H + 1, 1:W + 1, 0:Cin] = x_ref[0].astype(jnp.bfloat16)

    def conv_strip(src, r0, w_tap, bias, relu):
        """3x3 conv on output rows [r0, r0+R): nine accumulating bf16 MXU
        matmuls whose LHS are (dy,dx)-shifted (R*W, C) windows of `src`."""
        acc = None
        for dy in range(3):
            for dx in range(3):
                lhs = src[r0 + dy:r0 + dy + R, dx:dx + W, :].reshape(R * W, C)
                part = jnp.dot(lhs, w_tap(dy * 3 + dx),
                               preferred_element_type=jnp.float32)
                acc = part if acc is None else acc + part
        acc = acc + bias
        return jnp.maximum(acc, 0.0) if relu else acc

    # conv1..conv4 (+ ReLU): layer-outer / strip-inner, ping-pong between the
    # two VMEM buffers so the previous layer's halo rows stay intact while the
    # current layer's strips are written.  Activations never leave VMEM.
    src, dst = xa_ref, xb_ref
    for layer in range(4):
        for s in range(n_strips):
            r0 = s * R
            act = conv_strip(src, r0, lambda k: wh_ref[layer, k],
                             bh_ref[layer], relu=True)
            dst[r0 + 1:r0 + 1 + R, 1:W + 1, :] = (
                act.reshape(R, W, C).astype(jnp.bfloat16))
        src, dst = dst, src

    # Fused output conv (reg channels then centerness channels), no ReLU,
    # written straight to the lane-dense output slab in f32.
    for s in range(n_strips):
        r0 = s * R
        out = conv_strip(src, r0, lambda k: wo_ref[k], bo_ref[...], relu=False)
        o_ref[0:1, r0 * W:(r0 + R) * W, :] = (
            out.reshape(1, R * W, Co).astype(o_ref.dtype))


def init_params(key, num_features_in, num_anchors, feature_size):
    """Deterministic synthetic parameters. Weights stored HWIO (unpacked, f32)."""
    def conv_params(k, cin, cout):
        kw, kb = jax.random.split(k)
        scale = 1.0 / jnp.sqrt(9.0 * cin)
        w = jax.random.uniform(kw, (3, 3, cin, cout), jnp.float32, -scale, scale)
        b = jax.random.uniform(kb, (cout,), jnp.float32, -scale, scale)
        return w, b

    ks = jax.random.split(key, 6)
    p = {}
    p["conv1"] = conv_params(ks[0], num_features_in, feature_size)
    p["conv2"] = conv_params(ks[1], feature_size, feature_size)
    p["conv3"] = conv_params(ks[2], feature_size, feature_size)
    p["conv4"] = conv_params(ks[3], feature_size, feature_size)
    p["output_reg"] = conv_params(ks[4], feature_size, num_anchors * 4)
    p["output_centerness"] = conv_params(ks[5], feature_size, num_anchors * 1)
    return p


def _pack_conv(w_hwio, b, c_in_pad, c_out_pad):
    """HWIO (3,3,ci,co) -> per-tap (9, c_in_pad, c_out_pad) bf16 weights and
    (1, c_out_pad) f32 bias, zero-padded so the channel padding is inert."""
    kh, kw, ci, co = w_hwio.shape
    w = jnp.pad(w_hwio, ((0, 0), (0, 0), (0, c_in_pad - ci), (0, c_out_pad - co)))
    w = w.reshape(kh * kw, c_in_pad, c_out_pad).astype(jnp.bfloat16)
    b = jnp.pad(b, ((0, c_out_pad - co),)).reshape(1, c_out_pad).astype(jnp.float32)
    return w, b


def pack_params(params, num_features_in, num_anchors, feature_size):
    """One-time packing of all six convs into padded bf16 per-tap matrices."""
    # On v6e/v7x with feature_size>=256 this keeps C=256 (no extra padding),
    # matching the 256-wide MXU.
    C = _round_up(max(num_features_in, feature_size), 128)
    Co = _round_up(5 * num_anchors, 128)

    w1, b1 = _pack_conv(*params["conv1"], C, C)
    w2, b2 = _pack_conv(*params["conv2"], C, C)
    w3, b3 = _pack_conv(*params["conv3"], C, C)
    w4, b4 = _pack_conv(*params["conv4"], C, C)
    wh = jnp.stack([w1, w2, w3, w4])     # (4, 9, C, C) bf16
    bh = jnp.stack([b1, b2, b3, b4])     # (4, 1, C)    f32

    wr, br = params["output_reg"]
    wc, bc = params["output_centerness"]
    wo, bo = _pack_conv(jnp.concatenate([wr, wc], axis=-1),
                        jnp.concatenate([br, bc], axis=-1), C, Co)

    return dict(wh=wh, bh=bh, wo=wo, bo=bo, C=C, Co=Co,
                num_anchors=num_anchors)


def _pick_strip_rows(H, W, C, Co, budget_bytes=8 << 20):
    """Largest divisor of H whose per-strip temporaries fit the budget.
    (At production sizes on v6e/v7x prefer R*W to be a multiple of 256 so the
    matmul M dimension fills the 256-wide MXU.)"""
    best = 1
    for r in range(1, H + 1):
        if H % r:
            continue
        strip_bytes = r * W * (9 * C * 2 + 2 * C * 4 + 2 * Co * 4)
        if strip_bytes <= budget_bytes:
            best = r
    return best


def _vmem_estimate(*, H, W, Wp, Cin, C, Co, R):
    bf16, f32 = 2, 4
    act = 2 * (H + 2) * Wp * C * bf16                       # ping-pong activations
    wts = 2 * (4 * 9 * C * C + 9 * C * Co) * bf16           # x2 double-buffered
    bias = 2 * (4 * C + Co) * f32
    x_in = 2 * H * W * Cin * f32
    x_out = 2 * H * W * Co * f32
    strip = R * W * (9 * C * bf16 + 2 * C * f32 + 2 * Co * f32)  # lhs/acc temps
    total = act + wts + bias + x_in + x_out + strip
    return int(min(128 << 20, max(32 << 20, int(1.5 * total) + (4 << 20))))


def regression_model_forward(packed, x_nchw, strip_rows=None):
    """Matches RegressionModel.forward. Input is NCHW like the PyTorch module."""
    N, Cin, H, W = x_nchw.shape
    C, Co, A = packed["C"], packed["Co"], packed["num_anchors"]
    Wp = _round_up(W + 2, 8)                     # sublane-aligned padded width

    R = strip_rows if strip_rows is not None else _pick_strip_rows(H, W, C, Co)
    assert H % R == 0, "strip_rows must divide H"

    x = jnp.transpose(x_nchw, (0, 2, 3, 1))      # NCHW -> NHWC (layout glue, once)

    kernel = functools.partial(_fused_head_kernel, H=H, W=W, C=C, Cin=Cin,
                               Co=Co, R=R)
    vmem_bytes = _vmem_estimate(H=H, W=W, Wp=Wp, Cin=Cin, C=C, Co=Co, R=R)

    out = pl.pallas_call(
        kernel,
        out_shape=jax.ShapeDtypeStruct((N, H * W, Co), jnp.float32),
        grid_spec=pltpu.PrefetchScalarGridSpec(
            num_scalar_prefetch=0,
            grid=(N,),
            in_specs=[
                pl.BlockSpec((1, H, W, Cin), lambda n: (n, 0, 0, 0)),
                pl.BlockSpec((4, 9, C, C), lambda n: (0, 0, 0, 0)),
                pl.BlockSpec((4, 1, C), lambda n: (0, 0, 0)),
                pl.BlockSpec((9, C, Co), lambda n: (0, 0, 0)),
                pl.BlockSpec((1, Co), lambda n: (0, 0)),
            ],
            out_specs=pl.BlockSpec((1, H * W, Co), lambda n: (n, 0, 0)),
            scratch_shapes=[
                pltpu.VMEM((H + 2, Wp, C), jnp.bfloat16),   # ping activation
                pltpu.VMEM((H + 2, Wp, C), jnp.bfloat16),   # pong activation
            ],
        ),
        compiler_params=pltpu.CompilerParams(
            dimension_semantics=("parallel",),
            vmem_limit_bytes=vmem_bytes),
    )(x, packed["wh"], packed["bh"], packed["wo"], packed["bo"])

    # out is NHWC-flat and lane-padded: slice the real channels and collapse
    # exactly like the PyTorch permute(0,2,3,1).view(...).
    reg = out[:, :, :4 * A].reshape(N, H * W * A, 4)
    ctr = out[:, :, 4 * A:5 * A].reshape(N, H * W * A, 1)
    return reg, ctr


def _reference_forward(params, x_nchw):
    """Pure-JAX f32 reference (lax conv) for correctness checking."""
    x = jnp.transpose(x_nchw, (0, 2, 3, 1))

    def conv(x, w, b, relu):
        y = jax.lax.conv_general_dilated(
            x, w, window_strides=(1, 1), padding="SAME",
            dimension_numbers=("NHWC", "HWIO", "NHWC"))
        y = y + b[None, None, None, :]
        return jnp.maximum(y, 0.0) if relu else y

    out = conv(x, *params["conv1"], True)
    out = conv(out, *params["conv2"], True)
    out = conv(out, *params["conv3"], True)
    out = conv(out, *params["conv4"], True)
    reg = conv(out, *params["output_reg"], False)
    ctr = conv(out, *params["output_centerness"], False)
    N = reg.shape[0]
    return reg.reshape(N, -1, 4), ctr.reshape(N, -1, 1)


if __name__ == "__main__":
    # small shapes consistent with the module
    batch, num_features_in, H, W = 2, 16, 8, 8
    num_anchors, feature_size = 9, 32

    key = jax.random.PRNGKey(0)
    kx, kp = jax.random.split(key)
    x = jax.random.normal(kx, (batch, num_features_in, H, W), jnp.float32)  # NCHW
    params = init_params(kp, num_features_in, num_anchors, feature_size)
    packed = pack_params(params, num_features_in, num_anchors, feature_size)

    # strip_rows=4 -> two row strips: exercises the halo / ping-pong path.
    reg, ctr = regression_model_forward(packed, x, strip_rows=4)
    reg = jax.block_until_ready(reg)
    ctr = jax.block_until_ready(ctr)

    assert reg.shape == (batch, H * W * num_anchors, 4), reg.shape
    assert ctr.shape == (batch, H * W * num_anchors, 1), ctr.shape

    reg_ref, ctr_ref = _reference_forward(params, x)
    # bf16 operands / f32 accumulation: relaxed tolerance vs. the f32 reference.
    assert jnp.allclose(reg, reg_ref, atol=5e-2, rtol=5e-2), float(
        jnp.max(jnp.abs(reg - reg_ref)))
    assert jnp.allclose(ctr, ctr_ref, atol=5e-2, rtol=5e-2), float(
        jnp.max(jnp.abs(ctr - ctr_ref)))

    print("KERNEL_OK")
</pallas_src>

<mosaic_0001>
module attributes {stable_mosaic.version = 11 : i64} {
  func.func @_fused_head_kernel(%arg0: i32, %arg1: memref<1x8x8x16xf32, #tpu.memory_space<vmem>>, %arg2: memref<4x9x128x128xbf16, #tpu.memory_space<vmem>>, %arg3: memref<4x1x128xf32, #tpu.memory_space<vmem>>, %arg4: memref<9x128x128xbf16, #tpu.memory_space<vmem>>, %arg5: memref<1x128xf32, #tpu.memory_space<vmem>>, %arg6: memref<1x64x128xf32, #tpu.memory_space<vmem>>, %arg7: memref<10x16x128xbf16, #tpu.memory_space<vmem>>, %arg8: memref<10x16x128xbf16, #tpu.memory_space<vmem>>) attributes {dimension_semantics = [#tpu.dimension_semantics<parallel>], iteration_bounds = array<i64: 2>, scalar_prefetch = 0 : i64, scratch_operands = 2 : i64, tpu.core_type = #tpu.core_type<tc>, window_params = [{transform_indices = @transform_0, window_bounds = array<i64: 1, 8, 8, 16>}, {pipeline_mode = #tpu.pipeline_mode<synchronous>, transform_indices = @transform_1, window_bounds = array<i64: 4, 9, 128, 128>}, {pipeline_mode = #tpu.pipeline_mode<synchronous>, transform_indices = @transform_2, window_bounds = array<i64: 4, 1, 128>}, {pipeline_mode = #tpu.pipeline_mode<synchronous>, transform_indices = @transform_3, window_bounds = array<i64: 9, 128, 128>}, {pipeline_mode = #tpu.pipeline_mode<synchronous>, transform_indices = @transform_4, window_bounds = array<i64: 1, 128>}, {transform_indices = @transform_5, window_bounds = array<i64: 1, 64, 128>}]} {
    %cst = arith.constant 0.000000e+00 : bf16
    %0 = vector.broadcast %cst : bf16 to vector<10x16x128xbf16>
    %c0 = arith.constant 0 : index
    %c0_0 = arith.constant 0 : index
    %c0_1 = arith.constant 0 : index
    %1 = vector.load %arg7[%c0, %c0_0, %c0_1] : memref<10x16x128xbf16, #tpu.memory_space<vmem>>, vector<10x16x128xbf16>
    tpu.vector_store %arg7[%c0, %c0_0, %c0_1], %0 {strides = array<i32>} : memref<10x16x128xbf16, #tpu.memory_space<vmem>>, vector<10x16x128xbf16>,
    %cst_2 = arith.constant 0.000000e+00 : bf16
    %2 = vector.broadcast %cst_2 : bf16 to vector<1x16x128xbf16>
    %c0_3 = arith.constant 0 : index
    %c0_4 = arith.constant 0 : index
    %c0_5 = arith.constant 0 : index
    %3 = vector.load %arg8[%c0_3, %c0_4, %c0_5] : memref<10x16x128xbf16, #tpu.memory_space<vmem>>, vector<1x16x128xbf16>
    tpu.vector_store %arg8[%c0_3, %c0_4, %c0_5], %2 {strides = array<i32>} : memref<10x16x128xbf16, #tpu.memory_space<vmem>>, vector<1x16x128xbf16>,
    %cst_6 = arith.constant 0.000000e+00 : bf16
    %4 = vector.broadcast %cst_6 : bf16 to vector<1x16x128xbf16>
    %c9 = arith.constant 9 : index
    %c0_7 = arith.constant 0 : index
    %c0_8 = arith.constant 0 : index
    %5 = vector.load %arg8[%c9, %c0_7, %c0_8] : memref<10x16x128xbf16, #tpu.memory_space<vmem>>, vector<1x16x128xbf16>
    tpu.vector_store %arg8[%c9, %c0_7, %c0_8], %4 {strides = array<i32>} : memref<10x16x128xbf16, #tpu.memory_space<vmem>>, vector<1x16x128xbf16>,
    %cst_9 = arith.constant 0.000000e+00 : bf16
    %6 = vector.broadcast %cst_9 : bf16 to vector<8x1x128xbf16>
    %c1 = arith.constant 1 : index
    %c0_10 = arith.constant 0 : index
    %c0_11 = arith.constant 0 : index
    %7 = vector.load %arg8[%c1, %c0_10, %c0_11] : memref<10x16x128xbf16, #tpu.memory_space<vmem>>, vector<8x1x128xbf16>
    tpu.vector_store %arg8[%c1, %c0_10, %c0_11], %6 {strides = array<i32>} : memref<10x16x128xbf16, #tpu.memory_space<vmem>>, vector<8x1x128xbf16>,
    %cst_12 = arith.constant 0.000000e+00 : bf16
    %8 = vector.broadcast %cst_12 : bf16 to vector<8x1x128xbf16>
    %c1_13 = arith.constant 1 : index
    %c9_14 = arith.constant 9 : index
    %c0_15 = arith.constant 0 : index
    %9 = vector.load %arg8[%c1_13, %c9_14, %c0_15] : memref<10x16x128xbf16, #tpu.memory_space<vmem>>, vector<8x1x128xbf16>
    tpu.vector_store %arg8[%c1_13, %c9_14, %c0_15], %8 {strides = array<i32>} : memref<10x16x128xbf16, #tpu.memory_space<vmem>>, vector<8x1x128xbf16>,
    %c0_16 = arith.constant 0 : index
    %c0_17 = arith.constant 0 : index
    %c0_18 = arith.constant 0 : index
    %c0_19 = arith.constant 0 : index
    %10 = vector.load %arg1[%c0_16, %c0_17, %c0_18, %c0_19] : memref<1x8x8x16xf32, #tpu.memory_space<vmem>>, vector<1x8x8x16xf32>
    %11 = vector.shape_cast %10 : vector<1x8x8x16xf32> to vector<8x8x16xf32>
    %12 = arith.truncf %11 : vector<8x8x16xf32> to vector<8x8x16xbf16>
    %c1_20 = arith.constant 1 : index
    %c1_21 = arith.constant 1 : index
    %c0_22 = arith.constant 0 : index
    %13 = vector.load %arg7[%c1_20, %c1_21, %c0_22] : memref<10x16x128xbf16, #tpu.memory_space<vmem>>, vector<8x8x16xbf16>
    tpu.vector_store %arg7[%c1_20, %c1_21, %c0_22], %12 {strides = array<i32>} : memref<10x16x128xbf16, #tpu.memory_space<vmem>>, vector<8x8x16xbf16>,
    %c0_23 = arith.constant 0 : index
    %c0_24 = arith.constant 0 : index
    %c0_25 = arith.constant 0 : index
    %14 = vector.load %arg3[%c0_23, %c0_24, %c0_25] : memref<4x1x128xf32, #tpu.memory_space<vmem>>, vector<1x1x128xf32>
    %15 = vector.shape_cast %14 : vector<1x1x128xf32> to vector<1x128xf32>
    %c0_26 = arith.constant 0 : index
    %c0_27 = arith.constant 0 : index
    %c0_28 = arith.constant 0 : index
    %16 = vector.load %arg7[%c0_26, %c0_27, %c0_28] : memref<10x16x128xbf16, #tpu.memory_space<vmem>>, vector<4x8x128xbf16>
    %17 = vector.shape_cast %16 : vector<4x8x128xbf16> to vector<32x128xbf16>
    %c0_29 = arith.constant 0 : index
    %c0_30 = arith.constant 0 : index
    %c0_31 = arith.constant 0 : index
    %c0_32 = arith.constant 0 : index
    %18 = vector.load %arg2[%c0_29, %c0_30, %c0_31, %c0_32] : memref<4x9x128x128xbf16, #tpu.memory_space<vmem>>, vector<1x1x128x128xbf16>
    %19 = vector.shape_cast %18 : vector<1x1x128x128xbf16> to vector<128x128xbf16>
    %cst_33 = arith.constant dense<0.000000e+00> : vector<32x128xf32>
    %20 = tpu.matmul %17, %19, %cst_33 {dimension_numbers = #tpu.dot_dimension_numbers<[1], [0], [0], [1], [0, 0, 1, 1], [], []>} : vector<32x128xbf16>, vector<128x128xbf16>, vector<32x128xf32> -> vector<32x128xf32>
    %c0_34 = arith.constant 0 : index
    %c1_35 = arith.constant 1 : index
    %c0_36 = arith.constant 0 : index
    %21 = vector.load %arg7[%c0_34, %c1_35, %c0_36] : memref<10x16x128xbf16, #tpu.memory_space<vmem>>, vector<4x8x128xbf16>
    %22 = vector.shape_cast %21 : vector<4x8x128xbf16> to vector<32x128xbf16>
    %c0_37 = arith.constant 0 : index
    %c1_38 = arith.constant 1 : index
    %c0_39 = arith.constant 0 : index
    %c0_40 = arith.constant 0 : index
    %23 = vector.load %arg2[%c0_37, %c1_38, %c0_39, %c0_40] : memref<4x9x128x128xbf16, #tpu.memory_space<vmem>>, vector<1x1x128x128xbf16>
    %24 = vector.shape_cast %23 : vector<1x1x128x128xbf16> to vector<128x128xbf16>
    %cst_41 = arith.constant dense<0.000000e+00> : vector<32x128xf32>
    %25 = tpu.matmul %22, %24, %cst_41 {dimension_numbers = #tpu.dot_dimension_numbers<[1], [0], [0], [1], [0, 0, 1, 1], [], []>} : vector<32x128xbf16>, vector<128x128xbf16>, vector<32x128xf32> -> vector<32x128xf32>
    %26 = arith.addf %20, %25 : vector<32x128xf32>
    %c0_42 = arith.constant 0 : index
    %c2 = arith.constant 2 : index
    %c0_43 = arith.constant 0 : index
    %27 = vector.load %arg7[%c0_42, %c2, %c0_43] : memref<10x16x128xbf16, #tpu.memory_space<vmem>>, vector<4x8x128xbf16>
    %28 = vector.shape_cast %27 : vector<4x8x128xbf16> to vector<32x128xbf16>
    %c0_44 = arith.constant 0 : index
    %c2_45 = arith.constant 2 : index
    %c0_46 = arith.constant 0 : index
    %c0_47 = arith.constant 0 : index
    %29 = vector.load %arg2[%c0_44, %c2_45, %c0_46, %c0_47] : memref<4x9x128x128xbf16, #tpu.memory_space<vmem>>, vector<1x1x128x128xbf16>
    %30 = vector.shape_cast %29 : vector<1x1x128x128xbf16> to vector<128x128xbf16>
    %cst_48 = arith.constant dense<0.000000e+00> : vector<32x128xf32>
    %31 = tpu.matmul %28, %30, %cst_48 {dimension_numbers = #tpu.dot_dimension_numbers<[1], [0], [0], [1], [0, 0, 1, 1], [], []>} : vector<32x128xbf16>, vector<128x128xbf16>, vector<32x128xf32> -> vector<32x128xf32>
    %32 = arith.addf %26, %31 : vector<32x128xf32>
    %c1_49 = arith.constant 1 : index
    %c0_50 = arith.constant 0 : index
    %c0_51 = arith.constant 0 : index
    %33 = vector.load %arg7[%c1_49, %c0_50, %c0_51] : memref<10x16x128xbf16, #tpu.memory_space<vmem>>, vector<4x8x128xbf16>
    %34 = vector.shape_cast %33 : vector<4x8x128xbf16> to vector<32x128xbf16>
    %c0_52 = arith.constant 0 : index
    %c3 = arith.constant 3 : index
    %c0_53 = arith.constant 0 : index
    %c0_54 = arith.constant 0 : index
    %35 = vector.load %arg2[%c0_52, %c3, %c0_53, %c0_54] : memref<4x9x128x128xbf16, #tpu.memory_space<vmem>>, vector<1x1x128x128xbf16>
    %36 = vector.shape_cast %35 : vector<1x1x128x128xbf16> to vector<128x128xbf16>
    %cst_55 = arith.constant dense<0.000000e+00> : vector<32x128xf32>
    %37 = tpu.matmul %34, %36, %cst_55 {dimension_numbers = #tpu.dot_dimension_numbers<[1], [0], [0], [1], [0, 0, 1, 1], [], []>} : vector<32x128xbf16>, vector<128x128xbf16>, vector<32x128xf32> -> vector<32x128xf32>
    %38 = arith.addf %32, %37 : vector<32x128xf32>
    %c1_56 = arith.constant 1 : index
    %c1_57 = arith.constant 1 : index
    %c0_58 = arith.constant 0 : index
    %39 = vector.load %arg7[%c1_56, %c1_57, %c0_58] : memref<10x16x128xbf16, #tpu.memory_space<vmem>>, vector<4x8x128xbf16>
    %40 = vector.shape_cast %39 : vector<4x8x128xbf16> to vector<32x128xbf16>
    %c0_59 = arith.constant 0 : index
    %c4 = arith.constant 4 : index
    %c0_60 = arith.constant 0 : index
    %c0_61 = arith.constant 0 : index
    %41 = vector.load %arg2[%c0_59, %c4, %c0_60, %c0_61] : memref<4x9x128x128xbf16, #tpu.memory_space<vmem>>, vector<1x1x128x128xbf16>
    %42 = vector.shape_cast %41 : vector<1x1x128x128xbf16> to vector<128x128xbf16>
    %cst_62 = arith.constant dense<0.000000e+00> : vector<32x128xf32>
    %43 = tpu.matmul %40, %42, %cst_62 {dimension_numbers = #tpu.dot_dimension_numbers<[1], [0], [0], [1], [0, 0, 1, 1], [], []>} : vector<32x128xbf16>, vector<128x128xbf16>, vector<32x128xf32> -> vector<32x128xf32>
    %44 = arith.addf %38, %43 : vector<32x128xf32>
    %c1_63 = arith.constant 1 : index
    %c2_64 = arith.constant 2 : index
    %c0_65 = arith.constant 0 : index
    %45 = vector.load %arg7[%c1_63, %c2_64, %c0_65] : memref<10x16x128xbf16, #tpu.memory_space<vmem>>, vector<4x8x128xbf16>
    %46 = vector.shape_cast %45 : vector<4x8x128xbf16> to vector<32x128xbf16>
    %c0_66 = arith.constant 0 : index
    %c5 = arith.constant 5 : index
    %c0_67 = arith.constant 0 : index
    %c0_68 = arith.constant 0 : index
    %47 = vector.load %arg2[%c0_66, %c5, %c0_67, %c0_68] : memref<4x9x128x128xbf16, #tpu.memory_space<vmem>>, vector<1x1x128x128xbf16>
    %48 = vector.shape_cast %47 : vector<1x1x128x128xbf16> to vector<128x128xbf16>
    %cst_69 = arith.constant dense<0.000000e+00> : vector<32x128xf32>
    %49 = tpu.matmul %46, %48, %cst_69 {dimension_numbers = #tpu.dot_dimension_numbers<[1], [0], [0], [1], [0, 0, 1, 1], [], []>} : vector<32x128xbf16>, vector<128x128xbf16>, vector<32x128xf32> -> vector<32x128xf32>
    %50 = arith.addf %44, %49 : vector<32x128xf32>
    %c2_70 = arith.constant 2 : index
    %c0_71 = arith.constant 0 : index
    %c0_72 = arith.constant 0 : index
    %51 = vector.load %arg7[%c2_70, %c0_71, %c0_72] : memref<10x16x128xbf16, #tpu.memory_space<vmem>>, vector<4x8x128xbf16>
    %52 = vector.shape_cast %51 : vector<4x8x128xbf16> to vector<32x128xbf16>
    %c0_73 = arith.constant 0 : index
    %c6 = arith.constant 6 : index
    %c0_74 = arith.constant 0 : index
    %c0_75 = arith.constant 0 : index
    %53 = vector.load %arg2[%c0_73, %c6, %c0_74, %c0_75] : memref<4x9x128x128xbf16, #tpu.memory_space<vmem>>, vector<1x1x128x128xbf16>
    %54 = vector.shape_cast %53 : vector<1x1x128x128xbf16> to vector<128x128xbf16>
    %cst_76 = arith.constant dense<0.000000e+00> : vector<32x128xf32>
    %55 = tpu.matmul %52, %54, %cst_76 {dimension_numbers = #tpu.dot_dimension_numbers<[1], [0], [0], [1], [0, 0, 1, 1], [], []>} : vector<32x128xbf16>, vector<128x128xbf16>, vector<32x128xf32> -> vector<32x128xf32>
    %56 = arith.addf %50, %55 : vector<32x128xf32>
    %c2_77 = arith.constant 2 : index
    %c1_78 = arith.constant 1 : index
    %c0_79 = arith.constant 0 : index
    %57 = vector.load %arg7[%c2_77, %c1_78, %c0_79] : memref<10x16x128xbf16, #tpu.memory_space<vmem>>, vector<4x8x128xbf16>
    %58 = vector.shape_cast %57 : vector<4x8x128xbf16> to vector<32x128xbf16>
    %c0_80 = arith.constant 0 : index
    %c7 = arith.constant 7 : index
    %c0_81 = arith.constant 0 : index
    %c0_82 = arith.constant 0 : index
    %59 = vector.load %arg2[%c0_80, %c7, %c0_81, %c0_82] : memref<4x9x128x128xbf16, #tpu.memory_space<vmem>>, vector<1x1x128x128xbf16>
    %60 = vector.shape_cast %59 : vector<1x1x128x128xbf16> to vector<128x128xbf16>
    %cst_83 = arith.constant dense<0.000000e+00> : vector<32x128xf32>
    %61 = tpu.matmul %58, %60, %cst_83 {dimension_numbers = #tpu.dot_dimension_numbers<[1], [0], [0], [1], [0, 0, 1, 1], [], []>} : vector<32x128xbf16>, vector<128x128xbf16>, vector<32x128xf32> -> vector<32x128xf32>
    %62 = arith.addf %56, %61 : vector<32x128xf32>
    %c2_84 = arith.constant 2 : index
    %c2_85 = arith.constant 2 : index
    %c0_86 = arith.constant 0 : index
    %63 = vector.load %arg7[%c2_84, %c2_85, %c0_86] : memref<10x16x128xbf16, #tpu.memory_space<vmem>>, vector<4x8x128xbf16>
    %64 = vector.shape_cast %63 : vector<4x8x128xbf16> to vector<32x128xbf16>
    %c0_87 = arith.constant 0 : index
    %c8 = arith.constant 8 : index
    %c0_88 = arith.constant 0 : index
    %c0_89 = arith.constant 0 : index
    %65 = vector.load %arg2[%c0_87, %c8, %c0_88, %c0_89] : memref<4x9x128x128xbf16, #tpu.memory_space<vmem>>, vector<1x1x128x128xbf16>
    %66 = vector.shape_cast %65 : vector<1x1x128x128xbf16> to vector<128x128xbf16>
    %cst_90 = arith.constant dense<0.000000e+00> : vector<32x128xf32>
    %67 = tpu.matmul %64, %66, %cst_90 {dimension_numbers = #tpu.dot_dimension_numbers<[1], [0], [0], [1], [0, 0, 1, 1], [], []>} : vector<32x128xbf16>, vector<128x128xbf16>, vector<32x128xf32> -> vector<32x128xf32>
    %68 = arith.addf %62, %67 : vector<32x128xf32>
    %69 = vector.broadcast %15 : vector<1x128xf32> to vector<32x128xf32>
    %70 = arith.addf %68, %69 : vector<32x128xf32>
    %cst_91 = arith.constant 0.000000e+00 : f32
    %71 = vector.broadcast %cst_91 : f32 to vector<32x128xf32>
    %72 = arith.maximumf %70, %71 : vector<32x128xf32>
    %73 = vector.shape_cast %72 : vector<32x128xf32> to vector<4x8x128xf32>
    %74 = arith.truncf %73 : vector<4x8x128xf32> to vector<4x8x128xbf16>
    %c1_92 = arith.constant 1 : index
    %c1_93 = arith.constant 1 : index
    %c0_94 = arith.constant 0 : index
    %75 = vector.load %arg8[%c1_92, %c1_93, %c0_94] : memref<10x16x128xbf16, #tpu.memory_space<vmem>>, vector<4x8x128xbf16>
    tpu.vector_store %arg8[%c1_92, %c1_93, %c0_94], %74 {strides = array<i32>} : memref<10x16x128xbf16, #tpu.memory_space<vmem>>, vector<4x8x128xbf16>,
    %c0_95 = arith.constant 0 : index
    %c0_96 = arith.constant 0 : index
    %c0_97 = arith.constant 0 : index
    %76 = vector.load %arg3[%c0_95, %c0_96, %c0_97] : memref<4x1x128xf32, #tpu.memory_space<vmem>>, vector<1x1x128xf32>
    %77 = vector.shape_cast %76 : vector<1x1x128xf32> to vector<1x128xf32>
    %c4_98 = arith.constant 4 : index
    %c0_99 = arith.constant 0 : index
    %c0_100 = arith.constant 0 : index
    %78 = vector.load %arg7[%c4_98, %c0_99, %c0_100] : memref<10x16x128xbf16, #tpu.memory_space<vmem>>, vector<4x8x128xbf16>
    %79 = vector.shape_cast %78 : vector<4x8x128xbf16> to vector<32x128xbf16>
    %c0_101 = arith.constant 0 : index
    %c0_102 = arith.constant 0 : index
    %c0_103 = arith.constant 0 : index
    %c0_104 = arith.constant 0 : index
    %80 = vector.load %arg2[%c0_101, %c0_102, %c0_103, %c0_104] : memref<4x9x128x128xbf16, #tpu.memory_space<vmem>>, vector<1x1x128x128xbf16>
    %81 = vector.shape_cast %80 : vector<1x1x128x128xbf16> to vector<128x128xbf16>
    %cst_105 = arith.constant dense<0.000000e+00> : vector<32x128xf32>
    %82 = tpu.matmul %79, %81, %cst_105 {dimension_numbers = #tpu.dot_dimension_numbers<[1], [0], [0], [1], [0, 0, 1, 1], [], []>} : vector<32x128xbf16>, vector<128x128xbf16>, vector<32x128xf32> -> vector<32x128xf32>
    %c4_106 = arith.constant 4 : index
    %c1_107 = arith.constant 1 : index
    %c0_108 = arith.constant 0 : index
    %83 = vector.load %arg7[%c4_106, %c1_107, %c0_108] : memref<10x16x128xbf16, #tpu.memory_space<vmem>>, vector<4x8x128xbf16>
    %84 = vector.shape_cast %83 : vector<4x8x128xbf16> to vector<32x128xbf16>
    %c0_109 = arith.constant 0 : index
    %c1_110 = arith.constant 1 : index
    %c0_111 = arith.constant 0 : index
    %c0_112 = arith.constant 0 : index
    %85 = vector.load %arg2[%c0_109, %c1_110, %c0_111, %c0_112] : memref<4x9x128x128xbf16, #tpu.memory_space<vmem>>, vector<1x1x128x128xbf16>
    %86 = vector.shape_cast %85 : vector<1x1x128x128xbf16> to vector<128x128xbf16>
    %cst_113 = arith.constant dense<0.000000e+00> : vector<32x128xf32>
    %87 = tpu.matmul %84, %86, %cst_113 {dimension_numbers = #tpu.dot_dimension_numbers<[1], [0], [0], [1], [0, 0, 1, 1], [], []>} : vector<32x128xbf16>, vector<128x128xbf16>, vector<32x128xf32> -> vector<32x128xf32>
    %88 = arith.addf %82, %87 : vector<32x128xf32>
    %c4_114 = arith.constant 4 : index
    %c2_115 = arith.constant 2 : index
    %c0_116 = arith.constant 0 : index
    %89 = vector.load %arg7[%c4_114, %c2_115, %c0_116] : memref<10x16x128xbf16, #tpu.memory_space<vmem>>, vector<4x8x128xbf16>
    %90 = vector.shape_cast %89 : vector<4x8x128xbf16> to vector<32x128xbf16>
    %c0_117 = arith.constant 0 : index
    %c2_118 = arith.constant 2 : index
    %c0_119 = arith.constant 0 : index
    %c0_120 = arith.constant 0 : index
    %91 = vector.load %arg2[%c0_117, %c2_118, %c0_119, %c0_120] : memref<4x9x128x128xbf16, #tpu.memory_space<vmem>>, vector<1x1x128x128xbf16>
    %92 = vector.shape_cast %91 : vector<1x1x128x128xbf16> to vector<128x128xbf16>
    %cst_121 = arith.constant dense<0.000000e+00> : vector<32x128xf32>
    %93 = tpu.matmul %90, %92, %cst_121 {dimension_numbers = #tpu.dot_dimension_numbers<[1], [0], [0], [1], [0, 0, 1, 1], [], []>} : vector<32x128xbf16>, vector<128x128xbf16>, vector<32x128xf32> -> vector<32x128xf32>
    %94 = arith.addf %88, %93 : vector<32x128xf32>
    %c5_122 = arith.constant 5 : index
    %c0_123 = arith.constant 0 : index
    %c0_124 = arith.constant 0 : index
    %95 = vector.load %arg7[%c5_122, %c0_123, %c0_124] : memref<10x16x128xbf16, #tpu.memory_space<vmem>>, vector<4x8x128xbf16>
    %96 = vector.shape_cast %95 : vector<4x8x128xbf16> to vector<32x128xbf16>
    %c0_125 = arith.constant 0 : index
    %c3_126 = arith.constant 3 : index
    %c0_127 = arith.constant 0 : index
    %c0_128 = arith.constant 0 : index
    %97 = vector.load %arg2[%c0_125, %c3_126, %c0_127, %c0_128] : memref<4x9x128x128xbf16, #tpu.memory_space<vmem>>, vector<1x1x128x128xbf16>
    %98 = vector.shape_cast %97 : vector<1x1x128x128xbf16> to vector<128x128xbf16>
    %cst_129 = arith.constant dense<0.000000e+00> : vector<32x128xf32>
    %99 = tpu.matmul %96, %98, %cst_129 {dimension_numbers = #tpu.dot_dimension_numbers<[1], [0], [0], [1], [0, 0, 1, 1], [], []>} : vector<32x128xbf16>, vector<128x128xbf16>, vector<32x128xf32> -> vector<32x128xf32>
    %100 = arith.addf %94, %99 : vector<32x128xf32>
    %c5_130 = arith.constant 5 : index
    %c1_131 = arith.constant 1 : index
    %c0_132 = arith.constant 0 : index
    %101 = vector.load %arg7[%c5_130, %c1_131, %c0_132] : memref<10x16x128xbf16, #tpu.memory_space<vmem>>, vector<4x8x128xbf16>
    %102 = vector.shape_cast %101 : vector<4x8x128xbf16> to vector<32x128xbf16>
    %c0_133 = arith.constant 0 : index
    %c4_134 = arith.constant 4 : index
    %c0_135 = arith.constant 0 : index
    %c0_136 = arith.constant 0 : index
    %103 = vector.load %arg2[%c0_133, %c4_134, %c0_135, %c0_136] : memref<4x9x128x128xbf16, #tpu.memory_space<vmem>>, vector<1x1x128x128xbf16>
    %104 = vector.shape_cast %103 : vector<1x1x128x128xbf16> to vector<128x128xbf16>
    %cst_137 = arith.constant dense<0.000000e+00> : vector<32x128xf32>
    %105 = tpu.matmul %102, %104, %cst_137 {dimension_numbers = #tpu.dot_dimension_numbers<[1], [0], [0], [1], [0, 0, 1, 1], [], []>} : vector<32x128xbf16>, vector<128x128xbf16>, vector<32x128xf32> -> vector<32x128xf32>
    %106 = arith.addf %100, %105 : vector<32x128xf32>
    %c5_138 = arith.constant 5 : index
    %c2_139 = arith.constant 2 : index
    %c0_140 = arith.constant 0 : index
    %107 = vector.load %arg7[%c5_138, %c2_139, %c0_140] : memref<10x16x128xbf16, #tpu.memory_space<vmem>>, vector<4x8x128xbf16>
    %108 = vector.shape_cast %107 : vector<4x8x128xbf16> to vector<32x128xbf16>
    %c0_141 = arith.constant 0 : index
    %c5_142 = arith.constant 5 : index
    %c0_143 = arith.constant 0 : index
    %c0_144 = arith.constant 0 : index
    %109 = vector.load %arg2[%c0_141, %c5_142, %c0_143, %c0_144] : memref<4x9x128x128xbf16, #tpu.memory_space<vmem>>, vector<1x1x128x128xbf16>
    %110 = vector.shape_cast %109 : vector<1x1x128x128xbf16> to vector<128x128xbf16>
    %cst_145 = arith.constant dense<0.000000e+00> : vector<32x128xf32>
    %111 = tpu.matmul %108, %110, %cst_145 {dimension_numbers = #tpu.dot_dimension_numbers<[1], [0], [0], [1], [0, 0, 1, 1], [], []>} : vector<32x128xbf16>, vector<128x128xbf16>, vector<32x128xf32> -> vector<32x128xf32>
    %112 = arith.addf %106, %111 : vector<32x128xf32>
    %c6_146 = arith.constant 6 : index
    %c0_147 = arith.constant 0 : index
    %c0_148 = arith.constant 0 : index
    %113 = vector.load %arg7[%c6_146, %c0_147, %c0_148] : memref<10x16x128xbf16, #tpu.memory_space<vmem>>, vector<4x8x128xbf16>
    %114 = vector.shape_cast %113 : vector<4x8x128xbf16> to vector<32x128xbf16>
    %c0_149 = arith.constant 0 : index
    %c6_150 = arith.constant 6 : index
    %c0_151 = arith.constant 0 : index
    %c0_152 = arith.constant 0 : index
    %115 = vector.load %arg2[%c0_149, %c6_150, %c0_151, %c0_152] : memref<4x9x128x128xbf16, #tpu.memory_space<vmem>>, vector<1x1x128x128xbf16>
    %116 = vector.shape_cast %115 : vector<1x1x128x128xbf16> to vector<128x128xbf16>
    %cst_153 = arith.constant dense<0.000000e+00> : vector<32x128xf32>
    %117 = tpu.matmul %114, %116, %cst_153 {dimension_numbers = #tpu.dot_dimension_numbers<[1], [0], [0], [1], [0, 0, 1, 1], [], []>} : vector<32x128xbf16>, vector<128x128xbf16>, vector<32x128xf32> -> vector<32x128xf32>
    %118 = arith.addf %112, %117 : vector<32x128xf32>
    %c6_154 = arith.constant 6 : index
    %c1_155 = arith.constant 1 : index
    %c0_156 = arith.constant 0 : index
    %119 = vector.load %arg7[%c6_154, %c1_155, %c0_156] : memref<10x16x128xbf16, #tpu.memory_space<vmem>>, vector<4x8x128xbf16>
    %120 = vector.shape_cast %119 : vector<4x8x128xbf16> to vector<32x128xbf16>
    %c0_157 = arith.constant 0 : index
    %c7_158 = arith.constant 7 : index
    %c0_159 = arith.constant 0 : index
    %c0_160 = arith.constant 0 : index
    %121 = vector.load %arg2[%c0_157, %c7_158, %c0_159, %c0_160] : memref<4x9x128x128xbf16, #tpu.memory_space<vmem>>, vector<1x1x128x128xbf16>
    %122 = vector.shape_cast %121 : vector<1x1x128x128xbf16> to vector<128x128xbf16>
    %cst_161 = arith.constant dense<0.000000e+00> : vector<32x128xf32>
    %123 = tpu.matmul %120, %122, %cst_161 {dimension_numbers = #tpu.dot_dimension_numbers<[1], [0], [0], [1], [0, 0, 1, 1], [], []>} : vector<32x128xbf16>, vector<128x128xbf16>, vector<32x128xf32> -> vector<32x128xf32>
    %124 = arith.addf %118, %123 : vector<32x128xf32>
    %c6_162 = arith.constant 6 : index
    %c2_163 = arith.constant 2 : index
    %c0_164 = arith.constant 0 : index
    %125 = vector.load %arg7[%c6_162, %c2_163, %c0_164] : memref<10x16x128xbf16, #tpu.memory_space<vmem>>, vector<4x8x128xbf16>
    %126 = vector.shape_cast %125 : vector<4x8x128xbf16> to vector<32x128xbf16>
    %c0_165 = arith.constant 0 : index
    %c8_166 = arith.constant 8 : index
    %c0_167 = arith.constant 0 : index
    %c0_168 = arith.constant 0 : index
    %127 = vector.load %arg2[%c0_165, %c8_166, %c0_167, %c0_168] : memref<4x9x128x128xbf16, #tpu.memory_space<vmem>>, vector<1x1x128x128xbf16>
    %128 = vector.shape_cast %127 : vector<1x1x128x128xbf16> to vector<128x128xbf16>
    %cst_169 = arith.constant dense<0.000000e+00> : vector<32x128xf32>
    %129 = tpu.matmul %126, %128, %cst_169 {dimension_numbers = #tpu.dot_dimension_numbers<[1], [0], [0], [1], [0, 0, 1, 1], [], []>} : vector<32x128xbf16>, vector<128x128xbf16>, vector<32x128xf32> -> vector<32x128xf32>
    %130 = arith.addf %124, %129 : vector<32x128xf32>
    %131 = vector.broadcast %77 : vector<1x128xf32> to vector<32x128xf32>
    %132 = arith.addf %130, %131 : vector<32x128xf32>
    %cst_170 = arith.constant 0.000000e+00 : f32
    %133 = vector.broadcast %cst_170 : f32 to vector<32x128xf32>
    %134 = arith.maximumf %132, %133 : vector<32x128xf32>
    %135 = vector.shape_cast %134 : vector<32x128xf32> to vector<4x8x128xf32>
    %136 = arith.truncf %135 : vector<4x8x128xf32> to vector<4x8x128xbf16>
    %c5_171 = arith.constant 5 : index
    %c1_172 = arith.constant 1 : index
    %c0_173 = arith.constant 0 : index
    %137 = vector.load %arg8[%c5_171, %c1_172, %c0_173] : memref<10x16x128xbf16, #tpu.memory_space<vmem>>, vector<4x8x128xbf16>
    tpu.vector_store %arg8[%c5_171, %c1_172, %c0_173], %136 {strides = array<i32>} : memref<10x16x128xbf16, #tpu.memory_space<vmem>>, vector<4x8x128xbf16>,
    %c1_174 = arith.constant 1 : index
    %c0_175 = arith.constant 0 : index
    %c0_176 = arith.constant 0 : index
    %138 = vector.load %arg3[%c1_174, %c0_175, %c0_176] : memref<4x1x128xf32, #tpu.memory_space<vmem>>, vector<1x1x128xf32>
    %139 = vector.shape_cast %138 : vector<1x1x128xf32> to vector<1x128xf32>
    %c0_177 = arith.constant 0 : index
    %c0_178 = arith.constant 0 : index
    %c0_179 = arith.constant 0 : index
    %140 = vector.load %arg8[%c0_177, %c0_178, %c0_179] : memref<10x16x128xbf16, #tpu.memory_space<vmem>>, vector<4x8x128xbf16>
    %141 = vector.shape_cast %140 : vector<4x8x128xbf16> to vector<32x128xbf16>
    %c1_180 = arith.constant 1 : index
    %c0_181 = arith.constant 0 : index
    %c0_182 = arith.constant 0 : index
    %c0_183 = arith.constant 0 : index
    %142 = vector.load %arg2[%c1_180, %c0_181, %c0_182, %c0_183] : memref<4x9x128x128xbf16, #tpu.memory_space<vmem>>, vector<1x1x128x128xbf16>
    %143 = vector.shape_cast %142 : vector<1x1x128x128xbf16> to vector<128x128xbf16>
    %cst_184 = arith.constant dense<0.000000e+00> : vector<32x128xf32>
    %144 = tpu.matmul %141, %143, %cst_184 {dimension_numbers = #tpu.dot_dimension_numbers<[1], [0], [0], [1], [0, 0, 1, 1], [], []>} : vector<32x128xbf16>, vector<128x128xbf16>, vector<32x128xf32> -> vector<32x128xf32>
    %c0_185 = arith.constant 0 : index
    %c1_186 = arith.constant 1 : index
    %c0_187 = arith.constant 0 : index
    %145 = vector.load %arg8[%c0_185, %c1_186, %c0_187] : memref<10x16x128xbf16, #tpu.memory_space<vmem>>, vector<4x8x128xbf16>
    %146 = vector.shape_cast %145 : vector<4x8x128xbf16> to vector<32x128xbf16>
    %c1_188 = arith.constant 1 : index
    %c1_189 = arith.constant 1 : index
    %c0_190 = arith.constant 0 : index
    %c0_191 = arith.constant 0 : index
    %147 = vector.load %arg2[%c1_188, %c1_189, %c0_190, %c0_191] : memref<4x9x128x128xbf16, #tpu.memory_space<vmem>>, vector<1x1x128x128xbf16>
    %148 = vector.shape_cast %147 : vector<1x1x128x128xbf16> to vector<128x128xbf16>
    %cst_192 = arith.constant dense<0.000000e+00> : vector<32x128xf32>
    %149 = tpu.matmul %146, %148, %cst_192 {dimension_numbers = #tpu.dot_dimension_numbers<[1], [0], [0], [1], [0, 0, 1, 1], [], []>} : vector<32x128xbf16>, vector<128x128xbf16>, vector<32x128xf32> -> vector<32x128xf32>
    %150 = arith.addf %144, %149 : vector<32x128xf32>
    %c0_193 = arith.constant 0 : index
    %c2_194 = arith.constant 2 : index
    %c0_195 = arith.constant 0 : index
    %151 = vector.load %arg8[%c0_193, %c2_194, %c0_195] : memref<10x16x128xbf16, #tpu.memory_space<vmem>>, vector<4x8x128xbf16>
    %152 = vector.shape_cast %151 : vector<4x8x128xbf16> to vector<32x128xbf16>
    %c1_196 = arith.constant 1 : index
    %c2_197 = arith.constant 2 : index
    %c0_198 = arith.constant 0 : index
    %c0_199 = arith.constant 0 : index
    %153 = vector.load %arg2[%c1_196, %c2_197, %c0_198, %c0_199] : memref<4x9x128x128xbf16, #tpu.memory_space<vmem>>, vector<1x1x128x128xbf16>
    %154 = vector.shape_cast %153 : vector<1x1x128x128xbf16> to vector<128x128xbf16>
    %cst_200 = arith.constant dense<0.000000e+00> : vector<32x128xf32>
    %155 = tpu.matmul %152, %154, %cst_200 {dimension_numbers = #tpu.dot_dimension_numbers<[1], [0], [0], [1], [0, 0, 1, 1], [], []>} : vector<32x128xbf16>, vector<128x128xbf16>, vector<32x128xf32> -> vector<32x128xf32>
    %156 = arith.addf %150, %155 : vector<32x128xf32>
    %c1_201 = arith.constant 1 : index
    %c0_202 = arith.constant 0 : index
    %c0_203 = arith.constant 0 : index
    %157 = vector.load %arg8[%c1_201, %c0_202, %c0_203] : memref<10x16x128xbf16, #tpu.memory_space<vmem>>, vector<4x8x128xbf16>
    %158 = vector.shape_cast %157 : vector<4x8x128xbf16> to vector<32x128xbf16>
    %c1_204 = arith.constant 1 : index
    %c3_205 = arith.constant 3 : index
    %c0_206 = arith.constant 0 : index
    %c0_207 = arith.constant 0 : index
    %159 = vector.load %arg2[%c1_204, %c3_205, %c0_206, %c0_207] : memref<4x9x128x128xbf16, #tpu.memory_space<vmem>>, vector<1x1x128x128xbf16>
    %160 = vector.shape_cast %159 : vector<1x1x128x128xbf16> to vector<128x128xbf16>
    %cst_208 = arith.constant dense<0.000000e+00> : vector<32x128xf32>
    %161 = tpu.matmul %158, %160, %cst_208 {dimension_numbers = #tpu.dot_dimension_numbers<[1], [0], [0], [1], [0, 0, 1, 1], [], []>} : vector<32x128xbf16>, vector<128x128xbf16>, vector<32x128xf32> -> vector<32x128xf32>
    %162 = arith.addf %156, %161 : vector<32x128xf32>
    %c1_209 = arith.constant 1 : index
    %c1_210 = arith.constant 1 : index
    %c0_211 = arith.constant 0 : index
    %163 = vector.load %arg8[%c1_209, %c1_210, %c0_211] : memref<10x16x128xbf16, #tpu.memory_space<vmem>>, vector<4x8x128xbf16>
    %164 = vector.shape_cast %163 : vector<4x8x128xbf16> to vector<32x128xbf16>
    %c1_212 = arith.constant 1 : index
    %c4_213 = arith.constant 4 : index
    %c0_214 = arith.constant 0 : index
    %c0_215 = arith.constant 0 : index
    %165 = vector.load %arg2[%c1_212, %c4_213, %c0_214, %c0_215] : memref<4x9x128x128xbf16, #tpu.memory_space<vmem>>, vector<1x1x128x128xbf16>
    %166 = vector.shape_cast %165 : vector<1x1x128x128xbf16> to vector<128x128xbf16>
    %cst_216 = arith.constant dense<0.000000e+00> : vector<32x128xf32>
    %167 = tpu.matmul %164, %166, %cst_216 {dimension_numbers = #tpu.dot_dimension_numbers<[1], [0], [0], [1], [0, 0, 1, 1], [], []>} : vector<32x128xbf16>, vector<128x128xbf16>, vector<32x128xf32> -> vector<32x128xf32>
    %168 = arith.addf %162, %167 : vector<32x128xf32>
    %c1_217 = arith.constant 1 : index
    %c2_218 = arith.constant 2 : index
    %c0_219 = arith.constant 0 : index
    %169 = vector.load %arg8[%c1_217, %c2_218, %c0_219] : memref<10x16x128xbf16, #tpu.memory_space<vmem>>, vector<4x8x128xbf16>
    %170 = vector.shape_cast %169 : vector<4x8x128xbf16> to vector<32x128xbf16>
    %c1_220 = arith.constant 1 : index
    %c5_221 = arith.constant 5 : index
    %c0_222 = arith.constant 0 : index
    %c0_223 = arith.constant 0 : index
    %171 = vector.load %arg2[%c1_220, %c5_221, %c0_222, %c0_223] : memref<4x9x128x128xbf16, #tpu.memory_space<vmem>>, vector<1x1x128x128xbf16>
    %172 = vector.shape_cast %171 : vector<1x1x128x128xbf16> to vector<128x128xbf16>
    %cst_224 = arith.constant dense<0.000000e+00> : vector<32x128xf32>
    %173 = tpu.matmul %170, %172, %cst_224 {dimension_numbers = #tpu.dot_dimension_numbers<[1], [0], [0], [1], [0, 0, 1, 1], [], []>} : vector<32x128xbf16>, vector<128x128xbf16>, vector<32x128xf32> -> vector<32x128xf32>
    %174 = arith.addf %168, %173 : vector<32x128xf32>
    %c2_225 = arith.constant 2 : index
    %c0_226 = arith.constant 0 : index
    %c0_227 = arith.constant 0 : index
    %175 = vector.load %arg8[%c2_225, %c0_226, %c0_227] : memref<10x16x128xbf16, #tpu.memory_space<vmem>>, vector<4x8x128xbf16>
    %176 = vector.shape_cast %175 : vector<4x8x128xbf16> to vector<32x128xbf16>
    %c1_228 = arith.constant 1 : index
    %c6_229 = arith.constant 6 : index
    %c0_230 = arith.constant 0 : index
    %c0_231 = arith.constant 0 : index
    %177 = vector.load %arg2[%c1_228, %c6_229, %c0_230, %c0_231] : memref<4x9x128x128xbf16, #tpu.memory_space<vmem>>, vector<1x1x128x128xbf16>
    %178 = vector.shape_cast %177 : vector<1x1x128x128xbf16> to vector<128x128xbf16>
    %cst_232 = arith.constant dense<0.000000e+00> : vector<32x128xf32>
    %179 = tpu.matmul %176, %178, %cst_232 {dimension_numbers = #tpu.dot_dimension_numbers<[1], [0], [0], [1], [0, 0, 1, 1], [], []>} : vector<32x128xbf16>, vector<128x128xbf16>, vector<32x128xf32> -> vector<32x128xf32>
    %180 = arith.addf %174, %179 : vector<32x128xf32>
    %c2_233 = arith.constant 2 : index
    %c1_234 = arith.constant 1 : index
    %c0_235 = arith.constant 0 : index
    %181 = vector.load %arg8[%c2_233, %c1_234, %c0_235] : memref<10x16x128xbf16, #tpu.memory_space<vmem>>, vector<4x8x128xbf16>
    %182 = vector.shape_cast %181 : vector<4x8x128xbf16> to vector<32x128xbf16>
    %c1_236 = arith.constant 1 : index
    %c7_237 = arith.constant 7 : index
    %c0_238 = arith.constant 0 : index
    %c0_239 = arith.constant 0 : index
    %183 = vector.load %arg2[%c1_236, %c7_237, %c0_238, %c0_239] : memref<4x9x128x128xbf16, #tpu.memory_space<vmem>>, vector<1x1x128x128xbf16>
    %184 = vector.shape_cast %183 : vector<1x1x128x128xbf16> to vector<128x128xbf16>
    %cst_240 = arith.constant dense<0.000000e+00> : vector<32x128xf32>
    %185 = tpu.matmul %182, %184, %cst_240 {dimension_numbers = #tpu.dot_dimension_numbers<[1], [0], [0], [1], [0, 0, 1, 1], [], []>} : vector<32x128xbf16>, vector<128x128xbf16>, vector<32x128xf32> -> vector<32x128xf32>
    %186 = arith.addf %180, %185 : vector<32x128xf32>
    %c2_241 = arith.constant 2 : index
    %c2_242 = arith.constant 2 : index
    %c0_243 = arith.constant 0 : index
    %187 = vector.load %arg8[%c2_241, %c2_242, %c0_243] : memref<10x16x128xbf16, #tpu.memory_space<vmem>>, vector<4x8x128xbf16>
    %188 = vector.shape_cast %187 : vector<4x8x128xbf16> to vector<32x128xbf16>
    %c1_244 = arith.constant 1 : index
    %c8_245 = arith.constant 8 : index
    %c0_246 = arith.constant 0 : index
    %c0_247 = arith.constant 0 : index
    %189 = vector.load %arg2[%c1_244, %c8_245, %c0_246, %c0_247] : memref<4x9x128x128xbf16, #tpu.memory_space<vmem>>, vector<1x1x128x128xbf16>
    %190 = vector.shape_cast %189 : vector<1x1x128x128xbf16> to vector<128x128xbf16>
    %cst_248 = arith.constant dense<0.000000e+00> : vector<32x128xf32>
    %191 = tpu.matmul %188, %190, %cst_248 {dimension_numbers = #tpu.dot_dimension_numbers<[1], [0], [0], [1], [0, 0, 1, 1], [], []>} : vector<32x128xbf16>, vector<128x128xbf16>, vector<32x128xf32> -> vector<32x128xf32>
    %192 = arith.addf %186, %191 : vector<32x128xf32>
    %193 = vector.broadcast %139 : vector<1x128xf32> to vector<32x128xf32>
    %194 = arith.addf %192, %193 : vector<32x128xf32>
    %cst_249 = arith.constant 0.000000e+00 : f32
    %195 = vector.broadcast %cst_249 : f32 to vector<32x128xf32>
    %196 = arith.maximumf %194, %195 : vector<32x128xf32>
    %197 = vector.shape_cast %196 : vector<32x128xf32> to vector<4x8x128xf32>
    %198 = arith.truncf %197 : vector<4x8x128xf32> to vector<4x8x128xbf16>
    %c1_250 = arith.constant 1 : index
    %c1_251 = arith.constant 1 : index
    %c0_252 = arith.constant 0 : index
    %199 = vector.load %arg7[%c1_250, %c1_251, %c0_252] : memref<10x16x128xbf16, #tpu.memory_space<vmem>>, vector<4x8x128xbf16>
    tpu.vector_store %arg7[%c1_250, %c1_251, %c0_252], %198 {strides = array<i32>} : memref<10x16x128xbf16, #tpu.memory_space<vmem>>, vector<4x8x128xbf16>,
    %c1_253 = arith.constant 1 : index
    %c0_254 = arith.constant 0 : index
    %c0_255 = arith.constant 0 : index
    %200 = vector.load %arg3[%c1_253, %c0_254, %c0_255] : memref<4x1x128xf32, #tpu.memory_space<vmem>>, vector<1x1x128xf32>
    %201 = vector.shape_cast %200 : vector<1x1x128xf32> to vector<1x128xf32>
    %c4_256 = arith.constant 4 : index
    %c0_257 = arith.constant 0 : index
    %c0_258 = arith.constant 0 : index
    %202 = vector.load %arg8[%c4_256, %c0_257, %c0_258] : memref<10x16x128xbf16, #tpu.memory_space<vmem>>, vector<4x8x128xbf16>
    %203 = vector.shape_cast %202 : vector<4x8x128xbf16> to vector<32x128xbf16>
    %c1_259 = arith.constant 1 : index
    %c0_260 = arith.constant 0 : index
    %c0_261 = arith.constant 0 : index
    %c0_262 = arith.constant 0 : index
    %204 = vector.load %arg2[%c1_259, %c0_260, %c0_261, %c0_262] : memref<4x9x128x128xbf16, #tpu.memory_space<vmem>>, vector<1x1x128x128xbf16>
    %205 = vector.shape_cast %204 : vector<1x1x128x128xbf16> to vector<128x128xbf16>
    %cst_263 = arith.constant dense<0.000000e+00> : vector<32x128xf32>
    %206 = tpu.matmul %203, %205, %cst_263 {dimension_numbers = #tpu.dot_dimension_numbers<[1], [0], [0], [1], [0, 0, 1, 1], [], []>} : vector<32x128xbf16>, vector<128x128xbf16>, vector<32x128xf32> -> vector<32x128xf32>
    %c4_264 = arith.constant 4 : index
    %c1_265 = arith.constant 1 : index
    %c0_266 = arith.constant 0 : index
    %207 = vector.load %arg8[%c4_264, %c1_265, %c0_266] : memref<10x16x128xbf16, #tpu.memory_space<vmem>>, vector<4x8x128xbf16>
    %208 = vector.shape_cast %207 : vector<4x8x128xbf16> to vector<32x128xbf16>
    %c1_267 = arith.constant 1 : index
    %c1_268 = arith.constant 1 : index
    %c0_269 = arith.constant 0 : index
    %c0_270 = arith.constant 0 : index
    %209 = vector.load %arg2[%c1_267, %c1_268, %c0_269, %c0_270] : memref<4x9x128x128xbf16, #tpu.memory_space<vmem>>, vector<1x1x128x128xbf16>
    %210 = vector.shape_cast %209 : vector<1x1x128x128xbf16> to vector<128x128xbf16>
    %cst_271 = arith.constant dense<0.000000e+00> : vector<32x128xf32>
    %211 = tpu.matmul %208, %210, %cst_271 {dimension_numbers = #tpu.dot_dimension_numbers<[1], [0], [0], [1], [0, 0, 1, 1], [], []>} : vector<32x128xbf16>, vector<128x128xbf16>, vector<32x128xf32> -> vector<32x128xf32>
    %212 = arith.addf %206, %211 : vector<32x128xf32>
    %c4_272 = arith.constant 4 : index
    %c2_273 = arith.constant 2 : index
    %c0_274 = arith.constant 0 : index
    %213 = vector.load %arg8[%c4_272, %c2_273, %c0_274] : memref<10x16x128xbf16, #tpu.memory_space<vmem>>, vector<4x8x128xbf16>
    %214 = vector.shape_cast %213 : vector<4x8x128xbf16> to vector<32x128xbf16>
    %c1_275 = arith.constant 1 : index
    %c2_276 = arith.constant 2 : index
    %c0_277 = arith.constant 0 : index
    %c0_278 = arith.constant 0 : index
    %215 = vector.load %arg2[%c1_275, %c2_276, %c0_277, %c0_278] : memref<4x9x128x128xbf16, #tpu.memory_space<vmem>>, vector<1x1x128x128xbf16>
    %216 = vector.shape_cast %215 : vector<1x1x128x128xbf16> to vector<128x128xbf16>
    %cst_279 = arith.constant dense<0.000000e+00> : vector<32x128xf32>
    %217 = tpu.matmul %214, %216, %cst_279 {dimension_numbers = #tpu.dot_dimension_numbers<[1], [0], [0], [1], [0, 0, 1, 1], [], []>} : vector<32x128xbf16>, vector<128x128xbf16>, vector<32x128xf32> -> vector<32x128xf32>
    %218 = arith.addf %212, %217 : vector<32x128xf32>
    %c5_280 = arith.constant 5 : index
    %c0_281 = arith.constant 0 : index
    %c0_282 = arith.constant 0 : index
    %219 = vector.load %arg8[%c5_280, %c0_281, %c0_282] : memref<10x16x128xbf16, #tpu.memory_space<vmem>>, vector<4x8x128xbf16>
    %220 = vector.shape_cast %219 : vector<4x8x128xbf16> to vector<32x128xbf16>
    %c1_283 = arith.constant 1 : index
    %c3_284 = arith.constant 3 : index
    %c0_285 = arith.constant 0 : index
    %c0_286 = arith.constant 0 : index
    %221 = vector.load %arg2[%c1_283, %c3_284, %c0_285, %c0_286] : memref<4x9x128x128xbf16, #tpu.memory_space<vmem>>, vector<1x1x128x128xbf16>
    %222 = vector.shape_cast %221 : vector<1x1x128x128xbf16> to vector<128x128xbf16>
    %cst_287 = arith.constant dense<0.000000e+00> : vector<32x128xf32>
    %223 = tpu.matmul %220, %222, %cst_287 {dimension_numbers = #tpu.dot_dimension_numbers<[1], [0], [0], [1], [0, 0, 1, 1], [], []>} : vector<32x128xbf16>, vector<128x128xbf16>, vector<32x128xf32> -> vector<32x128xf32>
    %224 = arith.addf %218, %223 : vector<32x128xf32>
    %c5_288 = arith.constant 5 : index
    %c1_289 = arith.constant 1 : index
    %c0_290 = arith.constant 0 : index
    %225 = vector.load %arg8[%c5_288, %c1_289, %c0_290] : memref<10x16x128xbf16, #tpu.memory_space<vmem>>, vector<4x8x128xbf16>
    %226 = vector.shape_cast %225 : vector<4x8x128xbf16> to vector<32x128xbf16>
    %c1_291 = arith.constant 1 : index
    %c4_292 = arith.constant 4 : index
    %c0_293 = arith.constant 0 : index
    %c0_294 = arith.constant 0 : index
    %227 = vector.load %arg2[%c1_291, %c4_292, %c0_293, %c0_294] : memref<4x9x128x128xbf16, #tpu.memory_space<vmem>>, vector<1x1x128x128xbf16>
    %228 = vector.shape_cast %227 : vector<1x1x128x128xbf16> to vector<128x128xbf16>
    %cst_295 = arith.constant dense<0.000000e+00> : vector<32x128xf32>
    %229 = tpu.matmul %226, %228, %cst_295 {dimension_numbers = #tpu.dot_dimension_numbers<[1], [0], [0], [1], [0, 0, 1, 1], [], []>} : vector<32x128xbf16>, vector<128x128xbf16>, vector<32x128xf32> -> vector<32x128xf32>
    %230 = arith.addf %224, %229 : vector<32x128xf32>
    %c5_296 = arith.constant 5 : index
    %c2_297 = arith.constant 2 : index
    %c0_298 = arith.constant 0 : index
    %231 = vector.load %arg8[%c5_296, %c2_297, %c0_298] : memref<10x16x128xbf16, #tpu.memory_space<vmem>>, vector<4x8x128xbf16>
    %232 = vector.shape_cast %231 : vector<4x8x128xbf16> to vector<32x128xbf16>
    %c1_299 = arith.constant 1 : index
    %c5_300 = arith.constant 5 : index
    %c0_301 = arith.constant 0 : index
    %c0_302 = arith.constant 0 : index
    %233 = vector.load %arg2[%c1_299, %c5_300, %c0_301, %c0_302] : memref<4x9x128x128xbf16, #tpu.memory_space<vmem>>, vector<1x1x128x128xbf16>
    %234 = vector.shape_cast %233 : vector<1x1x128x128xbf16> to vector<128x128xbf16>
    %cst_303 = arith.constant dense<0.000000e+00> : vector<32x128xf32>
    %235 = tpu.matmul %232, %234, %cst_303 {dimension_numbers = #tpu.dot_dimension_numbers<[1], [0], [0], [1], [0, 0, 1, 1], [], []>} : vector<32x128xbf16>, vector<128x128xbf16>, vector<32x128xf32> -> vector<32x128xf32>
    %236 = arith.addf %230, %235 : vector<32x128xf32>
    %c6_304 = arith.constant 6 : index
    %c0_305 = arith.constant 0 : index
    %c0_306 = arith.constant 0 : index
    %237 = vector.load %arg8[%c6_304, %c0_305, %c0_306] : memref<10x16x128xbf16, #tpu.memory_space<vmem>>, vector<4x8x128xbf16>
    %238 = vector.shape_cast %237 : vector<4x8x128xbf16> to vector<32x128xbf16>
    %c1_307 = arith.constant 1 : index
    %c6_308 = arith.constant 6 : index
    %c0_309 = arith.constant 0 : index
    %c0_310 = arith.constant 0 : index
    %239 = vector.load %arg2[%c1_307, %c6_308, %c0_309, %c0_310] : memref<4x9x128x128xbf16, #tpu.memory_space<vmem>>, vector<1x1x128x128xbf16>
    %240 = vector.shape_cast %239 : vector<1x1x128x128xbf16> to vector<128x128xbf16>
    %cst_311 = arith.constant dense<0.000000e+00> : vector<32x128xf32>
    %241 = tpu.matmul %238, %240, %cst_311 {dimension_numbers = #tpu.dot_dimension_numbers<[1], [0], [0], [1], [0, 0, 1, 1], [], []>} : vector<32x128xbf16>, vector<128x128xbf16>, vector<32x128xf32> -> vector<32x128xf32>
    %242 = arith.addf %236, %241 : vector<32x128xf32>
    %c6_312 = arith.constant 6 : index
    %c1_313 = arith.constant 1 : index
    %c0_314 = arith.constant 0 : index
    %243 = vector.load %arg8[%c6_312, %c1_313, %c0_314] : memref<10x16x128xbf16, #tpu.memory_space<vmem>>, vector<4x8x128xbf16>
    %244 = vector.shape_cast %243 : vector<4x8x128xbf16> to vector<32x128xbf16>
    %c1_315 = arith.constant 1 : index
    %c7_316 = arith.constant 7 : index
    %c0_317 = arith.constant 0 : index
    %c0_318 = arith.constant 0 : index
    %245 = vector.load %arg2[%c1_315, %c7_316, %c0_317, %c0_318] : memref<4x9x128x128xbf16, #tpu.memory_space<vmem>>, vector<1x1x128x128xbf16>
    %246 = vector.shape_cast %245 : vector<1x1x128x128xbf16> to vector<128x128xbf16>
    %cst_319 = arith.constant dense<0.000000e+00> : vector<32x128xf32>
    %247 = tpu.matmul %244, %246, %cst_319 {dimension_numbers = #tpu.dot_dimension_numbers<[1], [0], [0], [1], [0, 0, 1, 1], [], []>} : vector<32x128xbf16>, vector<128x128xbf16>, vector<32x128xf32> -> vector<32x128xf32>
    %248 = arith.addf %242, %247 : vector<32x128xf32>
    %c6_320 = arith.constant 6 : index
    %c2_321 = arith.constant 2 : index
    %c0_322 = arith.constant 0 : index
    %249 = vector.load %arg8[%c6_320, %c2_321, %c0_322] : memref<10x16x128xbf16, #tpu.memory_space<vmem>>, vector<4x8x128xbf16>
    %250 = vector.shape_cast %249 : vector<4x8x128xbf16> to vector<32x128xbf16>
    %c1_323 = arith.constant 1 : index
    %c8_324 = arith.constant 8 : index
    %c0_325 = arith.constant 0 : index
    %c0_326 = arith.constant 0 : index
    %251 = vector.load %arg2[%c1_323, %c8_324, %c0_325, %c0_326] : memref<4x9x128x128xbf16, #tpu.memory_space<vmem>>, vector<1x1x128x128xbf16>
    %252 = vector.shape_cast %251 : vector<1x1x128x128xbf16> to vector<128x128xbf16>
    %cst_327 = arith.constant dense<0.000000e+00> : vector<32x128xf32>
    %253 = tpu.matmul %250, %252, %cst_327 {dimension_numbers = #tpu.dot_dimension_numbers<[1], [0], [0], [1], [0, 0, 1, 1], [], []>} : vector<32x128xbf16>, vector<128x128xbf16>, vector<32x128xf32> -> vector<32x128xf32>
    %254 = arith.addf %248, %253 : vector<32x128xf32>
    %255 = vector.broadcast %201 : vector<1x128xf32> to vector<32x128xf32>
    %256 = arith.addf %254, %255 : vector<32x128xf32>
    %cst_328 = arith.constant 0.000000e+00 : f32
    %257 = vector.broadcast %cst_328 : f32 to vector<32x128xf32>
    %258 = arith.maximumf %256, %257 : vector<32x128xf32>
    %259 = vector.shape_cast %258 : vector<32x128xf32> to vector<4x8x128xf32>
    %260 = arith.truncf %259 : vector<4x8x128xf32> to vector<4x8x128xbf16>
    %c5_329 = arith.constant 5 : index
    %c1_330 = arith.constant 1 : index
    %c0_331 = arith.constant 0 : index
    %261 = vector.load %arg7[%c5_329, %c1_330, %c0_331] : memref<10x16x128xbf16, #tpu.memory_space<vmem>>, vector<4x8x128xbf16>
    tpu.vector_store %arg7[%c5_329, %c1_330, %c0_331], %260 {strides = array<i32>} : memref<10x16x128xbf16, #tpu.memory_space<vmem>>, vector<4x8x128xbf16>,
    %c2_332 = arith.constant 2 : index
    %c0_333 = arith.constant 0 : index
    %c0_334 = arith.constant 0 : index
    %262 = vector.load %arg3[%c2_332, %c0_333, %c0_334] : memref<4x1x128xf32, #tpu.memory_space<vmem>>, vector<1x1x128xf32>
    %263 = vector.shape_cast %262 : vector<1x1x128xf32> to vector<1x128xf32>
    %c0_335 = arith.constant 0 : index
    %c0_336 = arith.constant 0 : index
    %c0_337 = arith.constant 0 : index
    %264 = vector.load %arg7[%c0_335, %c0_336, %c0_337] : memref<10x16x128xbf16, #tpu.memory_space<vmem>>, vector<4x8x128xbf16>
    %265 = vector.shape_cast %264 : vector<4x8x128xbf16> to vector<32x128xbf16>
    %c2_338 = arith.constant 2 : index
    %c0_339 = arith.constant 0 : index
    %c0_340 = arith.constant 0 : index
    %c0_341 = arith.constant 0 : index
    %266 = vector.load %arg2[%c2_338, %c0_339, %c0_340, %c0_341] : memref<4x9x128x128xbf16, #tpu.memory_space<vmem>>, vector<1x1x128x128xbf16>
    %267 = vector.shape_cast %266 : vector<1x1x128x128xbf16> to vector<128x128xbf16>
    %cst_342 = arith.constant dense<0.000000e+00> : vector<32x128xf32>
    %268 = tpu.matmul %265, %267, %cst_342 {dimension_numbers = #tpu.dot_dimension_numbers<[1], [0], [0], [1], [0, 0, 1, 1], [], []>} : vector<32x128xbf16>, vector<128x128xbf16>, vector<32x128xf32> -> vector<32x128xf32>
    %c0_343 = arith.constant 0 : index
    %c1_344 = arith.constant 1 : index
    %c0_345 = arith.constant 0 : index
    %269 = vector.load %arg7[%c0_343, %c1_344, %c0_345] : memref<10x16x128xbf16, #tpu.memory_space<vmem>>, vector<4x8x128xbf16>
    %270 = vector.shape_cast %269 : vector<4x8x128xbf16> to vector<32x128xbf16>
    %c2_346 = arith.constant 2 : index
    %c1_347 = arith.constant 1 : index
    %c0_348 = arith.constant 0 : index
    %c0_349 = arith.constant 0 : index
    %271 = vector.load %arg2[%c2_346, %c1_347, %c0_348, %c0_349] : memref<4x9x128x128xbf16, #tpu.memory_space<vmem>>, vector<1x1x128x128xbf16>
    %272 = vector.shape_cast %271 : vector<1x1x128x128xbf16> to vector<128x128xbf16>
    %cst_350 = arith.constant dense<0.000000e+00> : vector<32x128xf32>
    %273 = tpu.matmul %270, %272, %cst_350 {dimension_numbers = #tpu.dot_dimension_numbers<[1], [0], [0], [1], [0, 0, 1, 1], [], []>} : vector<32x128xbf16>, vector<128x128xbf16>, vector<32x128xf32> -> vector<32x128xf32>
    %274 = arith.addf %268, %273 : vector<32x128xf32>
    %c0_351 = arith.constant 0 : index
    %c2_352 = arith.constant 2 : index
    %c0_353 = arith.constant 0 : index
    %275 = vector.load %arg7[%c0_351, %c2_352, %c0_353] : memref<10x16x128xbf16, #tpu.memory_space<vmem>>, vector<4x8x128xbf16>
    %276 = vector.shape_cast %275 : vector<4x8x128xbf16> to vector<32x128xbf16>
    %c2_354 = arith.constant 2 : index
    %c2_355 = arith.constant 2 : index
    %c0_356 = arith.constant 0 : index
    %c0_357 = arith.constant 0 : index
    %277 = vector.load %arg2[%c2_354, %c2_355, %c0_356, %c0_357] : memref<4x9x128x128xbf16, #tpu.memory_space<vmem>>, vector<1x1x128x128xbf16>
    %278 = vector.shape_cast %277 : vector<1x1x128x128xbf16> to vector<128x128xbf16>
    %cst_358 = arith.constant dense<0.000000e+00> : vector<32x128xf32>
    %279 = tpu.matmul %276, %278, %cst_358 {dimension_numbers = #tpu.dot_dimension_numbers<[1], [0], [0], [1], [0, 0, 1, 1], [], []>} : vector<32x128xbf16>, vector<128x128xbf16>, vector<32x128xf32> -> vector<32x128xf32>
    %280 = arith.addf %274, %279 : vector<32x128xf32>
    %c1_359 = arith.constant 1 : index
    %c0_360 = arith.constant 0 : index
    %c0_361 = arith.constant 0 : index
    %281 = vector.load %arg7[%c1_359, %c0_360, %c0_361] : memref<10x16x128xbf16, #tpu.memory_space<vmem>>, vector<4x8x128xbf16>
    %282 = vector.shape_cast %281 : vector<4x8x128xbf16> to vector<32x128xbf16>
    %c2_362 = arith.constant 2 : index
    %c3_363 = arith.constant 3 : index
    %c0_364 = arith.constant 0 : index
    %c0_365 = arith.constant 0 : index
    %283 = vector.load %arg2[%c2_362, %c3_363, %c0_364, %c0_365] : memref<4x9x128x128xbf16, #tpu.memory_space<vmem>>, vector<1x1x128x128xbf16>
    %284 = vector.shape_cast %283 : vector<1x1x128x128xbf16> to vector<128x128xbf16>
    %cst_366 = arith.constant dense<0.000000e+00> : vector<32x128xf32>
    %285 = tpu.matmul %282, %284, %cst_366 {dimension_numbers = #tpu.dot_dimension_numbers<[1], [0], [0], [1], [0, 0, 1, 1], [], []>} : vector<32x128xbf16>, vector<128x128xbf16>, vector<32x128xf32> -> vector<32x128xf32>
    %286 = arith.addf %280, %285 : vector<32x128xf32>
    %c1_367 = arith.constant 1 : index
    %c1_368 = arith.constant 1 : index
    %c0_369 = arith.constant 0 : index
    %287 = vector.load %arg7[%c1_367, %c1_368, %c0_369] : memref<10x16x128xbf16, #tpu.memory_space<vmem>>, vector<4x8x128xbf16>
    %288 = vector.shape_cast %287 : vector<4x8x128xbf16> to vector<32x128xbf16>
    %c2_370 = arith.constant 2 : index
    %c4_371 = arith.constant 4 : index
    %c0_372 = arith.constant 0 : index
    %c0_373 = arith.constant 0 : index
    %289 = vector.load %arg2[%c2_370, %c4_371, %c0_372, %c0_373] : memref<4x9x128x128xbf16, #tpu.memory_space<vmem>>, vector<1x1x128x128xbf16>
    %290 = vector.shape_cast %289 : vector<1x1x128x128xbf16> to vector<128x128xbf16>
    %cst_374 = arith.constant dense<0.000000e+00> : vector<32x128xf32>
    %291 = tpu.matmul %288, %290, %cst_374 {dimension_numbers = #tpu.dot_dimension_numbers<[1], [0], [0], [1], [0, 0, 1, 1], [], []>} : vector<32x128xbf16>, vector<128x128xbf16>, vector<32x128xf32> -> vector<32x128xf32>
    %292 = arith.addf %286, %291 : vector<32x128xf32>
    %c1_375 = arith.constant 1 : index
    %c2_376 = arith.constant 2 : index
    %c0_377 = arith.constant 0 : index
    %293 = vector.load %arg7[%c1_375, %c2_376, %c0_377] : memref<10x16x128xbf16, #tpu.memory_space<vmem>>, vector<4x8x128xbf16>
    %294 = vector.shape_cast %293 : vector<4x8x128xbf16> to vector<32x128xbf16>
    %c2_378 = arith.constant 2 : index
    %c5_379 = arith.constant 5 : index
    %c0_380 = arith.constant 0 : index
    %c0_381 = arith.constant 0 : index
    %295 = vector.load %arg2[%c2_378, %c5_379, %c0_380, %c0_381] : memref<4x9x128x128xbf16, #tpu.memory_space<vmem>>, vector<1x1x128x128xbf16>
    %296 = vector.shape_cast %295 : vector<1x1x128x128xbf16> to vector<128x128xbf16>
    %cst_382 = arith.constant dense<0.000000e+00> : vector<32x128xf32>
    %297 = tpu.matmul %294, %296, %cst_382 {dimension_numbers = #tpu.dot_dimension_numbers<[1], [0], [0], [1], [0, 0, 1, 1], [], []>} : vector<32x128xbf16>, vector<128x128xbf16>, vector<32x128xf32> -> vector<32x128xf32>
    %298 = arith.addf %292, %297 : vector<32x128xf32>
    %c2_383 = arith.constant 2 : index
    %c0_384 = arith.constant 0 : index
    %c0_385 = arith.constant 0 : index
    %299 = vector.load %arg7[%c2_383, %c0_384, %c0_385] : memref<10x16x128xbf16, #tpu.memory_space<vmem>>, vector<4x8x128xbf16>
    %300 = vector.shape_cast %299 : vector<4x8x128xbf16> to vector<32x128xbf16>
    %c2_386 = arith.constant 2 : index
    %c6_387 = arith.constant 6 : index
    %c0_388 = arith.constant 0 : index
    %c0_389 = arith.constant 0 : index
    %301 = vector.load %arg2[%c2_386, %c6_387, %c0_388, %c0_389] : memref<4x9x128x128xbf16, #tpu.memory_space<vmem>>, vector<1x1x128x128xbf16>
    %302 = vector.shape_cast %301 : vector<1x1x128x128xbf16> to vector<128x128xbf16>
    %cst_390 = arith.constant dense<0.000000e+00> : vector<32x128xf32>
    %303 = tpu.matmul %300, %302, %cst_390 {dimension_numbers = #tpu.dot_dimension_numbers<[1], [0], [0], [1], [0, 0, 1, 1], [], []>} : vector<32x128xbf16>, vector<128x128xbf16>, vector<32x128xf32> -> vector<32x128xf32>
    %304 = arith.addf %298, %303 : vector<32x128xf32>
    %c2_391 = arith.constant 2 : index
    %c1_392 = arith.constant 1 : index
    %c0_393 = arith.constant 0 : index
    %305 = vector.load %arg7[%c2_391, %c1_392, %c0_393] : memref<10x16x128xbf16, #tpu.memory_space<vmem>>, vector<4x8x128xbf16>
    %306 = vector.shape_cast %305 : vector<4x8x128xbf16> to vector<32x128xbf16>
    %c2_394 = arith.constant 2 : index
    %c7_395 = arith.constant 7 : index
    %c0_396 = arith.constant 0 : index
    %c0_397 = arith.constant 0 : index
    %307 = vector.load %arg2[%c2_394, %c7_395, %c0_396, %c0_397] : memref<4x9x128x128xbf16, #tpu.memory_space<vmem>>, vector<1x1x128x128xbf16>
    %308 = vector.shape_cast %307 : vector<1x1x128x128xbf16> to vector<128x128xbf16>
    %cst_398 = arith.constant dense<0.000000e+00> : vector<32x128xf32>
    %309 = tpu.matmul %306, %308, %cst_398 {dimension_numbers = #tpu.dot_dimension_numbers<[1], [0], [0], [1], [0, 0, 1, 1], [], []>} : vector<32x128xbf16>, vector<128x128xbf16>, vector<32x128xf32> -> vector<32x128xf32>
    %310 = arith.addf %304, %309 : vector<32x128xf32>
    %c2_399 = arith.constant 2 : index
    %c2_400 = arith.constant 2 : index
    %c0_401 = arith.constant 0 : index
    %311 = vector.load %arg7[%c2_399, %c2_400, %c0_401] : memref<10x16x128xbf16, #tpu.memory_space<vmem>>, vector<4x8x128xbf16>
    %312 = vector.shape_cast %311 : vector<4x8x128xbf16> to vector<32x128xbf16>
    %c2_402 = arith.constant 2 : index
    %c8_403 = arith.constant 8 : index
    %c0_404 = arith.constant 0 : index
    %c0_405 = arith.constant 0 : index
    %313 = vector.load %arg2[%c2_402, %c8_403, %c0_404, %c0_405] : memref<4x9x128x128xbf16, #tpu.memory_space<vmem>>, vector<1x1x128x128xbf16>
    %314 = vector.shape_cast %313 : vector<1x1x128x128xbf16> to vector<128x128xbf16>
    %cst_406 = arith.constant dense<0.000000e+00> : vector<32x128xf32>
    %315 = tpu.matmul %312, %314, %cst_406 {dimension_numbers = #tpu.dot_dimension_numbers<[1], [0], [0], [1], [0, 0, 1, 1], [], []>} : vector<32x128xbf16>, vector<128x128xbf16>, vector<32x128xf32> -> vector<32x128xf32>
    %316 = arith.addf %310, %315 : vector<32x128xf32>
    %317 = vector.broadcast %263 : vector<1x128xf32> to vector<32x128xf32>
    %318 = arith.addf %316, %317 : vector<32x128xf32>
    %cst_407 = arith.constant 0.000000e+00 : f32
    %319 = vector.broadcast %cst_407 : f32 to vector<32x128xf32>
    %320 = arith.maximumf %318, %319 : vector<32x128xf32>
    %321 = vector.shape_cast %320 : vector<32x128xf32> to vector<4x8x128xf32>
    %322 = arith.truncf %321 : vector<4x8x128xf32> to vector<4x8x128xbf16>
    %c1_408 = arith.constant 1 : index
    %c1_409 = arith.constant 1 : index
    %c0_410 = arith.constant 0 : index
    %323 = vector.load %arg8[%c1_408, %c1_409, %c0_410] : memref<10x16x128xbf16, #tpu.memory_space<vmem>>, vector<4x8x128xbf16>
    tpu.vector_store %arg8[%c1_408, %c1_409, %c0_410], %322 {strides = array<i32>} : memref<10x16x128xbf16, #tpu.memory_space<vmem>>, vector<4x8x128xbf16>,
    %c2_411 = arith.constant 2 : index
    %c0_412 = arith.constant 0 : index
    %c0_413 = arith.constant 0 : index
    %324 = vector.load %arg3[%c2_411, %c0_412, %c0_413] : memref<4x1x128xf32, #tpu.memory_space<vmem>>, vector<1x1x128xf32>
    %325 = vector.shape_cast %324 : vector<1x1x128xf32> to vector<1x128xf32>
    %c4_414 = arith.constant 4 : index
    %c0_415 = arith.constant 0 : index
    %c0_416 = arith.constant 0 : index
    %326 = vector.load %arg7[%c4_414, %c0_415, %c0_416] : memref<10x16x128xbf16, #tpu.memory_space<vmem>>, vector<4x8x128xbf16>
    %327 = vector.shape_cast %326 : vector<4x8x128xbf16> to vector<32x128xbf16>
    %c2_417 = arith.constant 2 : index
    %c0_418 = arith.constant 0 : index
    %c0_419 = arith.constant 0 : index
    %c0_420 = arith.constant 0 : index
    %328 = vector.load %arg2[%c2_417, %c0_418, %c0_419, %c0_420] : memref<4x9x128x128xbf16, #tpu.memory_space<vmem>>, vector<1x1x128x128xbf16>
    %329 = vector.shape_cast %328 : vector<1x1x128x128xbf16> to vector<128x128xbf16>
    %cst_421 = arith.constant dense<0.000000e+00> : vector<32x128xf32>
    %330 = tpu.matmul %327, %329, %cst_421 {dimension_numbers = #tpu.dot_dimension_numbers<[1], [0], [0], [1], [0, 0, 1, 1], [], []>} : vector<32x128xbf16>, vector<128x128xbf16>, vector<32x128xf32> -> vector<32x128xf32>
    %c4_422 = arith.constant 4 : index
    %c1_423 = arith.constant 1 : index
    %c0_424 = arith.constant 0 : index
    %331 = vector.load %arg7[%c4_422, %c1_423, %c0_424] : memref<10x16x128xbf16, #tpu.memory_space<vmem>>, vector<4x8x128xbf16>
    %332 = vector.shape_cast %331 : vector<4x8x128xbf16> to vector<32x128xbf16>
    %c2_425 = arith.constant 2 : index
    %c1_426 = arith.constant 1 : index
    %c0_427 = arith.constant 0 : index
    %c0_428 = arith.constant 0 : index
    %333 = vector.load %arg2[%c2_425, %c1_426, %c0_427, %c0_428] : memref<4x9x128x128xbf16, #tpu.memory_space<vmem>>, vector<1x1x128x128xbf16>
    %334 = vector.shape_cast %333 : vector<1x1x128x128xbf16> to vector<128x128xbf16>
    %cst_429 = arith.constant dense<0.000000e+00> : vector<32x128xf32>
    %335 = tpu.matmul %332, %334, %cst_429 {dimension_numbers = #tpu.dot_dimension_numbers<[1], [0], [0], [1], [0, 0, 1, 1], [], []>} : vector<32x128xbf16>, vector<128x128xbf16>, vector<32x128xf32> -> vector<32x128xf32>
    %336 = arith.addf %330, %335 : vector<32x128xf32>
    %c4_430 = arith.constant 4 : index
    %c2_431 = arith.constant 2 : index
    %c0_432 = arith.constant 0 : index
    %337 = vector.load %arg7[%c4_430, %c2_431, %c0_432] : memref<10x16x128xbf16, #tpu.memory_space<vmem>>, vector<4x8x128xbf16>
    %338 = vector.shape_cast %337 : vector<4x8x128xbf16> to vector<32x128xbf16>
    %c2_433 = arith.constant 2 : index
    %c2_434 = arith.constant 2 : index
    %c0_435 = arith.constant 0 : index
    %c0_436 = arith.constant 0 : index
    %339 = vector.load %arg2[%c2_433, %c2_434, %c0_435, %c0_436] : memref<4x9x128x128xbf16, #tpu.memory_space<vmem>>, vector<1x1x128x128xbf16>
    %340 = vector.shape_cast %339 : vector<1x1x128x128xbf16> to vector<128x128xbf16>
    %cst_437 = arith.constant dense<0.000000e+00> : vector<32x128xf32>
    %341 = tpu.matmul %338, %340, %cst_437 {dimension_numbers = #tpu.dot_dimension_numbers<[1], [0], [0], [1], [0, 0, 1, 1], [], []>} : vector<32x128xbf16>, vector<128x128xbf16>, vector<32x128xf32> -> vector<32x128xf32>
    %342 = arith.addf %336, %341 : vector<32x128xf32>
    %c5_438 = arith.constant 5 : index
    %c0_439 = arith.constant 0 : index
    %c0_440 = arith.constant 0 : index
    %343 = vector.load %arg7[%c5_438, %c0_439, %c0_440] : memref<10x16x128xbf16, #tpu.memory_space<vmem>>, vector<4x8x128xbf16>
    %344 = vector.shape_cast %343 : vector<4x8x128xbf16> to vector<32x128xbf16>
    %c2_441 = arith.constant 2 : index
    %c3_442 = arith.constant 3 : index
    %c0_443 = arith.constant 0 : index
    %c0_444 = arith.constant 0 : index
    %345 = vector.load %arg2[%c2_441, %c3_442, %c0_443, %c0_444] : memref<4x9x128x128xbf16, #tpu.memory_space<vmem>>, vector<1x1x128x128xbf16>
    %346 = vector.shape_cast %345 : vector<1x1x128x128xbf16> to vector<128x128xbf16>
    %cst_445 = arith.constant dense<0.000000e+00> : vector<32x128xf32>
    %347 = tpu.matmul %344, %346, %cst_445 {dimension_numbers = #tpu.dot_dimension_numbers<[1], [0], [0], [1], [0, 0, 1, 1], [], []>} : vector<32x128xbf16>, vector<128x128xbf16>, vector<32x128xf32> -> vector<32x128xf32>
    %348 = arith.addf %342, %347 : vector<32x128xf32>
    %c5_446 = arith.constant 5 : index
    %c1_447 = arith.constant 1 : index
    %c0_448 = arith.constant 0 : index
    %349 = vector.load %arg7[%c5_446, %c1_447, %c0_448] : memref<10x16x128xbf16, #tpu.memory_space<vmem>>, vector<4x8x128xbf16>
    %350 = vector.shape_cast %349 : vector<4x8x128xbf16> to vector<32x128xbf16>
    %c2_449 = arith.constant 2 : index
    %c4_450 = arith.constant 4 : index
    %c0_451 = arith.constant 0 : index
    %c0_452 = arith.constant 0 : index
    %351 = vector.load %arg2[%c2_449, %c4_450, %c0_451, %c0_452] : memref<4x9x128x128xbf16, #tpu.memory_space<vmem>>, vector<1x1x128x128xbf16>
    %352 = vector.shape_cast %351 : vector<1x1x128x128xbf16> to vector<128x128xbf16>
    %cst_453 = arith.constant dense<0.000000e+00> : vector<32x128xf32>
    %353 = tpu.matmul %350, %352, %cst_453 {dimension_numbers = #tpu.dot_dimension_numbers<[1], [0], [0], [1], [0, 0, 1, 1], [], []>} : vector<32x128xbf16>, vector<128x128xbf16>, vector<32x128xf32> -> vector<32x128xf32>
    %354 = arith.addf %348, %353 : vector<32x128xf32>
    %c5_454 = arith.constant 5 : index
    %c2_455 = arith.constant 2 : index
    %c0_456 = arith.constant 0 : index
    %355 = vector.load %arg7[%c5_454, %c2_455, %c0_456] : memref<10x16x128xbf16, #tpu.memory_space<vmem>>, vector<4x8x128xbf16>
    %356 = vector.shape_cast %355 : vector<4x8x128xbf16> to vector<32x128xbf16>
    %c2_457 = arith.constant 2 : index
    %c5_458 = arith.constant 5 : index
    %c0_459 = arith.constant 0 : index
    %c0_460 = arith.constant 0 : index
    %357 = vector.load %arg2[%c2_457, %c5_458, %c0_459, %c0_460] : memref<4x9x128x128xbf16, #tpu.memory_space<vmem>>, vector<1x1x128x128xbf16>
    %358 = vector.shape_cast %357 : vector<1x1x128x128xbf16> to vector<128x128xbf16>
    %cst_461 = arith.constant dense<0.000000e+00> : vector<32x128xf32>
    %359 = tpu.matmul %356, %358, %cst_461 {dimension_numbers = #tpu.dot_dimension_numbers<[1], [0], [0], [1], [0, 0, 1, 1], [], []>} : vector<32x128xbf16>, vector<128x128xbf16>, vector<32x128xf32> -> vector<32x128xf32>
    %360 = arith.addf %354, %359 : vector<32x128xf32>
    %c6_462 = arith.constant 6 : index
    %c0_463 = arith.constant 0 : index
    %c0_464 = arith.constant 0 : index
    %361 = vector.load %arg7[%c6_462, %c0_463, %c0_464] : memref<10x16x128xbf16, #tpu.memory_space<vmem>>, vector<4x8x128xbf16>
    %362 = vector.shape_cast %361 : vector<4x8x128xbf16> to vector<32x128xbf16>
    %c2_465 = arith.constant 2 : index
    %c6_466 = arith.constant 6 : index
    %c0_467 = arith.constant 0 : index
    %c0_468 = arith.constant 0 : index
    %363 = vector.load %arg2[%c2_465, %c6_466, %c0_467, %c0_468] : memref<4x9x128x128xbf16, #tpu.memory_space<vmem>>, vector<1x1x128x128xbf16>
    %364 = vector.shape_cast %363 : vector<1x1x128x128xbf16> to vector<128x128xbf16>
    %cst_469 = arith.constant dense<0.000000e+00> : vector<32x128xf32>
    %365 = tpu.matmul %362, %364, %cst_469 {dimension_numbers = #tpu.dot_dimension_numbers<[1], [0], [0], [1], [0, 0, 1, 1], [], []>} : vector<32x128xbf16>, vector<128x128xbf16>, vector<32x128xf32> -> vector<32x128xf32>
    %366 = arith.addf %360, %365 : vector<32x128xf32>
    %c6_470 = arith.constant 6 : index
    %c1_471 = arith.constant 1 : index
    %c0_472 = arith.constant 0 : index
    %367 = vector.load %arg7[%c6_470, %c1_471, %c0_472] : memref<10x16x128xbf16, #tpu.memory_space<vmem>>, vector<4x8x128xbf16>
    %368 = vector.shape_cast %367 : vector<4x8x128xbf16> to vector<32x128xbf16>
    %c2_473 = arith.constant 2 : index
    %c7_474 = arith.constant 7 : index
    %c0_475 = arith.constant 0 : index
    %c0_476 = arith.constant 0 : index
    %369 = vector.load %arg2[%c2_473, %c7_474, %c0_475, %c0_476] : memref<4x9x128x128xbf16, #tpu.memory_space<vmem>>, vector<1x1x128x128xbf16>
    %370 = vector.shape_cast %369 : vector<1x1x128x128xbf16> to vector<128x128xbf16>
    %cst_477 = arith.constant dense<0.000000e+00> : vector<32x128xf32>
    %371 = tpu.matmul %368, %370, %cst_477 {dimension_numbers = #tpu.dot_dimension_numbers<[1], [0], [0], [1], [0, 0, 1, 1], [], []>} : vector<32x128xbf16>, vector<128x128xbf16>, vector<32x128xf32> -> vector<32x128xf32>
    %372 = arith.addf %366, %371 : vector<32x128xf32>
    %c6_478 = arith.constant 6 : index
    %c2_479 = arith.constant 2 : index
    %c0_480 = arith.constant 0 : index
    %373 = vector.load %arg7[%c6_478, %c2_479, %c0_480] : memref<10x16x128xbf16, #tpu.memory_space<vmem>>, vector<4x8x128xbf16>
    %374 = vector.shape_cast %373 : vector<4x8x128xbf16> to vector<32x128xbf16>
    %c2_481 = arith.constant 2 : index
    %c8_482 = arith.constant 8 : index
    %c0_483 = arith.constant 0 : index
    %c0_484 = arith.constant 0 : index
    %375 = vector.load %arg2[%c2_481, %c8_482, %c0_483, %c0_484] : memref<4x9x128x128xbf16, #tpu.memory_space<vmem>>, vector<1x1x128x128xbf16>
    %376 = vector.shape_cast %375 : vector<1x1x128x128xbf16> to vector<128x128xbf16>
    %cst_485 = arith.constant dense<0.000000e+00> : vector<32x128xf32>
    %377 = tpu.matmul %374, %376, %cst_485 {dimension_numbers = #tpu.dot_dimension_numbers<[1], [0], [0], [1], [0, 0, 1, 1], [], []>} : vector<32x128xbf16>, vector<128x128xbf16>, vector<32x128xf32> -> vector<32x128xf32>
    %378 = arith.addf %372, %377 : vector<32x128xf32>
    %379 = vector.broadcast %325 : vector<1x128xf32> to vector<32x128xf32>
    %380 = arith.addf %378, %379 : vector<32x128xf32>
    %cst_486 = arith.constant 0.000000e+00 : f32
    %381 = vector.broadcast %cst_486 : f32 to vector<32x128xf32>
    %382 = arith.maximumf %380, %381 : vector<32x128xf32>
    %383 = vector.shape_cast %382 : vector<32x128xf32> to vector<4x8x128xf32>
    %384 = arith.truncf %383 : vector<4x8x128xf32> to vector<4x8x128xbf16>
    %c5_487 = arith.constant 5 : index
    %c1_488 = arith.constant 1 : index
    %c0_489 = arith.constant 0 : index
    %385 = vector.load %arg8[%c5_487, %c1_488, %c0_489] : memref<10x16x128xbf16, #tpu.memory_space<vmem>>, vector<4x8x128xbf16>
    tpu.vector_store %arg8[%c5_487, %c1_488, %c0_489], %384 {strides = array<i32>} : memref<10x16x128xbf16, #tpu.memory_space<vmem>>, vector<4x8x128xbf16>,
    %c3_490 = arith.constant 3 : index
    %c0_491 = arith.constant 0 : index
    %c0_492 = arith.constant 0 : index
    %386 = vector.load %arg3[%c3_490, %c0_491, %c0_492] : memref<4x1x128xf32, #tpu.memory_space<vmem>>, vector<1x1x128xf32>
    %387 = vector.shape_cast %386 : vector<1x1x128xf32> to vector<1x128xf32>
    %c0_493 = arith.constant 0 : index
    %c0_494 = arith.constant 0 : index
    %c0_495 = arith.constant 0 : index
    %388 = vector.load %arg8[%c0_493, %c0_494, %c0_495] : memref<10x16x128xbf16, #tpu.memory_space<vmem>>, vector<4x8x128xbf16>
    %389 = vector.shape_cast %388 : vector<4x8x128xbf16> to vector<32x128xbf16>
    %c3_496 = arith.constant 3 : index
    %c0_497 = arith.constant 0 : index
    %c0_498 = arith.constant 0 : index
    %c0_499 = arith.constant 0 : index
    %390 = vector.load %arg2[%c3_496, %c0_497, %c0_498, %c0_499] : memref<4x9x128x128xbf16, #tpu.memory_space<vmem>>, vector<1x1x128x128xbf16>
    %391 = vector.shape_cast %390 : vector<1x1x128x128xbf16> to vector<128x128xbf16>
    %cst_500 = arith.constant dense<0.000000e+00> : vector<32x128xf32>
    %392 = tpu.matmul %389, %391, %cst_500 {dimension_numbers = #tpu.dot_dimension_numbers<[1], [0], [0], [1], [0, 0, 1, 1], [], []>} : vector<32x128xbf16>, vector<128x128xbf16>, vector<32x128xf32> -> vector<32x128xf32>
    %c0_501 = arith.constant 0 : index
    %c1_502 = arith.constant 1 : index
    %c0_503 = arith.constant 0 : index
    %393 = vector.load %arg8[%c0_501, %c1_502, %c0_503] : memref<10x16x128xbf16, #tpu.memory_space<vmem>>, vector<4x8x128xbf16>
    %394 = vector.shape_cast %393 : vector<4x8x128xbf16> to vector<32x128xbf16>
    %c3_504 = arith.constant 3 : index
    %c1_505 = arith.constant 1 : index
    %c0_506 = arith.constant 0 : index
    %c0_507 = arith.constant 0 : index
    %395 = vector.load %arg2[%c3_504, %c1_505, %c0_506, %c0_507] : memref<4x9x128x128xbf16, #tpu.memory_space<vmem>>, vector<1x1x128x128xbf16>
    %396 = vector.shape_cast %395 : vector<1x1x128x128xbf16> to vector<128x128xbf16>
    %cst_508 = arith.constant dense<0.000000e+00> : vector<32x128xf32>
    %397 = tpu.matmul %394, %396, %cst_508 {dimension_numbers = #tpu.dot_dimension_numbers<[1], [0], [0], [1], [0, 0, 1, 1], [], []>} : vector<32x128xbf16>, vector<128x128xbf16>, vector<32x128xf32> -> vector<32x128xf32>
    %398 = arith.addf %392, %397 : vector<32x128xf32>
    %c0_509 = arith.constant 0 : index
    %c2_510 = arith.constant 2 : index
    %c0_511 = arith.constant 0 : index
    %399 = vector.load %arg8[%c0_509, %c2_510, %c0_511] : memref<10x16x128xbf16, #tpu.memory_space<vmem>>, vector<4x8x128xbf16>
    %400 = vector.shape_cast %399 : vector<4x8x128xbf16> to vector<32x128xbf16>
    %c3_512 = arith.constant 3 : index
    %c2_513 = arith.constant 2 : index
    %c0_514 = arith.constant 0 : index
    %c0_515 = arith.constant 0 : index
    %401 = vector.load %arg2[%c3_512, %c2_513, %c0_514, %c0_515] : memref<4x9x128x128xbf16, #tpu.memory_space<vmem>>, vector<1x1x128x128xbf16>
    %402 = vector.shape_cast %401 : vector<1x1x128x128xbf16> to vector<128x128xbf16>
    %cst_516 = arith.constant dense<0.000000e+00> : vector<32x128xf32>
    %403 = tpu.matmul %400, %402, %cst_516 {dimension_numbers = #tpu.dot_dimension_numbers<[1], [0], [0], [1], [0, 0, 1, 1], [], []>} : vector<32x128xbf16>, vector<128x128xbf16>, vector<32x128xf32> -> vector<32x128xf32>
    %404 = arith.addf %398, %403 : vector<32x128xf32>
    %c1_517 = arith.constant 1 : index
    %c0_518 = arith.constant 0 : index
    %c0_519 = arith.constant 0 : index
    %405 = vector.load %arg8[%c1_517, %c0_518, %c0_519] : memref<10x16x128xbf16, #tpu.memory_space<vmem>>, vector<4x8x128xbf16>
    %406 = vector.shape_cast %405 : vector<4x8x128xbf16> to vector<32x128xbf16>
    %c3_520 = arith.constant 3 : index
    %c3_521 = arith.constant 3 : index
    %c0_522 = arith.constant 0 : index
    %c0_523 = arith.constant 0 : index
    %407 = vector.load %arg2[%c3_520, %c3_521, %c0_522, %c0_523] : memref<4x9x128x128xbf16, #tpu.memory_space<vmem>>, vector<1x1x128x128xbf16>
    %408 = vector.shape_cast %407 : vector<1x1x128x128xbf16> to vector<128x128xbf16>
    %cst_524 = arith.constant dense<0.000000e+00> : vector<32x128xf32>
    %409 = tpu.matmul %406, %408, %cst_524 {dimension_numbers = #tpu.dot_dimension_numbers<[1], [0], [0], [1], [0, 0, 1, 1], [], []>} : vector<32x128xbf16>, vector<128x128xbf16>, vector<32x128xf32> -> vector<32x128xf32>
    %410 = arith.addf %404, %409 : vector<32x128xf32>
    %c1_525 = arith.constant 1 : index
    %c1_526 = arith.constant 1 : index
    %c0_527 = arith.constant 0 : index
    %411 = vector.load %arg8[%c1_525, %c1_526, %c0_527] : memref<10x16x128xbf16, #tpu.memory_space<vmem>>, vector<4x8x128xbf16>
    %412 = vector.shape_cast %411 : vector<4x8x128xbf16> to vector<32x128xbf16>
    %c3_528 = arith.constant 3 : index
    %c4_529 = arith.constant 4 : index
    %c0_530 = arith.constant 0 : index
    %c0_531 = arith.constant 0 : index
    %413 = vector.load %arg2[%c3_528, %c4_529, %c0_530, %c0_531] : memref<4x9x128x128xbf16, #tpu.memory_space<vmem>>, vector<1x1x128x128xbf16>
    %414 = vector.shape_cast %413 : vector<1x1x128x128xbf16> to vector<128x128xbf16>
    %cst_532 = arith.constant dense<0.000000e+00> : vector<32x128xf32>
    %415 = tpu.matmul %412, %414, %cst_532 {dimension_numbers = #tpu.dot_dimension_numbers<[1], [0], [0], [1], [0, 0, 1, 1], [], []>} : vector<32x128xbf16>, vector<128x128xbf16>, vector<32x128xf32> -> vector<32x128xf32>
    %416 = arith.addf %410, %415 : vector<32x128xf32>
    %c1_533 = arith.constant 1 : index
    %c2_534 = arith.constant 2 : index
    %c0_535 = arith.constant 0 : index
    %417 = vector.load %arg8[%c1_533, %c2_534, %c0_535] : memref<10x16x128xbf16, #tpu.memory_space<vmem>>, vector<4x8x128xbf16>
    %418 = vector.shape_cast %417 : vector<4x8x128xbf16> to vector<32x128xbf16>
    %c3_536 = arith.constant 3 : index
    %c5_537 = arith.constant 5 : index
    %c0_538 = arith.constant 0 : index
    %c0_539 = arith.constant 0 : index
    %419 = vector.load %arg2[%c3_536, %c5_537, %c0_538, %c0_539] : memref<4x9x128x128xbf16, #tpu.memory_space<vmem>>, vector<1x1x128x128xbf16>
    %420 = vector.shape_cast %419 : vector<1x1x128x128xbf16> to vector<128x128xbf16>
    %cst_540 = arith.constant dense<0.000000e+00> : vector<32x128xf32>
    %421 = tpu.matmul %418, %420, %cst_540 {dimension_numbers = #tpu.dot_dimension_numbers<[1], [0], [0], [1], [0, 0, 1, 1], [], []>} : vector<32x128xbf16>, vector<128x128xbf16>, vector<32x128xf32> -> vector<32x128xf32>
    %422 = arith.addf %416, %421 : vector<32x128xf32>
    %c2_541 = arith.constant 2 : index
    %c0_542 = arith.constant 0 : index
    %c0_543 = arith.constant 0 : index
    %423 = vector.load %arg8[%c2_541, %c0_542, %c0_543] : memref<10x16x128xbf16, #tpu.memory_space<vmem>>, vector<4x8x128xbf16>
    %424 = vector.shape_cast %423 : vector<4x8x128xbf16> to vector<32x128xbf16>
    %c3_544 = arith.constant 3 : index
    %c6_545 = arith.constant 6 : index
    %c0_546 = arith.constant 0 : index
    %c0_547 = arith.constant 0 : index
    %425 = vector.load %arg2[%c3_544, %c6_545, %c0_546, %c0_547] : memref<4x9x128x128xbf16, #tpu.memory_space<vmem>>, vector<1x1x128x128xbf16>
    %426 = vector.shape_cast %425 : vector<1x1x128x128xbf16> to vector<128x128xbf16>
    %cst_548 = arith.constant dense<0.000000e+00> : vector<32x128xf32>
    %427 = tpu.matmul %424, %426, %cst_548 {dimension_numbers = #tpu.dot_dimension_numbers<[1], [0], [0], [1], [0, 0, 1, 1], [], []>} : vector<32x128xbf16>, vector<128x128xbf16>, vector<32x128xf32> -> vector<32x128xf32>
    %428 = arith.addf %422, %427 : vector<32x128xf32>
    %c2_549 = arith.constant 2 : index
    %c1_550 = arith.constant 1 : index
    %c0_551 = arith.constant 0 : index
    %429 = vector.load %arg8[%c2_549, %c1_550, %c0_551] : memref<10x16x128xbf16, #tpu.memory_space<vmem>>, vector<4x8x128xbf16>
    %430 = vector.shape_cast %429 : vector<4x8x128xbf16> to vector<32x128xbf16>
    %c3_552 = arith.constant 3 : index
    %c7_553 = arith.constant 7 : index
    %c0_554 = arith.constant 0 : index
    %c0_555 = arith.constant 0 : index
    %431 = vector.load %arg2[%c3_552, %c7_553, %c0_554, %c0_555] : memref<4x9x128x128xbf16, #tpu.memory_space<vmem>>, vector<1x1x128x128xbf16>
    %432 = vector.shape_cast %431 : vector<1x1x128x128xbf16> to vector<128x128xbf16>
    %cst_556 = arith.constant dense<0.000000e+00> : vector<32x128xf32>
    %433 = tpu.matmul %430, %432, %cst_556 {dimension_numbers = #tpu.dot_dimension_numbers<[1], [0], [0], [1], [0, 0, 1, 1], [], []>} : vector<32x128xbf16>, vector<128x128xbf16>, vector<32x128xf32> -> vector<32x128xf32>
    %434 = arith.addf %428, %433 : vector<32x128xf32>
    %c2_557 = arith.constant 2 : index
    %c2_558 = arith.constant 2 : index
    %c0_559 = arith.constant 0 : index
    %435 = vector.load %arg8[%c2_557, %c2_558, %c0_559] : memref<10x16x128xbf16, #tpu.memory_space<vmem>>, vector<4x8x128xbf16>
    %436 = vector.shape_cast %435 : vector<4x8x128xbf16> to vector<32x128xbf16>
    %c3_560 = arith.constant 3 : index
    %c8_561 = arith.constant 8 : index
    %c0_562 = arith.constant 0 : index
    %c0_563 = arith.constant 0 : index
    %437 = vector.load %arg2[%c3_560, %c8_561, %c0_562, %c0_563] : memref<4x9x128x128xbf16, #tpu.memory_space<vmem>>, vector<1x1x128x128xbf16>
    %438 = vector.shape_cast %437 : vector<1x1x128x128xbf16> to vector<128x128xbf16>
    %cst_564 = arith.constant dense<0.000000e+00> : vector<32x128xf32>
    %439 = tpu.matmul %436, %438, %cst_564 {dimension_numbers = #tpu.dot_dimension_numbers<[1], [0], [0], [1], [0, 0, 1, 1], [], []>} : vector<32x128xbf16>, vector<128x128xbf16>, vector<32x128xf32> -> vector<32x128xf32>
    %440 = arith.addf %434, %439 : vector<32x128xf32>
    %441 = vector.broadcast %387 : vector<1x128xf32> to vector<32x128xf32>
    %442 = arith.addf %440, %441 : vector<32x128xf32>
    %cst_565 = arith.constant 0.000000e+00 : f32
    %443 = vector.broadcast %cst_565 : f32 to vector<32x128xf32>
    %444 = arith.maximumf %442, %443 : vector<32x128xf32>
    %445 = vector.shape_cast %444 : vector<32x128xf32> to vector<4x8x128xf32>
    %446 = arith.truncf %445 : vector<4x8x128xf32> to vector<4x8x128xbf16>
    %c1_566 = arith.constant 1 : index
    %c1_567 = arith.constant 1 : index
    %c0_568 = arith.constant 0 : index
    %447 = vector.load %arg7[%c1_566, %c1_567, %c0_568] : memref<10x16x128xbf16, #tpu.memory_space<vmem>>, vector<4x8x128xbf16>
    tpu.vector_store %arg7[%c1_566, %c1_567, %c0_568], %446 {strides = array<i32>} : memref<10x16x128xbf16, #tpu.memory_space<vmem>>, vector<4x8x128xbf16>,
    %c3_569 = arith.constant 3 : index
    %c0_570 = arith.constant 0 : index
    %c0_571 = arith.constant 0 : index
    %448 = vector.load %arg3[%c3_569, %c0_570, %c0_571] : memref<4x1x128xf32, #tpu.memory_space<vmem>>, vector<1x1x128xf32>
    %449 = vector.shape_cast %448 : vector<1x1x128xf32> to vector<1x128xf32>
    %c4_572 = arith.constant 4 : index
    %c0_573 = arith.constant 0 : index
    %c0_574 = arith.constant 0 : index
    %450 = vector.load %arg8[%c4_572, %c0_573, %c0_574] : memref<10x16x128xbf16, #tpu.memory_space<vmem>>, vector<4x8x128xbf16>
    %451 = vector.shape_cast %450 : vector<4x8x128xbf16> to vector<32x128xbf16>
    %c3_575 = arith.constant 3 : index
    %c0_576 = arith.constant 0 : index
    %c0_577 = arith.constant 0 : index
    %c0_578 = arith.constant 0 : index
    %452 = vector.load %arg2[%c3_575, %c0_576, %c0_577, %c0_578] : memref<4x9x128x128xbf16, #tpu.memory_space<vmem>>, vector<1x1x128x128xbf16>
    %453 = vector.shape_cast %452 : vector<1x1x128x128xbf16> to vector<128x128xbf16>
    %cst_579 = arith.constant dense<0.000000e+00> : vector<32x128xf32>
    %454 = tpu.matmul %451, %453, %cst_579 {dimension_numbers = #tpu.dot_dimension_numbers<[1], [0], [0], [1], [0, 0, 1, 1], [], []>} : vector<32x128xbf16>, vector<128x128xbf16>, vector<32x128xf32> -> vector<32x128xf32>
    %c4_580 = arith.constant 4 : index
    %c1_581 = arith.constant 1 : index
    %c0_582 = arith.constant 0 : index
    %455 = vector.load %arg8[%c4_580, %c1_581, %c0_582] : memref<10x16x128xbf16, #tpu.memory_space<vmem>>, vector<4x8x128xbf16>
    %456 = vector.shape_cast %455 : vector<4x8x128xbf16> to vector<32x128xbf16>
    %c3_583 = arith.constant 3 : index
    %c1_584 = arith.constant 1 : index
    %c0_585 = arith.constant 0 : index
    %c0_586 = arith.constant 0 : index
    %457 = vector.load %arg2[%c3_583, %c1_584, %c0_585, %c0_586] : memref<4x9x128x128xbf16, #tpu.memory_space<vmem>>, vector<1x1x128x128xbf16>
    %458 = vector.shape_cast %457 : vector<1x1x128x128xbf16> to vector<128x128xbf16>
    %cst_587 = arith.constant dense<0.000000e+00> : vector<32x128xf32>
    %459 = tpu.matmul %456, %458, %cst_587 {dimension_numbers = #tpu.dot_dimension_numbers<[1], [0], [0], [1], [0, 0, 1, 1], [], []>} : vector<32x128xbf16>, vector<128x128xbf16>, vector<32x128xf32> -> vector<32x128xf32>
    %460 = arith.addf %454, %459 : vector<32x128xf32>
    %c4_588 = arith.constant 4 : index
    %c2_589 = arith.constant 2 : index
    %c0_590 = arith.constant 0 : index
    %461 = vector.load %arg8[%c4_588, %c2_589, %c0_590] : memref<10x16x128xbf16, #tpu.memory_space<vmem>>, vector<4x8x128xbf16>
    %462 = vector.shape_cast %461 : vector<4x8x128xbf16> to vector<32x128xbf16>
    %c3_591 = arith.constant 3 : index
    %c2_592 = arith.constant 2 : index
    %c0_593 = arith.constant 0 : index
    %c0_594 = arith.constant 0 : index
    %463 = vector.load %arg2[%c3_591, %c2_592, %c0_593, %c0_594] : memref<4x9x128x128xbf16, #tpu.memory_space<vmem>>, vector<1x1x128x128xbf16>
    %464 = vector.shape_cast %463 : vector<1x1x128x128xbf16> to vector<128x128xbf16>
    %cst_595 = arith.constant dense<0.000000e+00> : vector<32x128xf32>
    %465 = tpu.matmul %462, %464, %cst_595 {dimension_numbers = #tpu.dot_dimension_numbers<[1], [0], [0], [1], [0, 0, 1, 1], [], []>} : vector<32x128xbf16>, vector<128x128xbf16>, vector<32x128xf32> -> vector<32x128xf32>
    %466 = arith.addf %460, %465 : vector<32x128xf32>
    %c5_596 = arith.constant 5 : index
    %c0_597 = arith.constant 0 : index
    %c0_598 = arith.constant 0 : index
    %467 = vector.load %arg8[%c5_596, %c0_597, %c0_598] : memref<10x16x128xbf16, #tpu.memory_space<vmem>>, vector<4x8x128xbf16>
    %468 = vector.shape_cast %467 : vector<4x8x128xbf16> to vector<32x128xbf16>
    %c3_599 = arith.constant 3 : index
    %c3_600 = arith.constant 3 : index
    %c0_601 = arith.constant 0 : index
    %c0_602 = arith.constant 0 : index
    %469 = vector.load %arg2[%c3_599, %c3_600, %c0_601, %c0_602] : memref<4x9x128x128xbf16, #tpu.memory_space<vmem>>, vector<1x1x128x128xbf16>
    %470 = vector.shape_cast %469 : vector<1x1x128x128xbf16> to vector<128x128xbf16>
    %cst_603 = arith.constant dense<0.000000e+00> : vector<32x128xf32>
    %471 = tpu.matmul %468, %470, %cst_603 {dimension_numbers = #tpu.dot_dimension_numbers<[1], [0], [0], [1], [0, 0, 1, 1], [], []>} : vector<32x128xbf16>, vector<128x128xbf16>, vector<32x128xf32> -> vector<32x128xf32>
    %472 = arith.addf %466, %471 : vector<32x128xf32>
    %c5_604 = arith.constant 5 : index
    %c1_605 = arith.constant 1 : index
    %c0_606 = arith.constant 0 : index
    %473 = vector.load %arg8[%c5_604, %c1_605, %c0_606] : memref<10x16x128xbf16, #tpu.memory_space<vmem>>, vector<4x8x128xbf16>
    %474 = vector.shape_cast %473 : vector<4x8x128xbf16> to vector<32x128xbf16>
    %c3_607 = arith.constant 3 : index
    %c4_608 = arith.constant 4 : index
    %c0_609 = arith.constant 0 : index
    %c0_610 = arith.constant 0 : index
    %475 = vector.load %arg2[%c3_607, %c4_608, %c0_609, %c0_610] : memref<4x9x128x128xbf16, #tpu.memory_space<vmem>>, vector<1x1x128x128xbf16>
    %476 = vector.shape_cast %475 : vector<1x1x128x128xbf16> to vector<128x128xbf16>
    %cst_611 = arith.constant dense<0.000000e+00> : vector<32x128xf32>
    %477 = tpu.matmul %474, %476, %cst_611 {dimension_numbers = #tpu.dot_dimension_numbers<[1], [0], [0], [1], [0, 0, 1, 1], [], []>} : vector<32x128xbf16>, vector<128x128xbf16>, vector<32x128xf32> -> vector<32x128xf32>
    %478 = arith.addf %472, %477 : vector<32x128xf32>
    %c5_612 = arith.constant 5 : index
    %c2_613 = arith.constant 2 : index
    %c0_614 = arith.constant 0 : index
    %479 = vector.load %arg8[%c5_612, %c2_613, %c0_614] : memref<10x16x128xbf16, #tpu.memory_space<vmem>>, vector<4x8x128xbf16>
    %480 = vector.shape_cast %479 : vector<4x8x128xbf16> to vector<32x128xbf16>
    %c3_615 = arith.constant 3 : index
    %c5_616 = arith.constant 5 : index
    %c0_617 = arith.constant 0 : index
    %c0_618 = arith.constant 0 : index
    %481 = vector.load %arg2[%c3_615, %c5_616, %c0_617, %c0_618] : memref<4x9x128x128xbf16, #tpu.memory_space<vmem>>, vector<1x1x128x128xbf16>
    %482 = vector.shape_cast %481 : vector<1x1x128x128xbf16> to vector<128x128xbf16>
    %cst_619 = arith.constant dense<0.000000e+00> : vector<32x128xf32>
    %483 = tpu.matmul %480, %482, %cst_619 {dimension_numbers = #tpu.dot_dimension_numbers<[1], [0], [0], [1], [0, 0, 1, 1], [], []>} : vector<32x128xbf16>, vector<128x128xbf16>, vector<32x128xf32> -> vector<32x128xf32>
    %484 = arith.addf %478, %483 : vector<32x128xf32>
    %c6_620 = arith.constant 6 : index
    %c0_621 = arith.constant 0 : index
    %c0_622 = arith.constant 0 : index
    %485 = vector.load %arg8[%c6_620, %c0_621, %c0_622] : memref<10x16x128xbf16, #tpu.memory_space<vmem>>, vector<4x8x128xbf16>
    %486 = vector.shape_cast %485 : vector<4x8x128xbf16> to vector<32x128xbf16>
    %c3_623 = arith.constant 3 : index
    %c6_624 = arith.constant 6 : index
    %c0_625 = arith.constant 0 : index
    %c0_626 = arith.constant 0 : index
    %487 = vector.load %arg2[%c3_623, %c6_624, %c0_625, %c0_626] : memref<4x9x128x128xbf16, #tpu.memory_space<vmem>>, vector<1x1x128x128xbf16>
    %488 = vector.shape_cast %487 : vector<1x1x128x128xbf16> to vector<128x128xbf16>
    %cst_627 = arith.constant dense<0.000000e+00> : vector<32x128xf32>
    %489 = tpu.matmul %486, %488, %cst_627 {dimension_numbers = #tpu.dot_dimension_numbers<[1], [0], [0], [1], [0, 0, 1, 1], [], []>} : vector<32x128xbf16>, vector<128x128xbf16>, vector<32x128xf32> -> vector<32x128xf32>
    %490 = arith.addf %484, %489 : vector<32x128xf32>
    %c6_628 = arith.constant 6 : index
    %c1_629 = arith.constant 1 : index
    %c0_630 = arith.constant 0 : index
    %491 = vector.load %arg8[%c6_628, %c1_629, %c0_630] : memref<10x16x128xbf16, #tpu.memory_space<vmem>>, vector<4x8x128xbf16>
    %492 = vector.shape_cast %491 : vector<4x8x128xbf16> to vector<32x128xbf16>
    %c3_631 = arith.constant 3 : index
    %c7_632 = arith.constant 7 : index
    %c0_633 = arith.constant 0 : index
    %c0_634 = arith.constant 0 : index
    %493 = vector.load %arg2[%c3_631, %c7_632, %c0_633, %c0_634] : memref<4x9x128x128xbf16, #tpu.memory_space<vmem>>, vector<1x1x128x128xbf16>
    %494 = vector.shape_cast %493 : vector<1x1x128x128xbf16> to vector<128x128xbf16>
    %cst_635 = arith.constant dense<0.000000e+00> : vector<32x128xf32>
    %495 = tpu.matmul %492, %494, %cst_635 {dimension_numbers = #tpu.dot_dimension_numbers<[1], [0], [0], [1], [0, 0, 1, 1], [], []>} : vector<32x128xbf16>, vector<128x128xbf16>, vector<32x128xf32> -> vector<32x128xf32>
    %496 = arith.addf %490, %495 : vector<32x128xf32>
    %c6_636 = arith.constant 6 : index
    %c2_637 = arith.constant 2 : index
    %c0_638 = arith.constant 0 : index
    %497 = vector.load %arg8[%c6_636, %c2_637, %c0_638] : memref<10x16x128xbf16, #tpu.memory_space<vmem>>, vector<4x8x128xbf16>
    %498 = vector.shape_cast %497 : vector<4x8x128xbf16> to vector<32x128xbf16>
    %c3_639 = arith.constant 3 : index
    %c8_640 = arith.constant 8 : index
    %c0_641 = arith.constant 0 : index
    %c0_642 = arith.constant 0 : index
    %499 = vector.load %arg2[%c3_639, %c8_640, %c0_641, %c0_642] : memref<4x9x128x128xbf16, #tpu.memory_space<vmem>>, vector<1x1x128x128xbf16>
    %500 = vector.shape_cast %499 : vector<1x1x128x128xbf16> to vector<128x128xbf16>
    %cst_643 = arith.constant dense<0.000000e+00> : vector<32x128xf32>
    %501 = tpu.matmul %498, %500, %cst_643 {dimension_numbers = #tpu.dot_dimension_numbers<[1], [0], [0], [1], [0, 0, 1, 1], [], []>} : vector<32x128xbf16>, vector<128x128xbf16>, vector<32x128xf32> -> vector<32x128xf32>
    %502 = arith.addf %496, %501 : vector<32x128xf32>
    %503 = vector.broadcast %449 : vector<1x128xf32> to vector<32x128xf32>
    %504 = arith.addf %502, %503 : vector<32x128xf32>
    %cst_644 = arith.constant 0.000000e+00 : f32
    %505 = vector.broadcast %cst_644 : f32 to vector<32x128xf32>
    %506 = arith.maximumf %504, %505 : vector<32x128xf32>
    %507 = vector.shape_cast %506 : vector<32x128xf32> to vector<4x8x128xf32>
    %508 = arith.truncf %507 : vector<4x8x128xf32> to vector<4x8x128xbf16>
    %c5_645 = arith.constant 5 : index
    %c1_646 = arith.constant 1 : index
    %c0_647 = arith.constant 0 : index
    %509 = vector.load %arg7[%c5_645, %c1_646, %c0_647] : memref<10x16x128xbf16, #tpu.memory_space<vmem>>, vector<4x8x128xbf16>
    tpu.vector_store %arg7[%c5_645, %c1_646, %c0_647], %508 {strides = array<i32>} : memref<10x16x128xbf16, #tpu.memory_space<vmem>>, vector<4x8x128xbf16>,
    %c0_648 = arith.constant 0 : index
    %c0_649 = arith.constant 0 : index
    %510 = vector.load %arg5[%c0_648, %c0_649] : memref<1x128xf32, #tpu.memory_space<vmem>>, vector<1x128xf32>
    %c0_650 = arith.constant 0 : index
    %c0_651 = arith.constant 0 : index
    %c0_652 = arith.constant 0 : index
    %511 = vector.load %arg7[%c0_650, %c0_651, %c0_652] : memref<10x16x128xbf16, #tpu.memory_space<vmem>>, vector<4x8x128xbf16>
    %512 = vector.shape_cast %511 : vector<4x8x128xbf16> to vector<32x128xbf16>
    %c0_653 = arith.constant 0 : index
    %c0_654 = arith.constant 0 : index
    %c0_655 = arith.constant 0 : index
    %513 = vector.load %arg4[%c0_653, %c0_654, %c0_655] : memref<9x128x128xbf16, #tpu.memory_space<vmem>>, vector<1x128x128xbf16>
    %514 = vector.shape_cast %513 : vector<1x128x128xbf16> to vector<128x128xbf16>
    %cst_656 = arith.constant dense<0.000000e+00> : vector<32x128xf32>
    %515 = tpu.matmul %512, %514, %cst_656 {dimension_numbers = #tpu.dot_dimension_numbers<[1], [0], [0], [1], [0, 0, 1, 1], [], []>} : vector<32x128xbf16>, vector<128x128xbf16>, vector<32x128xf32> -> vector<32x128xf32>
    %c0_657 = arith.constant 0 : index
    %c1_658 = arith.constant 1 : index
    %c0_659 = arith.constant 0 : index
    %516 = vector.load %arg7[%c0_657, %c1_658, %c0_659] : memref<10x16x128xbf16, #tpu.memory_space<vmem>>, vector<4x8x128xbf16>
    %517 = vector.shape_cast %516 : vector<4x8x128xbf16> to vector<32x128xbf16>
    %c1_660 = arith.constant 1 : index
    %c0_661 = arith.constant 0 : index
    %c0_662 = arith.constant 0 : index
    %518 = vector.load %arg4[%c1_660, %c0_661, %c0_662] : memref<9x128x128xbf16, #tpu.memory_space<vmem>>, vector<1x128x128xbf16>
    %519 = vector.shape_cast %518 : vector<1x128x128xbf16> to vector<128x128xbf16>
    %cst_663 = arith.constant dense<0.000000e+00> : vector<32x128xf32>
    %520 = tpu.matmul %517, %519, %cst_663 {dimension_numbers = #tpu.dot_dimension_numbers<[1], [0], [0], [1], [0, 0, 1, 1], [], []>} : vector<32x128xbf16>, vector<128x128xbf16>, vector<32x128xf32> -> vector<32x128xf32>
    %521 = arith.addf %515, %520 : vector<32x128xf32>
    %c0_664 = arith.constant 0 : index
    %c2_665 = arith.constant 2 : index
    %c0_666 = arith.constant 0 : index
    %522 = vector.load %arg7[%c0_664, %c2_665, %c0_666] : memref<10x16x128xbf16, #tpu.memory_space<vmem>>, vector<4x8x128xbf16>
    %523 = vector.shape_cast %522 : vector<4x8x128xbf16> to vector<32x128xbf16>
    %c2_667 = arith.constant 2 : index
    %c0_668 = arith.constant 0 : index
    %c0_669 = arith.constant 0 : index
    %524 = vector.load %arg4[%c2_667, %c0_668, %c0_669] : memref<9x128x128xbf16, #tpu.memory_space<vmem>>, vector<1x128x128xbf16>
    %525 = vector.shape_cast %524 : vector<1x128x128xbf16> to vector<128x128xbf16>
    %cst_670 = arith.constant dense<0.000000e+00> : vector<32x128xf32>
    %526 = tpu.matmul %523, %525, %cst_670 {dimension_numbers = #tpu.dot_dimension_numbers<[1], [0], [0], [1], [0, 0, 1, 1], [], []>} : vector<32x128xbf16>, vector<128x128xbf16>, vector<32x128xf32> -> vector<32x128xf32>
    %527 = arith.addf %521, %526 : vector<32x128xf32>
    %c1_671 = arith.constant 1 : index
    %c0_672 = arith.constant 0 : index
    %c0_673 = arith.constant 0 : index
    %528 = vector.load %arg7[%c1_671, %c0_672, %c0_673] : memref<10x16x128xbf16, #tpu.memory_space<vmem>>, vector<4x8x128xbf16>
    %529 = vector.shape_cast %528 : vector<4x8x128xbf16> to vector<32x128xbf16>
    %c3_674 = arith.constant 3 : index
    %c0_675 = arith.constant 0 : index
    %c0_676 = arith.constant 0 : index
    %530 = vector.load %arg4[%c3_674, %c0_675, %c0_676] : memref<9x128x128xbf16, #tpu.memory_space<vmem>>, vector<1x128x128xbf16>
    %531 = vector.shape_cast %530 : vector<1x128x128xbf16> to vector<128x128xbf16>
    %cst_677 = arith.constant dense<0.000000e+00> : vector<32x128xf32>
    %532 = tpu.matmul %529, %531, %cst_677 {dimension_numbers = #tpu.dot_dimension_numbers<[1], [0], [0], [1], [0, 0, 1, 1], [], []>} : vector<32x128xbf16>, vector<128x128xbf16>, vector<32x128xf32> -> vector<32x128xf32>
    %533 = arith.addf %527, %532 : vector<32x128xf32>
    %c1_678 = arith.constant 1 : index
    %c1_679 = arith.constant 1 : index
    %c0_680 = arith.constant 0 : index
    %534 = vector.load %arg7[%c1_678, %c1_679, %c0_680] : memref<10x16x128xbf16, #tpu.memory_space<vmem>>, vector<4x8x128xbf16>
    %535 = vector.shape_cast %534 : vector<4x8x128xbf16> to vector<32x128xbf16>
    %c4_681 = arith.constant 4 : index
    %c0_682 = arith.constant 0 : index
    %c0_683 = arith.constant 0 : index
    %536 = vector.load %arg4[%c4_681, %c0_682, %c0_683] : memref<9x128x128xbf16, #tpu.memory_space<vmem>>, vector<1x128x128xbf16>
    %537 = vector.shape_cast %536 : vector<1x128x128xbf16> to vector<128x128xbf16>
    %cst_684 = arith.constant dense<0.000000e+00> : vector<32x128xf32>
    %538 = tpu.matmul %535, %537, %cst_684 {dimension_numbers = #tpu.dot_dimension_numbers<[1], [0], [0], [1], [0, 0, 1, 1], [], []>} : vector<32x128xbf16>, vector<128x128xbf16>, vector<32x128xf32> -> vector<32x128xf32>
    %539 = arith.addf %533, %538 : vector<32x128xf32>
    %c1_685 = arith.constant 1 : index
    %c2_686 = arith.constant 2 : index
    %c0_687 = arith.constant 0 : index
    %540 = vector.load %arg7[%c1_685, %c2_686, %c0_687] : memref<10x16x128xbf16, #tpu.memory_space<vmem>>, vector<4x8x128xbf16>
    %541 = vector.shape_cast %540 : vector<4x8x128xbf16> to vector<32x128xbf16>
    %c5_688 = arith.constant 5 : index
    %c0_689 = arith.constant 0 : index
    %c0_690 = arith.constant 0 : index
    %542 = vector.load %arg4[%c5_688, %c0_689, %c0_690] : memref<9x128x128xbf16, #tpu.memory_space<vmem>>, vector<1x128x128xbf16>
    %543 = vector.shape_cast %542 : vector<1x128x128xbf16> to vector<128x128xbf16>
    %cst_691 = arith.constant dense<0.000000e+00> : vector<32x128xf32>
    %544 = tpu.matmul %541, %543, %cst_691 {dimension_numbers = #tpu.dot_dimension_numbers<[1], [0], [0], [1], [0, 0, 1, 1], [], []>} : vector<32x128xbf16>, vector<128x128xbf16>, vector<32x128xf32> -> vector<32x128xf32>
    %545 = arith.addf %539, %544 : vector<32x128xf32>
    %c2_692 = arith.constant 2 : index
    %c0_693 = arith.constant 0 : index
    %c0_694 = arith.constant 0 : index
    %546 = vector.load %arg7[%c2_692, %c0_693, %c0_694] : memref<10x16x128xbf16, #tpu.memory_space<vmem>>, vector<4x8x128xbf16>
    %547 = vector.shape_cast %546 : vector<4x8x128xbf16> to vector<32x128xbf16>
    %c6_695 = arith.constant 6 : index
    %c0_696 = arith.constant 0 : index
    %c0_697 = arith.constant 0 : index
    %548 = vector.load %arg4[%c6_695, %c0_696, %c0_697] : memref<9x128x128xbf16, #tpu.memory_space<vmem>>, vector<1x128x128xbf16>
    %549 = vector.shape_cast %548 : vector<1x128x128xbf16> to vector<128x128xbf16>
    %cst_698 = arith.constant dense<0.000000e+00> : vector<32x128xf32>
    %550 = tpu.matmul %547, %549, %cst_698 {dimension_numbers = #tpu.dot_dimension_numbers<[1], [0], [0], [1], [0, 0, 1, 1], [], []>} : vector<32x128xbf16>, vector<128x128xbf16>, vector<32x128xf32> -> vector<32x128xf32>
    %551 = arith.addf %545, %550 : vector<32x128xf32>
    %c2_699 = arith.constant 2 : index
    %c1_700 = arith.constant 1 : index
    %c0_701 = arith.constant 0 : index
    %552 = vector.load %arg7[%c2_699, %c1_700, %c0_701] : memref<10x16x128xbf16, #tpu.memory_space<vmem>>, vector<4x8x128xbf16>
    %553 = vector.shape_cast %552 : vector<4x8x128xbf16> to vector<32x128xbf16>
    %c7_702 = arith.constant 7 : index
    %c0_703 = arith.constant 0 : index
    %c0_704 = arith.constant 0 : index
    %554 = vector.load %arg4[%c7_702, %c0_703, %c0_704] : memref<9x128x128xbf16, #tpu.memory_space<vmem>>, vector<1x128x128xbf16>
    %555 = vector.shape_cast %554 : vector<1x128x128xbf16> to vector<128x128xbf16>
    %cst_705 = arith.constant dense<0.000000e+00> : vector<32x128xf32>
    %556 = tpu.matmul %553, %555, %cst_705 {dimension_numbers = #tpu.dot_dimension_numbers<[1], [0], [0], [1], [0, 0, 1, 1], [], []>} : vector<32x128xbf16>, vector<128x128xbf16>, vector<32x128xf32> -> vector<32x128xf32>
    %557 = arith.addf %551, %556 : vector<32x128xf32>
    %c2_706 = arith.constant 2 : index
    %c2_707 = arith.constant 2 : index
    %c0_708 = arith.constant 0 : index
    %558 = vector.load %arg7[%c2_706, %c2_707, %c0_708] : memref<10x16x128xbf16, #tpu.memory_space<vmem>>, vector<4x8x128xbf16>
    %559 = vector.shape_cast %558 : vector<4x8x128xbf16> to vector<32x128xbf16>
    %c8_709 = arith.constant 8 : index
    %c0_710 = arith.constant 0 : index
    %c0_711 = arith.constant 0 : index
    %560 = vector.load %arg4[%c8_709, %c0_710, %c0_711] : memref<9x128x128xbf16, #tpu.memory_space<vmem>>, vector<1x128x128xbf16>
    %561 = vector.shape_cast %560 : vector<1x128x128xbf16> to vector<128x128xbf16>
    %cst_712 = arith.constant dense<0.000000e+00> : vector<32x128xf32>
    %562 = tpu.matmul %559, %561, %cst_712 {dimension_numbers = #tpu.dot_dimension_numbers<[1], [0], [0], [1], [0, 0, 1, 1], [], []>} : vector<32x128xbf16>, vector<128x128xbf16>, vector<32x128xf32> -> vector<32x128xf32>
    %563 = arith.addf %557, %562 : vector<32x128xf32>
    %564 = vector.broadcast %510 : vector<1x128xf32> to vector<32x128xf32>
    %565 = arith.addf %563, %564 : vector<32x128xf32>
    %566 = vector.shape_cast %565 : vector<32x128xf32> to vector<1x32x128xf32>
    %c0_713 = arith.constant 0 : index
    %c0_714 = arith.constant 0 : index
    %c0_715 = arith.constant 0 : index
    %567 = vector.load %arg6[%c0_713, %c0_714, %c0_715] : memref<1x64x128xf32, #tpu.memory_space<vmem>>, vector<1x32x128xf32>
    tpu.vector_store %arg6[%c0_713, %c0_714, %c0_715], %566 {strides = array<i32>} : memref<1x64x128xf32, #tpu.memory_space<vmem>>, vector<1x32x128xf32>,
    %c0_716 = arith.constant 0 : index
    %c0_717 = arith.constant 0 : index
    %568 = vector.load %arg5[%c0_716, %c0_717] : memref<1x128xf32, #tpu.memory_space<vmem>>, vector<1x128xf32>
    %c4_718 = arith.constant 4 : index
    %c0_719 = arith.constant 0 : index
    %c0_720 = arith.constant 0 : index
    %569 = vector.load %arg7[%c4_718, %c0_719, %c0_720] : memref<10x16x128xbf16, #tpu.memory_space<vmem>>, vector<4x8x128xbf16>
    %570 = vector.shape_cast %569 : vector<4x8x128xbf16> to vector<32x128xbf16>
    %c0_721 = arith.constant 0 : index
    %c0_722 = arith.constant 0 : index
    %c0_723 = arith.constant 0 : index
    %571 = vector.load %arg4[%c0_721, %c0_722, %c0_723] : memref<9x128x128xbf16, #tpu.memory_space<vmem>>, vector<1x128x128xbf16>
    %572 = vector.shape_cast %571 : vector<1x128x128xbf16> to vector<128x128xbf16>
    %cst_724 = arith.constant dense<0.000000e+00> : vector<32x128xf32>
    %573 = tpu.matmul %570, %572, %cst_724 {dimension_numbers = #tpu.dot_dimension_numbers<[1], [0], [0], [1], [0, 0, 1, 1], [], []>} : vector<32x128xbf16>, vector<128x128xbf16>, vector<32x128xf32> -> vector<32x128xf32>
    %c4_725 = arith.constant 4 : index
    %c1_726 = arith.constant 1 : index
    %c0_727 = arith.constant 0 : index
    %574 = vector.load %arg7[%c4_725, %c1_726, %c0_727] : memref<10x16x128xbf16, #tpu.memory_space<vmem>>, vector<4x8x128xbf16>
    %575 = vector.shape_cast %574 : vector<4x8x128xbf16> to vector<32x128xbf16>
    %c1_728 = arith.constant 1 : index
    %c0_729 = arith.constant 0 : index
    %c0_730 = arith.constant 0 : index
    %576 = vector.load %arg4[%c1_728, %c0_729, %c0_730] : memref<9x128x128xbf16, #tpu.memory_space<vmem>>, vector<1x128x128xbf16>
    %577 = vector.shape_cast %576 : vector<1x128x128xbf16> to vector<128x128xbf16>
    %cst_731 = arith.constant dense<0.000000e+00> : vector<32x128xf32>
    %578 = tpu.matmul %575, %577, %cst_731 {dimension_numbers = #tpu.dot_dimension_numbers<[1], [0], [0], [1], [0, 0, 1, 1], [], []>} : vector<32x128xbf16>, vector<128x128xbf16>, vector<32x128xf32> -> vector<32x128xf32>
    %579 = arith.addf %573, %578 : vector<32x128xf32>
    %c4_732 = arith.constant 4 : index
    %c2_733 = arith.constant 2 : index
    %c0_734 = arith.constant 0 : index
    %580 = vector.load %arg7[%c4_732, %c2_733, %c0_734] : memref<10x16x128xbf16, #tpu.memory_space<vmem>>, vector<4x8x128xbf16>
    %581 = vector.shape_cast %580 : vector<4x8x128xbf16> to vector<32x128xbf16>
    %c2_735 = arith.constant 2 : index
    %c0_736 = arith.constant 0 : index
    %c0_737 = arith.constant 0 : index
    %582 = vector.load %arg4[%c2_735, %c0_736, %c0_737] : memref<9x128x128xbf16, #tpu.memory_space<vmem>>, vector<1x128x128xbf16>
    %583 = vector.shape_cast %582 : vector<1x128x128xbf16> to vector<128x128xbf16>
    %cst_738 = arith.constant dense<0.000000e+00> : vector<32x128xf32>
    %584 = tpu.matmul %581, %583, %cst_738 {dimension_numbers = #tpu.dot_dimension_numbers<[1], [0], [0], [1], [0, 0, 1, 1], [], []>} : vector<32x128xbf16>, vector<128x128xbf16>, vector<32x128xf32> -> vector<32x128xf32>
    %585 = arith.addf %579, %584 : vector<32x128xf32>
    %c5_739 = arith.constant 5 : index
    %c0_740 = arith.constant 0 : index
    %c0_741 = arith.constant 0 : index
    %586 = vector.load %arg7[%c5_739, %c0_740, %c0_741] : memref<10x16x128xbf16, #tpu.memory_space<vmem>>, vector<4x8x128xbf16>
    %587 = vector.shape_cast %586 : vector<4x8x128xbf16> to vector<32x128xbf16>
    %c3_742 = arith.constant 3 : index
    %c0_743 = arith.constant 0 : index
    %c0_744 = arith.constant 0 : index
    %588 = vector.load %arg4[%c3_742, %c0_743, %c0_744] : memref<9x128x128xbf16, #tpu.memory_space<vmem>>, vector<1x128x128xbf16>
    %589 = vector.shape_cast %588 : vector<1x128x128xbf16> to vector<128x128xbf16>
    %cst_745 = arith.constant dense<0.000000e+00> : vector<32x128xf32>
    %590 = tpu.matmul %587, %589, %cst_745 {dimension_numbers = #tpu.dot_dimension_numbers<[1], [0], [0], [1], [0, 0, 1, 1], [], []>} : vector<32x128xbf16>, vector<128x128xbf16>, vector<32x128xf32> -> vector<32x128xf32>
    %591 = arith.addf %585, %590 : vector<32x128xf32>
    %c5_746 = arith.constant 5 : index
    %c1_747 = arith.constant 1 : index
    %c0_748 = arith.constant 0 : index
    %592 = vector.load %arg7[%c5_746, %c1_747, %c0_748] : memref<10x16x128xbf16, #tpu.memory_space<vmem>>, vector<4x8x128xbf16>
    %593 = vector.shape_cast %592 : vector<4x8x128xbf16> to vector<32x128xbf16>
    %c4_749 = arith.constant 4 : index
    %c0_750 = arith.constant 0 : index
    %c0_751 = arith.constant 0 : index
    %594 = vector.load %arg4[%c4_749, %c0_750, %c0_751] : memref<9x128x128xbf16, #tpu.memory_space<vmem>>, vector<1x128x128xbf16>
    %595 = vector.shape_cast %594 : vector<1x128x128xbf16> to vector<128x128xbf16>
    %cst_752 = arith.constant dense<0.000000e+00> : vector<32x128xf32>
    %596 = tpu.matmul %593, %595, %cst_752 {dimension_numbers = #tpu.dot_dimension_numbers<[1], [0], [0], [1], [0, 0, 1, 1], [], []>} : vector<32x128xbf16>, vector<128x128xbf16>, vector<32x128xf32> -> vector<32x128xf32>
    %597 = arith.addf %591, %596 : vector<32x128xf32>
    %c5_753 = arith.constant 5 : index
    %c2_754 = arith.constant 2 : index
    %c0_755 = arith.constant 0 : index
    %598 = vector.load %arg7[%c5_753, %c2_754, %c0_755] : memref<10x16x128xbf16, #tpu.memory_space<vmem>>, vector<4x8x128xbf16>
    %599 = vector.shape_cast %598 : vector<4x8x128xbf16> to vector<32x128xbf16>
    %c5_756 = arith.constant 5 : index
    %c0_757 = arith.constant 0 : index
    %c0_758 = arith.constant 0 : index
    %600 = vector.load %arg4[%c5_756, %c0_757, %c0_758] : memref<9x128x128xbf16, #tpu.memory_space<vmem>>, vector<1x128x128xbf16>
    %601 = vector.shape_cast %600 : vector<1x128x128xbf16> to vector<128x128xbf16>
    %cst_759 = arith.constant dense<0.000000e+00> : vector<32x128xf32>
    %602 = tpu.matmul %599, %601, %cst_759 {dimension_numbers = #tpu.dot_dimension_numbers<[1], [0], [0], [1], [0, 0, 1, 1], [], []>} : vector<32x128xbf16>, vector<128x128xbf16>, vector<32x128xf32> -> vector<32x128xf32>
    %603 = arith.addf %597, %602 : vector<32x128xf32>
    %c6_760 = arith.constant 6 : index
    %c0_761 = arith.constant 0 : index
    %c0_762 = arith.constant 0 : index
    %604 = vector.load %arg7[%c6_760, %c0_761, %c0_762] : memref<10x16x128xbf16, #tpu.memory_space<vmem>>, vector<4x8x128xbf16>
    %605 = vector.shape_cast %604 : vector<4x8x128xbf16> to vector<32x128xbf16>
    %c6_763 = arith.constant 6 : index
    %c0_764 = arith.constant 0 : index
    %c0_765 = arith.constant 0 : index
    %606 = vector.load %arg4[%c6_763, %c0_764, %c0_765] : memref<9x128x128xbf16, #tpu.memory_space<vmem>>, vector<1x128x128xbf16>
    %607 = vector.shape_cast %606 : vector<1x128x128xbf16> to vector<128x128xbf16>
    %cst_766 = arith.constant dense<0.000000e+00> : vector<32x128xf32>
    %608 = tpu.matmul %605, %607, %cst_766 {dimension_numbers = #tpu.dot_dimension_numbers<[1], [0], [0], [1], [0, 0, 1, 1], [], []>} : vector<32x128xbf16>, vector<128x128xbf16>, vector<32x128xf32> -> vector<32x128xf32>
    %609 = arith.addf %603, %608 : vector<32x128xf32>
    %c6_767 = arith.constant 6 : index
    %c1_768 = arith.constant 1 : index
    %c0_769 = arith.constant 0 : index
    %610 = vector.load %arg7[%c6_767, %c1_768, %c0_769] : memref<10x16x128xbf16, #tpu.memory_space<vmem>>, vector<4x8x128xbf16>
    %611 = vector.shape_cast %610 : vector<4x8x128xbf16> to vector<32x128xbf16>
    %c7_770 = arith.constant 7 : index
    %c0_771 = arith.constant 0 : index
    %c0_772 = arith.constant 0 : index
    %612 = vector.load %arg4[%c7_770, %c0_771, %c0_772] : memref<9x128x128xbf16, #tpu.memory_space<vmem>>, vector<1x128x128xbf16>
    %613 = vector.shape_cast %612 : vector<1x128x128xbf16> to vector<128x128xbf16>
    %cst_773 = arith.constant dense<0.000000e+00> : vector<32x128xf32>
    %614 = tpu.matmul %611, %613, %cst_773 {dimension_numbers = #tpu.dot_dimension_numbers<[1], [0], [0], [1], [0, 0, 1, 1], [], []>} : vector<32x128xbf16>, vector<128x128xbf16>, vector<32x128xf32> -> vector<32x128xf32>
    %615 = arith.addf %609, %614 : vector<32x128xf32>
    %c6_774 = arith.constant 6 : index
    %c2_775 = arith.constant 2 : index
    %c0_776 = arith.constant 0 : index
    %616 = vector.load %arg7[%c6_774, %c2_775, %c0_776] : memref<10x16x128xbf16, #tpu.memory_space<vmem>>, vector<4x8x128xbf16>
    %617 = vector.shape_cast %616 : vector<4x8x128xbf16> to vector<32x128xbf16>
    %c8_777 = arith.constant 8 : index
    %c0_778 = arith.constant 0 : index
    %c0_779 = arith.constant 0 : index
    %618 = vector.load %arg4[%c8_777, %c0_778, %c0_779] : memref<9x128x128xbf16, #tpu.memory_space<vmem>>, vector<1x128x128xbf16>
    %619 = vector.shape_cast %618 : vector<1x128x128xbf16> to vector<128x128xbf16>
    %cst_780 = arith.constant dense<0.000000e+00> : vector<32x128xf32>
    %620 = tpu.matmul %617, %619, %cst_780 {dimension_numbers = #tpu.dot_dimension_numbers<[1], [0], [0], [1], [0, 0, 1, 1], [], []>} : vector<32x128xbf16>, vector<128x128xbf16>, vector<32x128xf32> -> vector<32x128xf32>
    %621 = arith.addf %615, %620 : vector<32x128xf32>
    %622 = vector.broadcast %568 : vector<1x128xf32> to vector<32x128xf32>
    %623 = arith.addf %621, %622 : vector<32x128xf32>
    %624 = vector.shape_cast %623 : vector<32x128xf32> to vector<1x32x128xf32>
    %c0_781 = arith.constant 0 : index
    %c32 = arith.constant 32 : index
    %c0_782 = arith.constant 0 : index
    %625 = vector.load %arg6[%c0_781, %c32, %c0_782] : memref<1x64x128xf32, #tpu.memory_space<vmem>>, vector<1x32x128xf32>
    tpu.vector_store %arg6[%c0_781, %c32, %c0_782], %624 {strides = array<i32>} : memref<1x64x128xf32, #tpu.memory_space<vmem>>, vector<1x32x128xf32>,
    return
  }
  func.func @transform_0(%arg0: i32) -> (i32, i32, i32, i32) {
    %c0_i32 = arith.constant 0 : i32
    %c0_i32_0 = arith.constant 0 : i32
    %c0_i32_1 = arith.constant 0 : i32
    %c0_i32_2 = arith.constant 0 : i32
    return %arg0, %c0_i32, %c0_i32_0, %c0_i32_1 : i32, i32, i32, i32
  }
  func.func @transform_1(%arg0: i32) -> (i32, i32, i32, i32) {
    %c0_i32 = arith.constant 0 : i32
    %c0_i32_0 = arith.constant 0 : i32
    %c0_i32_1 = arith.constant 0 : i32
    %c0_i32_2 = arith.constant 0 : i32
    %c0_i32_3 = arith.constant 0 : i32
    return %c0_i32, %c0_i32_0, %c0_i32_1, %c0_i32_2 : i32, i32, i32, i32
  }
  func.func @transform_2(%arg0: i32) -> (i32, i32, i32) {
    %c0_i32 = arith.constant 0 : i32
    %c0_i32_0 = arith.constant 0 : i32
    %c0_i32_1 = arith.constant 0 : i32
    %c0_i32_2 = arith.constant 0 : i32
    return %c0_i32, %c0_i32_0, %c0_i32_1 : i32, i32, i32
  }
  func.func @transform_3(%arg0: i32) -> (i32, i32, i32) {
    %c0_i32 = arith.constant 0 : i32
    %c0_i32_0 = arith.constant 0 : i32
    %c0_i32_1 = arith.constant 0 : i32
    %c0_i32_2 = arith.constant 0 : i32
    return %c0_i32, %c0_i32_0, %c0_i32_1 : i32, i32, i32
  }
  func.func @transform_4(%arg0: i32) -> (i32, i32) {
    %c0_i32 = arith.constant 0 : i32
    %c0_i32_0 = arith.constant 0 : i32
    %c0_i32_1 = arith.constant 0 : i32
    return %c0_i32, %c0_i32_0 : i32, i32
  }
  func.func @transform_5(%arg0: i32) -> (i32, i32, i32) {
    %c0_i32 = arith.constant 0 : i32
    %c0_i32_0 = arith.constant 0 : i32
    %c0_i32_1 = arith.constant 0 : i32
    return %arg0, %c0_i32, %c0_i32_0 : i32, i32, i32
  }
}

</mosaic_0001>

<bundles_post_ra>
// kernel: tpu_custom_call.1
= control target key start
LH: loop header
LB: loop body
LE: loop exit
PB: predicated region body
PF: predicated region fallthrough
CT: control target
= control target key end

     0   :  { %10 = vsyncpa [#allocation5], 0  ;;  %s23782_s0 = inlined_call_operand.hbm [shape: f32[2,8,8,16], index: 0, kind: input, shape index: {}]   ;;  %s23783_s1 = inlined_call_operand.hbm [shape: bf16[4,9,128,128], index: 1, kind: input, shape index: {}]   ;;  %s23784_s2 = inlined_call_operand.hbm [shape: f32[4,1,128], index: 2, kind: input, shape index: {}]   ;;  %s23785_s3 = inlined_call_operand.hbm [shape: bf16[9,128,128], index: 3, kind: input, shape index: {}]   ;;  %s23786_s4 = inlined_call_operand.hbm [shape: f32[1,128], index: 4, kind: input, shape index: {}]   ;;  %s23787_s5 = inlined_call_operand.hbm [shape: f32[2,64,128], index: 5, kind: output, shape index: {}]  }
   0x1   :  { %12 = vsyncpa [#allocation5 + $0x1], 0 }
   0x2   :  { %13 = vsyncpa [#allocation8], 0 }
   0x3   :  { %14 = vsyncpa [#allocation11], 0 }
   0x4   :  { %15 = vsyncpa [#allocation6], 0 }
   0x5   :  { %17 = vsyncpa [#allocation6 + $0x1], 0  ;;  %s22380_s18 = smov 0   ;;  %s22382_s19 = smov 0  }
   0x6   :  { %s22384_s20 = smov 0   ;;  %s22386_s21 = smov 0  }
   0x7 LB: > { %s22401_s22 = sadd.s32 4294967295, %s22333_s21   ;;  %s16207_s23 = sadd.s32 4294967294, %s22333_s21   ;;  %s22333_s21 = sphi %s22386_s21, %s23822_s21   ;;  %s22329_s20 = sphi %s22384_s20, %s23821_s20   ;;  %s22325_s19 = sphi %s22382_s19, %s23820_s19   ;;  %s22321_s18 = sphi %s22380_s18, %s23819_s18  }
   0x8   : > { %p43_p0 = scmp.ne.s32.totalorder %s22325_s19, %s22321_s18  ;;  %p23788_p1 = scmp.eq.s32.totalorder %s22401_s22, 0 }
   0x9   : > { %p157_p3 = scmp.eq.s32.totalorder %s16207_s23, 1  ;;  %p16208_p5 = scmp.ge.s32.totalorder %s22333_s21, 1 }
   0xa   : > { %p22410_p4 = por %p23788_p1, %p43_p0  ;;  %p164_p7 = scmp.lt.s32.totalorder %s22333_s21, 3 }
   0xb   : > { %p22415_p6 = por %p157_p3, %p43_p0  ;;  %s22335_s27 = smov [#allocation7]  }
   0xc   : > { %s23791_s24 = scalar_select %p22410_p4, 1, 0 }
   0xd   : > { %s23792_s25 = scalar_select %p22415_p6, 1, 0 }
   0xe   : > { %p22420_p8 = pnand %p16208_p5, %p164_p7  ;;  %s176_s28 = sshll.u32 %s22335_s27, 4  ;;  %s22424_s28 = int_to_ptr.vmem [resolvable:$true] %s176_s28 }
   0xf   : > { %s22336_s30 = smov [#allocation10]   ;;  %s22337_s7 = smov [#allocation9]  }
  0x10   : > { %s23793_s26 = scalar_select %p22420_p8, 1, 0 }
  0x11   : > { %p20781_p9 = pneg %p22420_p8  ;;  %s202_s6 = sshll.u32 %s22336_s30, 4  ;;  %s22435_s6 = int_to_ptr.vmem [resolvable:$true] %s202_s6 }
  0x12   : > { %s22437_s8 = sshll.u32 %s22337_s7, 4  ;;  %s22117_s11 = scalar_lea.hbm %s23783_s1, 36864  ;;  %s190_s8 = int_to_ptr.vmem [resolvable:$true] %s22437_s8 }
  0x13   : > { %p22431_p11 = pnand %p20781_p9, %p23788_p1  ;;  %p22118_p12 = scmp.ne.s32.totalorder %s23783_s1, %s22117_s11 }
  0x14   : > { %p22124_p5 = scmp.lt.u32.totalorder %s22117_s11, %s23783_s1 }
  0x15   : > { %p22447_p13 = pneg %p22431_p11 }
  0x17   : > { %p22120_p0 = pnand %p22447_p13, %p22118_p12 }
  0x19   : > { %p22121_p3 = pneg %p22120_p0 }
  0x1b   : > { %p22126_p7 = pnand %p22124_p5, %p22121_p3 }
  0x1d   : > { %22129 = shalt.err (!%p22126_p7)
}
  0x1e   : > { %s22130_s17 = scalar_lea.vmem %s22424_s28, 36864  ;;  %p22138_p2 = scmp.lt.s32.totalorder %s22424_s28, %s22424_s28 }
  0x1f   : > { %p22131_p9 = scmp.ne.s32.totalorder %s22424_s28, %s22130_s17  ;;  %p22139_p6 = scmp.lt.s32.totalorder %s22130_s17, %s22130_s17 }
  0x21   : > { %p22133_p10 = pnand %p22131_p9, %p22447_p13  ;;  %p22140_p12 = por %p22139_p6, %p22138_p2 }
  0x23   : > { %p22134_p1 = pneg %p22133_p10 }
  0x25   : > { %p22141_p0 = pnand %p22140_p12, %p22134_p1 }
  0x27   : > { %22144 = shalt.err (!%p22141_p0)
}
  0x28   : > { %s22338_s23 = smov 64   ;;  %s22339_s27 = smov 4  }
  0x29   : > { %20784 = dma.hbm_to_vmem [thread:$0]  (!%p22431_p11), %s23783_s1, 36864, %s22424_s28, [#allocation8], %s22338_s23, %s22338_s23, %s22339_s27  }
  0x2a   : > { %s22145_s11 = scalar_lea.hbm %s23785_s3, 9216 }
  0x2b   : > { %p22146_p2 = scmp.ne.s32.totalorder %s23785_s3, %s22145_s11  ;;  %p22152_p10 = scmp.lt.u32.totalorder %s22145_s11, %s23785_s3 }
  0x2d   : > { %p22148_p1 = pnand %p22146_p2, %p22447_p13 }
  0x2f   : > { %p22149_p6 = pneg %p22148_p1 }
  0x31   : > { %p22154_p3 = pnand %p22152_p10, %p22149_p6 }
  0x33   : > { %22157 = shalt.err (!%p22154_p3)
}
  0x34   : > { %s22158_s28 = scalar_lea.vmem %s22435_s6, 9216  ;;  %p22166_p12 = scmp.lt.s32.totalorder %s22435_s6, %s22435_s6 }
  0x35   : > { %p22159_p5 = scmp.ne.s32.totalorder %s22435_s6, %s22158_s28  ;;  %p22167_p0 = scmp.lt.s32.totalorder %s22158_s28, %s22158_s28 }
  0x37   : > { %p22161_p7 = pnand %p22159_p5, %p22447_p13  ;;  %p22168_p2 = por %p22167_p0, %p22166_p12 }
  0x39   : > { %p22162_p9 = pneg %p22161_p7 }
  0x3b   : > { %p22169_p1 = pnand %p22168_p2, %p22162_p9 }
  0x3d   : > { %22172 = shalt.err (!%p22169_p1)
}
  0x3e   : > { %20790 = dma.hbm_to_vmem [thread:$0]  (!%p22431_p11), %s23785_s3, 9216, %s22435_s6, [#allocation11], %s22338_s23, %s22338_s23, %s22339_s27  }
  0x3f   : > { %s22173_s10 = scalar_lea.hbm %s23784_s2, 64 }
  0x40   : > { %p22174_p6 = scmp.ne.s32.totalorder %s23784_s2, %s22173_s10  ;;  %p22180_p5 = scmp.lt.u32.totalorder %s22173_s10, %s23784_s2 }
  0x42   : > { %p22176_p10 = pnand %p22174_p6, %p22447_p13 }
  0x44   : > { %p22177_p3 = pneg %p22176_p10 }
  0x46   : > { %p22182_p7 = pnand %p22180_p5, %p22177_p3 }
  0x48   : > { %22185 = shalt.err (!%p22182_p7)
}
  0x49   : > { %s22186_s16 = scalar_lea.vmem %s190_s8, 64  ;;  %p22194_p2 = scmp.lt.s32.totalorder %s190_s8, %s190_s8 }
  0x4a   : > { %p22187_p9 = scmp.ne.s32.totalorder %s190_s8, %s22186_s16  ;;  %p22195_p1 = scmp.lt.s32.totalorder %s22186_s16, %s22186_s16 }
  0x4c   : > { %p22189_p12 = pnand %p22187_p9, %p22447_p13  ;;  %p22196_p4 = por %p22195_p1, %p22194_p2 }
  0x4e   : > { %p22190_p0 = pneg %p22189_p12 }
  0x50   : > { %p22197_p8 = pnand %p22196_p4, %p22190_p0 }
  0x52   : > { %22200 = shalt.err (!%p22197_p8)
}
  0x53   : > { %s22340_s6 = smov 16   ;;  %s22341_s23 = smov 1  }
  0x54   : > { %20787 = dma.hbm_to_vmem [thread:$0]  (!%p22431_p11), %s23784_s2, 64, %s190_s8, [#allocation8], %s22340_s6, %s22340_s6, %s22341_s23  }
  0x55   : > { %s22342_s17 = smov [#allocation12]   ;;  %s22201_s10 = scalar_lea.hbm %s23786_s4, 16 }
  0x56   : > { %s216_s30 = sshll.u32 %s22342_s17, 4  ;;  %p22202_p4 = scmp.ne.s32.totalorder %s23786_s4, %s22201_s10  ;;  %s217_s30 = int_to_ptr.vmem [resolvable:$true] %s216_s30 }
  0x57   : > { %p22208_p10 = scmp.lt.u32.totalorder %s22201_s10, %s23786_s4 }
  0x58   : > { %p22204_p8 = pnand %p22202_p4, %p22447_p13 }
  0x5a   : > { %p22205_p6 = pneg %p22204_p8 }
  0x5c   : > { %p22210_p3 = pnand %p22208_p10, %p22205_p6 }
  0x5e   : > { %22213 = shalt.err (!%p22210_p3)
}
  0x5f   : > { %s22214_s8 = scalar_lea.vmem %s217_s30, 16  ;;  %s22221_s16 = scalar_lea.vmem %s217_s30, 32 }
  0x60   : > { %p22215_p5 = scmp.ne.s32.totalorder %s217_s30, %s22214_s8  ;;  %p22222_p12 = scmp.lt.s32.totalorder %s217_s30, %s217_s30 }
  0x61   : > { %p22223_p0 = scmp.lt.s32.totalorder %s22221_s16, %s22214_s8 }
  0x62   : > { %p22217_p7 = pnand %p22215_p5, %p22447_p13 }
  0x63   : > { %p22224_p2 = por %p22223_p0, %p22222_p12 }
  0x64   : > { %p22218_p9 = pneg %p22217_p7 }
  0x66   : > { %p22225_p1 = pnand %p22224_p2, %p22218_p9 }
  0x68   : > { %22228 = shalt.err (!%p22225_p1)
}
  0x69   : > { %20793 = dma.hbm_to_vmem [thread:$0]  (!%p22431_p11), %s23786_s4, 16, %s217_s30, [#allocation11]  }
  0x6a   : > { %s22529_s14 = sadd.s32 1, %s22333_s21   ;;  %s30_s27 = sadd.s32 1, %s22329_s20 }
  0x6b   : > { %s27_s29 = ssub.s32 %s22333_s21, %s22529_s14  ;;  %p37_p13 = scmp.ne.s32.totalorder %s22329_s20, %s22325_s19 }
  0x6c   : > { %p28_p4 = scmp.eq.s32.totalorder %s27_s29, 0  ;;  %p38_p8 = scmp.eq.s32.totalorder %s22333_s21, 0 }
  0x6d   : > { %p23796_p6 = scmp.eq.s32.totalorder %s22401_s22, 1  ;;  %p20806_p3 = scmp.lt.s32.totalorder %s22333_s21, 2 }
  0x6e   : > { %s22545_s17 = scalar_select %p28_p4, %s22329_s20, %s30_s27  }
  0x6f   : > { %p22539_p10 = por %p23796_p6, %p37_p13  ;;  %p39_p5 = por %p38_p8, %p37_p13 }
  0x70   : > { %s227_s7 = sand.u32 1, %s22329_s20   ;;  %s17739_s30 = sshll.u32 %s22333_s21, 10 }
  0x71   : > { %s16214_s9 = sshll.u32 %s227_s7, 6  ;;  %s22552_s12 = scalar_lea.hbm %s23782_s0, %s17739_s30 }
  0x72   : > { %s231_s13 = scalar_lea.vmem [#allocation4], %s16214_s9  ;;  %p22556_p11 = pnand %p20806_p3, %p39_p5 }
  0x73   : > { %s238_s15 = sshll.u32 %s231_s13, 4  ;;  %s22560_s16 = scalar_lea.sflag [#allocation5], %s227_s7  ;;  %s22554_s15 = int_to_ptr.vmem [resolvable:$true] %s238_s15 }
  0x74   : > { %s22229_s6 = scalar_lea.hbm %s22552_s12, 1024  ;;  %p22231_p9 = pneg %p22556_p11 }
  0x75   : > { %p22230_p7 = scmp.ne.s32.totalorder %s22552_s12, %s22229_s6  ;;  %s22234_s29 = scalar_lea.hbm %s23782_s0, 2048 }
  0x76   : > { %p22235_p2 = scmp.lt.u32.totalorder %s22552_s12, %s23782_s0  ;;  %p22236_p1 = scmp.lt.u32.totalorder %s22234_s29, %s22229_s6 }
  0x77   : > { %p22232_p12 = pnand %p22231_p9, %p22230_p7  ;;  %p22238_p4 = scmp.lt.u32.totalorder %s22229_s6, %s22552_s12 }
  0x78   : > { %p22237_p13 = por %p22236_p1, %p22235_p2 }
  0x79   : > { %p22233_p0 = pneg %p22232_p12 }
  0x7a   : > { %p22239_p8 = por %p22238_p4, %p22237_p13 }
  0x7c   : > { %p22240_p6 = pnand %p22239_p8, %p22233_p0 }
  0x7e   : > { %22243 = shalt.err (!%p22240_p6)
}
  0x7f   : > { %s22244_s7 = scalar_lea.vmem %s22554_s15, 1024  ;;  %s22343_s10 = smov [#allocation4]  }
  0x80   : > { %p22245_p3 = scmp.ne.s32.totalorder %s22554_s15, %s22244_s7  ;;  %s22249_s11 = sshll.u32 %s22343_s10, 4  ;;  %s22250_s11 = int_to_ptr.vmem [resolvable:$false] %s22249_s11 }
  0x81   : > { %s22251_s13 = scalar_lea.vmem %s22250_s11, 2048  ;;  %p22252_p12 = scmp.lt.s32.totalorder %s22554_s15, %s22250_s11 }
  0x82   : > { %p22247_p5 = pnand %p22245_p3, %p22231_p9  ;;  %p22253_p2 = scmp.lt.s32.totalorder %s22251_s13, %s22244_s7 }
  0x84   : > { %p22248_p7 = pneg %p22247_p5  ;;  %p22254_p1 = por %p22253_p2, %p22252_p12 }
  0x86   : > { %p22255_p13 = pnand %p22254_p1, %p22248_p7 }
  0x88   : > { %22258 = shalt.err (!%p22255_p13)
}
  0x89   : > { %s22344_s6 = smov 128   ;;  %s22345_s23 = smov 8  }
  0x8a   : > { %20797 = dma.hbm_to_vmem [thread:$0]  (!%p22556_p11), %s22552_s12, 1024, %s22554_s15, %s22560_s16, %s22344_s6, %s22344_s6, %s22345_s23  }
  0x8b   : > { %p23799_p9 = scmp.ne.s32.totalorder %s23793_s26, 0 }
  0x8c   : > { %s22591_s27 = sand.u32 (!%p23799_p9), 1, %s22325_s19   ;;  %p23800_p0 = scmp.ne.s32.totalorder (!%p23799_p9), %s23791_s24, 0 }
  0x8d   : > { %250 = sbr.rel (%p23799_p9) target bundleno = 2740 (0xab4), region = 40  ;;  %s16218_s29 = sshll.u32 (!%p23799_p9), %s22591_s27, 6 }
  0x8e   : > { %s253_s9 = scalar_lea.sflag (!%p23799_p9), [#allocation5], %s22591_s27  ;;  %s22597_s30 = scalar_lea.vmem (!%p23799_p9), [#allocation4], %s16218_s29 }
  0x94   : > { %22304 = dma.done.wait (%p23800_p0), %s253_s9, 1024  }
  0x95   : > { %22306 = vsyncadd (%p23800_p0), %s253_s9, 4294966272  ;;  %p23801_p11 = scmp.eq.s32.totalorder %s22401_s22, 0 }
  0x97   : > { %22308 = dma.done.wait (%p23801_p11), [#allocation8], 36928   ;;  %p23802_p4 = pmov %p23801_p11 }
  0x99   : > { %22310 = vsyncadd (%p23802_p4), [#allocation8], 4294930368  ;;  %p23803_p8 = pmov %p23802_p4 }
  0x9a   : > { %p23804_p6 = pmov %p23802_p4 }
  0x9b   : > { %22312 = dma.done.wait (%p23803_p8), [#allocation11], 9232  }
  0x9c   : > { %22314 = vsyncadd (%p23804_p6), [#allocation11], 4294958064  ;;  %v22346_v0 = vmov 0   ;;  %v20857_v1 = vld [vmem:[#allocation7 + $0x40] sm:$0xff]   ;;  %v20859_v3 = vld [vmem:[#allocation7 + $0x48] sm:$0xff]   ;;  %vm449_vm0 = vcmask 126976  }
  0x9d   : > { %300 = vst [vmem:[#allocation2] sm:$0xff] %v22346_v0  ;;  %301 = vst [vmem:[#allocation2 + $0x8] sm:$0xff] %v22346_v0  ;;  %v20858_v2 = vld [vmem:[#allocation7 + $0x40] sm:$0xff]   ;;  %18641 = vmatprep.subr.bf16.mxu0 %v20857_v1  ;;  %v20860_v4 = vld [vmem:[#allocation7 + $0x48] sm:$0xff]   ;;  %vm450_vm1 = vsmask.f32 4354 }
  0x9e   : > { %302 = vst [vmem:[#allocation2 + $0x10] sm:$0xff] %v22346_v0  ;;  %303 = vst [vmem:[#allocation2 + $0x18] sm:$0xff] %v22346_v0  ;;  %18821 = vmatprep.subr.bf16.mxu1 %v20858_v2  ;;  %18642 = vmatpush3.bf16.msra.mxu0 %v20857_v1  ;;  %v20861_v5 = vld [vmem:[#allocation7 + $0x50] sm:$0xff]   ;;  %v20863_v7 = vld [vmem:[#allocation7 + $0x58] sm:$0xff]   ;;  %vm521_vm3 = vsmask.f32 3328 }
  0x9f   : > { %304 = vst [vmem:[#allocation2 + $0x20] sm:$0xff] %v22346_v0  ;;  %305 = vst [vmem:[#allocation2 + $0x28] sm:$0xff] %v22346_v0  ;;  %18822 = vmatpush3.bf16.msra.mxu1 %v20858_v2  ;;  %18643 = vmatprep.subr.bf16.mxu0 %v20859_v3  ;;  %v20862_v6 = vld [vmem:[#allocation7 + $0x50] sm:$0xff]   ;;  %v20864_v8 = vld [vmem:[#allocation7 + $0x58] sm:$0xff]   ;;  %vm522_vm4 = vsmask.f32 7440 }
  0xa0   : > { %306 = vst [vmem:[#allocation2 + $0x30] sm:$0xff] %v22346_v0  ;;  %307 = vst [vmem:[#allocation2 + $0x38] sm:$0xff] %v22346_v0  ;;  %18823 = vmatprep.subr.bf16.mxu1 %v20860_v4  ;;  %v20865_v9 = vld [vmem:[#allocation7 + $0x60] sm:$0xff]   ;;  %v20867_v11 = vld [vmem:[#allocation7 + $0x68] sm:$0xff]   ;;  %vm835_vm6 = vcmask 1042432   ;;  %vm836_vm7 = vcmask 1046532  }
  0xa1   : > { %308 = vst [vmem:[#allocation2 + $0x40] sm:$0xff] %v22346_v0  ;;  %309 = vst [vmem:[#allocation2 + $0x48] sm:$0xff] %v22346_v0  ;;  %v20866_v10 = vld [vmem:[#allocation7 + $0x60] sm:$0xff]   ;;  %v20868_v14 = vld [vmem:[#allocation7 + $0x68] sm:$0xff]   ;;  %vm314_vm9 = vcmask 1040384   ;;  %vm341_vm12 = vcmask 1044484  }
  0xa2   : > { %310 = vst [vmem:[#allocation3] sm:$0xff] %v22346_v0  ;;  %312 = vst [vmem:[#allocation3 + $0x48] sm:$0xff] %v22346_v0  ;;  %18644 = vmatpush3.bf16.msra.mxu0 %v20859_v3  ;;  %v368_v12 = vld [vmem:[%s22597_s30] sm:$0xff]  ;;  %v371_v17 = vld [vmem:[%s22597_s30 + $0x18] sm:$0xff]  ;;  %vm315_vm10 = vsmask.f32 256 }
  0xa3   : > { %18824 = vmatpush3.bf16.msra.mxu1 %v20860_v4  ;;  %18645 = vmatprep.subr.bf16.mxu0 %v20861_v5  ;;  %v376_v15 = vpack.c.bf16 %v368_v12, %v368_v12  ;;  %v372_v18 = vld [vmem:[%s22597_s30 + $0x20] sm:$0xff]  ;;  %v20869_v19 = vld [vmem:[#allocation7 + $0x70] sm:$0xff]   ;;  %v379_v25 = vpack.c.bf16 %v371_v17, %v371_v17  ;;  %v369_v29 = vld [vmem:[%s22597_s30 + $0x8] sm:$0xff]  ;;  %vm342_vm13 = vsmask.f32 7954  ;;  %vm2043_vm15 = vcmask 1044480  }
  0xa4   : > { %18825 = vmatprep.subr.bf16.mxu1 %v20862_v6  ;;  %v497_v13 = vld [vmem:[#allocation2] sm:$0x1f]  ;;  %v20870_v24 = vld [vmem:[#allocation7 + $0x70] sm:$0xff]   ;;  %v380_v26 = vpack.c.bf16 %v372_v18, %v372_v18  ;;  %v373_v31 = vld [vmem:[%s22597_s30 + $0x28] sm:$0xff]  ;;  %v377_v43 = vpack.c.bf16 %v369_v29, %v369_v29  ;;  %s298_s24 = scalar_lea.vmem [#allocation13], %s16218_s29  ;;  %s17740_s12 = sshll.u32 %s22401_s22, 10 }
  0xa5   : > { %v16224_v16 = vcombine.low %v497_v13, %v497_v13  ;;  %v385_v20 = vshrl.u32 %v376_v15, 16  ;;  %v388_v21 = vshll.u32 %v376_v15, 16  ;;  %v16225_v28 = vcombine.high %v497_v13, %v497_v13  ;;  %v370_v30 = vld [vmem:[%s22597_s30 + $0x10] sm:$0xff]  ;;  %vm22619_vm2 = vmand %vm449_vm0, %vm450_vm1  ;;  %v452_v33 = vld [vmem:[#allocation2 + $0x8] sm:$0x1f]  ;;  %s16096_s26 = sshll.u32 %s298_s24, 4  ;;  %s23738_s16 = scalar_lea.hbm %s23787_s5, %s17740_s12  ;;  %s23733_s26 = int_to_ptr.vmem [resolvable:$true] %s16096_s26 }
  0xa6   : > { %18646 = vmatpush3.bf16.msra.mxu0 %v20861_v5  ;;  %v406_v35 = vshrl.u32 %v379_v25, 16  ;;  %v409_v36 = vshll.u32 %v379_v25, 16  ;;  %v413_v37 = vshrl.u32 %v380_v26, 16  ;;  %v416_v40 = vshll.u32 %v380_v26, 16  ;;  %v461_v41 = vld [vmem:[#allocation2 + $0x20] sm:$0x1f]  ;;  %vm22644_vm5 = vmor %vm521_vm3, %vm522_vm4 }
  0xa7   : > { %18826 = vmatpush3.bf16.msra.mxu1 %v20862_v6  ;;  %18647 = vmatprep.subr.bf16.mxu0 %v20863_v7  ;;  %v525_v22 = vshrl.u32 %v16224_v16, 16  ;;  %v528_v23 = vshll.u32 %v16224_v16, 16  ;;  %v387_v27 = vrot.slane %v385_v20, 7  ;;  %v464_v42 = vld [vmem:[#allocation2 + $0x28] sm:$0x1f]  ;;  %v20871_v44 = vld [vmem:[#allocation7 + $0x78] sm:$0xff]   ;;  %v378_v47 = vpack.c.bf16 %v370_v30, %v370_v30  ;;  %vm22668_vm8 = vmor %vm835_vm6, %vm836_vm7 }
  0xa8   : > { %18827 = vmatprep.subr.bf16.mxu1 %v20864_v8  ;;  %v408_v45 = vrot.slane %v406_v35, 7  ;;  %v415_v46 = vrot.slane %v413_v37, 7  ;;  %v374_v48 = vld [vmem:[%s22597_s30 + $0x30] sm:$0xff]  ;;  %v381_v49 = vpack.c.bf16 %v373_v31, %v373_v31  ;;  %v20872_v50 = vld [vmem:[#allocation7 + $0x78] sm:$0xff]   ;;  %v534_v52 = vshll.u32 %v16225_v28, 16  ;;  %v22626_v55 = vld [vmem:[#allocation7] sm:$0xff]  }
  0xa9   : > { %v527_v34 = vrot.slane %v525_v22, 4  ;;  %v390_v38 = vor.u32 %v388_v21, %v387_v27  ;;  %v530_v39 = vrot.slane %v528_v23, 5  ;;  %v392_v53 = vshrl.u32 %v377_v43, 16  ;;  %v455_v60 = vld [vmem:[#allocation2 + $0x10] sm:$0x1f]  ;;  %vm22881_vm11 = vmand %vm314_vm9, %vm315_vm10  ;;  %v22099_v25 = vld [vmem:[#allocation10 + $0x218] sm:$0xff]  }
  0xaa   : > { %18648 = vmatpush3.bf16.msra.mxu0 %v20863_v7  ;;  %v395_v54 = vshll.u32 %v377_v43, 16  ;;  %v411_v56 = vor.u32 %v409_v36, %v408_v45  ;;  %v418_v57 = vor.u32 %v416_v40, %v415_v46  ;;  %v399_v58 = vshrl.u32 %v378_v47, 16  ;;  %v458_v63 = vld [vmem:[#allocation2 + $0x18] sm:$0x1f]  ;;  %v467_v6 = vld [vmem:[#allocation2 + $0x30] sm:$0x1f]  ;;  %vm22889_vm14 = vmand %vm341_vm12, %vm342_vm13 }
  0xab   : > { %18828 = vmatpush3.bf16.msra.mxu1 %v20864_v8  ;;  %18649 = vmatprep.subr.bf16.mxu0 %v20865_v9  ;;  %v453_v51 = vsel %vm22619_vm2, %v390_v38, %v452_v33  ;;  %v402_v59 = vshll.u32 %v378_v47, 16  ;;  %v531_v61 = vor.u32 %v530_v39, %v527_v34  ;;  %v394_v62 = vrot.slane %v392_v53, 7  ;;  %v22632_v7 = vld [vmem:[#allocation7] sm:$0xff]   ;;  %v470_v13 = vld [vmem:[#allocation2 + $0x38] sm:$0x1f]  ;;  %vm23019_vm0 = vmand %vm2043_vm15, %vm450_vm1  ;;  %s16083_s22 = scalar_lea.sflag [#allocation6], %s22591_s27 }
  0xac   : > { %18829 = vmatprep.subr.bf16.mxu1 %v20866_v10  ;;  %454 = vst [vmem:[#allocation2 + $0x8] sm:$0x1f] %v453_v51  ;;  %v382_v0 = vpack.c.bf16 %v374_v48, %v374_v48  ;;  %v420_v1 = vshrl.u32 %v381_v49, 16  ;;  %v462_v2 = vsel %vm22619_vm2, %v411_v56, %v461_v41  ;;  %v465_v3 = vsel %vm22619_vm2, %v418_v57, %v464_v42  ;;  %s22259_s7 = scalar_lea.vmem %s23733_s26, 1024  ;;  %s22347_s10 = smov [#allocation13]  }
  0xad   : > { %v401_v4 = vrot.slane %v399_v58, 7  ;;  %v423_v5 = vshll.u32 %v381_v49, 16  ;;  %463 = vst [vmem:[#allocation2 + $0x20] sm:$0x1f] %v462_v2  ;;  %466 = vst [vmem:[#allocation2 + $0x28] sm:$0x1f] %v465_v3  ;;  %v397_v8 = vor.u32 %v395_v54, %v394_v62  ;;  %p22260_p3 = scmp.ne.s32.totalorder %s23733_s26, %s22259_s7 }
  0xae   : > { %18650 = vmatpush3.bf16.msra.mxu0 %v20865_v9  ;;  %v422_v9 = vrot.slane %v420_v1, 7  ;;  %v532_v17 = vrot.slane %v531_v61, 4  ;;  %v536_v18 = vrot.slane %v534_v52, 5  ;;  %s22263_s11 = sshll.u32 %s22347_s10, 4  ;;  %s22264_s11 = int_to_ptr.vmem [resolvable:$false] %s22263_s11 }
  0xaf   : > { %18830 = vmatpush3.bf16.msra.mxu1 %v20866_v10  ;;  %18651 = vmatprep.subr.bf16.mxu0 %v20867_v11  ;;  %v427_v10 = vshrl.u32 %v382_v0, 16  ;;  %v404_v12 = vor.u32 %v402_v59, %v401_v4  ;;  %p22261_p5 = pnand %p22260_p3, %p22539_p10  ;;  %s22265_s13 = scalar_lea.vmem %s22264_s11, 2048 }
  0xb0   : > { %18831 = vmatprep.subr.bf16.mxu1 %v20868_v14  ;;  %v425_v15 = vor.u32 %v423_v5, %v422_v9  ;;  %v537_v31 = vsel %vm22644_vm5, %v532_v17, %v536_v18  ;;  %p22266_p12 = scmp.lt.s32.totalorder %s23733_s26, %s22264_s11  ;;  %p22267_p2 = scmp.lt.s32.totalorder %s22265_s13, %s22259_s7 }
  0xb1   : > { %v429_v16 = vrot.slane %v427_v10, 7  ;;  %p22262_p7 = pneg %p22261_p5 }
  0xb2   : > { %18652 = vmatpush3.bf16.msra.mxu0 %v20867_v11  ;;  %v430_v11 = vshll.u32 %v382_v0, 16  ;;  %v468_v22 = vsel %vm22619_vm2, %v425_v15, %v467_v6  ;;  %p22268_p1 = por %p22267_p2, %p22266_p12 }
  0xb3   : > { %18832 = vmatpush3.bf16.msra.mxu1 %v20868_v14  ;;  %18653 = vmatprep.subr.bf16.mxu0 %v20869_v19  ;;  %v456_v14 = vsel %vm22619_vm2, %v397_v8, %v455_v60  ;;  %v498_v20 = vld [vmem:[#allocation2 + $0x8] sm:$0x1f]  ;;  %469 = vst [vmem:[#allocation2 + $0x30] sm:$0x1f] %v468_v22 }
  0xb4   : > { %18833 = vmatprep.subr.bf16.mxu1 %v20870_v24  ;;  %457 = vst [vmem:[#allocation2 + $0x10] sm:$0x1f] %v456_v14  ;;  %v432_v21 = vor.u32 %v430_v11, %v429_v16  ;;  %v16226_v23 = vcombine.low %v498_v20, %v498_v20  ;;  %v2079_v30 = vld [vmem:[#allocation2 + $0x20] sm:$0x1f]  ;;  %v2080_v33 = vld [vmem:[#allocation2 + $0x28] sm:$0x1f]  ;;  %p22269_p13 = pnand %p22268_p1, %p22262_p7 }
  0xb5   : > { %v16375_v34 = vcombine.low %v2079_v30, %v2079_v30  ;;  %v16376_v35 = vcombine.high %v2079_v30, %v2079_v30  ;;  %v16377_v39 = vcombine.low %v2080_v33, %v2080_v33  ;;  %v16378_v40 = vcombine.high %v2080_v33, %v2080_v33 }
  0xb6   : > { %18654 = vmatpush3.bf16.msra.mxu0 %v20869_v19  ;;  %v459_v19 = vsel %vm22619_vm2, %v404_v12, %v458_v63  ;;  %v471_v26 = vsel %vm22619_vm2, %v432_v21, %v470_v13  ;;  %v539_v27 = vshrl.u32 %v16226_v23, 16  ;;  %v542_v28 = vshll.u32 %v16226_v23, 16 }
  0xb7   : > { %18834 = vmatpush3.bf16.msra.mxu1 %v20870_v24  ;;  %18655 = vmatprep.subr.bf16.mxu0 %v20871_v44  ;;  %460 = vst [vmem:[#allocation2 + $0x18] sm:$0x1f] %v459_v19  ;;  %v16227_v24 = vcombine.high %v498_v20, %v498_v20  ;;  %472 = vst [vmem:[#allocation2 + $0x38] sm:$0x1f] %v471_v26  ;;  %v2104_v41 = vshrl.u32 %v16375_v34, 16  ;;  %v2107_v42 = vshll.u32 %v16375_v34, 16 }
  0xb8   : > { %18835 = vmatprep.subr.bf16.mxu1 %v20872_v50  ;;  %v541_v36 = vrot.slane %v539_v27, 4  ;;  %v544_v37 = vrot.slane %v542_v28, 5  ;;  %v2113_v43 = vshll.u32 %v16376_v35, 16  ;;  %v2118_v46 = vshrl.u32 %v16377_v39, 16 }
  0xb9   : > { %v548_v29 = vshll.u32 %v16227_v24, 16  ;;  %v2121_v47 = vshll.u32 %v16377_v39, 16  ;;  %v2109_v51 = vrot.slane %v2107_v42, 5  ;;  %v2127_v53 = vshll.u32 %v16378_v40, 16 }
  0xba   : > { %18656 = vmatpush3.bf16.msra.mxu0 %v20871_v44  ;;  %v545_v45 = vor.u32 %v544_v37, %v541_v36  ;;  %v2115_v52 = vrot.slane %v2113_v43, 5  ;;  %v2120_v56 = vrot.slane %v2118_v46, 4  ;;  %v2081_v63 = vld [vmem:[#allocation2 + $0x30] sm:$0x1f] }
  0xbb   : > { %18836 = vmatpush3.bf16.msra.mxu1 %v20872_v50  ;;  %18661 = vmatprep.subr.bf16.mxu0 %v22626_v55  ;;  %v550_v38 = vrot.slane %v548_v29, 5  ;;  %v499_v44 = vld [vmem:[#allocation2 + $0x10] sm:$0x1f]  ;;  %v2106_v50 = vrot.slane %v2104_v41, 4  ;;  %v2123_v57 = vrot.slane %v2121_v47, 5  ;;  %v2129_v60 = vrot.slane %v2127_v53, 5 }
  0xbc   : > { %18841 = vmatprep.subr.bf16.mxu1 %v22632_v7  ;;  %v16228_v49 = vcombine.low %v499_v44, %v499_v44  ;;  %v546_v54 = vrot.slane %v545_v45, 4  ;;  %v16229_v58 = vcombine.high %v499_v44, %v499_v44  ;;  %v16379_v21 = vcombine.low %v2081_v63, %v2081_v63  ;;  %v20905_v45 = vld [vmem:[#allocation2] ss:$8 sps:$4 sm:$0xff]  }
  0xbd   : > { %v2110_v59 = vor.u32 %v2109_v51, %v2106_v50  ;;  %v2124_v1 = vor.u32 %v2123_v57, %v2120_v56  ;;  %v16380_v24 = vcombine.high %v2081_v63, %v2081_v63  ;;  %v20891_v50 = vld [vmem:[#allocation7 + $0x8] sm:$0xff]   ;;  %v20893_v57 = vld [vmem:[#allocation7 + $0x10] sm:$0xff]  }
  0xbe   : > { %v500_v48 = vld [vmem:[#allocation2 + $0x18] sm:$0x1f]  ;;  %v551_v0 = vsel %vm22644_vm5, %v546_v54, %v550_v38  ;;  %v553_v2 = vshrl.u32 %v16228_v49, 16  ;;  %v556_v3 = vshll.u32 %v16228_v49, 16  ;;  %v562_v8 = vshll.u32 %v16229_v58, 16  ;;  %v20892_v53 = vld [vmem:[#allocation7 + $0x8] sm:$0xff]  }
  0xbf   : > { %v16230_v61 = vcombine.low %v500_v48, %v500_v48  ;;  %v16231_v62 = vcombine.high %v500_v48, %v500_v48  ;;  %v2082_v4 = vld [vmem:[#allocation2 + $0x38] sm:$0x1f]  ;;  %v16232_v5 = vcombine.low %v537_v31, %v551_v0  ;;  %v2111_v6 = vrot.slane %v2110_v59, 4  ;;  %v20907_v59 = vld [vmem:[#allocation2 + $0x20] ss:$8 sps:$4 sm:$0xff]  }
  0xc0   : > { %v2125_v10 = vrot.slane %v2124_v1, 4  ;;  %v555_v11 = vrot.slane %v553_v2, 4  ;;  %v558_v12 = vrot.slane %v556_v3, 5  ;;  %v564_v15 = vrot.slane %v562_v8, 5  ;;  %v20899_v63 = vld [vmem:[#allocation7 + $0x28] sm:$0xff]   ;;  %v20898_v1 = vld [vmem:[#allocation7 + $0x20] sm:$0xff]  }
  0xc1   : > { %v567_v9 = vshrl.u32 %v16230_v61, 16  ;;  %v570_v13 = vshll.u32 %v16230_v61, 16  ;;  %18657 = vmatprep.mubr.bf16.mxu0 %v16232_v5  ;;  %v2116_v14 = vsel %vm22644_vm5, %v2111_v6, %v2115_v52  ;;  %v576_v17 = vshll.u32 %v16231_v62, 16  ;;  %v20897_v61 = vld [vmem:[#allocation7 + $0x20] sm:$0xff]   ;;  %v20896_v62 = vld [vmem:[#allocation7 + $0x18] sm:$0xff]   ;;  %v20901_v3 = vld [vmem:[#allocation7 + $0x30] sm:$0xff]  }
  0xc2   : > { %v2130_v18 = vsel %vm22644_vm5, %v2125_v10, %v2129_v60  ;;  %v559_v19 = vor.u32 %v558_v12, %v555_v11  ;;  %v16381_v26 = vcombine.low %v2082_v4, %v2082_v4  ;;  %v16382_v29 = vcombine.high %v2082_v4, %v2082_v4  ;;  %v20895_v60 = vld [vmem:[#allocation7 + $0x18] sm:$0xff]   ;;  %v811_v0 = vld [vmem:[#allocation2] sm:$0x1e]  ;;  %v812_v2 = vld [vmem:[#allocation2 + $0x8] sm:$0x1e] }
  0xc3   : > { %v569_v16 = vrot.slane %v567_v9, 4  ;;  %v572_v20 = vrot.slane %v570_v13, 5  ;;  %v16383_v22 = vcombine.low %v2116_v14, %v2130_v18  ;;  %v578_v23 = vrot.slane %v576_v17, 5  ;;  %v20900_v8 = vld [vmem:[#allocation7 + $0x28] sm:$0xff]   ;;  %v20903_v9 = vld [vmem:[#allocation7 + $0x38] sm:$0xff]   ;;  %v20902_v17 = vld [vmem:[#allocation7 + $0x30] sm:$0xff]  }
  0xc4   : > { %v560_v27 = vrot.slane %v559_v19, 4  ;;  %v2132_v30 = vshrl.u32 %v16379_v21, 16  ;;  %v2135_v31 = vshll.u32 %v16379_v21, 16  ;;  %v2141_v33 = vshll.u32 %v16380_v24, 16  ;;  %v2389_v10 = vld [vmem:[#allocation2 + $0x20] sm:$0x1e] }
  0xc5   : > { %v573_v28 = vor.u32 %v572_v20, %v569_v16  ;;  %18837 = vmatprep.mubr.bf16.mxu1 %v16383_v22  ;;  %v2146_v34 = vshrl.u32 %v16381_v26, 16  ;;  %v2149_v35 = vshll.u32 %v16381_v26, 16  ;;  %v2155_v39 = vshll.u32 %v16382_v29, 16  ;;  %v2390_v11 = vld [vmem:[#allocation2 + $0x28] sm:$0x1e]  ;;  %v20904_v22 = vld [vmem:[#allocation7 + $0x38] sm:$0xff]  }
  0xc6   : > { %v565_v36 = vsel %vm22644_vm5, %v560_v27, %v564_v15  ;;  %v2134_v38 = vrot.slane %v2132_v30, 4  ;;  %v2137_v40 = vrot.slane %v2135_v31, 5  ;;  %v2143_v44 = vrot.slane %v2141_v33, 5  ;;  %v20909_v24 = vld [vmem:[#allocation2 + $0x10] ss:$8 sps:$4 sm:$0xff]  }
  0xc7   : > { %v574_v37 = vrot.slane %v573_v28, 4  ;;  %v2148_v41 = vrot.slane %v2146_v34, 4  ;;  %v2151_v42 = vrot.slane %v2149_v35, 5  ;;  %v2157_v49 = vrot.slane %v2155_v39, 5  ;;  %v20911_v34 = vld [vmem:[#allocation7 + $0x88] sm:$0xff]   ;;  %v20908_v35 = vld [vmem:[#allocation7 + $0x80] sm:$0xff]  }
  0xc8   : > { %v2138_v47 = vor.u32 %v2137_v40, %v2134_v38  ;;  %v16253_v4 = vcombine.high %v811_v0, %v811_v0  ;;  %v16254_v5 = vcombine.low %v812_v2, %v812_v2  ;;  %v16255_v6 = vcombine.high %v812_v2, %v812_v2  ;;  %v20910_v38 = vld [vmem:[#allocation2 + $0x30] ss:$8 sps:$4 sm:$0xff]   ;;  %v20912_v40 = vld [vmem:[#allocation7 + $0x88] sm:$0xff]  }
  0xc9   : > { %v579_v43 = vsel %vm22644_vm5, %v574_v37, %v578_v23  ;;  %v2152_v48 = vor.u32 %v2151_v42, %v2148_v41  ;;  %v16403_v18 = vcombine.low %v2389_v10, %v2389_v10  ;;  %v16404_v19 = vcombine.high %v2389_v10, %v2389_v10  ;;  %v20906_v23 = vld [vmem:[#allocation7 + $0x80] sm:$0xff]   ;;  %v20913_v39 = vld [vmem:[#allocation7 + $0x90] sm:$0xff]   ;;  %v375_v42 = vld [vmem:[%s22597_s30 + $0x38] sm:$0xff] }
  0xca   : > { %v16233_v46 = vcombine.low %v565_v36, %v579_v43  ;;  %v2139_v51 = vrot.slane %v2138_v47, 4  ;;  %v840_v14 = vrot.slane %v16253_v4, 5  ;;  %v16261_v15 = vrot.slane %v16254_v5, 9  ;;  %v20923_v5 = vld [vmem:[#allocation7 + $0xb8] sm:$0xff]   ;;  %v20922_v10 = vld [vmem:[#allocation7 + $0xb0] sm:$0xff]  }
  0xcb   : > { %v2153_v52 = vrot.slane %v2152_v48, 4  ;;  %v844_v16 = vrot.slane %v16255_v6, 5  ;;  %v16405_v20 = vcombine.low %v2390_v11, %v2390_v11  ;;  %v16406_v21 = vcombine.high %v2390_v11, %v2390_v11  ;;  %v20917_v48 = vld [vmem:[#allocation7 + $0xa0] sm:$0xff]  }
  0xcc   : > { %18658 = vmatmul.mubr.bf16.vlgmr.msra.gmra.mrb[0].mxu0 %v16233_v46  ;;  %v2144_v54 = vsel %vm22644_vm5, %v2139_v51, %v2143_v44  ;;  %v16411_v28 = vrot.slane %v16403_v18, 9  ;;  %v2415_v29 = vrot.slane %v16404_v19, 5  ;;  %v383_v43 = vpack.c.bf16 %v375_v42, %v375_v42  ;;  %v20915_v44 = vld [vmem:[#allocation7 + $0x98] sm:$0xff]  }
  0xcd   : > { %18662 = vmatpush3.bf16.msra.mxu0 %v22626_v55  ;;  %18677 = vmatprep.mubr.bf16.mxu0 %v20905_v45  ;;  %v2158_v56 = vsel %vm22644_vm5, %v2153_v52, %v2157_v49  ;;  %v20894_v55 = vld [vmem:[#allocation7 + $0x10] sm:$0xff]   ;;  %v845_v27 = vsel %vm22668_vm8, %v16261_v15, %v844_v16  ;;  %v16412_v30 = vrot.slane %v16405_v20, 9  ;;  %v2419_v31 = vrot.slane %v16406_v21, 5  ;;  %v20916_v51 = vld [vmem:[#allocation7 + $0x98] sm:$0xff]   ;;  %v20934_v21 = vld [vmem:[#allocation7 + $0xc0] sm:$0xff]  }
  0xce   : > { %18663 = vmatprep.subr.bf16.mxu0 %v20891_v50  ;;  %v16384_v58 = vcombine.low %v2144_v54, %v2158_v56  ;;  %v2416_v36 = vsel %vm22668_vm8, %v16411_v28, %v2415_v29  ;;  %v20914_v45 = vld [vmem:[#allocation7 + $0x90] sm:$0xff]   ;;  %v434_v46 = vshrl.u32 %v383_v43, 16  ;;  %v437_v47 = vshll.u32 %v383_v43, 16  ;;  %v20924_v19 = vld [vmem:[#allocation7 + $0xb8] sm:$0xff]   ;;  %v20944_v28 = vld [vmem:[#allocation7 + $0xc8] sm:$0xff]  }
  0xcf   : > { %v2420_v37 = vsel %vm22668_vm8, %v16412_v30, %v2419_v31  ;;  %v813_v54 = vld [vmem:[#allocation2 + $0x10] sm:$0x1e]  ;;  %v1114_v30 = vld [vmem:[#allocation2 + $0x8] sm:$0x1f] }
  0xd0   : > { %18838 = vmatmul.mubr.bf16.vlgmr.msra.gmra.mrb[0].mxu1 %v16384_v58  ;;  %v16415_v41 = vcombine.low %v2416_v36, %v2420_v37  ;;  %v436_v49 = vrot.slane %v434_v46, 7  ;;  %v20918_v58 = vld [vmem:[#allocation7 + $0xa0] sm:$0xff]   ;;  %v20945_v29 = vld [vmem:[#allocation7 + $0xd0] sm:$0xff]   ;;  %v20948_v46 = vld [vmem:[#allocation7 + $0xd8] sm:$0xff]  }
  0xd1   : > { %18664 = vmatpush3.bf16.msra.mxu0 %v20891_v50  ;;  %18842 = vmatpush3.bf16.msra.mxu1 %v22632_v7  ;;  %v16252_v7 = vcombine.low %v811_v0, %v811_v0  ;;  %v473_v50 = vld [vmem:[#allocation2 + $0x40] sm:$0x1f]  ;;  %v20920_v0 = vld [vmem:[#allocation7 + $0xa8] sm:$0xff]   ;;  %v20946_v37 = vld [vmem:[#allocation7 + $0xd0] sm:$0xff]  }
  0xd2   : > { %18665 = vmatprep.subr.bf16.mxu0 %v20893_v57  ;;  %18843 = vmatprep.subr.bf16.mxu1 %v20892_v53  ;;  %v439_v52 = vor.u32 %v437_v47, %v436_v49  ;;  %v20959_v31 = vld [vmem:[#allocation2 + $0x28] ss:$8 sps:$4 sm:$0xff]  }
  0xd3   : > { %18857 = vmatprep.mubr.bf16.mxu1 %v20907_v59  ;;  %v16260_v13 = vrot.slane %v16252_v7, 9  ;;  %v16256_v59 = vcombine.low %v813_v54, %v813_v54  ;;  %v2689_v43 = vld [vmem:[#allocation2 + $0x30] sm:$0x1f] }
  0xd4   : > { %v474_v56 = vsel %vm22619_vm2, %v439_v52, %v473_v50  ;;  %v16437_v49 = vcombine.low %v2689_v43, %v2689_v43  ;;  %v20951_v50 = vld [vmem:[#allocation7 + $0xe8] sm:$0xff]  }
  0xd5   : > { %18666 = vmatpush3.bf16.msra.mxu0 %v20893_v57  ;;  %18844 = vmatpush3.bf16.msra.mxu1 %v20892_v53  ;;  %v841_v26 = vsel %vm22668_vm8, %v16260_v13, %v840_v14  ;;  %v20919_v53 = vld [vmem:[#allocation7 + $0xa8] sm:$0xff]   ;;  %v814_v57 = vld [vmem:[#allocation2 + $0x18] sm:$0x1e]  ;;  %475 = vst [vmem:[#allocation2 + $0x40] sm:$0x1f] %v474_v56  ;;  %v16262_v32 = vrot.slane %v16256_v59, 9 }
  0xd6   : > { %18667 = vmatprep.subr.bf16.mxu0 %v20895_v60  ;;  %18845 = vmatprep.subr.bf16.mxu1 %v20894_v55  ;;  %v16264_v33 = vcombine.low %v841_v26, %v845_v27  ;;  %v20929_v14 = vld [vmem:[#allocation7 + $0xc0] sm:$0xff]   ;;  %v20943_v26 = vld [vmem:[#allocation7 + $0xc8] sm:$0xff]  }
  0xd9   : > { %18668 = vmatpush3.bf16.msra.mxu0 %v20895_v60  ;;  %18846 = vmatpush3.bf16.msra.mxu1 %v20894_v55  ;;  %v20921_v60 = vld [vmem:[#allocation7 + $0xb0] sm:$0xff]   ;;  %v16257_v55 = vcombine.high %v813_v54, %v813_v54 }
  0xda   : > { %18669 = vmatprep.subr.bf16.mxu0 %v20897_v61  ;;  %18847 = vmatprep.subr.bf16.mxu1 %v20896_v62 }
  0xdb   : > { %v848_v2 = vrot.slane %v16257_v55, 5  ;;  %v2727_v55 = vshrl.u32 %v16437_v49, 16 }
  0xdd   : > { %18670 = vmatpush3.bf16.msra.mxu0 %v20897_v61  ;;  %18848 = vmatpush3.bf16.msra.mxu1 %v20896_v62  ;;  %v16258_v61 = vcombine.low %v814_v57, %v814_v57  ;;  %v16259_v62 = vcombine.high %v814_v57, %v814_v57  ;;  %v849_v11 = vsel %vm22668_vm8, %v16262_v32, %v848_v2  ;;  %v20950_v57 = vld [vmem:[#allocation7 + $0xe0] sm:$0xff]   ;;  %v20952_v2 = vld [vmem:[#allocation7 + $0xe8] sm:$0xff]  }
  0xde   : > { %18671 = vmatprep.subr.bf16.mxu0 %v20899_v63  ;;  %18849 = vmatprep.subr.bf16.mxu1 %v20898_v1 }
  0xdf   : > { %v16263_v7 = vrot.slane %v16258_v61, 9  ;;  %v2730_v61 = vshll.u32 %v16437_v49, 16 }
  0xe1   : > { %18672 = vmatpush3.bf16.msra.mxu0 %v20899_v63  ;;  %18850 = vmatpush3.bf16.msra.mxu1 %v20898_v1  ;;  %v2391_v63 = vld [vmem:[#allocation2 + $0x30] sm:$0x1e]  ;;  %v2392_v1 = vld [vmem:[#allocation2 + $0x38] sm:$0x1e] }
  0xe2   : > { %18673 = vmatprep.subr.bf16.mxu0 %v20901_v3  ;;  %18851 = vmatprep.subr.bf16.mxu1 %v20900_v8  ;;  %v16407_v4 = vcombine.low %v2391_v63, %v2391_v63  ;;  %v16408_v6 = vcombine.high %v2391_v63, %v2391_v63 }
  0xe4   : > { %v16413_v15 = vrot.slane %v16407_v4, 9  ;;  %v2423_v16 = vrot.slane %v16408_v6, 5  ;;  %v1116_v6 = vld [vmem:[#allocation2 + $0x18] sm:$0x1f] }
  0xe5   : > { %18674 = vmatpush3.bf16.msra.mxu0 %v20901_v3  ;;  %18852 = vmatpush3.bf16.msra.mxu1 %v20900_v8  ;;  %v852_v3 = vrot.slane %v16259_v62, 5  ;;  %v16409_v8 = vcombine.low %v2392_v1, %v2392_v1  ;;  %v20953_v62 = vld [vmem:[#allocation7 + $0xf0] sm:$0xff]  }
  0xe6   : > { %18675 = vmatprep.subr.bf16.mxu0 %v20903_v9  ;;  %18853 = vmatprep.subr.bf16.mxu1 %v20902_v17 }
  0xe7   : > { %v853_v13 = vsel %vm22668_vm8, %v16263_v7, %v852_v3  ;;  %v16438_v3 = vcombine.high %v2689_v43, %v2689_v43 }
  0xe8   : > { %v16265_v20 = vcombine.low %v849_v11, %v853_v13  ;;  %v20954_v11 = vld [vmem:[#allocation7 + $0xf0] sm:$0xff]   ;;  %v1117_v13 = vld [vmem:[#allocation2 + $0x20] sm:$0x1f] }
  0xe9   : > { %18676 = vmatpush3.bf16.msra.mxu0 %v20903_v9  ;;  %18854 = vmatpush3.bf16.msra.mxu1 %v20902_v17  ;;  %v16410_v9 = vcombine.high %v2392_v1, %v2392_v1  ;;  %v16414_v17 = vrot.slane %v16409_v8, 9  ;;  %v20955_v8 = vld [vmem:[#allocation7 + $0xf8] sm:$0xff]  }
  0xea   : > { %18681 = vmatprep.subr.bf16.mxu0 %v20906_v23  ;;  %18855 = vmatprep.subr.bf16.mxu1 %v20904_v22 }
  0xeb   : > { %v2427_v18 = vrot.slane %v16410_v9, 5  ;;  %v2729_v9 = vrot.slane %v2727_v55, 4 }
  0xec   : > { %18678 = vmatmul.mubr.bf16.vlgmr.msra.gmra.mrb[0].mxu0 %v20909_v24 }
  0xed   : > { %18682 = vmatpush3.bf16.msra.mxu0 %v20906_v23  ;;  %18697 = vmatprep.mubr.bf16.mxu0 %v16264_v33  ;;  %v2424_v23 = vsel %vm22668_vm8, %v16413_v15, %v2423_v16  ;;  %v2428_v24 = vsel %vm22668_vm8, %v16414_v17, %v2427_v18  ;;  %v1115_v33 = vld [vmem:[#allocation2 + $0x10] sm:$0x1f]  ;;  %v16288_v16 = vcombine.low %v1116_v6, %v1116_v6  ;;  %v2736_v18 = vshll.u32 %v16438_v3, 16 }
  0xee   : > { %18856 = vmatpush3.bf16.msra.mxu1 %v20904_v22  ;;  %18683 = vmatprep.subr.bf16.mxu0 %v20911_v34  ;;  %v20957_v22 = vld [vmem:[#allocation2 + $0x8] ss:$8 sps:$4 sm:$0xff]   ;;  %v16416_v27 = vcombine.low %v2424_v23, %v2428_v24  ;;  %v16286_v36 = vcombine.low %v1115_v33, %v1115_v33  ;;  %v16287_v47 = vcombine.high %v1115_v33, %v1115_v33  ;;  %v22693_v24 = vld [vmem:[#allocation2 + $0x40] sm:$0x1f] }
  0xef   : > { %18861 = vmatprep.subr.bf16.mxu1 %v20908_v35  ;;  %v16289_v23 = vcombine.high %v1116_v6, %v1116_v6 }
  0xf1   : > { %18858 = vmatmul.mubr.bf16.vlgmr.msra.gmra.mrb[0].mxu1 %v20910_v38  ;;  %18684 = vmatpush3.bf16.msra.mxu0 %v20911_v34  ;;  %v16284_v34 = vcombine.low %v1114_v30, %v1114_v30  ;;  %v20949_v38 = vld [vmem:[#allocation7 + $0xe0] sm:$0xff]   ;;  %v22701_v43 = vshll.u32 %v16289_v23, 16  ;;  %v20971_v23 = vld [vmem:[#allocation7 + $0x128] sm:$0xff]  }
  0xf2   : > { %18862 = vmatpush3.bf16.msra.mxu1 %v20908_v35  ;;  %18685 = vmatprep.subr.bf16.mxu0 %v20913_v39  ;;  %v20947_v35 = vld [vmem:[#allocation7 + $0xd8] sm:$0xff]  }
  0xf3   : > { %18863 = vmatprep.subr.bf16.mxu1 %v20912_v40  ;;  %18877 = vmatprep.mubr.bf16.mxu1 %v16415_v41  ;;  %v1139_v41 = vshrl.u32 %v16284_v34, 16  ;;  %v1142_v42 = vshll.u32 %v16284_v34, 16  ;;  %v2738_v34 = vrot.slane %v2736_v18, 5  ;;  %v2893_v18 = vld [vmem:[#allocation2 + $0x28] sm:$0x1e] }
  0xf5   : > { %18686 = vmatpush3.bf16.msra.mxu0 %v20913_v39  ;;  %v2688_v39 = vld [vmem:[#allocation2 + $0x28] sm:$0x1f]  ;;  %v1141_v52 = vrot.slane %v1139_v41, 4 }
  0xf6   : > { %18864 = vmatpush3.bf16.msra.mxu1 %v20912_v40  ;;  %18687 = vmatprep.subr.bf16.mxu0 %v20915_v44  ;;  %v16285_v40 = vcombine.high %v1114_v30, %v1114_v30  ;;  %v16436_v32 = vcombine.high %v2688_v39, %v2688_v39  ;;  %v16290_v30 = vcombine.low %v1117_v13, %v1117_v13 }
  0xf7   : > { %18865 = vmatprep.subr.bf16.mxu1 %v20914_v45 }
  0xf8   : > { %v2722_v17 = vshll.u32 %v16436_v32, 16 }
  0xf9   : > { %18688 = vmatpush3.bf16.msra.mxu0 %v20915_v44  ;;  %v1153_v44 = vshrl.u32 %v16286_v36, 16 }
  0xfa   : > { %18866 = vmatpush3.bf16.msra.mxu1 %v20914_v45  ;;  %18689 = vmatprep.subr.bf16.mxu0 %v20917_v48  ;;  %v1156_v45 = vshll.u32 %v16286_v36, 16  ;;  %v2724_v33 = vrot.slane %v2722_v17, 5  ;;  %v20963_v36 = vld [vmem:[#allocation7 + $0x108] sm:$0xff]   ;;  %v1321_v17 = vld [vmem:[#allocation2 + $0x10] sm:$0x1e] }
  0xfb   : > { %18867 = vmatprep.subr.bf16.mxu1 %v20916_v51  ;;  %v1155_v54 = vrot.slane %v1153_v44, 4  ;;  %v16441_v44 = vcombine.low %v22693_v24, %v22693_v24 }
  0xfc   : > { %v1158_v56 = vrot.slane %v1156_v45, 5 }
  0xfd   : > { %18690 = vmatpush3.bf16.msra.mxu0 %v20917_v48  ;;  %v16435_v48 = vcombine.low %v2688_v39, %v2688_v39 }
  0xfe   : > { %18868 = vmatpush3.bf16.msra.mxu1 %v20916_v51  ;;  %18691 = vmatprep.subr.bf16.mxu0 %v20919_v53  ;;  %v1148_v51 = vshll.u32 %v16285_v40, 16  ;;  %v1159_v1 = vor.u32 %v1158_v56, %v1155_v54  ;;  %v20960_v40 = vld [vmem:[#allocation7 + $0x100] sm:$0xff]   ;;  %v2755_v56 = vshrl.u32 %v16441_v44, 16 }
  0xff   : > { %18869 = vmatprep.subr.bf16.mxu1 %v20918_v58  ;;  %v2713_v59 = vshrl.u32 %v16435_v48, 16 }
 0x100   : > { %v1160_v15 = vrot.slane %v1159_v1, 4 }
 0x101   : > { %18692 = vmatpush3.bf16.msra.mxu0 %v20919_v53  ;;  %v1144_v53 = vrot.slane %v1142_v42, 5  ;;  %v2715_v4 = vrot.slane %v2713_v59, 4  ;;  %v1170_v42 = vshll.u32 %v16288_v16, 16 }
 0x102   : > { %18870 = vmatpush3.bf16.msra.mxu1 %v20918_v58  ;;  %18693 = vmatprep.subr.bf16.mxu0 %v20921_v60  ;;  %v1162_v58 = vshll.u32 %v16287_v47, 16  ;;  %v20962_v47 = vld [vmem:[#allocation2 + $0x38] ss:$8 sps:$4 sm:$0xff]  }
 0x103   : > { %18871 = vmatprep.subr.bf16.mxu1 %v20920_v0  ;;  %v1145_v63 = vor.u32 %v1144_v53, %v1141_v52 }
 0x104   : > { %v1164_v7 = vrot.slane %v1162_v58, 5  ;;  %v1172_v58 = vrot.slane %v1170_v42, 5 }
 0x105   : > { %18694 = vmatpush3.bf16.msra.mxu0 %v20921_v60  ;;  %v2716_v60 = vshll.u32 %v16435_v48, 16  ;;  %v1184_v48 = vshll.u32 %v16290_v30, 16 }
 0x106   : > { %18872 = vmatpush3.bf16.msra.mxu1 %v20920_v0  ;;  %18695 = vmatprep.subr.bf16.mxu0 %v20923_v5  ;;  %v1150_v0 = vrot.slane %v1148_v51, 5 }
 0x107   : > { %18873 = vmatprep.subr.bf16.mxu1 %v20922_v10 }
 0x109   : > { %18696 = vmatpush3.bf16.msra.mxu0 %v20923_v5  ;;  %v2718_v5 = vrot.slane %v2716_v60, 5  ;;  %v20964_v60 = vld [vmem:[#allocation7 + $0x108] sm:$0xff]  }
 0x10a   : > { %18874 = vmatpush3.bf16.msra.mxu1 %v20922_v10  ;;  %18701 = vmatprep.subr.bf16.mxu0 %v20929_v14  ;;  %v2732_v10 = vrot.slane %v2730_v61, 5  ;;  %v1186_v61 = vrot.slane %v1184_v48, 5 }
 0x10b   : > { %18875 = vmatprep.subr.bf16.mxu1 %v20924_v19 }
 0x10c   : > { %18698 = vmatmul.mubr.bf16.vlgmr.msra.gmra.mrb[0].mxu0 %v16265_v20  ;;  %v2733_v20 = vor.u32 %v2732_v10, %v2729_v9 }
 0x10d   : > { %18702 = vmatpush3.bf16.msra.mxu0 %v20929_v14  ;;  %18717 = vmatprep.mubr.bf16.mxu0 %v20957_v22  ;;  %v1146_v14 = vrot.slane %v1145_v63, 4  ;;  %v20956_v22 = vld [vmem:[#allocation7 + $0xf8] sm:$0xff]   ;;  %v16442_v63 = vcombine.high %v22693_v24, %v22693_v24 }
 0x10e   : > { %18876 = vmatpush3.bf16.msra.mxu1 %v20924_v19  ;;  %18703 = vmatprep.subr.bf16.mxu0 %v20943_v26  ;;  %v2719_v19 = vor.u32 %v2718_v5, %v2715_v4  ;;  %v1178_v4 = vrot.slane %v22701_v43, 5  ;;  %v1322_v43 = vld [vmem:[#allocation2 + $0x18] sm:$0x1e] }
 0x10f   : > { %18881 = vmatprep.subr.bf16.mxu1 %v20934_v21  ;;  %v22717_v10 = vshll.u32 %v16442_v63, 16  ;;  %v1622_v63 = vld [vmem:[#allocation2 + $0x18] sm:$0x1f] }
 0x111   : > { %18878 = vmatmul.mubr.bf16.vlgmr.msra.gmra.mrb[0].mxu1 %v16416_v27  ;;  %18704 = vmatpush3.bf16.msra.mxu0 %v20943_v26  ;;  %v20958_v26 = vld [vmem:[#allocation7 + $0x100] sm:$0xff]  }
 0x112   : > { %18882 = vmatpush3.bf16.msra.mxu1 %v20934_v21  ;;  %18705 = vmatprep.subr.bf16.mxu0 %v20945_v29  ;;  %v22691_v21 = vld [vmem:[#allocation2 + $0x38] sm:$0x1f] }
 0x113   : > { %18883 = vmatprep.subr.bf16.mxu1 %v20944_v28  ;;  %18897 = vmatprep.mubr.bf16.mxu1 %v20959_v31  ;;  %v20961_v27 = vld [vmem:[#allocation2 + $0x18] ss:$8 sps:$4 sm:$0xff]   ;;  %v1167_v31 = vshrl.u32 %v16288_v16, 16  ;;  %v16439_v39 = vcombine.low %v22691_v21, %v22691_v21 }
 0x115   : > { %18706 = vmatpush3.bf16.msra.mxu0 %v20945_v29  ;;  %v1165_v29 = vsel %vm22644_vm5, %v1160_v15, %v1164_v7  ;;  %v1169_v45 = vrot.slane %v1167_v31, 4  ;;  %v2741_v53 = vshrl.u32 %v16439_v39, 16  ;;  %v2744_v54 = vshll.u32 %v16439_v39, 16 }
 0x116   : > { %18884 = vmatpush3.bf16.msra.mxu1 %v20944_v28  ;;  %18707 = vmatprep.subr.bf16.mxu0 %v20947_v35  ;;  %v1151_v28 = vsel %vm22644_vm5, %v1146_v14, %v1150_v0  ;;  %v20967_v0 = vld [vmem:[#allocation7 + $0x118] sm:$0xff]   ;;  %v2757_v7 = vrot.slane %v2755_v56, 4 }
 0x117   : > { %18885 = vmatprep.subr.bf16.mxu1 %v20946_v37  ;;  %v16292_v41 = vcombine.low %v1151_v28, %v1165_v29  ;;  %v2743_v1 = vrot.slane %v2741_v53, 4  ;;  %v2746_v32 = vrot.slane %v2744_v54, 5  ;;  %v1173_v6 = vor.u32 %v1172_v58, %v1169_v45  ;;  %v20968_v14 = vld [vmem:[#allocation7 + $0x118] sm:$0xff]   ;;  %v20970_v29 = vld [vmem:[#allocation7 + $0x120] sm:$0xff]  }
 0x118   : > { %v16305_v28 = vcombine.high %v1321_v17, %v1321_v17  ;;  %v2896_v54 = vld [vmem:[#allocation2 + $0x40] sm:$0x1e]  ;;  %v16306_v58 = vcombine.low %v1322_v43, %v1322_v43 }
 0x119   : > { %18708 = vmatpush3.bf16.msra.mxu0 %v20947_v35  ;;  %v16291_v35 = vcombine.high %v1117_v13, %v1117_v13  ;;  %v1320_v13 = vld [vmem:[#allocation2 + $0x8] sm:$0x1e]  ;;  %v2747_v15 = vor.u32 %v2746_v32, %v2743_v1 }
 0x11a   : > { %18886 = vmatpush3.bf16.msra.mxu1 %v20946_v37  ;;  %18709 = vmatprep.subr.bf16.mxu0 %v20949_v38  ;;  %v2720_v37 = vrot.slane %v2719_v19, 4  ;;  %v1174_v19 = vrot.slane %v1173_v6, 4  ;;  %v22736_v42 = vrot.slane %v16305_v28, 5  ;;  %v16460_v6 = vcombine.high %v2896_v54, %v2896_v54 }
 0x11b   : > { %18887 = vmatprep.subr.bf16.mxu1 %v20948_v46  ;;  %v22705_v49 = vshll.u32 %v16291_v35, 16  ;;  %v2894_v35 = vld [vmem:[#allocation2 + $0x30] sm:$0x1e] }
 0x11c   : > { %v2725_v51 = vsel %vm22644_vm5, %v2720_v37, %v2724_v33  ;;  %v16453_v33 = vcombine.low %v2893_v18, %v2893_v18  ;;  %v22728_v39 = vsel %vm22644_vm5, %v1174_v19, %v1178_v4  ;;  %v16455_v45 = vcombine.low %v2894_v35, %v2894_v35 }
 0x11d   : > { %18710 = vmatpush3.bf16.msra.mxu0 %v20949_v38  ;;  %v2734_v38 = vrot.slane %v2733_v20, 4  ;;  %v1192_v5 = vrot.slane %v22705_v49, 5  ;;  %v1323_v49 = vld [vmem:[#allocation2 + $0x20] sm:$0x1e] }
 0x11e   : > { %18888 = vmatpush3.bf16.msra.mxu1 %v20948_v46  ;;  %18711 = vmatprep.subr.bf16.mxu0 %v20951_v50  ;;  %v1181_v46 = vshrl.u32 %v16290_v30, 16  ;;  %v2748_v30 = vrot.slane %v2747_v15, 4  ;;  %v22748_v56 = vrot.slane %v16455_v45, 9  ;;  %v20981_v15 = vld [vmem:[#allocation7 + $0x140] sm:$0xff]  }
 0x11f   : > { %18889 = vmatprep.subr.bf16.mxu1 %v20950_v57  ;;  %v2739_v52 = vsel %vm22644_vm5, %v2734_v38, %v2738_v34  ;;  %v16454_v34 = vcombine.high %v2893_v18, %v2893_v18  ;;  %v20973_v38 = vld [vmem:[#allocation7 + $0x130] sm:$0xff]  }
 0x120   : > { %v1183_v59 = vrot.slane %v1181_v46, 4  ;;  %v16443_v55 = vcombine.low %v2725_v51, %v2739_v52  ;;  %v16456_v46 = vcombine.high %v2894_v35, %v2894_v35  ;;  %v20975_v51 = vld [vmem:[#allocation7 + $0x138] sm:$0xff]  }
 0x121   : > { %18712 = vmatpush3.bf16.msra.mxu0 %v20951_v50  ;;  %v20965_v50 = vld [vmem:[#allocation7 + $0x110] sm:$0xff]   ;;  %v22740_v48 = vrot.slane %v16454_v34, 5  ;;  %v20986_v34 = vld [vmem:[#allocation7 + $0x140] sm:$0xff]  }
 0x122   : > { %18890 = vmatpush3.bf16.msra.mxu1 %v20950_v57  ;;  %18713 = vmatprep.subr.bf16.mxu0 %v20953_v62  ;;  %v2758_v57 = vshll.u32 %v16441_v44, 16  ;;  %v20972_v44 = vld [vmem:[#allocation7 + $0x128] sm:$0xff]  }
 0x123   : > { %18891 = vmatprep.subr.bf16.mxu1 %v20952_v2 }
 0x124   : > { %v2760_v3 = vrot.slane %v2758_v57, 5  ;;  %v22750_v57 = vrot.slane %v16456_v46, 5 }
 0x125   : > { %18714 = vmatpush3.bf16.msra.mxu0 %v20953_v62  ;;  %v16440_v62 = vcombine.high %v22691_v21, %v22691_v21  ;;  %v16302_v21 = vcombine.low %v1320_v13, %v1320_v13 }
 0x126   : > { %18892 = vmatpush3.bf16.msra.mxu1 %v20952_v2  ;;  %18715 = vmatprep.subr.bf16.mxu0 %v20955_v8  ;;  %v20966_v2 = vld [vmem:[#allocation7 + $0x110] sm:$0xff]   ;;  %v2761_v16 = vor.u32 %v2760_v3, %v2757_v7  ;;  %v16336_v7 = vcombine.low %v1622_v63, %v1622_v63 }
 0x127   : > { %18893 = vmatprep.subr.bf16.mxu1 %v20954_v11  ;;  %v2750_v9 = vshll.u32 %v16440_v62, 16  ;;  %v1621_v62 = vld [vmem:[#allocation2 + $0x10] sm:$0x1f] }
 0x128   : > { %v22720_v31 = vrot.slane %v2761_v16, 4  ;;  %v16334_v32 = vcombine.low %v1621_v62, %v1621_v62  ;;  %v1660_v18 = vshrl.u32 %v16336_v7, 16  ;;  %v1663_v19 = vshll.u32 %v16336_v7, 16  ;;  %v20998_v7 = vld [vmem:[#allocation7 + $0x150] sm:$0xff]  }
 0x129   : > { %18716 = vmatpush3.bf16.msra.mxu0 %v20955_v8  ;;  %v1187_v8 = vor.u32 %v1186_v61, %v1183_v59  ;;  %v2752_v24 = vrot.slane %v2750_v9, 5  ;;  %v16307_v59 = vcombine.high %v1322_v43, %v1322_v43  ;;  %v16309_v61 = vcombine.high %v1323_v49, %v1323_v49 }
 0x12a   : > { %18894 = vmatpush3.bf16.msra.mxu1 %v20954_v11  ;;  %18721 = vmatprep.subr.bf16.mxu0 %v20958_v26  ;;  %v20969_v11 = vld [vmem:[#allocation7 + $0x120] sm:$0xff]   ;;  %v22760_v9 = vrot.slane %v16306_v58, 9  ;;  %v1662_v43 = vrot.slane %v1660_v18, 4 }
 0x12b   : > { %18895 = vmatprep.subr.bf16.mxu1 %v20956_v22  ;;  %v1188_v20 = vrot.slane %v1187_v8, 4  ;;  %v22746_v53 = vsel %vm22644_vm5, %v2748_v30, %v2752_v24  ;;  %v3192_v8 = vld [vmem:[#allocation2 + $0x30] sm:$0x1f]  ;;  %v3193_v24 = vld [vmem:[#allocation2 + $0x38] sm:$0x1f]  ;;  %v22776_v30 = vrot.slane %v16460_v6, 5 }
 0x12c   : > { %18718 = vmatmul.mubr.bf16.vlgmr.msra.gmra.mrb[0].mxu0 %v20961_v27  ;;  %v16304_v27 = vcombine.low %v1321_v17, %v1321_v17  ;;  %v16337_v17 = vcombine.high %v1622_v63, %v1622_v63  ;;  %v16487_v46 = vcombine.low %v3193_v24, %v3193_v24 }
 0x12d   : > { %18722 = vmatpush3.bf16.msra.mxu0 %v20958_v26  ;;  %18737 = vmatprep.mubr.bf16.mxu0 %v16292_v41  ;;  %v2766_v26 = vrot.slane %v22717_v10, 5 }
 0x12e   : > { %18896 = vmatpush3.bf16.msra.mxu1 %v20956_v22  ;;  %18723 = vmatprep.subr.bf16.mxu0 %v20963_v36  ;;  %v16303_v22 = vcombine.high %v1320_v13, %v1320_v13  ;;  %v22734_v41 = vrot.slane %v16304_v27, 9  ;;  %v1646_v13 = vshrl.u32 %v16334_v32, 16  ;;  %v16485_v27 = vcombine.low %v3192_v8, %v3192_v8 }
 0x12f   : > { %18901 = vmatprep.subr.bf16.mxu1 %v20960_v40  ;;  %v2767_v35 = vsel %vm22644_vm5, %v22720_v31, %v2766_v26  ;;  %v22785_v45 = vshll.u32 %v16337_v17, 16  ;;  %v2924_v26 = vsel %vm22668_vm8, %v22748_v56, %v22750_v57  ;;  %v20996_v56 = vld [vmem:[#allocation7 + $0x148] sm:$0xff]  }
 0x130   : > { %v22724_v37 = vrot.slane %v16303_v22, 5  ;;  %v1351_v3 = vsel %vm22668_vm8, %v22734_v41, %v22736_v42  ;;  %v22783_v41 = vld [vmem:[#allocation2 + $0x20] sm:$0x1f]  ;;  %v20995_v42 = vld [vmem:[#allocation7 + $0x148] sm:$0xff]   ;;  %v3220_v58 = vshll.u32 %v16485_v27, 16 }
 0x131   : > { %18898 = vmatmul.mubr.bf16.vlgmr.msra.gmra.mrb[0].mxu1 %v20962_v47  ;;  %18724 = vmatpush3.bf16.msra.mxu0 %v20963_v36  ;;  %v22722_v36 = vrot.slane %v16302_v21, 9  ;;  %v22738_v47 = vrot.slane %v16453_v33, 9  ;;  %v22766_v21 = vrot.slane %v16309_v61, 5  ;;  %v16486_v33 = vcombine.high %v3192_v8, %v3192_v8  ;;  %v20999_v8 = vld [vmem:[#allocation7 + $0x158] sm:$0xff]  }
 0x132   : > { %18902 = vmatpush3.bf16.msra.mxu1 %v20960_v40  ;;  %18725 = vmatprep.subr.bf16.mxu0 %v20965_v50  ;;  %v22732_v40 = vsel %vm22644_vm5, %v1188_v20, %v1192_v5  ;;  %v16459_v5 = vcombine.low %v2896_v54, %v2896_v54  ;;  %v20976_v20 = vld [vmem:[#allocation7 + $0x138] sm:$0xff]   ;;  %v16488_v54 = vcombine.high %v3193_v24, %v3193_v24 }
 0x133   : > { %18903 = vmatprep.subr.bf16.mxu1 %v20964_v60  ;;  %18917 = vmatprep.mubr.bf16.mxu1 %v16443_v55  ;;  %v16293_v52 = vcombine.low %v22728_v39, %v22732_v40  ;;  %v16308_v55 = vcombine.low %v1323_v49, %v1323_v49  ;;  %v2920_v10 = vsel %vm22668_vm8, %v22738_v47, %v22740_v48  ;;  %v3217_v49 = vshrl.u32 %v16485_v27, 16 }
 0x134   : > { %v16338_v47 = vcombine.low %v22783_v41, %v22783_v41  ;;  %v16444_v48 = vcombine.low %v22746_v53, %v2767_v35  ;;  %v3234_v39 = vshll.u32 %v16487_v46, 16  ;;  %v16465_v61 = vcombine.low %v2920_v10, %v2924_v26 }
 0x135   : > { %18726 = vmatpush3.bf16.msra.mxu0 %v20965_v50  ;;  %v2895_v50 = vld [vmem:[#allocation2 + $0x38] sm:$0x1e]  ;;  %v22764_v16 = vrot.slane %v16308_v55, 9  ;;  %v3231_v55 = vshrl.u32 %v16487_v46, 16  ;;  %v3219_v53 = vrot.slane %v3217_v49, 4  ;;  %v16339_v17 = vcombine.high %v22783_v41, %v22783_v41 }
 0x136   : > { %18904 = vmatpush3.bf16.msra.mxu1 %v20964_v60  ;;  %18727 = vmatprep.subr.bf16.mxu0 %v20967_v0  ;;  %v1347_v60 = vsel %vm22668_vm8, %v22722_v36, %v22724_v37  ;;  %v16457_v1 = vcombine.low %v2895_v50, %v2895_v50  ;;  %v16458_v4 = vcombine.high %v2895_v50, %v2895_v50  ;;  %v1648_v37 = vrot.slane %v1646_v13, 4  ;;  %v22796_v50 = vld [vmem:[#allocation2 + $0x28] sm:$0x1f]  ;;  %v21000_v41 = vld [vmem:[#allocation7 + $0x158] sm:$0xff]  }
 0x137   : > { %18905 = vmatprep.subr.bf16.mxu1 %v20966_v2  ;;  %v16314_v36 = vcombine.low %v1347_v60, %v1351_v3  ;;  %v16340_v40 = vcombine.low %v22796_v50, %v22796_v50  ;;  %v1677_v63 = vshll.u32 %v16338_v47, 16  ;;  %v16341_v18 = vcombine.high %v22796_v50, %v22796_v50 }
 0x138   : > { %v22768_v22 = vrot.slane %v16457_v1, 9  ;;  %v22772_v28 = vrot.slane %v16458_v4, 5  ;;  %v1671_v1 = vrot.slane %v22785_v45, 5  ;;  %v22821_v49 = vshll.u32 %v16339_v17, 16 }
 0x139   : > { %18728 = vmatpush3.bf16.msra.mxu0 %v20967_v0  ;;  %v20974_v0 = vld [vmem:[#allocation7 + $0x130] sm:$0xff]   ;;  %v1691_v6 = vshll.u32 %v16340_v40, 16  ;;  %v22823_v50 = vshll.u32 %v16341_v18, 16 }
 0x13a   : > { %18906 = vmatpush3.bf16.msra.mxu1 %v20966_v2  ;;  %18729 = vmatprep.subr.bf16.mxu0 %v20969_v11  ;;  %v16335_v2 = vcombine.high %v1621_v62, %v1621_v62  ;;  %v1674_v62 = vshrl.u32 %v16338_v47, 16 }
 0x13b   : > { %18907 = vmatprep.subr.bf16.mxu1 %v20968_v14  ;;  %v1699_v17 = vrot.slane %v22823_v50, 5  ;;  %v21070_v50 = vld [vmem:[#allocation7 + $0x200] sm:$0xff]  }
 0x13d   : > { %18730 = vmatpush3.bf16.msra.mxu0 %v20969_v11  ;;  %v22762_v11 = vrot.slane %v16307_v59, 5  ;;  %v22801_v59 = vshll.u32 %v16486_v33, 16 }
 0x13e   : > { %18908 = vmatpush3.bf16.msra.mxu1 %v20968_v14  ;;  %18731 = vmatprep.subr.bf16.mxu0 %v20971_v23  ;;  %v1649_v14 = vshll.u32 %v16334_v32, 16  ;;  %v3222_v32 = vrot.slane %v3220_v58, 5  ;;  %v21003_v58 = vld [vmem:[#allocation7 + $0x168] sm:$0xff]  }
 0x13f   : > { %18909 = vmatprep.subr.bf16.mxu1 %v20970_v29  ;;  %v3228_v4 = vrot.slane %v22801_v59, 5  ;;  %v21050_v59 = vld [vmem:[#allocation7 + $0x1d0] sm:$0xff]  }
 0x140   : > { %v3223_v27 = vor.u32 %v3222_v32, %v3219_v53  ;;  %v1685_v53 = vrot.slane %v22821_v49, 5 }
 0x141   : > { %18732 = vmatpush3.bf16.msra.mxu0 %v20971_v23  ;;  %v22770_v23 = vshll.u32 %v16335_v2, 16  ;;  %v22809_v2 = vshll.u32 %v16488_v54, 16 }
 0x142   : > { %18910 = vmatpush3.bf16.msra.mxu1 %v20970_v29  ;;  %18733 = vmatprep.subr.bf16.mxu0 %v20973_v38  ;;  %v22774_v29 = vrot.slane %v16459_v5, 9  ;;  %v1688_v5 = vshrl.u32 %v16340_v40, 16 }
 0x143   : > { %18911 = vmatprep.subr.bf16.mxu1 %v20972_v44  ;;  %v1657_v31 = vrot.slane %v22770_v23, 5  ;;  %v3242_v46 = vrot.slane %v22809_v2, 5  ;;  %v21049_v23 = vld [vmem:[#allocation7 + $0x1d0] sm:$0xff]   ;;  %v21053_v2 = vld [vmem:[#allocation7 + $0x1e0] sm:$0xff]  }
 0x145   : > { %18734 = vmatpush3.bf16.msra.mxu0 %v20973_v38  ;;  %v1651_v38 = vrot.slane %v1649_v14, 5  ;;  %v3233_v14 = vrot.slane %v3231_v55, 4 }
 0x146   : > { %18912 = vmatpush3.bf16.msra.mxu1 %v20972_v44  ;;  %18735 = vmatprep.subr.bf16.mxu0 %v20975_v51  ;;  %v1665_v44 = vrot.slane %v1663_v19, 5  ;;  %v1676_v19 = vrot.slane %v1674_v62, 4 }
 0x147   : > { %18913 = vmatprep.subr.bf16.mxu1 %v20974_v0  ;;  %v1652_v57 = vor.u32 %v1651_v38, %v1648_v37  ;;  %v1693_v37 = vrot.slane %v1691_v6, 5 }
 0x148   : > { %v1666_v60 = vor.u32 %v1665_v44, %v1662_v43  ;;  %v21001_v43 = vld [vmem:[#allocation7 + $0x160] sm:$0xff]  }
 0x149   : > { %18736 = vmatpush3.bf16.msra.mxu0 %v20975_v51  ;;  %v20997_v51 = vld [vmem:[#allocation7 + $0x150] sm:$0xff]   ;;  %v22811_v3 = vrot.slane %v1652_v57, 4 }
 0x14a   : > { %18914 = vmatpush3.bf16.msra.mxu1 %v20974_v0  ;;  %18741 = vmatprep.subr.bf16.mxu0 %v20981_v15  ;;  %v3195_v0 = vld [vmem:[#allocation2 + $0x48] sm:$0x1f]  ;;  %v22814_v13 = vrot.slane %v1666_v60, 4  ;;  %v21002_v60 = vld [vmem:[#allocation7 + $0x160] sm:$0xff]  }
 0x14b   : > { %18915 = vmatprep.subr.bf16.mxu1 %v20976_v20  ;;  %v16492_v35 = vcombine.high %v3195_v0, %v3195_v0 }
 0x14c   : > { %18738 = vmatmul.mubr.bf16.vlgmr.msra.gmra.mrb[0].mxu0 %v16293_v52  ;;  %v3194_v52 = vld [vmem:[#allocation2 + $0x40] sm:$0x1f] }
 0x14d   : > { %18742 = vmatpush3.bf16.msra.mxu0 %v20981_v15  ;;  %18757 = vmatprep.mubr.bf16.mxu0 %v16314_v36  ;;  %v3236_v15 = vrot.slane %v3234_v39, 5  ;;  %v16489_v24 = vcombine.low %v3194_v52, %v3194_v52  ;;  %v16490_v33 = vcombine.high %v3194_v52, %v3194_v52  ;;  %v1690_v36 = vrot.slane %v1688_v5, 4 }
 0x14e   : > { %18916 = vmatpush3.bf16.msra.mxu1 %v20976_v20  ;;  %18743 = vmatprep.subr.bf16.mxu0 %v20995_v42  ;;  %v1679_v20 = vrot.slane %v1677_v63, 5  ;;  %v22827_v57 = vshll.u32 %v16492_v35, 16  ;;  %v22829_v52 = vrot.slane %v3223_v27, 4  ;;  %v1827_v63 = vld [vmem:[#allocation2 + $0x10] sm:$0x1e]  ;;  %v21004_v35 = vld [vmem:[#allocation7 + $0x168] sm:$0xff]  }
 0x14f   : > { %18921 = vmatprep.subr.bf16.mxu1 %v20986_v34  ;;  %v3245_v38 = vshrl.u32 %v16489_v24, 16  ;;  %v3237_v44 = vor.u32 %v3236_v15, %v3233_v14  ;;  %v22825_v47 = vshll.u32 %v16490_v33, 16  ;;  %v1694_v39 = vor.u32 %v1693_v37, %v1690_v36  ;;  %v3398_v14 = vld [vmem:[#allocation2 + $0x38] sm:$0x1e] }
 0x150   : > { %v1680_v55 = vor.u32 %v1679_v20, %v1676_v19  ;;  %v16352_v32 = vcombine.low %v1827_v63, %v1827_v63  ;;  %v16353_v5 = vcombine.high %v1827_v63, %v1827_v63  ;;  %v1829_v19 = vld [vmem:[#allocation2 + $0x20] sm:$0x1e]  ;;  %v21005_v20 = vld [vmem:[#allocation7 + $0x170] sm:$0xff]   ;;  %v3270_v27 = vrot.slane %v22827_v57, 5  ;;  %v21080_v57 = vld [vmem:[#allocation7 + $0x208] sm:$0xff]  }
 0x151   : > { %18918 = vmatmul.mubr.bf16.vlgmr.msra.gmra.mrb[0].mxu1 %v16444_v48  ;;  %18744 = vmatpush3.bf16.msra.mxu0 %v20995_v42  ;;  %v3248_v42 = vshll.u32 %v16489_v24, 16  ;;  %v3247_v54 = vrot.slane %v3245_v38, 4  ;;  %v3256_v18 = vrot.slane %v22825_v47, 5  ;;  %v3229_v45 = vsel %vm22644_vm5, %v22829_v52, %v3228_v4  ;;  %v21052_v4 = vld [vmem:[#allocation7 + $0x1d8] sm:$0xff]   ;;  %v21054_v52 = vld [vmem:[#allocation7 + $0x1e0] sm:$0xff]  }
 0x152   : > { %18922 = vmatpush3.bf16.msra.mxu1 %v20986_v34  ;;  %18745 = vmatprep.subr.bf16.mxu0 %v20997_v51  ;;  %v16491_v34 = vcombine.low %v3195_v0, %v3195_v0  ;;  %v1828_v0 = vld [vmem:[#allocation2 + $0x18] sm:$0x1e]  ;;  %v22834_v15 = vrot.slane %v1680_v55, 4  ;;  %v22845_v37 = vrot.slane %v16352_v32, 9  ;;  %v3400_v55 = vld [vmem:[#allocation2 + $0x48] sm:$0x1e] }
 0x153   : > { %18923 = vmatprep.subr.bf16.mxu1 %v20996_v56  ;;  %18937 = vmatprep.mubr.bf16.mxu1 %v16465_v61  ;;  %v22831_v61 = vrot.slane %v3237_v44, 4  ;;  %v16354_v6 = vcombine.low %v1828_v0, %v1828_v0  ;;  %v16355_v33 = vcombine.high %v1828_v0, %v1828_v0  ;;  %v21007_v44 = vld [vmem:[#allocation7 + $0x178] sm:$0xff]  }
 0x154   : > { %v3259_v10 = vshrl.u32 %v16491_v34, 16  ;;  %v3262_v26 = vshll.u32 %v16491_v34, 16 }
 0x155   : > { %18746 = vmatpush3.bf16.msra.mxu0 %v20997_v51  ;;  %v3250_v51 = vrot.slane %v3248_v42, 5  ;;  %v16505_v42 = vcombine.low %v3398_v14, %v3398_v14 }
 0x156   : > { %18924 = vmatpush3.bf16.msra.mxu1 %v20996_v56  ;;  %18747 = vmatprep.subr.bf16.mxu0 %v20999_v8  ;;  %v3261_v48 = vrot.slane %v3259_v10, 4  ;;  %v3264_v56 = vrot.slane %v3262_v26, 5  ;;  %v22847_v10 = vrot.slane %v16353_v5, 5  ;;  %v16506_v26 = vcombine.high %v3398_v14, %v3398_v14 }
 0x157   : > { %18925 = vmatprep.subr.bf16.mxu1 %v20998_v7  ;;  %v3251_v40 = vor.u32 %v3250_v51, %v3247_v54  ;;  %v16356_v54 = vcombine.low %v1829_v19, %v1829_v19  ;;  %v3399_v51 = vld [vmem:[#allocation2 + $0x40] sm:$0x1e]  ;;  %v22861_v32 = vrot.slane %v16505_v42, 9  ;;  %v16510_v42 = vcombine.high %v3400_v55, %v3400_v55 }
 0x158   : > { %v3265_v62 = vor.u32 %v3264_v56, %v3261_v48  ;;  %v21006_v48 = vld [vmem:[#allocation7 + $0x170] sm:$0xff]   ;;  %v16357_v56 = vcombine.high %v1829_v19, %v1829_v19  ;;  %v16507_v5 = vcombine.low %v3399_v51, %v3399_v51  ;;  %v16508_v14 = vcombine.high %v3399_v51, %v3399_v51 }
 0x159   : > { %18748 = vmatpush3.bf16.msra.mxu0 %v20999_v8  ;;  %v3397_v8 = vld [vmem:[#allocation2 + $0x30] sm:$0x1e]  ;;  %v22840_v24 = vrot.slane %v3251_v40, 4  ;;  %v22855_v40 = vrot.slane %v16355_v33, 5  ;;  %v16509_v19 = vcombine.low %v3400_v55, %v3400_v55  ;;  %v1359_v33 = vsel %vm22668_vm8, %v22764_v16, %v22766_v21 }
 0x15a   : > { %18926 = vmatpush3.bf16.msra.mxu1 %v20998_v7  ;;  %18749 = vmatprep.subr.bf16.mxu0 %v21001_v43  ;;  %v22836_v7 = vrot.slane %v1694_v39, 4  ;;  %v16503_v34 = vcombine.low %v3397_v8, %v3397_v8  ;;  %v22843_v36 = vrot.slane %v3265_v62, 4  ;;  %v16504_v38 = vcombine.high %v3397_v8, %v3397_v8  ;;  %v21114_v16 = vld [vmem:[#allocation7 + $0x290] sm:$0xff]  }
 0x15b   : > { %18927 = vmatprep.subr.bf16.mxu1 %v21000_v41  ;;  %v1355_v39 = vsel %vm22668_vm8, %v22760_v9, %v22762_v11  ;;  %v22865_v8 = vrot.slane %v16356_v54, 9  ;;  %v350_v9 = vld [vmem:[#allocation3 + $0x18] sm:$0x10]  ;;  %v21008_v11 = vld [vmem:[#allocation7 + $0x178] sm:$0xff]   ;;  %v22877_v54 = vrot.slane %v16507_v5, 9  ;;  %v22879_v51 = vrot.slane %v16508_v14, 5 }
 0x15c   : > { %v22857_v62 = vrot.slane %v16503_v34, 9  ;;  %v22859_v0 = vrot.slane %v16504_v38, 5  ;;  %v22871_v34 = vrot.slane %v16357_v56, 5  ;;  %v16315_v21 = vcombine.low %v1355_v39, %v1359_v33  ;;  %v21028_v33 = vld [vmem:[#allocation7 + $0x188] sm:$0xff]  }
 0x15d   : > { %18750 = vmatpush3.bf16.msra.mxu0 %v21001_v43  ;;  %v1830_v43 = vld [vmem:[#allocation2 + $0x28] sm:$0x1e]  ;;  %v22885_v56 = vrot.slane %v16509_v19, 9  ;;  %v22893_v5 = vrot.slane %v16510_v42, 5  ;;  %v351_v14 = vsel %vm22889_vm14, 0, %v350_v9  ;;  %v2928_v39 = vsel %vm22668_vm8, %v22768_v22, %v22772_v28  ;;  %v21031_v9 = vld [vmem:[#allocation7 + $0x198] sm:$0xff]  }
 0x15e   : > { %18928 = vmatpush3.bf16.msra.mxu1 %v21000_v41  ;;  %18751 = vmatprep.subr.bf16.mxu0 %v21003_v58  ;;  %v22849_v41 = vrot.slane %v16354_v6, 9  ;;  %v16358_v63 = vcombine.low %v1830_v43, %v1830_v43  ;;  %v323_v6 = vld [vmem:[#allocation3 + $0x18] sm:$0x1]  ;;  %352 = vst [vmem:[#allocation3 + $0x18] sm:$0x10] %v351_v14  ;;  %v21030_v22 = vld [vmem:[#allocation7 + $0x190] sm:$0xff]   ;;  %v1658_v14 = vsel %vm22644_vm5, %v22811_v3, %v1657_v31 }
 0x15f   : > { %18929 = vmatprep.subr.bf16.mxu1 %v21002_v60  ;;  %v324_v55 = vsel %vm22881_vm11, 0, %v323_v6  ;;  %v2932_v6 = vsel %vm22668_vm8, %v22774_v29, %v22776_v30  ;;  %v21033_v28 = vld [vmem:[#allocation7 + $0x1a0] sm:$0xff]   ;;  %v21032_v29 = vld [vmem:[#allocation7 + $0x198] sm:$0xff]   ;;  %v21035_v30 = vld [vmem:[#allocation7 + $0x1a8] sm:$0xff]   ;;  %v3243_v31 = vsel %vm22644_vm5, %v22831_v61, %v3242_v46 }
 0x160   : > { %v22873_v38 = vrot.slane %v16358_v63, 9  ;;  %325 = vst [vmem:[#allocation3 + $0x18] sm:$0x1] %v324_v55  ;;  %v16466_v19 = vcombine.low %v2928_v39, %v2932_v6  ;;  %v21034_v42 = vld [vmem:[#allocation7 + $0x1a0] sm:$0xff]   ;;  %v21040_v55 = vld [vmem:[#allocation7 + $0x1b8] sm:$0xff]   ;;  %v1672_v39 = vsel %vm22644_vm5, %v22814_v13, %v1671_v1  ;;  %v21047_v6 = vld [vmem:[#allocation7 + $0x1c8] sm:$0xff]   ;;  %v16493_v3 = vcombine.low %v3229_v45, %v3243_v31 }
 0x161   : > { %18752 = vmatpush3.bf16.msra.mxu0 %v21003_v58  ;;  %v16359_v58 = vcombine.high %v1830_v43, %v1830_v43  ;;  %v21013_v43 = vld [vmem:[#allocation7 + $0x180] sm:$0xff]   ;;  %v21048_v1 = vld [vmem:[#allocation7 + $0x1c8] sm:$0xff]   ;;  %v21051_v13 = vld [vmem:[#allocation7 + $0x1d8] sm:$0xff]   ;;  %v1858_v49 = vsel %vm22668_vm8, %v22849_v41, %v22855_v40 }
 0x162   : > { %18930 = vmatpush3.bf16.msra.mxu1 %v21002_v60  ;;  %18753 = vmatprep.subr.bf16.mxu0 %v21005_v20  ;;  %v22863_v60 = vrot.slane %v16506_v26, 5  ;;  %v21055_v46 = vld [vmem:[#allocation7 + $0x1e8] sm:$0xff]   ;;  %v21057_v61 = vld [vmem:[#allocation7 + $0x1f0] sm:$0xff]   ;;  %v21085_v41 = vld [vmem:[#allocation7 + $0x220] sm:$0xff]  }
 0x163   : > { %18931 = vmatprep.subr.bf16.mxu1 %v21004_v35  ;;  %v22875_v26 = vrot.slane %v16359_v58, 5  ;;  %v21018_v58 = vld [vmem:[#allocation7 + $0x180] sm:$0xff]   ;;  %v21084_v40 = vld [vmem:[#allocation7 + $0x218] sm:$0xff]   ;;  %v326_v31 = vld [vmem:[#allocation3 + $0x20] sm:$0x1] }
 0x164   : > { %v3428_v47 = vsel %vm22668_vm8, %v22861_v32, %v22863_v60  ;;  %v21089_v32 = vld [vmem:[#allocation7 + $0x230] sm:$0xff]   ;;  %v21088_v60 = vld [vmem:[#allocation7 + $0x228] sm:$0xff]   ;;  %v21117_v63 = vld [vmem:[#allocation7 + $0x2a0] sm:$0xff]  }
 0x165   : > { %18754 = vmatpush3.bf16.msra.mxu0 %v21005_v20  ;;  %v21041_v20 = vld [vmem:[#allocation2 + $0x10] ss:$8 sps:$4 sm:$0xff]  }
 0x166   : > { %18932 = vmatpush3.bf16.msra.mxu1 %v21004_v35  ;;  %18755 = vmatprep.subr.bf16.mxu0 %v21007_v44  ;;  %v21027_v35 = vld [vmem:[#allocation7 + $0x188] sm:$0xff]  }
 0x167   : > { %18933 = vmatprep.subr.bf16.mxu1 %v21006_v48 }
 0x169   : > { %18756 = vmatpush3.bf16.msra.mxu0 %v21007_v44  ;;  %v21029_v44 = vld [vmem:[#allocation7 + $0x190] sm:$0xff]  }
 0x16a   : > { %18934 = vmatpush3.bf16.msra.mxu1 %v21006_v48  ;;  %18761 = vmatprep.subr.bf16.mxu0 %v21013_v43  ;;  %v21043_v48 = vld [vmem:[#allocation2 + $0x30] ss:$8 sps:$4 sm:$0xff]  }
 0x16b   : > { %18935 = vmatprep.subr.bf16.mxu1 %v21008_v11 }
 0x16c   : > { %18758 = vmatmul.mubr.bf16.vlgmr.msra.gmra.mrb[0].mxu0 %v16315_v21  ;;  %v21038_v21 = vld [vmem:[#allocation7 + $0x1b0] sm:$0xff]  }
 0x16d   : > { %18762 = vmatpush3.bf16.msra.mxu0 %v21013_v43  ;;  %18777 = vmatprep.mubr.bf16.mxu0 %v21041_v20  ;;  %v21036_v43 = vld [vmem:[#allocation7 + $0x1a8] sm:$0xff]   ;;  %v21039_v20 = vld [vmem:[#allocation7 + $0x1b8] sm:$0xff]  }
 0x16e   : > { %18936 = vmatpush3.bf16.msra.mxu1 %v21008_v11  ;;  %18763 = vmatprep.subr.bf16.mxu0 %v21027_v35  ;;  %v21037_v11 = vld [vmem:[#allocation7 + $0x1b0] sm:$0xff]  }
 0x16f   : > { %18941 = vmatprep.subr.bf16.mxu1 %v21018_v58 }
 0x171   : > { %18938 = vmatmul.mubr.bf16.vlgmr.msra.gmra.mrb[0].mxu1 %v16466_v19  ;;  %18764 = vmatpush3.bf16.msra.mxu0 %v21027_v35  ;;  %v21042_v35 = vld [vmem:[#allocation7 + $0x1c0] sm:$0xff]   ;;  %v16342_v19 = vcombine.low %v1658_v14, %v1672_v39  ;;  %v3432_v39 = vsel %vm22668_vm8, %v22877_v54, %v22879_v51  ;;  %v344_v54 = vld [vmem:[#allocation3 + $0x8] sm:$0x10] }
 0x172   : > { %18942 = vmatpush3.bf16.msra.mxu1 %v21018_v58  ;;  %18765 = vmatprep.subr.bf16.mxu0 %v21029_v44  ;;  %v21045_v58 = vld [vmem:[#allocation2 + $0x20] ss:$8 sps:$4 sm:$0xff]  }
 0x173   : > { %18943 = vmatprep.subr.bf16.mxu1 %v21028_v33  ;;  %18957 = vmatprep.mubr.bf16.mxu1 %v21043_v48  ;;  %v21056_v48 = vld [vmem:[#allocation7 + $0x1e8] sm:$0xff]  }
 0x175   : > { %18766 = vmatpush3.bf16.msra.mxu0 %v21029_v44  ;;  %v21044_v44 = vld [vmem:[#allocation7 + $0x1c0] sm:$0xff]  }
 0x176   : > { %18944 = vmatpush3.bf16.msra.mxu1 %v21028_v33  ;;  %18767 = vmatprep.subr.bf16.mxu0 %v21031_v9  ;;  %v21046_v33 = vld [vmem:[#allocation2 + $0x40] ss:$8 sps:$4 sm:$0xff]  }
 0x177   : > { %18945 = vmatprep.subr.bf16.mxu1 %v21030_v22 }
 0x179   : > { %18768 = vmatpush3.bf16.msra.mxu0 %v21031_v9  ;;  %v21059_v9 = vld [vmem:[#allocation7 + $0x1f8] sm:$0xff]  }
 0x17a   : > { %18946 = vmatpush3.bf16.msra.mxu1 %v21030_v22  ;;  %18769 = vmatprep.subr.bf16.mxu0 %v21033_v28  ;;  %v21058_v22 = vld [vmem:[#allocation7 + $0x1f0] sm:$0xff]  }
 0x17b   : > { %18947 = vmatprep.subr.bf16.mxu1 %v21032_v29 }
 0x17d   : > { %18770 = vmatpush3.bf16.msra.mxu0 %v21033_v28  ;;  %v21065_v28 = vld [vmem:[#allocation7 + $0x200] sm:$0xff]  }
 0x17e   : > { %18948 = vmatpush3.bf16.msra.mxu1 %v21032_v29  ;;  %18771 = vmatprep.subr.bf16.mxu0 %v21035_v30  ;;  %v21060_v29 = vld [vmem:[#allocation7 + $0x1f8] sm:$0xff]  }
 0x17f   : > { %18949 = vmatprep.subr.bf16.mxu1 %v21034_v42 }
 0x181   : > { %18772 = vmatpush3.bf16.msra.mxu0 %v21035_v30  ;;  %v1686_v30 = vsel %vm22644_vm5, %v22834_v15, %v1685_v53  ;;  %v21079_v15 = vld [vmem:[#allocation7 + $0x208] sm:$0xff]  }
 0x182   : > { %18950 = vmatpush3.bf16.msra.mxu1 %v21034_v42  ;;  %18773 = vmatprep.subr.bf16.mxu0 %v21037_v11  ;;  %v1700_v42 = vsel %vm22644_vm5, %v22836_v7, %v1699_v17  ;;  %v3257_v7 = vsel %vm22644_vm5, %v22840_v24, %v3256_v18  ;;  %v3271_v17 = vsel %vm22644_vm5, %v22843_v36, %v3270_v27  ;;  %v21083_v27 = vld [vmem:[#allocation7 + $0x218] sm:$0xff]   ;;  %v21082_v36 = vld [vmem:[#allocation7 + $0x210] sm:$0xff]  }
 0x183   : > { %18951 = vmatprep.subr.bf16.mxu1 %v21036_v43  ;;  %v16343_v53 = vcombine.low %v1686_v30, %v1700_v42  ;;  %v16494_v18 = vcombine.low %v3257_v7, %v3271_v17  ;;  %v21109_v30 = vld [vmem:[#allocation7 + $0x280] sm:$0xff]   ;;  %v21119_v17 = vld [vmem:[#allocation7 + $0x2a8] sm:$0xff]  }
 0x184   : > { %v21110_v42 = vld [vmem:[#allocation7 + $0x280] sm:$0xff]  }
 0x185   : > { %18774 = vmatpush3.bf16.msra.mxu0 %v21037_v11  ;;  %v1854_v11 = vsel %vm22668_vm8, %v22845_v37, %v22847_v10  ;;  %v21081_v37 = vld [vmem:[#allocation7 + $0x210] sm:$0xff]   ;;  %v3424_v10 = vsel %vm22668_vm8, %v22857_v62, %v22859_v0  ;;  %v21087_v62 = vld [vmem:[#allocation7 + $0x228] sm:$0xff]   ;;  %v21086_v0 = vld [vmem:[#allocation7 + $0x220] sm:$0xff]  }
 0x186   : > { %18952 = vmatpush3.bf16.msra.mxu1 %v21036_v43  ;;  %18775 = vmatprep.subr.bf16.mxu0 %v21039_v20  ;;  %v16364_v43 = vcombine.low %v1854_v11, %v1858_v49  ;;  %v16515_v24 = vcombine.low %v3424_v10, %v3428_v47  ;;  %v21111_v49 = vld [vmem:[#allocation7 + $0x288] sm:$0xff]   ;;  %v21118_v7 = vld [vmem:[#allocation7 + $0x2a0] sm:$0xff]   ;;  %v21121_v10 = vld [vmem:[#allocation7 + $0x2b0] sm:$0xff]  }
 0x187   : > { %18953 = vmatprep.subr.bf16.mxu1 %v21038_v21  ;;  %v21122_v47 = vld [vmem:[#allocation7 + $0x2b0] sm:$0xff]  }
 0x189   : > { %18776 = vmatpush3.bf16.msra.mxu0 %v21039_v20  ;;  %v21091_v20 = vld [vmem:[#allocation7 + $0x238] sm:$0xff]  }
 0x18a   : > { %18954 = vmatpush3.bf16.msra.mxu1 %v21038_v21  ;;  %18781 = vmatprep.subr.bf16.mxu0 %v21042_v35  ;;  %v21090_v21 = vld [vmem:[#allocation7 + $0x230] sm:$0xff]  }
 0x18b   : > { %18955 = vmatprep.subr.bf16.mxu1 %v21040_v55 }
 0x18c   : > { %18778 = vmatmul.mubr.bf16.vlgmr.msra.gmra.mrb[0].mxu0 %v21045_v58  ;;  %v1866_v58 = vsel %vm22668_vm8, %v22873_v38, %v22875_v26  ;;  %v335_v38 = vld [vmem:[#allocation3 + $0x38] sm:$0x1]  ;;  %v362_v26 = vld [vmem:[#allocation3 + $0x38] sm:$0x10] }
 0x18d   : > { %18782 = vmatpush3.bf16.msra.mxu0 %v21042_v35  ;;  %18797 = vmatprep.mubr.bf16.mxu0 %v16342_v19  ;;  %v21092_v35 = vld [vmem:[#allocation7 + $0x238] sm:$0xff]  }
 0x18e   : > { %18956 = vmatpush3.bf16.msra.mxu1 %v21040_v55  ;;  %18783 = vmatprep.subr.bf16.mxu0 %v21047_v6  ;;  %v1862_v55 = vsel %vm22668_vm8, %v22865_v8, %v22871_v34  ;;  %v3436_v8 = vsel %vm22668_vm8, %v22885_v56, %v22893_v5  ;;  %v317_v19 = vld [vmem:[#allocation3 + $0x8] sm:$0x1]  ;;  %v345_v56 = vsel %vm22889_vm14, 0, %v344_v54 }
 0x18f   : > { %18961 = vmatprep.subr.bf16.mxu1 %v21044_v44  ;;  %v16365_v14 = vcombine.low %v1862_v55, %v1866_v58  ;;  %v16516_v34 = vcombine.low %v3432_v39, %v3436_v8  ;;  %v318_v51 = vsel %vm22881_vm11, 0, %v317_v19  ;;  %v329_v5 = vld [vmem:[#allocation3 + $0x28] sm:$0x1]  ;;  %346 = vst [vmem:[#allocation3 + $0x8] sm:$0x10] %v345_v56 }
 0x190   : > { %319 = vst [vmem:[#allocation3 + $0x8] sm:$0x1] %v318_v51 }
 0x191   : > { %18958 = vmatmul.mubr.bf16.vlgmr.msra.gmra.mrb[0].mxu1 %v21046_v33  ;;  %18784 = vmatpush3.bf16.msra.mxu0 %v21047_v6  ;;  %v336_v6 = vsel %vm22881_vm11, 0, %v335_v38  ;;  %v356_v33 = vld [vmem:[#allocation3 + $0x28] sm:$0x10] }
 0x192   : > { %18962 = vmatpush3.bf16.msra.mxu1 %v21044_v44  ;;  %18785 = vmatprep.subr.bf16.mxu0 %v21049_v23  ;;  %v363_v44 = vsel %vm22889_vm14, 0, %v362_v26  ;;  %337 = vst [vmem:[#allocation3 + $0x38] sm:$0x1] %v336_v6  ;;  %v357_v45 = vsel %vm22889_vm14, 0, %v356_v33 }
 0x193   : > { %18963 = vmatprep.subr.bf16.mxu1 %v21048_v1  ;;  %18977 = vmatprep.mubr.bf16.mxu1 %v16493_v3  ;;  %364 = vst [vmem:[#allocation3 + $0x38] sm:$0x10] %v363_v44  ;;  %358 = vst [vmem:[#allocation3 + $0x28] sm:$0x10] %v357_v45  ;;  %v353_v3 = vld [vmem:[#allocation3 + $0x20] sm:$0x10] }
 0x195   : > { %18786 = vmatpush3.bf16.msra.mxu0 %v21049_v23  ;;  %v330_v23 = vsel %vm22881_vm11, 0, %v329_v5 }
 0x196   : > { %18964 = vmatpush3.bf16.msra.mxu1 %v21048_v1  ;;  %18787 = vmatprep.subr.bf16.mxu0 %v21051_v13  ;;  %331 = vst [vmem:[#allocation3 + $0x28] sm:$0x1] %v330_v23  ;;  %v327_v1 = vsel %vm22881_vm11, 0, %v326_v31 }
 0x197   : > { %18965 = vmatprep.subr.bf16.mxu1 %v21050_v59  ;;  %328 = vst [vmem:[#allocation3 + $0x20] sm:$0x1] %v327_v1 }
 0x199   : > { %18788 = vmatpush3.bf16.msra.mxu0 %v21051_v13  ;;  %v338_v13 = vld [vmem:[#allocation3 + $0x40] sm:$0x1] }
 0x19a   : > { %18966 = vmatpush3.bf16.msra.mxu1 %v21050_v59  ;;  %18789 = vmatprep.subr.bf16.mxu0 %v21053_v2  ;;  %v354_v59 = vsel %vm22889_vm14, 0, %v353_v3 }
 0x19b   : > { %18967 = vmatprep.subr.bf16.mxu1 %v21052_v4  ;;  %355 = vst [vmem:[#allocation3 + $0x20] sm:$0x10] %v354_v59 }
 0x19d   : > { %18790 = vmatpush3.bf16.msra.mxu0 %v21053_v2  ;;  %v339_v2 = vsel %vm22881_vm11, 0, %v338_v13  ;;  %v2051_v13 = vld [vmem:[#allocation3 + $0x18] sm:$0x1f] }
 0x19e   : > { %18968 = vmatpush3.bf16.msra.mxu1 %v21052_v4  ;;  %18791 = vmatprep.subr.bf16.mxu0 %v21055_v46  ;;  %v365_v4 = vld [vmem:[#allocation3 + $0x40] sm:$0x10]  ;;  %340 = vst [vmem:[#allocation3 + $0x40] sm:$0x1] %v339_v2 }
 0x19f   : > { %18969 = vmatprep.subr.bf16.mxu1 %v21054_v52 }
 0x1a1   : > { %18792 = vmatpush3.bf16.msra.mxu0 %v21055_v46  ;;  %v320_v46 = vld [vmem:[#allocation3 + $0x10] sm:$0x1] }
 0x1a2   : > { %18970 = vmatpush3.bf16.msra.mxu1 %v21054_v52  ;;  %18793 = vmatprep.subr.bf16.mxu0 %v21057_v61  ;;  %v366_v52 = vsel %vm22889_vm14, 0, %v365_v4 }
 0x1a3   : > { %18971 = vmatprep.subr.bf16.mxu1 %v21056_v48  ;;  %367 = vst [vmem:[#allocation3 + $0x40] sm:$0x10] %v366_v52 }
 0x1a5   : > { %18794 = vmatpush3.bf16.msra.mxu0 %v21057_v61  ;;  %v321_v61 = vsel %vm22881_vm11, 0, %v320_v46 }
 0x1a6   : > { %18972 = vmatpush3.bf16.msra.mxu1 %v21056_v48  ;;  %18795 = vmatprep.subr.bf16.mxu0 %v21059_v9  ;;  %v347_v48 = vld [vmem:[#allocation3 + $0x10] sm:$0x10]  ;;  %322 = vst [vmem:[#allocation3 + $0x10] sm:$0x1] %v321_v61 }
 0x1a7   : > { %18973 = vmatprep.subr.bf16.mxu1 %v21058_v22 }
 0x1a9   : > { %18796 = vmatpush3.bf16.msra.mxu0 %v21059_v9  ;;  %v332_v9 = vld [vmem:[#allocation3 + $0x30] sm:$0x1] }
 0x1aa   : > { %18974 = vmatpush3.bf16.msra.mxu1 %v21058_v22  ;;  %18801 = vmatprep.subr.bf16.mxu0 %v21065_v28  ;;  %v348_v22 = vsel %vm22889_vm14, 0, %v347_v48  ;;  %v2045_v48 = vld [vmem:[#allocation3 + $0x8] sm:$0x1f] }
 0x1ab   : > { %18975 = vmatprep.subr.bf16.mxu1 %v21060_v29  ;;  %349 = vst [vmem:[#allocation3 + $0x10] sm:$0x10] %v348_v22 }
 0x1ac   : > { %18798 = vmatmul.mubr.bf16.vlgmr.msra.gmra.mrb[0].mxu0 %v16343_v53  ;;  %v21112_v53 = vld [vmem:[#allocation7 + $0x288] sm:$0xff]  }
 0x1ad   : > { %18802 = vmatpush3.bf16.msra.mxu0 %v21065_v28  ;;  %18817 = vmatprep.mubr.bf16.mxu0 %v16364_v43  ;;  %v333_v28 = vsel %vm22881_vm11, 0, %v332_v9  ;;  %v21116_v43 = vld [vmem:[#allocation7 + $0x298] sm:$0xff]  }
 0x1ae   : > { %18976 = vmatpush3.bf16.msra.mxu1 %v21060_v29  ;;  %18803 = vmatprep.subr.bf16.mxu0 %v21079_v15  ;;  %v359_v29 = vld [vmem:[#allocation3 + $0x30] sm:$0x10]  ;;  %334 = vst [vmem:[#allocation3 + $0x30] sm:$0x1] %v333_v28 }
 0x1af   : > { %18981 = vmatprep.subr.bf16.mxu1 %v21070_v50  ;;  %v360_v11 = vsel %vm22889_vm14, 0, %v359_v29 }
 0x1b0   : > { %361 = vst [vmem:[#allocation3 + $0x30] sm:$0x10] %v360_v11 }
 0x1b1   : > { %18978 = vmatmul.mubr.bf16.vlgmr.msra.gmra.mrb[0].mxu1 %v16494_v18  ;;  %18804 = vmatpush3.bf16.msra.mxu0 %v21079_v15  ;;  %v21113_v15 = vld [vmem:[#allocation7 + $0x290] sm:$0xff]   ;;  %v21123_v18 = vld [vmem:[#allocation7 + $0x2b8] sm:$0xff]  }
 0x1b2   : > { %18982 = vmatpush3.bf16.msra.mxu1 %v21070_v50  ;;  %18805 = vmatprep.subr.bf16.mxu0 %v21081_v37  ;;  %v21115_v50 = vld [vmem:[#allocation7 + $0x298] sm:$0xff]  }
 0x1b3   : > { %18983 = vmatprep.subr.bf16.mxu1 %v21080_v57  ;;  %18997 = vmatprep.mubr.bf16.mxu1 %v16515_v24  ;;  %v23005_v24 = vld [vmem:[#allocation7 + $0x240] sm:$0xff]  }
 0x1b5   : > { %18806 = vmatpush3.bf16.msra.mxu0 %v21081_v37  ;;  %v21120_v37 = vld [vmem:[#allocation7 + $0x2a8] sm:$0xff]  }
 0x1b6   : > { %18984 = vmatpush3.bf16.msra.mxu1 %v21080_v57  ;;  %18807 = vmatprep.subr.bf16.mxu0 %v21083_v27  ;;  %v21124_v57 = vld [vmem:[#allocation7 + $0x2b8] sm:$0xff]  }
 0x1b7   : > { %18985 = vmatprep.subr.bf16.mxu1 %v21082_v36 }
 0x1b9   : > { %18808 = vmatpush3.bf16.msra.mxu0 %v21083_v27  ;;  %v23007_v27 = vld [vmem:[#allocation7 + $0x240] sm:$0xff]  }
 0x1ba   : > { %18986 = vmatpush3.bf16.msra.mxu1 %v21082_v36  ;;  %18809 = vmatprep.subr.bf16.mxu0 %v21085_v41  ;;  %v3648_v36 = vld [vmem:[#allocation3] sm:$0x1f] }
 0x1bb   : > { %18987 = vmatprep.subr.bf16.mxu1 %v21084_v40 }
 0x1bd   : > { %18810 = vmatpush3.bf16.msra.mxu0 %v21085_v41  ;;  %v16526_v41 = vcombine.low %v3648_v36, %v3648_v36 }
 0x1be   : > { %18988 = vmatpush3.bf16.msra.mxu1 %v21084_v40  ;;  %18811 = vmatprep.subr.bf16.mxu0 %v21087_v62  ;;  %v16374_v40 = vld [vmem:[#allocation9] ss:$0 sm:$0xff] }
 0x1bf   : > { %18989 = vmatprep.subr.bf16.mxu1 %v21086_v0 }
 0x1c1   : > { %18812 = vmatpush3.bf16.msra.mxu0 %v21087_v62  ;;  %v16527_v62 = vcombine.high %v3648_v36, %v3648_v36 }
 0x1c2   : > { %18990 = vmatpush3.bf16.msra.mxu1 %v21086_v0  ;;  %18813 = vmatprep.subr.bf16.mxu0 %v21089_v32  ;;  %v3673_v0 = vshrl.u32 %v16526_v41, 16 }
 0x1c3   : > { %18991 = vmatprep.subr.bf16.mxu1 %v21088_v60 }
 0x1c4   : > { %v23011_v8 = vrot.slane %v3673_v0, 4  ;;  %v3613_v0 = vld [vmem:[#allocation3 + $0x28] sm:$0x1f] }
 0x1c5   : > { %18814 = vmatpush3.bf16.msra.mxu0 %v21089_v32 }
 0x1c6   : > { %18992 = vmatpush3.bf16.msra.mxu1 %v21088_v60  ;;  %18815 = vmatprep.subr.bf16.mxu0 %v21091_v20  ;;  %v3676_v60 = vshll.u32 %v16526_v41, 16 }
 0x1c7   : > { %18993 = vmatprep.subr.bf16.mxu1 %v21090_v21 }
 0x1c8   : > { %v23015_v6 = vrot.slane %v3676_v60, 5 }
 0x1c9   : > { %18816 = vmatpush3.bf16.msra.mxu0 %v21091_v20 }
 0x1ca   : > { %18994 = vmatpush3.bf16.msra.mxu1 %v21090_v21  ;;  %19001 = vmatprep.subr.bf16.mxu0 %v21109_v30 }
 0x1cb   : > { %18995 = vmatprep.subr.bf16.mxu1 %v21092_v35 }
 0x1cc   : > { %18818 = vmatmul.mubr.bf16.vlgmr.msra.gmra.mrb[0].mxu0 %v16365_v14 }
 0x1cd   : > { %19002 = vmatpush3.bf16.msra.mxu0 %v21109_v30 }
 0x1ce   : > { %18996 = vmatpush3.bf16.msra.mxu1 %v21092_v35  ;;  %19003 = vmatprep.subr.bf16.mxu0 %v21111_v49 }
 0x1cf   : > { %19181 = vmatprep.subr.bf16.mxu1 %v21110_v42 }
 0x1d1   : > { %18998 = vmatmul.mubr.bf16.vlgmr.msra.gmra.mrb[0].mxu1 %v16516_v34  ;;  %19004 = vmatpush3.bf16.msra.mxu0 %v21111_v49  ;;  %v23013_v34 = vshll.u32 %v16527_v62, 16 }
 0x1d2   : > { %19182 = vmatpush3.bf16.msra.mxu1 %v21110_v42  ;;  %19005 = vmatprep.subr.bf16.mxu0 %v21113_v15 }
 0x1d3   : > { %19183 = vmatprep.subr.bf16.mxu1 %v21112_v53 }
 0x1d5   : > { %19006 = vmatpush3.bf16.msra.mxu0 %v21113_v15 }
 0x1d6   : > { %19184 = vmatpush3.bf16.msra.mxu1 %v21112_v53  ;;  %19007 = vmatprep.subr.bf16.mxu0 %v21115_v50 }
 0x1d7   : > { %19185 = vmatprep.subr.bf16.mxu1 %v21114_v16 }
 0x1d9   : > { %19008 = vmatpush3.bf16.msra.mxu0 %v21115_v50 }
 0x1da   : > { %19186 = vmatpush3.bf16.msra.mxu1 %v21114_v16  ;;  %19009 = vmatprep.subr.bf16.mxu0 %v21117_v63  ;;  %v2054_v16 = vld [vmem:[#allocation3 + $0x20] sm:$0x1f] }
 0x1db   : > { %19187 = vmatprep.subr.bf16.mxu1 %v21116_v43 }
 0x1dd   : > { %19010 = vmatpush3.bf16.msra.mxu0 %v21117_v63 }
 0x1de   : > { %19188 = vmatpush3.bf16.msra.mxu1 %v21116_v43  ;;  %19011 = vmatprep.subr.bf16.mxu0 %v21119_v17 }
 0x1df   : > { %19189 = vmatprep.subr.bf16.mxu1 %v21118_v7 }
 0x1e1   : > { %19012 = vmatpush3.bf16.msra.mxu0 %v21119_v17 }
 0x1e2   : > { %19190 = vmatpush3.bf16.msra.mxu1 %v21118_v7  ;;  %19013 = vmatprep.subr.bf16.mxu0 %v21121_v10 }
 0x1e3   : > { %19191 = vmatprep.subr.bf16.mxu1 %v21120_v37 }
 0x1e5   : > { %19014 = vmatpush3.bf16.msra.mxu0 %v21121_v10 }
 0x1e6   : > { %19192 = vmatpush3.bf16.msra.mxu1 %v21120_v37  ;;  %19015 = vmatprep.subr.bf16.mxu0 %v21123_v18 }
 0x1e7   : > { %19193 = vmatprep.subr.bf16.mxu1 %v21122_v47 }
 0x1e9   : > { %19016 = vmatpush3.bf16.msra.mxu0 %v21123_v18 }
 0x1ea   : > { %19194 = vmatpush3.bf16.msra.mxu1 %v21122_v47  ;;  %19021 = vmatprep.subr.bf16.mxu0 %v23005_v24  ;;  %v3619_v47 = vld [vmem:[#allocation3 + $0x38] sm:$0x1f] }
 0x1eb   : > { %19195 = vmatprep.subr.bf16.mxu1 %v21124_v57 }
 0x1ee   : > { %19196 = vmatpush3.bf16.msra.mxu1 %v21124_v57 }
 0x1ef   : > { %19201 = vmatprep.subr.bf16.mxu1 %v23007_v27 }
 0x29f   : > { %v18819_v32 = vpop.f32.mrb[0].mxu0 }
 0x2a0   : > { %v2001_v20 = vadd.f32 %v18819_v32, %v16374_v40  ;;  %v1974_v21 = vpop.f32.mrb[1].mxu0 }
 0x2a1   : > { %v1999_v35 = vadd.f32 %v16374_v40, %v1974_v21  ;;  %v18820_v55 = vpop.f32.mrb[2].mxu0  ;;  %v3622_v21 = vld [vmem:[#allocation3 + $0x40] sm:$0x1f] }
 0x2a2   : > { %v2005_v58 = vmax.f32 %v2001_v20, 0.0  ;;  %v2002_v14 = vadd.f32 %v18820_v55, %v16374_v40  ;;  %v1977_v39 = vpop.f32.mrb[3].mxu0 }
 0x2a3   : > { %v2003_v38 = vmax.f32 %v1999_v35, 0.0  ;;  %v2000_v26 = vadd.f32 %v16374_v40, %v1977_v39 }
 0x2a4   : > { %v2009_v44 = vpack.c.bf16 %v2005_v58, %v2005_v58  ;;  %v18999_v19 = vpop.f32.mrb[0].mxu1  ;;  %v2006_v54 = vmax.f32 %v2002_v14, 0.0 }
 0x2a5   : > { %v3570_v51 = vadd.f32 %v18999_v19, %v16374_v40  ;;  %v2007_v56 = vpack.c.bf16 %v2003_v38, %v2003_v38  ;;  %v3543_v5 = vpop.f32.mrb[1].mxu1  ;;  %v2004_v33 = vmax.f32 %v2000_v26, 0.0 }
 0x2a6   : > { %v2026_v23 = vshrl.u32 %v2009_v44, 16  ;;  %v2029_v45 = vshll.u32 %v2009_v44, 16  ;;  %v3568_v31 = vadd.f32 %v16374_v40, %v3543_v5  ;;  %v2010_v1 = vpack.c.bf16 %v2006_v54, %v2006_v54  ;;  %v19000_v3 = vpop.f32.mrb[2].mxu1 }
 0x2a7   : > { %v3574_v59 = vmax.f32 %v3570_v51, 0.0  ;;  %v2012_v2 = vshrl.u32 %v2007_v56, 16  ;;  %v2015_v4 = vshll.u32 %v2007_v56, 16  ;;  %v3571_v46 = vadd.f32 %v19000_v3, %v16374_v40  ;;  %v3546_v52 = vpop.f32.mrb[3].mxu1  ;;  %v2048_v51 = vld [vmem:[#allocation3 + $0x10] sm:$0x1f] }
 0x2a8   : > { %v2028_v61 = vrot.slane %v2026_v23, 7  ;;  %v3572_v9 = vmax.f32 %v3568_v31, 0.0  ;;  %v2033_v22 = vshrl.u32 %v2010_v1, 16  ;;  %v2036_v28 = vshll.u32 %v2010_v1, 16 }
 0x2a9   : > { %v3578_v30 = vpack.c.bf16 %v3574_v59, %v3574_v59  ;;  %v2014_v42 = vrot.slane %v2012_v2, 7  ;;  %v3575_v11 = vmax.f32 %v3571_v46, 0.0  ;;  %v2008_v50 = vpack.c.bf16 %v2004_v33, %v2004_v33 }
 0x2aa   : > { %v2031_v49 = vor.u32 %v2029_v45, %v2028_v61  ;;  %v3576_v53 = vpack.c.bf16 %v3572_v9, %v3572_v9  ;;  %v2035_v15 = vrot.slane %v2033_v22, 7  ;;  %v3569_v17 = vadd.f32 %v16374_v40, %v3546_v52 }
 0x2ab   : > { %v3595_v43 = vshrl.u32 %v3578_v30, 16  ;;  %v2017_v63 = vor.u32 %v2015_v4, %v2014_v42  ;;  %v3579_v7 = vpack.c.bf16 %v3575_v11, %v3575_v11  ;;  %v3598_v10 = vshll.u32 %v3578_v30, 16  ;;  %v3616_v4 = vld [vmem:[#allocation3 + $0x30] sm:$0x1f] }
 0x2ac   : > { %v2052_v37 = vsel %vm23019_vm0, %v2031_v49, %v2051_v13  ;;  %v3581_v18 = vshrl.u32 %v3576_v53, 16  ;;  %v2038_v57 = vor.u32 %v2036_v28, %v2035_v15  ;;  %v3584_v62 = vshll.u32 %v3576_v53, 16 }
 0x2ad   : > { %2053 = vst [vmem:[#allocation3 + $0x18] sm:$0x1f] %v2052_v37  ;;  %v3597_v36 = vrot.slane %v3595_v43, 7  ;;  %v2046_v41 = vsel %vm23019_vm0, %v2017_v63, %v2045_v48  ;;  %v3602_v32 = vshrl.u32 %v3579_v7, 16  ;;  %v3605_v20 = vshll.u32 %v3579_v7, 16 }
 0x2ae   : > { %2047 = vst [vmem:[#allocation3 + $0x8] sm:$0x1f] %v2046_v41  ;;  %v3583_v60 = vrot.slane %v3581_v18, 7  ;;  %v2055_v40 = vsel %vm23019_vm0, %v2038_v57, %v2054_v16  ;;  %v2019_v35 = vshrl.u32 %v2008_v50, 16  ;;  %v3573_v14 = vmax.f32 %v3569_v17, 0.0 }
 0x2af   : > { %v3600_v55 = vor.u32 %v3598_v10, %v3597_v36  ;;  %2056 = vst [vmem:[#allocation3 + $0x20] sm:$0x1f] %v2055_v40  ;;  %v3604_v58 = vrot.slane %v3602_v32, 7  ;;  %v2022_v26 = vshll.u32 %v2008_v50, 16  ;;  %v3679_v44 = vor.u32 %v23015_v6, %v23011_v8 }
 0x2b0   : > { %v3586_v39 = vor.u32 %v3584_v62, %v3583_v60  ;;  %v2021_v38 = vrot.slane %v2019_v35, 7  ;;  %v3577_v56 = vpack.c.bf16 %v3573_v14, %v3573_v14  ;;  %v3684_v31 = vrot.slane %v23013_v34, 5 }
 0x2b1   : > { %v3620_v19 = vsel %vm23019_vm0, %v3600_v55, %v3619_v47  ;;  %v3607_v54 = vor.u32 %v3605_v20, %v3604_v58  ;;  %v3680_v6 = vrot.slane %v3679_v44, 4 }
 0x2b2   : > { %3621 = vst [vmem:[#allocation3 + $0x38] sm:$0x1f] %v3620_v19  ;;  %v3614_v5 = vsel %vm23019_vm0, %v3586_v39, %v3613_v0  ;;  %v2024_v33 = vor.u32 %v2022_v26, %v2021_v38  ;;  %v3588_v45 = vshrl.u32 %v3577_v56, 16  ;;  %v3591_v13 = vshll.u32 %v3577_v56, 16 }
 0x2b3   : > { %3615 = vst [vmem:[#allocation3 + $0x28] sm:$0x1f] %v3614_v5  ;;  %v3623_v23 = vsel %vm23019_vm0, %v3607_v54, %v3622_v21  ;;  %v3685_v53 = vsel %vm22644_vm5, %v3680_v6, %v3684_v31 }
 0x2b4   : > { %3624 = vst [vmem:[#allocation3 + $0x40] sm:$0x1f] %v3623_v23  ;;  %v2049_v8 = vsel %vm23019_vm0, %v2024_v33, %v2048_v51  ;;  %v3651_v1 = vld [vmem:[#allocation3 + $0x18] sm:$0x1f]  ;;  %v3590_v3 = vrot.slane %v3588_v45, 7 }
 0x2b5   : > { %2050 = vst [vmem:[#allocation3 + $0x10] sm:$0x1f] %v2049_v8  ;;  %v3649_v59 = vld [vmem:[#allocation3 + $0x8] sm:$0x1f]  ;;  %v16532_v2 = vcombine.low %v3651_v1, %v3651_v1  ;;  %v16533_v62 = vcombine.high %v3651_v1, %v3651_v1 }
 0x2b6   : > { %v16528_v46 = vcombine.low %v3649_v59, %v3649_v59  ;;  %v16529_v52 = vcombine.high %v3649_v59, %v3649_v59  ;;  %v5222_v61 = vld [vmem:[#allocation3 + $0x20] sm:$0x1f]  ;;  %v3593_v48 = vor.u32 %v3591_v13, %v3590_v3 }
 0x2b7   : > { %v16677_v9 = vcombine.low %v5222_v61, %v5222_v61  ;;  %v16678_v22 = vcombine.high %v5222_v61, %v5222_v61  ;;  %v3715_v28 = vshrl.u32 %v16532_v2, 16  ;;  %v3718_v49 = vshll.u32 %v16532_v2, 16 }
 0x2b8   : > { %v3687_v30 = vshrl.u32 %v16528_v46, 16  ;;  %v3690_v42 = vshll.u32 %v16528_v46, 16  ;;  %v3696_v11 = vshll.u32 %v16529_v52, 16  ;;  %v3617_v34 = vsel %vm23019_vm0, %v3593_v48, %v3616_v4 }
 0x2b9   : > { %v5247_v15 = vshrl.u32 %v16677_v9, 16  ;;  %v5250_v16 = vshll.u32 %v16677_v9, 16  ;;  %3618 = vst [vmem:[#allocation3 + $0x30] sm:$0x1f] %v3617_v34  ;;  %v5256_v7 = vshll.u32 %v16678_v22, 16  ;;  %v3717_v17 = vrot.slane %v3715_v28, 4 }
 0x2ba   : > { %v3689_v50 = vrot.slane %v3687_v30, 4  ;;  %v3692_v43 = vrot.slane %v3690_v42, 5  ;;  %v5223_v63 = vld [vmem:[#allocation3 + $0x28] sm:$0x1f]  ;;  %v3698_v36 = vrot.slane %v3696_v11, 5  ;;  %v3720_v0 = vrot.slane %v3718_v49, 5 }
 0x2bb   : > { %v16679_v37 = vcombine.low %v5223_v63, %v5223_v63  ;;  %v16680_v10 = vcombine.high %v5223_v63, %v5223_v63  ;;  %v5249_v47 = vrot.slane %v5247_v15, 4  ;;  %v5252_v18 = vrot.slane %v5250_v16, 5  ;;  %v5225_v56 = vld [vmem:[#allocation3 + $0x38] sm:$0x1f] }
 0x2bc   : > { %v3693_v57 = vor.u32 %v3692_v43, %v3689_v50  ;;  %v3650_v41 = vld [vmem:[#allocation3 + $0x10] sm:$0x1f]  ;;  %v3721_v58 = vor.u32 %v3720_v0, %v3717_v17  ;;  %v5258_v39 = vrot.slane %v5256_v7, 5  ;;  %v3724_v45 = vshll.u32 %v16533_v62, 16 }
 0x2bd   : > { %v5253_v32 = vor.u32 %v5252_v18, %v5249_v47  ;;  %v5261_v60 = vshrl.u32 %v16679_v37, 16  ;;  %v5264_v40 = vshll.u32 %v16679_v37, 16  ;;  %v5270_v20 = vshll.u32 %v16680_v10, 16  ;;  %v21145_v10 = vld [vmem:[#allocation7 + $0x248] sm:$0xff]   ;;  %v21143_v18 = vld [vmem:[#allocation3] ss:$8 sps:$4 sm:$0xff]  }
 0x2be   : > { %v3694_v21 = vrot.slane %v3693_v57, 4  ;;  %v16530_v35 = vcombine.low %v3650_v41, %v3650_v41  ;;  %v16531_v55 = vcombine.high %v3650_v41, %v3650_v41  ;;  %v3722_v3 = vrot.slane %v3721_v58, 4  ;;  %v21150_v58 = vld [vmem:[#allocation7 + $0x258] sm:$0xff]  }
 0x2bf   : > { %v5254_v14 = vrot.slane %v5253_v32, 4  ;;  %v5263_v38 = vrot.slane %v5261_v60, 4  ;;  %v5266_v26 = vrot.slane %v5264_v40, 5  ;;  %v5272_v23 = vrot.slane %v5270_v20, 5  ;;  %v21147_v32 = vld [vmem:[#allocation7 + $0x250] sm:$0xff]   ;;  %v21146_v20 = vld [vmem:[#allocation7 + $0x248] sm:$0xff]  }
 0x2c0   : > { %v3699_v44 = vsel %vm22644_vm5, %v3694_v21, %v3698_v36  ;;  %v3701_v19 = vshrl.u32 %v16530_v35, 16  ;;  %v3704_v54 = vshll.u32 %v16530_v35, 16  ;;  %v3710_v51 = vshll.u32 %v16531_v55, 16  ;;  %v5224_v8 = vld [vmem:[#allocation3 + $0x30] sm:$0x1f]  ;;  %v21149_v35 = vld [vmem:[#allocation7 + $0x258] sm:$0xff]  }
 0x2c1   : > { %v16534_v5 = vcombine.low %v3685_v53, %v3699_v44  ;;  %v5267_v33 = vor.u32 %v5266_v26, %v5263_v38  ;;  %v5259_v6 = vsel %vm22644_vm5, %v5254_v14, %v5258_v39  ;;  %v16681_v59 = vcombine.low %v5224_v8, %v5224_v8  ;;  %v21144_v21 = vld [vmem:[#allocation3 + $0x20] ss:$8 sps:$4 sm:$0xff]   ;;  %v21151_v55 = vld [vmem:[#allocation7 + $0x260] sm:$0xff]   ;;  %v21153_v14 = vld [vmem:[#allocation7 + $0x268] sm:$0xff]  }
 0x2c2   : > { %v3703_v31 = vrot.slane %v3701_v19, 4  ;;  %v3706_v1 = vrot.slane %v3704_v54, 5  ;;  %v16682_v2 = vcombine.high %v5224_v8, %v5224_v8  ;;  %v16683_v4 = vcombine.low %v5225_v56, %v5225_v56  ;;  %v21152_v39 = vld [vmem:[#allocation7 + $0x260] sm:$0xff]   ;;  %v3959_v38 = vld [vmem:[#allocation3] sm:$0x1e]  ;;  %v21154_v44 = vld [vmem:[#allocation7 + $0x268] sm:$0xff]  }
 0x2c3   : > { %19017 = vmatprep.mubr.bf16.mxu0 %v16534_v5  ;;  %v5268_v13 = vrot.slane %v5267_v33, 4  ;;  %v3712_v52 = vrot.slane %v3710_v51, 5  ;;  %v16684_v61 = vcombine.high %v5225_v56, %v5225_v56  ;;  %v3726_v9 = vrot.slane %v3724_v45, 5  ;;  %v3960_v26 = vld [vmem:[#allocation3 + $0x8] sm:$0x1e]  ;;  %v21156_v45 = vld [vmem:[#allocation7 + $0x270] sm:$0xff]  }
 0x2c4   : > { %v3707_v46 = vor.u32 %v3706_v1, %v3703_v31  ;;  %v5275_v22 = vshrl.u32 %v16681_v59, 16  ;;  %v5278_v28 = vshll.u32 %v16681_v59, 16  ;;  %v5289_v11 = vshrl.u32 %v16683_v4, 16  ;;  %v21157_v5 = vld [vmem:[#allocation7 + $0x278] sm:$0xff]   ;;  %v5532_v33 = vld [vmem:[#allocation3 + $0x20] sm:$0x1e] }
 0x2c5   : > { %v5273_v48 = vsel %vm22644_vm5, %v5268_v13, %v5272_v23  ;;  %v5292_v49 = vshll.u32 %v16683_v4, 16  ;;  %v3727_v34 = vsel %vm22644_vm5, %v3722_v3, %v3726_v9  ;;  %v5284_v16 = vshll.u32 %v16682_v2, 16  ;;  %v5533_v23 = vld [vmem:[#allocation3 + $0x28] sm:$0x1e]  ;;  %v21160_v3 = vld [vmem:[#allocation7 + $0x2c0] sm:$0xff]  }
 0x2c6   : > { %v16685_v30 = vcombine.low %v5259_v6, %v5273_v48  ;;  %v3708_v42 = vrot.slane %v3707_v46, 4  ;;  %v5277_v53 = vrot.slane %v5275_v22, 4  ;;  %v5280_v15 = vrot.slane %v5278_v28, 5  ;;  %v21158_v46 = vld [vmem:[#allocation7 + $0x278] sm:$0xff]   ;;  %v21171_v48 = vld [vmem:[#allocation7 + $0x2c8] sm:$0xff]  }
 0x2c7   : > { %v5291_v43 = vrot.slane %v5289_v11, 4  ;;  %v5294_v63 = vrot.slane %v5292_v49, 5  ;;  %v5298_v7 = vshll.u32 %v16684_v61, 16  ;;  %v5286_v36 = vrot.slane %v5284_v16, 5  ;;  %v21159_v9 = vld [vmem:[#allocation3 + $0x10] ss:$8 sps:$4 sm:$0xff]  }
 0x2c8   : > { %19197 = vmatprep.mubr.bf16.mxu1 %v16685_v30  ;;  %v3713_v50 = vsel %vm22644_vm5, %v3708_v42, %v3712_v52  ;;  %v5281_v37 = vor.u32 %v5280_v15, %v5277_v53  ;;  %v16554_v19 = vcombine.low %v3959_v38, %v3959_v38  ;;  %v16555_v54 = vcombine.high %v3959_v38, %v3959_v38  ;;  %v21162_v49 = vld [vmem:[#allocation7 + $0x2c0] sm:$0xff]   ;;  %v21173_v15 = vld [vmem:[#allocation7 + $0x2d0] sm:$0xff]   ;;  %v21172_v16 = vld [vmem:[#allocation7 + $0x2c8] sm:$0xff]  }
 0x2c9   : > { %v16535_v17 = vcombine.low %v3713_v50, %v3727_v34  ;;  %v5295_v47 = vor.u32 %v5294_v63, %v5291_v43  ;;  %v5300_v62 = vrot.slane %v5298_v7, 5  ;;  %v16556_v51 = vcombine.low %v3960_v26, %v3960_v26  ;;  %v21161_v50 = vld [vmem:[#allocation3 + $0x30] ss:$8 sps:$4 sm:$0xff]   ;;  %v21175_v63 = vld [vmem:[#allocation7 + $0x2d8] sm:$0xff]   ;;  %v21174_v7 = vld [vmem:[#allocation7 + $0x2d0] sm:$0xff]  }
 0x2ca   : > { %v5282_v57 = vrot.slane %v5281_v37, 4  ;;  %v16557_v56 = vcombine.high %v3960_v26, %v3960_v26  ;;  %v16562_v8 = vrot.slane %v16554_v19, 9  ;;  %v3985_v6 = vrot.slane %v16555_v54, 5  ;;  %v21176_v37 = vld [vmem:[#allocation7 + $0x2d8] sm:$0xff]   ;;  %v21182_v26 = vld [vmem:[#allocation7 + $0x2f0] sm:$0xff]  }
 0x2cb   : > { %19018 = vmatmul.mubr.bf16.vlgmr.msra.gmra.mrb[4].mxu0 %v16535_v17  ;;  %v5296_v41 = vrot.slane %v5295_v47, 4  ;;  %v16563_v31 = vrot.slane %v16556_v51, 9  ;;  %v16705_v13 = vcombine.low %v5532_v33, %v5532_v33  ;;  %v16706_v59 = vcombine.high %v5532_v33, %v5532_v33  ;;  %v21177_v17 = vld [vmem:[#allocation7 + $0x2e0] sm:$0xff]  }
 0x2cc   : > { %19022 = vmatpush3.bf16.msra.mxu0 %v23005_v24  ;;  %19037 = vmatprep.mubr.bf16.mxu0 %v21143_v18  ;;  %v5287_v0 = vsel %vm22644_vm5, %v5282_v57, %v5286_v36  ;;  %v21148_v24 = vld [vmem:[#allocation7 + $0x250] sm:$0xff]   ;;  %v3989_v1 = vrot.slane %v16557_v56, 5  ;;  %v16707_v2 = vcombine.low %v5533_v23, %v5533_v23  ;;  %v16708_v4 = vcombine.high %v5533_v23, %v5533_v23  ;;  %v3961_v47 = vld [vmem:[#allocation3 + $0x10] sm:$0x1e]  ;;  %v3962_v57 = vld [vmem:[#allocation3 + $0x18] sm:$0x1e] }
 0x2cd   : > { %19023 = vmatprep.subr.bf16.mxu0 %v21145_v10  ;;  %v5301_v60 = vsel %vm22644_vm5, %v5296_v41, %v5300_v62  ;;  %v3986_v52 = vsel %vm22668_vm8, %v16562_v8, %v3985_v6  ;;  %v16713_v22 = vrot.slane %v16705_v13, 9  ;;  %v5558_v28 = vrot.slane %v16706_v59, 5  ;;  %v21178_v18 = vld [vmem:[#allocation7 + $0x2e0] sm:$0xff]   ;;  %v21181_v36 = vld [vmem:[#allocation7 + $0x2f0] sm:$0xff]  }
 0x2ce   : > { %v16686_v40 = vcombine.low %v5287_v0, %v5301_v60  ;;  %v3990_v61 = vsel %vm22668_vm8, %v16563_v31, %v3989_v1  ;;  %v16714_v30 = vrot.slane %v16707_v2, 9  ;;  %v5562_v42 = vrot.slane %v16708_v4, 5  ;;  %v5534_v0 = vld [vmem:[#allocation3 + $0x30] sm:$0x1e]  ;;  %v23068_v60 = vld [vmem:[#allocation3 + $0x8] sm:$0x1f] }
 0x2cf   : > { %v16566_v11 = vcombine.low %v3986_v52, %v3990_v61  ;;  %v5559_v34 = vsel %vm22668_vm8, %v16713_v22, %v5558_v28  ;;  %v16558_v41 = vcombine.low %v3961_v47, %v3961_v47  ;;  %v16559_v62 = vcombine.high %v3961_v47, %v3961_v47  ;;  %v23078_v51 = vld [vmem:[#allocation3 + $0x30] sm:$0x1f]  ;;  %v21184_v1 = vld [vmem:[#allocation7 + $0x2f8] sm:$0xff]   ;;  %v21197_v28 = vld [vmem:[#allocation7 + $0x308] sm:$0xff]  }
 0x2d0   : > { %19024 = vmatpush3.bf16.msra.mxu0 %v21145_v10  ;;  %19198 = vmatmul.mubr.bf16.vlgmr.msra.gmra.mrb[4].mxu1 %v16686_v40  ;;  %v5563_v53 = vsel %vm22668_vm8, %v16714_v30, %v5562_v42  ;;  %v21179_v10 = vld [vmem:[#allocation7 + $0x2e8] sm:$0xff]   ;;  %v21183_v40 = vld [vmem:[#allocation7 + $0x2f8] sm:$0xff]   ;;  %v16586_v38 = vcombine.low %v23068_v60, %v23068_v60  ;;  %v21189_v56 = vld [vmem:[#allocation7 + $0x300] sm:$0xff]   ;;  %v16739_v13 = vcombine.low %v23078_v51, %v23078_v51 }
 0x2d1   : > { %19025 = vmatprep.subr.bf16.mxu0 %v21147_v32  ;;  %19202 = vmatpush3.bf16.msra.mxu1 %v23007_v27  ;;  %v21155_v27 = vld [vmem:[#allocation7 + $0x270] sm:$0xff]   ;;  %v16717_v43 = vcombine.low %v5559_v34, %v5563_v53  ;;  %v21194_v22 = vld [vmem:[#allocation7 + $0x300] sm:$0xff]   ;;  %v21198_v47 = vld [vmem:[#allocation7 + $0x308] sm:$0xff]  }
 0x2d2   : > { %19217 = vmatprep.mubr.bf16.mxu1 %v21144_v21  ;;  %19203 = vmatprep.subr.bf16.mxu1 %v21146_v20  ;;  %v16561_v21 = vcombine.high %v3962_v57, %v3962_v57  ;;  %v4284_v6 = vshrl.u32 %v16586_v38, 16  ;;  %v4287_v31 = vshll.u32 %v16586_v38, 16 }
 0x2d4   : > { %19026 = vmatpush3.bf16.msra.mxu0 %v21147_v32  ;;  %v21180_v32 = vld [vmem:[#allocation7 + $0x2e8] sm:$0xff]   ;;  %v3997_v19 = vrot.slane %v16561_v21, 5  ;;  %v4286_v42 = vrot.slane %v4284_v6, 4 }
 0x2d5   : > { %19027 = vmatprep.subr.bf16.mxu0 %v21149_v35  ;;  %19204 = vmatpush3.bf16.msra.mxu1 %v21146_v20  ;;  %v16560_v20 = vcombine.low %v3962_v57, %v3962_v57 }
 0x2d6   : > { %19205 = vmatprep.subr.bf16.mxu1 %v21148_v24 }
 0x2d8   : > { %19028 = vmatpush3.bf16.msra.mxu0 %v21149_v35  ;;  %v5535_v35 = vld [vmem:[#allocation3 + $0x38] sm:$0x1e] }
 0x2d9   : > { %19029 = vmatprep.subr.bf16.mxu0 %v21151_v55  ;;  %19206 = vmatpush3.bf16.msra.mxu1 %v21148_v24  ;;  %v23070_v24 = vld [vmem:[#allocation3 + $0x10] sm:$0x1f]  ;;  %v16712_v33 = vcombine.high %v5535_v35, %v5535_v35 }
 0x2da   : > { %19207 = vmatprep.subr.bf16.mxu1 %v21150_v58  ;;  %v16588_v54 = vcombine.low %v23070_v24, %v23070_v24  ;;  %v16589_v30 = vcombine.high %v23070_v24, %v23070_v24  ;;  %v21201_v24 = vld [vmem:[#allocation7 + $0x318] sm:$0xff]  }
 0x2db   : > { %v5570_v61 = vrot.slane %v16712_v33, 5 }
 0x2dc   : > { %19030 = vmatpush3.bf16.msra.mxu0 %v21151_v55  ;;  %v16709_v55 = vcombine.low %v5534_v0, %v5534_v0  ;;  %v4298_v2 = vshrl.u32 %v16588_v54, 16  ;;  %v4301_v4 = vshll.u32 %v16588_v54, 16  ;;  %v23102_v57 = vshll.u32 %v16589_v30, 16 }
 0x2dd   : > { %19031 = vmatprep.subr.bf16.mxu0 %v21153_v14  ;;  %19208 = vmatpush3.bf16.msra.mxu1 %v21150_v58  ;;  %v16710_v58 = vcombine.high %v5534_v0, %v5534_v0 }
 0x2de   : > { %19209 = vmatprep.subr.bf16.mxu1 %v21152_v39  ;;  %v16715_v23 = vrot.slane %v16709_v55, 9 }
 0x2e0   : > { %19032 = vmatpush3.bf16.msra.mxu0 %v21153_v14  ;;  %v16564_v14 = vrot.slane %v16558_v41, 9  ;;  %v21196_v41 = vld [vmem:[#allocation3 + $0x28] ss:$8 sps:$4 sm:$0xff]  }
 0x2e1   : > { %19033 = vmatprep.subr.bf16.mxu0 %v21155_v27  ;;  %19210 = vmatpush3.bf16.msra.mxu1 %v21152_v39  ;;  %v3993_v39 = vrot.slane %v16559_v62, 5 }
 0x2e2   : > { %19211 = vmatprep.subr.bf16.mxu1 %v21154_v44 }
 0x2e3   : > { %v3994_v8 = vsel %vm22668_vm8, %v16564_v14, %v3993_v39  ;;  %v4309_v14 = vrot.slane %v23102_v57, 5  ;;  %v21211_v57 = vld [vmem:[#allocation3 + $0x18] ss:$8 sps:$4 sm:$0xff]  }
 0x2e4   : > { %19034 = vmatpush3.bf16.msra.mxu0 %v21155_v27  ;;  %v23074_v27 = vld [vmem:[#allocation3 + $0x28] sm:$0x1f] }
 0x2e5   : > { %19035 = vmatprep.subr.bf16.mxu0 %v21157_v5  ;;  %19212 = vmatpush3.bf16.msra.mxu1 %v21154_v44  ;;  %v16565_v44 = vrot.slane %v16560_v20, 9 }
 0x2e6   : > { %19213 = vmatprep.subr.bf16.mxu1 %v21156_v45 }
 0x2e7   : > { %v3998_v59 = vsel %vm22668_vm8, %v16565_v44, %v3997_v19  ;;  %v21203_v44 = vld [vmem:[#allocation7 + $0x320] sm:$0xff]  }
 0x2e8   : > { %19036 = vmatpush3.bf16.msra.mxu0 %v21157_v5  ;;  %v16711_v5 = vcombine.low %v5535_v35, %v5535_v35 }
 0x2e9   : > { %19041 = vmatprep.subr.bf16.mxu0 %v21160_v3  ;;  %19214 = vmatpush3.bf16.msra.mxu1 %v21156_v45  ;;  %v5566_v45 = vrot.slane %v16710_v58, 5  ;;  %v21200_v58 = vld [vmem:[#allocation7 + $0x310] sm:$0xff]  }
 0x2ea   : > { %19215 = vmatprep.subr.bf16.mxu1 %v21158_v46  ;;  %v16716_v52 = vrot.slane %v16711_v5, 9  ;;  %v21202_v5 = vld [vmem:[#allocation7 + $0x318] sm:$0xff]  }
 0x2eb   : > { %19038 = vmatmul.mubr.bf16.vlgmr.msra.gmra.mrb[4].mxu0 %v21159_v9  ;;  %v5567_v9 = vsel %vm22668_vm8, %v16715_v23, %v5566_v45 }
 0x2ec   : > { %19042 = vmatpush3.bf16.msra.mxu0 %v21160_v3  ;;  %19057 = vmatprep.mubr.bf16.mxu0 %v16566_v11  ;;  %v16737_v3 = vcombine.low %v23074_v27, %v23074_v27  ;;  %v4289_v11 = vrot.slane %v4287_v31, 5 }
 0x2ed   : > { %19043 = vmatprep.subr.bf16.mxu0 %v21171_v48  ;;  %19216 = vmatpush3.bf16.msra.mxu1 %v21158_v46  ;;  %v16567_v46 = vcombine.low %v3994_v8, %v3998_v59 }
 0x2ee   : > { %19221 = vmatprep.subr.bf16.mxu1 %v21162_v49  ;;  %v5855_v34 = vshrl.u32 %v16737_v3, 16  ;;  %v5858_v53 = vshll.u32 %v16737_v3, 16  ;;  %v21204_v3 = vld [vmem:[#allocation7 + $0x320] sm:$0xff]  }
 0x2f0   : > { %19044 = vmatpush3.bf16.msra.mxu0 %v21171_v48  ;;  %19218 = vmatmul.mubr.bf16.vlgmr.msra.gmra.mrb[4].mxu1 %v21161_v50  ;;  %v16587_v48 = vcombine.high %v23068_v60, %v23068_v60  ;;  %v21199_v50 = vld [vmem:[#allocation7 + $0x310] sm:$0xff]   ;;  %v5857_v62 = vrot.slane %v5855_v34, 4  ;;  %v5860_v0 = vrot.slane %v5858_v53, 5 }
 0x2f1   : > { %19045 = vmatprep.subr.bf16.mxu0 %v21173_v15  ;;  %19222 = vmatpush3.bf16.msra.mxu1 %v21162_v49  ;;  %v21195_v49 = vld [vmem:[#allocation3 + $0x8] ss:$8 sps:$4 sm:$0xff]  }
 0x2f2   : > { %19237 = vmatprep.mubr.bf16.mxu1 %v16717_v43  ;;  %19223 = vmatprep.subr.bf16.mxu1 %v21172_v16  ;;  %v4300_v43 = vrot.slane %v4298_v2, 4  ;;  %v5861_v39 = vor.u32 %v5860_v0, %v5857_v62  ;;  %v21214_v62 = vld [vmem:[#allocation7 + $0x340] sm:$0xff]  }
 0x2f4   : > { %19046 = vmatpush3.bf16.msra.mxu0 %v21173_v15  ;;  %v5869_v15 = vshrl.u32 %v16739_v13, 16  ;;  %v23114_v45 = vrot.slane %v5861_v39, 4 }
 0x2f5   : > { %19047 = vmatprep.subr.bf16.mxu0 %v21175_v63  ;;  %19224 = vmatpush3.bf16.msra.mxu1 %v21172_v16  ;;  %v5872_v16 = vshll.u32 %v16739_v13, 16 }
 0x2f6   : > { %19225 = vmatprep.subr.bf16.mxu1 %v21174_v7 }
 0x2f7   : > { %v5874_v60 = vrot.slane %v5872_v16, 5 }
 0x2f8   : > { %19048 = vmatpush3.bf16.msra.mxu0 %v21175_v63  ;;  %v4303_v63 = vrot.slane %v4301_v4, 5 }
 0x2f9   : > { %19049 = vmatprep.subr.bf16.mxu0 %v21177_v17  ;;  %19226 = vmatpush3.bf16.msra.mxu1 %v21174_v7  ;;  %v16738_v7 = vcombine.high %v23074_v27, %v23074_v27 }
 0x2fa   : > { %19227 = vmatprep.subr.bf16.mxu1 %v21176_v37  ;;  %v4304_v20 = vor.u32 %v4303_v63, %v4300_v43 }
 0x2fb   : > { %v23104_v21 = vshll.u32 %v16738_v7, 16  ;;  %v21210_v7 = vld [vmem:[#allocation7 + $0x338] sm:$0xff]  }
 0x2fc   : > { %19050 = vmatpush3.bf16.msra.mxu0 %v21177_v17  ;;  %v16740_v17 = vcombine.high %v23078_v51, %v23078_v51  ;;  %v4305_v54 = vrot.slane %v4304_v20, 4 }
 0x2fd   : > { %19051 = vmatprep.subr.bf16.mxu0 %v21179_v10  ;;  %19228 = vmatpush3.bf16.msra.mxu1 %v21176_v37  ;;  %v5571_v37 = vsel %vm22668_vm8, %v16716_v52, %v5570_v61  ;;  %v5866_v51 = vrot.slane %v23104_v21, 5  ;;  %v21207_v52 = vld [vmem:[#allocation7 + $0x330] sm:$0xff]   ;;  %v21206_v61 = vld [vmem:[#allocation7 + $0x328] sm:$0xff]  }
 0x2fe   : > { %19229 = vmatprep.subr.bf16.mxu1 %v21178_v18  ;;  %v23106_v35 = vshll.u32 %v16740_v17, 16  ;;  %v4310_v43 = vsel %vm22644_vm5, %v4305_v54, %v4309_v14  ;;  %v21224_v14 = vld [vmem:[#allocation7 + $0x348] sm:$0xff]  }
 0x300   : > { %19052 = vmatpush3.bf16.msra.mxu0 %v21179_v10  ;;  %v16718_v10 = vcombine.low %v5567_v9, %v5571_v37 }
 0x301   : > { %19053 = vmatprep.subr.bf16.mxu0 %v21181_v36  ;;  %19230 = vmatpush3.bf16.msra.mxu1 %v21178_v18  ;;  %v23100_v18 = vshll.u32 %v16587_v48, 16  ;;  %v5832_v48 = vld [vmem:[#allocation3 + $0x38] sm:$0x1f] }
 0x302   : > { %19231 = vmatprep.subr.bf16.mxu1 %v21180_v32  ;;  %v16741_v16 = vcombine.low %v5832_v48, %v5832_v48  ;;  %v16742_v63 = vcombine.high %v5832_v48, %v5832_v48  ;;  %v6036_v48 = vld [vmem:[#allocation3 + $0x30] sm:$0x1e] }
 0x303   : > { %v4295_v55 = vrot.slane %v23100_v18, 5  ;;  %v21213_v18 = vld [vmem:[#allocation3 + $0x38] ss:$8 sps:$4 sm:$0xff]  }
 0x304   : > { %19054 = vmatpush3.bf16.msra.mxu0 %v21181_v36  ;;  %v4261_v36 = vld [vmem:[#allocation3 + $0x18] sm:$0x1f] }
 0x305   : > { %19055 = vmatprep.subr.bf16.mxu0 %v21183_v40  ;;  %19232 = vmatpush3.bf16.msra.mxu1 %v21180_v32  ;;  %v5871_v32 = vrot.slane %v5869_v15, 4  ;;  %v16590_v27 = vcombine.low %v4261_v36, %v4261_v36  ;;  %v16591_v33 = vcombine.high %v4261_v36, %v4261_v36  ;;  %v5833_v15 = vld [vmem:[#allocation3 + $0x40] sm:$0x1f]  ;;  %v21223_v36 = vld [vmem:[#allocation7 + $0x348] sm:$0xff]  }
 0x306   : > { %19233 = vmatprep.subr.bf16.mxu1 %v21182_v26  ;;  %v16743_v37 = vcombine.low %v5833_v15, %v5833_v15 }
 0x307   : > { %v5875_v38 = vor.u32 %v5874_v60, %v5871_v32  ;;  %v4312_v6 = vshrl.u32 %v16590_v27, 16  ;;  %v4315_v31 = vshll.u32 %v16590_v27, 16  ;;  %v23118_v2 = vshll.u32 %v16591_v33, 16  ;;  %v21226_v33 = vld [vmem:[#allocation7 + $0x350] sm:$0xff]  }
 0x308   : > { %19056 = vmatpush3.bf16.msra.mxu0 %v21183_v40  ;;  %v4290_v40 = vor.u32 %v4289_v11, %v4286_v42  ;;  %v21209_v42 = vld [vmem:[#allocation7 + $0x338] sm:$0xff]   ;;  %v21208_v11 = vld [vmem:[#allocation7 + $0x330] sm:$0xff]   ;;  %v16744_v32 = vcombine.high %v5833_v15, %v5833_v15  ;;  %v5897_v20 = vshrl.u32 %v16743_v37, 16  ;;  %v5867_v27 = vsel %vm22644_vm5, %v23114_v45, %v5866_v51  ;;  %v21229_v51 = vld [vmem:[#allocation7 + $0x360] sm:$0xff]  }
 0x309   : > { %19061 = vmatprep.subr.bf16.mxu0 %v21189_v56  ;;  %19234 = vmatpush3.bf16.msra.mxu1 %v21182_v26  ;;  %v4262_v26 = vld [vmem:[#allocation3 + $0x20] sm:$0x1f]  ;;  %v23116_v8 = vrot.slane %v5875_v38, 4  ;;  %v4314_v59 = vrot.slane %v4312_v6, 4  ;;  %v4317_v9 = vrot.slane %v4315_v31, 5  ;;  %v21228_v31 = vld [vmem:[#allocation7 + $0x358] sm:$0xff]  }
 0x30a   : > { %19235 = vmatprep.subr.bf16.mxu1 %v21184_v1  ;;  %v23110_v19 = vrot.slane %v4290_v40, 4  ;;  %v16592_v23 = vcombine.low %v4262_v26, %v4262_v26  ;;  %v16593_v13 = vcombine.high %v4262_v26, %v4262_v26  ;;  %v23133_v40 = vshll.u32 %v16742_v63, 16  ;;  %v21232_v15 = vld [vmem:[#allocation7 + $0x368] sm:$0xff]  }
 0x30b   : > { %19058 = vmatmul.mubr.bf16.vlgmr.msra.gmra.mrb[4].mxu0 %v16567_v46  ;;  %v23140_v26 = vshll.u32 %v16744_v32, 16  ;;  %v16758_v63 = vcombine.high %v6036_v48, %v6036_v48 }
 0x30c   : > { %19062 = vmatpush3.bf16.msra.mxu0 %v21189_v56  ;;  %19077 = vmatprep.mubr.bf16.mxu0 %v21195_v49  ;;  %v5880_v56 = vrot.slane %v23106_v35, 5  ;;  %v4326_v4 = vshrl.u32 %v16592_v23, 16  ;;  %v4329_v46 = vshll.u32 %v16592_v23, 16  ;;  %v23121_v30 = vshll.u32 %v16593_v13, 16 }
 0x30d   : > { %19063 = vmatprep.subr.bf16.mxu0 %v21197_v28  ;;  %19236 = vmatpush3.bf16.msra.mxu1 %v21184_v1  ;;  %v21205_v1 = vld [vmem:[#allocation7 + $0x328] sm:$0xff]   ;;  %v4318_v49 = vor.u32 %v4317_v9, %v4314_v59  ;;  %v5908_v6 = vrot.slane %v23140_v26, 5 }
 0x30e   : > { %19241 = vmatprep.subr.bf16.mxu1 %v21194_v22  ;;  %v4331_v34 = vrot.slane %v4329_v46, 5  ;;  %v4337_v53 = vrot.slane %v23121_v30, 5  ;;  %v6035_v46 = vld [vmem:[#allocation3 + $0x28] sm:$0x1e] }
 0x30f   : > { %v23126_v17 = vrot.slane %v4318_v49, 4  ;;  %v21233_v49 = vld [vmem:[#allocation7 + $0x370] sm:$0xff]  }
 0x310   : > { %19064 = vmatpush3.bf16.msra.mxu0 %v21197_v28  ;;  %19238 = vmatmul.mubr.bf16.vlgmr.msra.gmra.mrb[4].mxu1 %v16718_v10  ;;  %v4328_v28 = vrot.slane %v4326_v4, 4  ;;  %v5883_v10 = vshrl.u32 %v16741_v16, 16  ;;  %v21231_v4 = vld [vmem:[#allocation7 + $0x368] sm:$0xff]  }
 0x311   : > { %19065 = vmatprep.subr.bf16.mxu0 %v21199_v50  ;;  %19242 = vmatpush3.bf16.msra.mxu1 %v21194_v22  ;;  %v4323_v22 = vrot.slane %v23118_v2, 5 }
 0x312   : > { %19257 = vmatprep.mubr.bf16.mxu1 %v21196_v41  ;;  %19243 = vmatprep.subr.bf16.mxu1 %v21198_v47  ;;  %v4296_v41 = vsel %vm22644_vm5, %v23110_v19, %v4295_v55  ;;  %v5885_v60 = vrot.slane %v5883_v10, 4  ;;  %v5881_v55 = vsel %vm22644_vm5, %v23116_v8, %v5880_v56  ;;  %v4332_v39 = vor.u32 %v4331_v34, %v4328_v28  ;;  %v4465_v19 = vld [vmem:[#allocation3 + $0x8] sm:$0x1e]  ;;  %v4467_v10 = vld [vmem:[#allocation3 + $0x18] sm:$0x1e] }
 0x313   : > { %v16594_v0 = vcombine.low %v4296_v41, %v4310_v43  ;;  %v16745_v35 = vcombine.low %v5867_v27, %v5881_v55  ;;  %v5894_v56 = vrot.slane %v23133_v40, 5  ;;  %v5899_v8 = vrot.slane %v5897_v20, 4  ;;  %v21236_v20 = vld [vmem:[#allocation7 + $0x378] sm:$0xff]   ;;  %v21246_v27 = vld [vmem:[#allocation7 + $0x380] sm:$0xff]  }
 0x314   : > { %19066 = vmatpush3.bf16.msra.mxu0 %v21199_v50  ;;  %v21212_v50 = vld [vmem:[#allocation7 + $0x340] sm:$0xff]   ;;  %v4333_v54 = vrot.slane %v4332_v39, 4  ;;  %v16604_v45 = vcombine.low %v4465_v19, %v4465_v19  ;;  %v16605_v13 = vcombine.high %v4465_v19, %v4465_v19  ;;  %v16755_v34 = vcombine.low %v6035_v46, %v6035_v46  ;;  %v6038_v39 = vld [vmem:[#allocation3 + $0x40] sm:$0x1e] }
 0x315   : > { %19067 = vmatprep.subr.bf16.mxu0 %v21201_v24  ;;  %19244 = vmatpush3.bf16.msra.mxu1 %v21198_v47  ;;  %v5886_v47 = vshll.u32 %v16741_v16, 16  ;;  %v16757_v43 = vcombine.low %v6036_v48, %v6036_v48  ;;  %v4324_v30 = vsel %vm22644_vm5, %v23126_v17, %v4323_v22  ;;  %v21257_v22 = vld [vmem:[#allocation7 + $0x390] sm:$0xff]   ;;  %v21261_v40 = vld [vmem:[#allocation7 + $0x3a0] sm:$0xff]   ;;  %v6037_v48 = vld [vmem:[#allocation3 + $0x38] sm:$0x1e] }
 0x316   : > { %19245 = vmatprep.subr.bf16.mxu1 %v21200_v58  ;;  %v16612_v28 = vrot.slane %v16604_v45, 9  ;;  %v4338_v32 = vsel %vm22644_vm5, %v4333_v54, %v4337_v53 }
 0x317   : > { %v5888_v38 = vrot.slane %v5886_v47, 5  ;;  %v4468_v47 = vld [vmem:[#allocation3 + $0x20] sm:$0x1e]  ;;  %v16764_v41 = vrot.slane %v16757_v43, 9 }
 0x318   : > { %19068 = vmatpush3.bf16.msra.mxu0 %v21201_v24  ;;  %v5900_v24 = vshll.u32 %v16743_v37, 16  ;;  %v21234_v37 = vld [vmem:[#allocation7 + $0x370] sm:$0xff]   ;;  %v16611_v55 = vcombine.high %v4468_v47, %v4468_v47 }
 0x319   : > { %19069 = vmatprep.subr.bf16.mxu0 %v21203_v44  ;;  %19246 = vmatpush3.bf16.msra.mxu1 %v21200_v58  ;;  %v21225_v58 = vld [vmem:[#allocation7 + $0x350] sm:$0xff]   ;;  %v5889_v23 = vor.u32 %v5888_v38, %v5885_v60  ;;  %v16595_v38 = vcombine.low %v4324_v30, %v4338_v32  ;;  %v4767_v32 = vld [vmem:[#allocation3 + $0x18] sm:$0x1f] }
 0x31a   : > { %19247 = vmatprep.subr.bf16.mxu1 %v21202_v5  ;;  %v5902_v21 = vrot.slane %v5900_v24, 5  ;;  %v16608_v24 = vcombine.low %v4467_v10, %v4467_v10  ;;  %v23170_v2 = vrot.slane %v16611_v55, 5  ;;  %v21286_v55 = vld [vmem:[#allocation7 + $0x3d8] sm:$0xff]  }
 0x31c   : > { %19070 = vmatpush3.bf16.msra.mxu0 %v21203_v44  ;;  %v21227_v44 = vld [vmem:[#allocation7 + $0x358] sm:$0xff]  }
 0x31d   : > { %19071 = vmatprep.subr.bf16.mxu0 %v21205_v1  ;;  %19248 = vmatpush3.bf16.msra.mxu1 %v21202_v5  ;;  %v4466_v5 = vld [vmem:[#allocation3 + $0x10] sm:$0x1e] }
 0x31e   : > { %19249 = vmatprep.subr.bf16.mxu1 %v21204_v3  ;;  %v16606_v59 = vcombine.low %v4466_v5, %v4466_v5 }
 0x320   : > { %19072 = vmatpush3.bf16.msra.mxu0 %v21205_v1  ;;  %v23149_v1 = vrot.slane %v5889_v23, 4  ;;  %v16761_v23 = vcombine.low %v6038_v39, %v6038_v39 }
 0x321   : > { %19073 = vmatprep.subr.bf16.mxu0 %v21207_v52  ;;  %19250 = vmatpush3.bf16.msra.mxu1 %v21204_v3  ;;  %v5903_v3 = vor.u32 %v5902_v21, %v5899_v8  ;;  %v16762_v8 = vcombine.high %v6038_v39, %v6038_v39  ;;  %v21289_v39 = vld [vmem:[#allocation7 + $0x3e8] sm:$0xff]  }
 0x322   : > { %19251 = vmatprep.subr.bf16.mxu1 %v21206_v61  ;;  %v5895_v21 = vsel %vm22644_vm5, %v23149_v1, %v5894_v56  ;;  %v21260_v56 = vld [vmem:[#allocation7 + $0x398] sm:$0xff]   ;;  %v21263_v1 = vld [vmem:[#allocation7 + $0x3a8] sm:$0xff]  }
 0x323   : > { %v5904_v9 = vrot.slane %v5903_v3, 4  ;;  %v16766_v3 = vrot.slane %v16761_v23, 9 }
 0x324   : > { %19074 = vmatpush3.bf16.msra.mxu0 %v21207_v52  ;;  %v21230_v52 = vld [vmem:[#allocation7 + $0x360] sm:$0xff]  }
 0x325   : > { %19075 = vmatprep.subr.bf16.mxu0 %v21209_v42  ;;  %19252 = vmatpush3.bf16.msra.mxu1 %v21206_v61  ;;  %v16607_v61 = vcombine.high %v4466_v5, %v4466_v5  ;;  %v5909_v17 = vsel %vm22644_vm5, %v5904_v9, %v5908_v6  ;;  %v21273_v9 = vld [vmem:[#allocation7 + $0x3c0] sm:$0xff]  }
 0x326   : > { %19253 = vmatprep.subr.bf16.mxu1 %v21208_v11  ;;  %v16746_v26 = vcombine.low %v5895_v21, %v5909_v17  ;;  %v21291_v17 = vld [vmem:[#allocation7 + $0x3f0] sm:$0xff]   ;;  %v16639_v21 = vcombine.high %v4767_v32, %v4767_v32 }
 0x327   : > { %v4495_v16 = vrot.slane %v16607_v61, 5  ;;  %v21266_v61 = vld [vmem:[#allocation7 + $0x3b0] sm:$0xff]  }
 0x328   : > { %19076 = vmatpush3.bf16.msra.mxu0 %v21209_v42  ;;  %v4491_v42 = vrot.slane %v16605_v13, 5  ;;  %v6073_v13 = vrot.slane %v16762_v8, 5 }
 0x329   : > { %19081 = vmatprep.subr.bf16.mxu0 %v21212_v50  ;;  %19254 = vmatpush3.bf16.msra.mxu1 %v21208_v11  ;;  %v16613_v11 = vrot.slane %v16606_v59, 9  ;;  %v21262_v59 = vld [vmem:[#allocation7 + $0x3a0] sm:$0xff]  }
 0x32a   : > { %19255 = vmatprep.subr.bf16.mxu1 %v21210_v7  ;;  %v4492_v53 = vsel %vm22668_vm8, %v16612_v28, %v4491_v42  ;;  %v21268_v28 = vld [vmem:[#allocation7 + $0x3b8] sm:$0xff]  }
 0x32b   : > { %19078 = vmatmul.mubr.bf16.vlgmr.msra.gmra.mrb[4].mxu0 %v21211_v57  ;;  %v16763_v57 = vrot.slane %v16755_v34, 9  ;;  %v4496_v60 = vsel %vm22668_vm8, %v16613_v11, %v4495_v16  ;;  %v16759_v11 = vcombine.low %v6037_v48, %v6037_v48  ;;  %v21281_v16 = vld [vmem:[#allocation7 + $0x3c8] sm:$0xff]  }
 0x32c   : > { %19082 = vmatpush3.bf16.msra.mxu0 %v21212_v50  ;;  %19097 = vmatprep.mubr.bf16.mxu0 %v16594_v0  ;;  %v16756_v50 = vcombine.high %v6035_v46, %v6035_v46  ;;  %v21241_v0 = vld [vmem:[#allocation7 + $0x380] sm:$0xff]   ;;  %v21264_v46 = vld [vmem:[#allocation7 + $0x3a8] sm:$0xff]  }
 0x32d   : > { %19083 = vmatprep.subr.bf16.mxu0 %v21223_v36  ;;  %19256 = vmatpush3.bf16.msra.mxu1 %v21210_v7  ;;  %v21235_v7 = vld [vmem:[#allocation7 + $0x378] sm:$0xff]  }
 0x32e   : > { %19261 = vmatprep.subr.bf16.mxu1 %v21214_v62 }
 0x330   : > { %19084 = vmatpush3.bf16.msra.mxu0 %v21223_v36  ;;  %19258 = vmatmul.mubr.bf16.vlgmr.msra.gmra.mrb[4].mxu1 %v21213_v18  ;;  %v6061_v36 = vrot.slane %v16756_v50, 5  ;;  %v16610_v18 = vcombine.low %v4468_v47, %v4468_v47  ;;  %v16765_v50 = vrot.slane %v16759_v11, 9 }
 0x331   : > { %19085 = vmatprep.subr.bf16.mxu0 %v21225_v58  ;;  %19262 = vmatpush3.bf16.msra.mxu1 %v21214_v62  ;;  %v6065_v62 = vrot.slane %v16758_v63, 5  ;;  %v21279_v63 = vld [vmem:[#allocation3 + $0x10] ss:$8 sps:$4 sm:$0xff]  }
 0x332   : > { %19277 = vmatprep.mubr.bf16.mxu1 %v16745_v35  ;;  %19263 = vmatprep.subr.bf16.mxu1 %v21224_v14  ;;  %v23164_v35 = vrot.slane %v16608_v24, 9  ;;  %v23168_v54 = vrot.slane %v16610_v18, 9  ;;  %v6062_v6 = vsel %vm22668_vm8, %v16763_v57, %v6061_v36  ;;  %v21282_v36 = vld [vmem:[#allocation7 + $0x3c8] sm:$0xff]   ;;  %v21287_v24 = vld [vmem:[#allocation7 + $0x3e0] sm:$0xff]  }
 0x333   : > { %v6066_v5 = vsel %vm22668_vm8, %v16764_v41, %v6065_v62  ;;  %v21280_v41 = vld [vmem:[#allocation3 + $0x30] ss:$8 sps:$4 sm:$0xff]  }
 0x334   : > { %19086 = vmatpush3.bf16.msra.mxu0 %v21225_v58  ;;  %v16609_v58 = vcombine.high %v4467_v10, %v4467_v10  ;;  %v16767_v45 = vcombine.low %v6062_v6, %v6066_v5  ;;  %v4504_v42 = vsel %vm22668_vm8, %v23168_v54, %v23170_v2  ;;  %v21283_v10 = vld [vmem:[#allocation7 + $0x3d0] sm:$0xff]   ;;  %v4766_v62 = vld [vmem:[#allocation3 + $0x10] sm:$0x1f] }
 0x335   : > { %19087 = vmatprep.subr.bf16.mxu0 %v21227_v44  ;;  %19264 = vmatpush3.bf16.msra.mxu1 %v21224_v14  ;;  %v21255_v14 = vld [vmem:[#allocation7 + $0x388] sm:$0xff]   ;;  %v6334_v18 = vld [vmem:[#allocation3 + $0x30] sm:$0x1f] }
 0x336   : > { %19265 = vmatprep.subr.bf16.mxu1 %v21226_v33  ;;  %v23166_v19 = vrot.slane %v16609_v58, 5  ;;  %v16638_v58 = vcombine.low %v4767_v32, %v4767_v32  ;;  %v21309_v32 = vld [vmem:[#allocation7 + $0x410] sm:$0xff]  }
 0x338   : > { %19088 = vmatpush3.bf16.msra.mxu0 %v21227_v44  ;;  %v16616_v44 = vcombine.low %v4492_v53, %v4496_v60  ;;  %v4500_v34 = vsel %vm22668_vm8, %v23164_v35, %v23166_v19  ;;  %v21284_v60 = vld [vmem:[#allocation7 + $0x3d0] sm:$0xff]   ;;  %v6335_v53 = vld [vmem:[#allocation3 + $0x38] sm:$0x1f]  ;;  %v21288_v35 = vld [vmem:[#allocation7 + $0x3e0] sm:$0xff]  }
 0x339   : > { %19089 = vmatprep.subr.bf16.mxu0 %v21229_v51  ;;  %19266 = vmatpush3.bf16.msra.mxu1 %v21226_v33  ;;  %v21256_v33 = vld [vmem:[#allocation7 + $0x388] sm:$0xff]   ;;  %v16789_v2 = vcombine.low %v6335_v53, %v6335_v53 }
 0x33a   : > { %19267 = vmatprep.subr.bf16.mxu1 %v21228_v31 }
 0x33c   : > { %19090 = vmatpush3.bf16.msra.mxu0 %v21229_v51  ;;  %v21259_v51 = vld [vmem:[#allocation7 + $0x398] sm:$0xff]  }
 0x33d   : > { %19091 = vmatprep.subr.bf16.mxu0 %v21231_v4  ;;  %19268 = vmatpush3.bf16.msra.mxu1 %v21228_v31  ;;  %v21258_v31 = vld [vmem:[#allocation7 + $0x390] sm:$0xff]  }
 0x33e   : > { %19269 = vmatprep.subr.bf16.mxu1 %v21230_v52 }
 0x340   : > { %19092 = vmatpush3.bf16.msra.mxu0 %v21231_v4  ;;  %v21265_v4 = vld [vmem:[#allocation7 + $0x3b0] sm:$0xff]  }
 0x341   : > { %19093 = vmatprep.subr.bf16.mxu0 %v21233_v49  ;;  %19270 = vmatpush3.bf16.msra.mxu1 %v21230_v52  ;;  %v21267_v52 = vld [vmem:[#allocation7 + $0x3b8] sm:$0xff]  }
 0x342   : > { %19271 = vmatprep.subr.bf16.mxu1 %v21232_v15 }
 0x344   : > { %19094 = vmatpush3.bf16.msra.mxu0 %v21233_v49  ;;  %v16760_v49 = vcombine.high %v6037_v48, %v6037_v48  ;;  %v21296_v48 = vld [vmem:[#allocation7 + $0x400] sm:$0xff]  }
 0x345   : > { %19095 = vmatprep.subr.bf16.mxu0 %v21235_v7  ;;  %19272 = vmatpush3.bf16.msra.mxu1 %v21232_v15  ;;  %v16617_v15 = vcombine.low %v4500_v34, %v4504_v42  ;;  %v16790_v42 = vcombine.high %v6335_v53, %v6335_v53 }
 0x346   : > { %19273 = vmatprep.subr.bf16.mxu1 %v21234_v37  ;;  %v6069_v43 = vrot.slane %v16760_v49, 5  ;;  %v21294_v49 = vld [vmem:[#allocation7 + $0x3f8] sm:$0xff]  }
 0x348   : > { %19096 = vmatpush3.bf16.msra.mxu0 %v21235_v7  ;;  %v21278_v7 = vld [vmem:[#allocation7 + $0x3c0] sm:$0xff]   ;;  %v6070_v47 = vsel %vm22668_vm8, %v16765_v50, %v6069_v43  ;;  %v21295_v43 = vld [vmem:[#allocation3 + $0x20] ss:$8 sps:$4 sm:$0xff]  }
 0x349   : > { %19101 = vmatprep.subr.bf16.mxu0 %v21241_v0  ;;  %19274 = vmatpush3.bf16.msra.mxu1 %v21234_v37  ;;  %v6074_v37 = vsel %vm22668_vm8, %v16766_v3, %v6073_v13 }
 0x34a   : > { %19275 = vmatprep.subr.bf16.mxu1 %v21236_v20  ;;  %v16768_v57 = vcombine.low %v6070_v47, %v6074_v37  ;;  %v6382_v37 = vshll.u32 %v16790_v42, 16 }
 0x34b   : > { %19098 = vmatmul.mubr.bf16.vlgmr.msra.gmra.mrb[4].mxu0 %v16595_v38  ;;  %v4805_v38 = vshrl.u32 %v16638_v58, 16 }
 0x34c   : > { %19102 = vmatpush3.bf16.msra.mxu0 %v21241_v0  ;;  %19117 = vmatprep.mubr.bf16.mxu0 %v16616_v44  ;;  %v21285_v0 = vld [vmem:[#allocation7 + $0x3d8] sm:$0xff]   ;;  %v16787_v44 = vcombine.low %v6334_v18, %v6334_v18 }
 0x34d   : > { %19103 = vmatprep.subr.bf16.mxu0 %v21255_v14  ;;  %19276 = vmatpush3.bf16.msra.mxu1 %v21236_v20  ;;  %v16636_v20 = vcombine.low %v4766_v62, %v4766_v62  ;;  %v4807_v5 = vrot.slane %v4805_v38, 4  ;;  %v23205_v38 = vld [vmem:[#allocation3 + $0x48] sm:$0x1f] }
 0x34e   : > { %19281 = vmatprep.subr.bf16.mxu1 %v21246_v27  ;;  %v6359_v23 = vshrl.u32 %v16787_v44, 16  ;;  %v6362_v8 = vshll.u32 %v16787_v44, 16  ;;  %v23207_v44 = vld [vmem:[#allocation3 + $0x40] sm:$0x1f] }
 0x34f   : > { %v4794_v30 = vshll.u32 %v16636_v20, 16 }
 0x350   : > { %19104 = vmatpush3.bf16.msra.mxu0 %v21255_v14  ;;  %19278 = vmatmul.mubr.bf16.vlgmr.msra.gmra.mrb[4].mxu1 %v16746_v26  ;;  %v4791_v14 = vshrl.u32 %v16636_v20, 16  ;;  %v21290_v26 = vld [vmem:[#allocation7 + $0x3e8] sm:$0xff]  }
 0x351   : > { %19105 = vmatprep.subr.bf16.mxu0 %v21257_v22  ;;  %19282 = vmatpush3.bf16.msra.mxu1 %v21246_v27  ;;  %v4808_v27 = vshll.u32 %v16638_v58, 16  ;;  %v4796_v54 = vrot.slane %v4794_v30, 5  ;;  %v4768_v58 = vld [vmem:[#allocation3 + $0x20] sm:$0x1f] }
 0x352   : > { %19297 = vmatprep.mubr.bf16.mxu1 %v16767_v45  ;;  %19283 = vmatprep.subr.bf16.mxu1 %v21256_v33  ;;  %v4793_v19 = vrot.slane %v4791_v14, 4  ;;  %v6376_v45 = vshll.u32 %v16789_v2, 16  ;;  %v21311_v14 = vld [vmem:[#allocation7 + $0x418] sm:$0xff]   ;;  %v16640_v30 = vcombine.low %v4768_v58, %v4768_v58 }
 0x354   : > { %19106 = vmatpush3.bf16.msra.mxu0 %v21257_v22  ;;  %v16637_v22 = vcombine.high %v4766_v62, %v4766_v62  ;;  %v4797_v6 = vor.u32 %v4796_v54, %v4793_v19  ;;  %v4822_v19 = vshll.u32 %v16640_v30, 16 }
 0x355   : > { %19107 = vmatprep.subr.bf16.mxu0 %v21259_v51  ;;  %19284 = vmatpush3.bf16.msra.mxu1 %v21256_v33  ;;  %v4810_v33 = vrot.slane %v4808_v27, 5  ;;  %v21313_v27 = vld [vmem:[#allocation7 + $0x420] sm:$0xff]  }
 0x356   : > { %19285 = vmatprep.subr.bf16.mxu1 %v21258_v31  ;;  %v4800_v3 = vshll.u32 %v16637_v22, 16  ;;  %v21312_v22 = vld [vmem:[#allocation7 + $0x418] sm:$0xff]  }
 0x357   : > { %v4811_v13 = vor.u32 %v4810_v33, %v4807_v5  ;;  %v16791_v5 = vcombine.low %v23207_v44, %v23207_v44  ;;  %v21315_v33 = vld [vmem:[#allocation7 + $0x428] sm:$0xff]  }
 0x358   : > { %19108 = vmatpush3.bf16.msra.mxu0 %v21259_v51  ;;  %v6373_v51 = vshrl.u32 %v16789_v2, 16 }
 0x359   : > { %19109 = vmatprep.subr.bf16.mxu0 %v21261_v40  ;;  %19286 = vmatpush3.bf16.msra.mxu1 %v21258_v31  ;;  %v21293_v31 = vld [vmem:[#allocation7 + $0x3f8] sm:$0xff]  }
 0x35a   : > { %19287 = vmatprep.subr.bf16.mxu1 %v21260_v56 }
 0x35c   : > { %19110 = vmatpush3.bf16.msra.mxu0 %v21261_v40  ;;  %v6361_v40 = vrot.slane %v6359_v23, 4 }
 0x35d   : > { %19111 = vmatprep.subr.bf16.mxu0 %v21263_v1  ;;  %19288 = vmatpush3.bf16.msra.mxu1 %v21260_v56  ;;  %v6364_v56 = vrot.slane %v6362_v8, 5  ;;  %v4824_v8 = vrot.slane %v4822_v19, 5 }
 0x35e   : > { %19289 = vmatprep.subr.bf16.mxu1 %v21262_v59 }
 0x35f   : > { %v6365_v11 = vor.u32 %v6364_v56, %v6361_v40  ;;  %v6390_v40 = vshll.u32 %v16791_v5, 16  ;;  %v4972_v56 = vld [vmem:[#allocation3 + $0x10] sm:$0x1e] }
 0x360   : > { %19112 = vmatpush3.bf16.msra.mxu0 %v21263_v1  ;;  %v4814_v1 = vshll.u32 %v16639_v21, 16  ;;  %v16655_v42 = vcombine.high %v4972_v56, %v4972_v56 }
 0x361   : > { %19113 = vmatprep.subr.bf16.mxu0 %v21265_v4  ;;  %19290 = vmatpush3.bf16.msra.mxu1 %v21262_v59  ;;  %v21292_v59 = vld [vmem:[#allocation7 + $0x3f0] sm:$0xff]  }
 0x362   : > { %19291 = vmatprep.subr.bf16.mxu1 %v21264_v46 }
 0x364   : > { %19114 = vmatpush3.bf16.msra.mxu0 %v21265_v4  ;;  %v4798_v4 = vrot.slane %v4797_v6, 4  ;;  %v21314_v6 = vld [vmem:[#allocation7 + $0x420] sm:$0xff]  }
 0x365   : > { %19115 = vmatprep.subr.bf16.mxu0 %v21267_v52  ;;  %19292 = vmatpush3.bf16.msra.mxu1 %v21264_v46  ;;  %v16788_v46 = vcombine.high %v6334_v18, %v6334_v18  ;;  %v4769_v18 = vld [vmem:[#allocation3 + $0x28] sm:$0x1f] }
 0x366   : > { %19293 = vmatprep.subr.bf16.mxu1 %v21266_v61  ;;  %v16642_v53 = vcombine.low %v4769_v18, %v4769_v18 }
 0x368   : > { %19116 = vmatpush3.bf16.msra.mxu0 %v21267_v52  ;;  %v6375_v52 = vrot.slane %v6373_v51, 4  ;;  %v4833_v54 = vshrl.u32 %v16642_v53, 16  ;;  %v4836_v2 = vshll.u32 %v16642_v53, 16 }
 0x369   : > { %19121 = vmatprep.subr.bf16.mxu0 %v21273_v9  ;;  %19294 = vmatpush3.bf16.msra.mxu1 %v21266_v61  ;;  %v6378_v61 = vrot.slane %v6376_v45, 5 }
 0x36a   : > { %19295 = vmatprep.subr.bf16.mxu1 %v21268_v28  ;;  %v4835_v21 = vrot.slane %v4833_v54, 4 }
 0x36b   : > { %19118 = vmatmul.mubr.bf16.vlgmr.msra.gmra.mrb[4].mxu0 %v16617_v15  ;;  %v4816_v15 = vrot.slane %v4814_v1, 5  ;;  %v6379_v50 = vor.u32 %v6378_v61, %v6375_v52  ;;  %v21317_v1 = vld [vmem:[#allocation7 + $0x430] sm:$0xff]   ;;  %v4973_v52 = vld [vmem:[#allocation3 + $0x18] sm:$0x1e] }
 0x36c   : > { %19122 = vmatpush3.bf16.msra.mxu0 %v21273_v9  ;;  %19137 = vmatprep.mubr.bf16.mxu0 %v21279_v63  ;;  %v4802_v9 = vrot.slane %v4800_v3, 5  ;;  %v16643_v3 = vcombine.high %v4769_v18, %v4769_v18  ;;  %v21316_v61 = vld [vmem:[#allocation7 + $0x428] sm:$0xff]  }
 0x36d   : > { %19123 = vmatprep.subr.bf16.mxu0 %v21281_v16  ;;  %19296 = vmatpush3.bf16.msra.mxu1 %v21268_v28  ;;  %v4812_v28 = vrot.slane %v4811_v13, 4  ;;  %v6387_v13 = vshrl.u32 %v16791_v5, 16 }
 0x36e   : > { %19301 = vmatprep.subr.bf16.mxu1 %v21278_v7  ;;  %v4803_v34 = vsel %vm22644_vm5, %v4798_v4, %v4802_v9 }
 0x36f   : > { %v4817_v63 = vsel %vm22644_vm5, %v4812_v28, %v4816_v15  ;;  %v16654_v28 = vcombine.low %v4972_v56, %v4972_v56  ;;  %v6392_v15 = vrot.slane %v6390_v40, 5 }
 0x370   : > { %19124 = vmatpush3.bf16.msra.mxu0 %v21281_v16  ;;  %19298 = vmatmul.mubr.bf16.vlgmr.msra.gmra.mrb[4].mxu1 %v16768_v57  ;;  %v6368_v16 = vshll.u32 %v16788_v46, 16  ;;  %v16644_v47 = vcombine.low %v4803_v34, %v4817_v63  ;;  %v21298_v57 = vld [vmem:[#allocation7 + $0x400] sm:$0xff]   ;;  %v16794_v46 = vcombine.high %v23205_v38, %v23205_v38  ;;  %v6389_v34 = vrot.slane %v6387_v13, 4  ;;  %v21341_v13 = vld [vmem:[#allocation7 + $0x450] sm:$0xff]  }
 0x371   : > { %19125 = vmatprep.subr.bf16.mxu0 %v21283_v10  ;;  %19302 = vmatpush3.bf16.msra.mxu1 %v21278_v7  ;;  %v6366_v7 = vrot.slane %v6365_v11, 4 }
 0x372   : > { %19317 = vmatprep.mubr.bf16.mxu1 %v21280_v41  ;;  %19303 = vmatprep.subr.bf16.mxu1 %v21282_v36  ;;  %v6380_v41 = vrot.slane %v6379_v50, 4  ;;  %v16656_v50 = vcombine.low %v4973_v52, %v4973_v52 }
 0x374   : > { %19126 = vmatpush3.bf16.msra.mxu0 %v21283_v10  ;;  %v21307_v10 = vld [vmem:[#allocation7 + $0x408] sm:$0xff]  }
 0x375   : > { %19127 = vmatprep.subr.bf16.mxu0 %v21285_v0  ;;  %19304 = vmatpush3.bf16.msra.mxu1 %v21282_v36  ;;  %v6370_v36 = vrot.slane %v6368_v16, 5  ;;  %v21319_v16 = vld [vmem:[#allocation7 + $0x438] sm:$0xff]  }
 0x376   : > { %19305 = vmatprep.subr.bf16.mxu1 %v21284_v60 }
 0x377   : > { %v6371_v62 = vsel %vm22644_vm5, %v6366_v7, %v6370_v36  ;;  %v16662_v36 = vrot.slane %v16654_v28, 9  ;;  %v4974_v28 = vld [vmem:[#allocation3 + $0x20] sm:$0x1e] }
 0x378   : > { %19128 = vmatpush3.bf16.msra.mxu0 %v21285_v0  ;;  %v6384_v0 = vrot.slane %v6382_v37, 5  ;;  %v16792_v37 = vcombine.high %v23207_v44, %v23207_v44 }
 0x379   : > { %19129 = vmatprep.subr.bf16.mxu0 %v21287_v24  ;;  %19306 = vmatpush3.bf16.msra.mxu1 %v21284_v60  ;;  %v21297_v60 = vld [vmem:[#allocation3 + $0x40] ss:$8 sps:$4 sm:$0xff]  }
 0x37a   : > { %19307 = vmatprep.subr.bf16.mxu1 %v21286_v55  ;;  %v6385_v20 = vsel %vm22644_vm5, %v6380_v41, %v6384_v0  ;;  %v4998_v41 = vrot.slane %v16655_v42, 5  ;;  %v4975_v42 = vld [vmem:[#allocation3 + $0x28] sm:$0x1e] }
 0x37c   : > { %19130 = vmatpush3.bf16.msra.mxu0 %v21287_v24  ;;  %v21308_v24 = vld [vmem:[#allocation7 + $0x408] sm:$0xff]  }
 0x37d   : > { %19131 = vmatprep.subr.bf16.mxu0 %v21289_v39  ;;  %19308 = vmatpush3.bf16.msra.mxu1 %v21286_v55  ;;  %v16795_v55 = vcombine.low %v6371_v62, %v6385_v20  ;;  %v6540_v20 = vld [vmem:[#allocation3 + $0x38] sm:$0x1e] }
 0x37e   : > { %19309 = vmatprep.subr.bf16.mxu1 %v21288_v35  ;;  %v16807_v44 = vcombine.low %v6540_v20, %v6540_v20 }
 0x380   : > { %19132 = vmatpush3.bf16.msra.mxu0 %v21289_v39  ;;  %v21310_v39 = vld [vmem:[#allocation7 + $0x410] sm:$0xff]  }
 0x381   : > { %19133 = vmatprep.subr.bf16.mxu0 %v21291_v17  ;;  %19310 = vmatpush3.bf16.msra.mxu1 %v21288_v35  ;;  %v4819_v35 = vshrl.u32 %v16640_v30, 16 }
 0x382   : > { %19311 = vmatprep.subr.bf16.mxu1 %v21290_v26 }
 0x383   : > { %v4821_v23 = vrot.slane %v4819_v35, 4  ;;  %v16808_v35 = vcombine.high %v6540_v20, %v6540_v20 }
 0x384   : > { %19134 = vmatpush3.bf16.msra.mxu0 %v21291_v17  ;;  %v16793_v17 = vcombine.low %v23205_v38, %v23205_v38  ;;  %v21320_v38 = vld [vmem:[#allocation7 + $0x438] sm:$0xff]  }
 0x385   : > { %19135 = vmatprep.subr.bf16.mxu0 %v21293_v31  ;;  %19312 = vmatpush3.bf16.msra.mxu1 %v21290_v26  ;;  %v4838_v26 = vrot.slane %v4836_v2, 5 }
 0x386   : > { %19313 = vmatprep.subr.bf16.mxu1 %v21292_v59  ;;  %v6401_v51 = vshrl.u32 %v16793_v17, 16  ;;  %v6404_v45 = vshll.u32 %v16793_v17, 16 }
 0x387   : > { %v4839_v4 = vor.u32 %v4838_v26, %v4835_v21  ;;  %v21330_v26 = vld [vmem:[#allocation7 + $0x440] sm:$0xff]  }
 0x388   : > { %19136 = vmatpush3.bf16.msra.mxu0 %v21293_v31  ;;  %v16641_v31 = vcombine.high %v4768_v58, %v4768_v58  ;;  %v6406_v9 = vrot.slane %v6404_v45, 5  ;;  %v16663_v58 = vrot.slane %v16656_v50, 9  ;;  %v21348_v50 = vld [vmem:[#allocation7 + $0x468] sm:$0xff]  }
 0x389   : > { %19141 = vmatprep.subr.bf16.mxu0 %v21296_v48  ;;  %19314 = vmatpush3.bf16.msra.mxu1 %v21292_v59  ;;  %v4825_v59 = vor.u32 %v4824_v8, %v4821_v23  ;;  %v4840_v7 = vrot.slane %v4839_v4, 4  ;;  %v21339_v23 = vld [vmem:[#allocation7 + $0x448] sm:$0xff]   ;;  %v21343_v4 = vld [vmem:[#allocation7 + $0x458] sm:$0xff]  }
 0x38a   : > { %19315 = vmatprep.subr.bf16.mxu1 %v21294_v49  ;;  %v4828_v11 = vshll.u32 %v16641_v31, 16 }
 0x38b   : > { %19138 = vmatmul.mubr.bf16.vlgmr.msra.gmra.mrb[4].mxu0 %v21295_v43  ;;  %v16657_v43 = vcombine.high %v4973_v52, %v4973_v52  ;;  %v4826_v63 = vrot.slane %v4825_v59, 4  ;;  %v21345_v52 = vld [vmem:[#allocation7 + $0x460] sm:$0xff]  }
 0x38c   : > { %19142 = vmatpush3.bf16.msra.mxu0 %v21296_v48  ;;  %19157 = vmatprep.mubr.bf16.mxu0 %v16644_v47  ;;  %v6403_v48 = vrot.slane %v6401_v51, 4  ;;  %v21318_v47 = vld [vmem:[#allocation7 + $0x430] sm:$0xff]   ;;  %v4830_v62 = vrot.slane %v4828_v11, 5  ;;  %v6569_v51 = vrot.slane %v16808_v35, 5  ;;  %v21363_v35 = vld [vmem:[#allocation7 + $0x4c8] sm:$0xff]  }
 0x38d   : > { %19143 = vmatprep.subr.bf16.mxu0 %v21307_v10  ;;  %19316 = vmatpush3.bf16.msra.mxu1 %v21294_v49  ;;  %v4842_v49 = vshll.u32 %v16643_v3, 16  ;;  %v5002_v18 = vrot.slane %v16657_v43, 5  ;;  %v21349_v11 = vld [vmem:[#allocation7 + $0x470] sm:$0xff]   ;;  %v21351_v43 = vld [vmem:[#allocation7 + $0x478] sm:$0xff]  }
 0x38e   : > { %19321 = vmatprep.subr.bf16.mxu1 %v21298_v57  ;;  %v4831_v30 = vsel %vm22644_vm5, %v4826_v63, %v4830_v62  ;;  %v6541_v63 = vld [vmem:[#allocation3 + $0x40] sm:$0x1e] }
 0x38f   : > { %v4844_v0 = vrot.slane %v4842_v49, 5  ;;  %v5003_v17 = vsel %vm22668_vm8, %v16663_v58, %v5002_v18  ;;  %v16658_v49 = vcombine.low %v4974_v28, %v4974_v28  ;;  %v16810_v62 = vcombine.high %v6541_v63, %v6541_v63 }
 0x390   : > { %19144 = vmatpush3.bf16.msra.mxu0 %v21307_v10  ;;  %19318 = vmatmul.mubr.bf16.vlgmr.msra.gmra.mrb[4].mxu1 %v21297_v60  ;;  %v6539_v10 = vld [vmem:[#allocation3 + $0x30] sm:$0x1e]  ;;  %v6410_v60 = vshll.u32 %v16794_v46, 16  ;;  %v21342_v46 = vld [vmem:[#allocation7 + $0x450] sm:$0xff]  }
 0x391   : > { %19145 = vmatprep.subr.bf16.mxu0 %v21309_v32  ;;  %19322 = vmatpush3.bf16.msra.mxu1 %v21298_v57  ;;  %v6407_v57 = vor.u32 %v6406_v9, %v6403_v48  ;;  %v4845_v53 = vsel %vm22644_vm5, %v4840_v7, %v4844_v0  ;;  %v21347_v48 = vld [vmem:[#allocation7 + $0x468] sm:$0xff]   ;;  %v21346_v9 = vld [vmem:[#allocation7 + $0x460] sm:$0xff]   ;;  %v6542_v7 = vld [vmem:[#allocation3 + $0x48] sm:$0x1e]  ;;  %v6573_v18 = vrot.slane %v16810_v62, 5 }
 0x392   : > { %19337 = vmatprep.mubr.bf16.mxu1 %v16795_v55  ;;  %19323 = vmatprep.subr.bf16.mxu1 %v21308_v24  ;;  %v16805_v55 = vcombine.low %v6539_v10, %v6539_v10  ;;  %v6412_v2 = vrot.slane %v6410_v60, 5  ;;  %v16811_v0 = vcombine.low %v6542_v7, %v6542_v7 }
 0x393   : > { %v6408_v54 = vrot.slane %v6407_v57, 4 }
 0x394   : > { %19146 = vmatpush3.bf16.msra.mxu0 %v21309_v32  ;;  %v6393_v32 = vor.u32 %v6392_v15, %v6389_v34  ;;  %v16813_v5 = vrot.slane %v16805_v55, 9  ;;  %v16659_v34 = vcombine.high %v4974_v28, %v4974_v28  ;;  %v16660_v15 = vcombine.low %v4975_v42, %v4975_v42 }
 0x395   : > { %19147 = vmatprep.subr.bf16.mxu0 %v21311_v14  ;;  %19324 = vmatpush3.bf16.msra.mxu1 %v21308_v24  ;;  %v21325_v24 = vld [vmem:[#allocation7 + $0x440] sm:$0xff]   ;;  %v6413_v31 = vsel %vm22644_vm5, %v6408_v54, %v6412_v2  ;;  %v16816_v55 = vrot.slane %v16811_v0, 9  ;;  %v21365_v54 = vld [vmem:[#allocation7 + $0x4d0] sm:$0xff]  }
 0x396   : > { %19325 = vmatprep.subr.bf16.mxu1 %v21310_v39  ;;  %v6394_v19 = vrot.slane %v6393_v32, 4  ;;  %v16812_v32 = vcombine.high %v6542_v7, %v6542_v7  ;;  %v21366_v2 = vld [vmem:[#allocation7 + $0x4d0] sm:$0xff]  }
 0x398   : > { %19148 = vmatpush3.bf16.msra.mxu0 %v21311_v14  ;;  %v16806_v14 = vcombine.high %v6539_v10, %v6539_v10  ;;  %v5006_v10 = vrot.slane %v16659_v34, 5 }
 0x399   : > { %19149 = vmatprep.subr.bf16.mxu0 %v21313_v27  ;;  %19326 = vmatpush3.bf16.msra.mxu1 %v21310_v39  ;;  %v6396_v39 = vshll.u32 %v16792_v37, 16  ;;  %v16664_v37 = vrot.slane %v16658_v49, 9 }
 0x39a   : > { %19327 = vmatprep.subr.bf16.mxu1 %v21312_v22 }
 0x39b   : > { %v6398_v8 = vrot.slane %v6396_v39, 5  ;;  %v5007_v60 = vsel %vm22668_vm8, %v16664_v37, %v5006_v10 }
 0x39c   : > { %19150 = vmatpush3.bf16.msra.mxu0 %v21313_v27  ;;  %v4999_v27 = vsel %vm22668_vm8, %v16662_v36, %v4998_v41  ;;  %v21350_v36 = vld [vmem:[#allocation7 + $0x470] sm:$0xff]   ;;  %v16809_v41 = vcombine.low %v6541_v63, %v6541_v63 }
 0x39d   : > { %19151 = vmatprep.subr.bf16.mxu0 %v21315_v33  ;;  %19328 = vmatpush3.bf16.msra.mxu1 %v21312_v22  ;;  %v16645_v22 = vcombine.low %v4831_v30, %v4845_v53  ;;  %v16666_v21 = vcombine.low %v4999_v27, %v5003_v17  ;;  %v6399_v45 = vsel %vm22644_vm5, %v6394_v19, %v6398_v8  ;;  %v21361_v27 = vld [vmem:[#allocation7 + $0x4c0] sm:$0xff]   ;;  %v21364_v19 = vld [vmem:[#allocation7 + $0x4c8] sm:$0xff]   ;;  %v21368_v17 = vld [vmem:[#allocation7 + $0x4d8] sm:$0xff]  }
 0x39e   : > { %19329 = vmatprep.subr.bf16.mxu1 %v21314_v6  ;;  %v16796_v40 = vcombine.low %v6399_v45, %v6413_v31  ;;  %v16815_v58 = vrot.slane %v16809_v41, 9  ;;  %v21372_v8 = vld [vmem:[#allocation7 + $0x4e8] sm:$0xff]   ;;  %v23241_v45 = vld [vmem:[#allocation7 + $0x480] sm:$0xff]  }
 0x39f   : > { %v23243_v31 = vld [vmem:[#allocation7 + $0x480] sm:$0xff]  }
 0x3a0   : > { %19152 = vmatpush3.bf16.msra.mxu0 %v21315_v33  ;;  %v6565_v33 = vrot.slane %v16806_v14, 5  ;;  %v6577_v14 = vrot.slane %v16812_v32, 5  ;;  %v6574_v53 = vsel %vm22668_vm8, %v16815_v58, %v6573_v18 }
 0x3a1   : > { %19153 = vmatprep.subr.bf16.mxu0 %v21317_v1  ;;  %19330 = vmatpush3.bf16.msra.mxu1 %v21314_v6  ;;  %v16814_v6 = vrot.slane %v16807_v44, 9  ;;  %v21362_v44 = vld [vmem:[#allocation7 + $0x4c0] sm:$0xff]  }
 0x3a2   : > { %19331 = vmatprep.subr.bf16.mxu1 %v21316_v61  ;;  %v6566_v3 = vsel %vm22668_vm8, %v16813_v5, %v6565_v33  ;;  %v6578_v39 = vsel %vm22668_vm8, %v16816_v55, %v6577_v14  ;;  %v21369_v5 = vld [vmem:[#allocation7 + $0x4e0] sm:$0xff]  }
 0x3a3   : > { %v6570_v56 = vsel %vm22668_vm8, %v16814_v6, %v6569_v51  ;;  %v21370_v33 = vld [vmem:[#allocation7 + $0x4e0] sm:$0xff]   ;;  %v21375_v6 = vld [vmem:[#allocation7 + $0x4f8] sm:$0xff]  }
 0x3a4   : > { %19154 = vmatpush3.bf16.msra.mxu0 %v21317_v1  ;;  %v21340_v1 = vld [vmem:[#allocation7 + $0x448] sm:$0xff]   ;;  %v16817_v59 = vcombine.low %v6566_v3, %v6570_v56  ;;  %v21376_v51 = vld [vmem:[#allocation7 + $0x4f8] sm:$0xff]   ;;  %v6789_v3 = vld [vmem:[#allocation2] sm:$0x1f] }
 0x3a5   : > { %19155 = vmatprep.subr.bf16.mxu0 %v21319_v16  ;;  %19332 = vmatpush3.bf16.msra.mxu1 %v21316_v61  ;;  %v21344_v61 = vld [vmem:[#allocation7 + $0x458] sm:$0xff]  }
 0x3a6   : > { %19333 = vmatprep.subr.bf16.mxu1 %v21318_v47 }
 0x3a8   : > { %19156 = vmatpush3.bf16.msra.mxu0 %v21319_v16  ;;  %v16661_v16 = vcombine.high %v4975_v42, %v4975_v42 }
 0x3a9   : > { %19161 = vmatprep.subr.bf16.mxu0 %v21325_v24  ;;  %19334 = vmatpush3.bf16.msra.mxu1 %v21318_v47  ;;  %v16665_v47 = vrot.slane %v16660_v15, 9 }
 0x3aa   : > { %19335 = vmatprep.subr.bf16.mxu1 %v21320_v38  ;;  %v5010_v57 = vrot.slane %v16661_v16, 5 }
 0x3ab   : > { %19158 = vmatmul.mubr.bf16.vlgmr.msra.gmra.mrb[4].mxu0 %v16645_v22  ;;  %v21367_v22 = vld [vmem:[#allocation7 + $0x4d8] sm:$0xff]  }
 0x3ac   : > { %19162 = vmatpush3.bf16.msra.mxu0 %v21325_v24  ;;  %19177 = vmatprep.mubr.bf16.mxu0 %v16666_v21  ;;  %v5011_v20 = vsel %vm22668_vm8, %v16665_v47, %v5010_v57  ;;  %v21352_v24 = vld [vmem:[#allocation7 + $0x478] sm:$0xff]   ;;  %v21373_v21 = vld [vmem:[#allocation7 + $0x4f0] sm:$0xff]  }
 0x3ad   : > { %19163 = vmatprep.subr.bf16.mxu0 %v21339_v23  ;;  %19336 = vmatpush3.bf16.msra.mxu1 %v21320_v38  ;;  %v16667_v30 = vcombine.low %v5007_v60, %v5011_v20  ;;  %v16818_v38 = vcombine.low %v6574_v53, %v6578_v39 }
 0x3ae   : > { %19341 = vmatprep.subr.bf16.mxu1 %v21330_v26 }
 0x3b0   : > { %19164 = vmatpush3.bf16.msra.mxu0 %v21339_v23  ;;  %19338 = vmatmul.mubr.bf16.vlgmr.msra.gmra.mrb[4].mxu1 %v16796_v40  ;;  %v21371_v23 = vld [vmem:[#allocation7 + $0x4e8] sm:$0xff]   ;;  %v23247_v40 = vld [vmem:[#allocation9 + $0x1] ss:$0 sm:$0xff] }
 0x3b1   : > { %19165 = vmatprep.subr.bf16.mxu0 %v21341_v13  ;;  %19342 = vmatpush3.bf16.msra.mxu1 %v21330_v26  ;;  %v21374_v26 = vld [vmem:[#allocation7 + $0x4f0] sm:$0xff]  }
 0x3b2   : > { %19357 = vmatprep.mubr.bf16.mxu1 %v16817_v59  ;;  %19343 = vmatprep.subr.bf16.mxu1 %v21340_v1 }
 0x3b4   : > { %19166 = vmatpush3.bf16.msra.mxu0 %v21341_v13  ;;  %v16828_v13 = vcombine.low %v6789_v3, %v6789_v3 }
 0x3b5   : > { %19167 = vmatprep.subr.bf16.mxu0 %v21343_v4  ;;  %19344 = vmatpush3.bf16.msra.mxu1 %v21340_v1 }
 0x3b6   : > { %19345 = vmatprep.subr.bf16.mxu1 %v21342_v46  ;;  %v6814_v56 = vshrl.u32 %v16828_v13, 16  ;;  %v6817_v1 = vshll.u32 %v16828_v13, 16 }
 0x3b8   : > { %19168 = vmatpush3.bf16.msra.mxu0 %v21343_v4  ;;  %v23254_v49 = vrot.slane %v6817_v1, 5  ;;  %v5191_v1 = vld [vmem:[#allocation2 + $0x10] sm:$0x1f] }
 0x3b9   : > { %19169 = vmatprep.subr.bf16.mxu0 %v21345_v52  ;;  %19346 = vmatpush3.bf16.msra.mxu1 %v21342_v46 }
 0x3ba   : > { %19347 = vmatprep.subr.bf16.mxu1 %v21344_v61 }
 0x3bc   : > { %19170 = vmatpush3.bf16.msra.mxu0 %v21345_v52 }
 0x3bd   : > { %19171 = vmatprep.subr.bf16.mxu0 %v21347_v48  ;;  %19348 = vmatpush3.bf16.msra.mxu1 %v21344_v61 }
 0x3be   : > { %19349 = vmatprep.subr.bf16.mxu1 %v21346_v9 }
 0x3c0   : > { %19172 = vmatpush3.bf16.msra.mxu0 %v21347_v48  ;;  %v16829_v48 = vcombine.high %v6789_v3, %v6789_v3 }
 0x3c1   : > { %19173 = vmatprep.subr.bf16.mxu0 %v21349_v11  ;;  %19350 = vmatpush3.bf16.msra.mxu1 %v21346_v9 }
 0x3c2   : > { %19351 = vmatprep.subr.bf16.mxu1 %v21348_v50  ;;  %v23257_v37 = vshll.u32 %v16829_v48, 16 }
 0x3c4   : > { %19174 = vmatpush3.bf16.msra.mxu0 %v21349_v11  ;;  %v23252_v11 = vrot.slane %v6814_v56, 4 }
 0x3c5   : > { %19175 = vmatprep.subr.bf16.mxu0 %v21351_v43  ;;  %19352 = vmatpush3.bf16.msra.mxu1 %v21348_v50 }
 0x3c6   : > { %19353 = vmatprep.subr.bf16.mxu1 %v21350_v36  ;;  %v6820_v41 = vor.u32 %v23254_v49, %v23252_v11  ;;  %v6754_v11 = vld [vmem:[#allocation2 + $0x28] sm:$0x1f] }
 0x3c8   : > { %19176 = vmatpush3.bf16.msra.mxu0 %v21351_v43 }
 0x3c9   : > { %19354 = vmatpush3.bf16.msra.mxu1 %v21350_v36  ;;  %19361 = vmatprep.subr.bf16.mxu0 %v21361_v27 }
 0x3ca   : > { %19355 = vmatprep.subr.bf16.mxu1 %v21352_v24 }
 0x3cb   : > { %19178 = vmatmul.mubr.bf16.vlgmr.msra.gmra.mrb[4].mxu0 %v16667_v30  ;;  %v5194_v30 = vld [vmem:[#allocation2 + $0x18] sm:$0x1f] }
 0x3cc   : > { %19362 = vmatpush3.bf16.msra.mxu0 %v21361_v27 }
 0x3cd   : > { %19356 = vmatpush3.bf16.msra.mxu1 %v21352_v24  ;;  %19363 = vmatprep.subr.bf16.mxu0 %v21363_v35 }
 0x3ce   : > { %19541 = vmatprep.subr.bf16.mxu1 %v21362_v44 }
 0x3d0   : > { %19358 = vmatmul.mubr.bf16.vlgmr.msra.gmra.mrb[4].mxu1 %v16818_v38  ;;  %19364 = vmatpush3.bf16.msra.mxu0 %v21363_v35 }
 0x3d1   : > { %19542 = vmatpush3.bf16.msra.mxu1 %v21362_v44  ;;  %19365 = vmatprep.subr.bf16.mxu0 %v21365_v54 }
 0x3d2   : > { %19543 = vmatprep.subr.bf16.mxu1 %v21364_v19 }
 0x3d4   : > { %19366 = vmatpush3.bf16.msra.mxu0 %v21365_v54 }
 0x3d5   : > { %19544 = vmatpush3.bf16.msra.mxu1 %v21364_v19  ;;  %19367 = vmatprep.subr.bf16.mxu0 %v21367_v22  ;;  %v5188_v19 = vld [vmem:[#allocation2 + $0x8] sm:$0x1f] }
 0x3d6   : > { %19545 = vmatprep.subr.bf16.mxu1 %v21366_v2 }
 0x3d8   : > { %19368 = vmatpush3.bf16.msra.mxu0 %v21367_v22 }
 0x3d9   : > { %19546 = vmatpush3.bf16.msra.mxu1 %v21366_v2  ;;  %19369 = vmatprep.subr.bf16.mxu0 %v21369_v5 }
 0x3da   : > { %19547 = vmatprep.subr.bf16.mxu1 %v21368_v17 }
 0x3dc   : > { %19370 = vmatpush3.bf16.msra.mxu0 %v21369_v5  ;;  %v5197_v5 = vld [vmem:[#allocation2 + $0x20] sm:$0x1f] }
 0x3dd   : > { %19548 = vmatpush3.bf16.msra.mxu1 %v21368_v17  ;;  %19371 = vmatprep.subr.bf16.mxu0 %v21371_v23 }
 0x3de   : > { %19549 = vmatprep.subr.bf16.mxu1 %v21370_v33 }
 0x3e0   : > { %19372 = vmatpush3.bf16.msra.mxu0 %v21371_v23 }
 0x3e1   : > { %19550 = vmatpush3.bf16.msra.mxu1 %v21370_v33  ;;  %19373 = vmatprep.subr.bf16.mxu0 %v21373_v21 }
 0x3e2   : > { %19551 = vmatprep.subr.bf16.mxu1 %v21372_v8 }
 0x3e4   : > { %19374 = vmatpush3.bf16.msra.mxu0 %v21373_v21 }
 0x3e5   : > { %19552 = vmatpush3.bf16.msra.mxu1 %v21372_v8  ;;  %19375 = vmatprep.subr.bf16.mxu0 %v21375_v6 }
 0x3e6   : > { %19553 = vmatprep.subr.bf16.mxu1 %v21374_v26 }
 0x3e8   : > { %19376 = vmatpush3.bf16.msra.mxu0 %v21375_v6 }
 0x3e9   : > { %19554 = vmatpush3.bf16.msra.mxu1 %v21374_v26  ;;  %19381 = vmatprep.subr.bf16.mxu0 %v23241_v45 }
 0x3ea   : > { %19555 = vmatprep.subr.bf16.mxu1 %v21376_v51 }
 0x3ed   : > { %19556 = vmatpush3.bf16.msra.mxu1 %v21376_v51 }
 0x3ee   : > { %19561 = vmatprep.subr.bf16.mxu1 %v23243_v31 }
 0x49e   : > { %v19179_v59 = vpop.f32.mrb[4].mxu0 }
 0x49f   : > { %v5146_v4 = vadd.f32 %v19179_v59, %v23247_v40  ;;  %v5119_v46 = vpop.f32.mrb[5].mxu0 }
 0x4a0   : > { %v5144_v52 = vadd.f32 %v23247_v40, %v5119_v46  ;;  %v19180_v61 = vpop.f32.mrb[6].mxu0 }
 0x4a1   : > { %v5150_v9 = vmax.f32 %v5146_v4, 0.0  ;;  %v5147_v28 = vadd.f32 %v19180_v61, %v23247_v40  ;;  %v5122_v42 = vpop.f32.mrb[7].mxu0  ;;  %v6760_v61 = vld [vmem:[#allocation2 + $0x38] sm:$0x1f] }
 0x4a2   : > { %v5148_v34 = vmax.f32 %v5144_v52, 0.0  ;;  %v5145_v15 = vadd.f32 %v23247_v40, %v5122_v42 }
 0x4a3   : > { %v5154_v16 = vpack.c.bf16 %v5150_v9, %v5150_v9  ;;  %v5151_v50 = vmax.f32 %v5147_v28, 0.0  ;;  %v19359_v43 = vpop.f32.mrb[4].mxu1 }
 0x4a4   : > { %v5152_v63 = vpack.c.bf16 %v5148_v34, %v5148_v34  ;;  %v5149_v7 = vmax.f32 %v5145_v15, 0.0  ;;  %v6712_v47 = vadd.f32 %v19359_v43, %v23247_v40  ;;  %v6685_v57 = vpop.f32.mrb[5].mxu1  ;;  %v6825_v15 = vrot.slane %v23257_v37, 5 }
 0x4a5   : > { %v5171_v10 = vshrl.u32 %v5154_v16, 16  ;;  %v5155_v36 = vpack.c.bf16 %v5151_v50, %v5151_v50  ;;  %v5174_v62 = vshll.u32 %v5154_v16, 16  ;;  %v6710_v32 = vadd.f32 %v23247_v40, %v6685_v57  ;;  %v19360_v60 = vpop.f32.mrb[6].mxu1 }
 0x4a6   : > { %v5157_v0 = vshrl.u32 %v5152_v63, 16  ;;  %v5153_v20 = vpack.c.bf16 %v5149_v7, %v5149_v7  ;;  %v6716_v58 = vmax.f32 %v6712_v47, 0.0  ;;  %v5160_v18 = vshll.u32 %v5152_v63, 16  ;;  %v6688_v14 = vpop.f32.mrb[7].mxu1  ;;  %v6763_v7 = vld [vmem:[#allocation2 + $0x40] sm:$0x1f] }
 0x4a7   : > { %v5173_v24 = vrot.slane %v5171_v10, 7  ;;  %v5178_v55 = vshrl.u32 %v5155_v36, 16  ;;  %v6714_v39 = vmax.f32 %v6710_v32, 0.0  ;;  %v6713_v38 = vadd.f32 %v19360_v60, %v23247_v40 }
 0x4a8   : > { %v5159_v53 = vrot.slane %v5157_v0, 7  ;;  %v5164_v27 = vshrl.u32 %v5153_v20, 16  ;;  %v6720_v35 = vpack.c.bf16 %v6716_v58, %v6716_v58  ;;  %v5181_v2 = vshll.u32 %v5155_v36, 16 }
 0x4a9   : > { %v5176_v44 = vor.u32 %v5174_v62, %v5173_v24  ;;  %v5180_v54 = vrot.slane %v5178_v55, 7  ;;  %v6718_v17 = vpack.c.bf16 %v6714_v39, %v6714_v39  ;;  %v6717_v33 = vmax.f32 %v6713_v38, 0.0 }
 0x4aa   : > { %v5162_v22 = vor.u32 %v5160_v18, %v5159_v53  ;;  %v5166_v23 = vrot.slane %v5164_v27, 7  ;;  %v6737_v21 = vshrl.u32 %v6720_v35, 16  ;;  %v5167_v6 = vshll.u32 %v5153_v20, 16 }
 0x4ab   : > { %v5195_v8 = vsel %vm23019_vm0, %v5176_v44, %v5194_v30  ;;  %v5183_v26 = vor.u32 %v5181_v2, %v5180_v54  ;;  %v6740_v51 = vshll.u32 %v6720_v35, 16  ;;  %v6723_v13 = vshrl.u32 %v6718_v17, 16 }
 0x4ac   : > { %5196 = vst [vmem:[#allocation2 + $0x18] sm:$0x1f] %v5195_v8  ;;  %v5189_v3 = vsel %vm23019_vm0, %v5162_v22, %v5188_v19  ;;  %v6721_v56 = vpack.c.bf16 %v6717_v33, %v6717_v33  ;;  %v6739_v59 = vrot.slane %v6737_v21, 7  ;;  %v5169_v46 = vor.u32 %v5167_v6, %v5166_v23 }
 0x4ad   : > { %5190 = vst [vmem:[#allocation2 + $0x8] sm:$0x1f] %v5189_v3  ;;  %v5198_v4 = vsel %vm23019_vm0, %v5183_v26, %v5197_v5  ;;  %v6711_v52 = vadd.f32 %v23247_v40, %v6688_v14  ;;  %v6725_v48 = vrot.slane %v6723_v13, 7  ;;  %v6726_v9 = vshll.u32 %v6718_v17, 16  ;;  %v6757_v14 = vld [vmem:[#allocation2 + $0x30] sm:$0x1f] }
 0x4ae   : > { %5199 = vst [vmem:[#allocation2 + $0x20] sm:$0x1f] %v5198_v4  ;;  %v6744_v28 = vshrl.u32 %v6721_v56, 16  ;;  %v6742_v42 = vor.u32 %v6740_v51, %v6739_v59  ;;  %v5192_v49 = vsel %vm23019_vm0, %v5169_v46, %v5191_v1  ;;  %v6747_v43 = vshll.u32 %v6721_v56, 16 }
 0x4af   : > { %v6715_v34 = vmax.f32 %v6711_v52, 0.0  ;;  %v6728_v16 = vor.u32 %v6726_v9, %v6725_v48  ;;  %5193 = vst [vmem:[#allocation2 + $0x10] sm:$0x1f] %v5192_v49  ;;  %v6821_v63 = vrot.slane %v6820_v41, 4 }
 0x4b0   : > { %v6746_v50 = vrot.slane %v6744_v28, 7  ;;  %v6761_v40 = vsel %vm23019_vm0, %v6742_v42, %v6760_v61 }
 0x4b1   : > { %v6719_v10 = vpack.c.bf16 %v6715_v34, %v6715_v34  ;;  %6762 = vst [vmem:[#allocation2 + $0x38] sm:$0x1f] %v6761_v40  ;;  %v6755_v47 = vsel %vm23019_vm0, %v6728_v16, %v6754_v11  ;;  %v6826_v41 = vsel %vm22644_vm5, %v6821_v63, %v6825_v15 }
 0x4b2   : > { %v6749_v57 = vor.u32 %v6747_v43, %v6746_v50  ;;  %6756 = vst [vmem:[#allocation2 + $0x28] sm:$0x1f] %v6755_v47 }
 0x4b3   : > { %v6730_v36 = vshrl.u32 %v6719_v10, 16  ;;  %v6792_v62 = vld [vmem:[#allocation2 + $0x18] sm:$0x1f]  ;;  %v6733_v0 = vshll.u32 %v6719_v10, 16 }
 0x4b4   : > { %v6764_v37 = vsel %vm23019_vm0, %v6749_v57, %v6763_v7  ;;  %v6790_v32 = vld [vmem:[#allocation2 + $0x8] sm:$0x1f]  ;;  %v16834_v60 = vcombine.low %v6792_v62, %v6792_v62  ;;  %v16835_v55 = vcombine.high %v6792_v62, %v6792_v62 }
 0x4b5   : > { %6765 = vst [vmem:[#allocation2 + $0x40] sm:$0x1f] %v6764_v37  ;;  %v6732_v20 = vrot.slane %v6730_v36, 7  ;;  %v16830_v24 = vcombine.low %v6790_v32, %v6790_v32  ;;  %v16831_v58 = vcombine.high %v6790_v32, %v6790_v32  ;;  %v8361_v18 = vld [vmem:[#allocation2 + $0x20] sm:$0x1f] }
 0x4b6   : > { %v16979_v30 = vcombine.low %v8361_v18, %v8361_v18  ;;  %v16980_v53 = vcombine.high %v8361_v18, %v8361_v18  ;;  %v6856_v39 = vshrl.u32 %v16834_v60, 16  ;;  %v6859_v38 = vshll.u32 %v16834_v60, 16  ;;  %v6791_v54 = vld [vmem:[#allocation2 + $0x10] sm:$0x1f] }
 0x4b7   : > { %v6735_v27 = vor.u32 %v6733_v0, %v6732_v20  ;;  %v6828_v44 = vshrl.u32 %v16830_v24, 16  ;;  %v6831_v35 = vshll.u32 %v16830_v24, 16  ;;  %v6837_v19 = vshll.u32 %v16831_v58, 16 }
 0x4b8   : > { %v8386_v2 = vshrl.u32 %v16979_v30, 16  ;;  %v8389_v22 = vshll.u32 %v16979_v30, 16  ;;  %v8395_v17 = vshll.u32 %v16980_v53, 16  ;;  %v16832_v5 = vcombine.low %v6791_v54, %v6791_v54  ;;  %v8364_v50 = vld [vmem:[#allocation2 + $0x38] sm:$0x1f] }
 0x4b9   : > { %v6758_v33 = vsel %vm23019_vm0, %v6735_v27, %v6757_v14  ;;  %v6830_v23 = vrot.slane %v6828_v44, 4  ;;  %v6833_v8 = vrot.slane %v6831_v35, 5  ;;  %v6839_v21 = vrot.slane %v6837_v19, 5  ;;  %v8362_v26 = vld [vmem:[#allocation2 + $0x28] sm:$0x1f] }
 0x4ba   : > { %6759 = vst [vmem:[#allocation2 + $0x30] sm:$0x1f] %v6758_v33  ;;  %v8388_v6 = vrot.slane %v8386_v2, 4  ;;  %v8391_v51 = vrot.slane %v8389_v22, 5  ;;  %v8397_v3 = vrot.slane %v8395_v17, 5  ;;  %v16833_v13 = vcombine.high %v6791_v54, %v6791_v54 }
 0x4bb   : > { %v6834_v56 = vor.u32 %v6833_v8, %v6830_v23  ;;  %v16981_v1 = vcombine.low %v8362_v26, %v8362_v26  ;;  %v16982_v59 = vcombine.high %v8362_v26, %v8362_v26  ;;  %v6842_v4 = vshrl.u32 %v16832_v5, 16 }
 0x4bc   : > { %v8392_v46 = vor.u32 %v8391_v51, %v8388_v6  ;;  %v6845_v52 = vshll.u32 %v16832_v5, 16  ;;  %v6851_v61 = vshll.u32 %v16833_v13, 16  ;;  %v6858_v48 = vrot.slane %v6856_v39, 4  ;;  %v21395_v6 = vld [vmem:[#allocation2] ss:$8 sps:$4 sm:$0xff]  }
 0x4bd   : > { %v6835_v9 = vrot.slane %v6834_v56, 4  ;;  %v8400_v28 = vshrl.u32 %v16981_v1, 16  ;;  %v8403_v42 = vshll.u32 %v16981_v1, 16  ;;  %v8409_v11 = vshll.u32 %v16982_v59, 16  ;;  %v21399_v1 = vld [vmem:[#allocation7 + $0x490] sm:$0xff]  }
 0x4be   : > { %v8393_v49 = vrot.slane %v8392_v46, 4  ;;  %v6844_v34 = vrot.slane %v6842_v4, 4  ;;  %v6847_v15 = vrot.slane %v6845_v52, 5  ;;  %v6853_v16 = vrot.slane %v6851_v61, 5  ;;  %v21398_v52 = vld [vmem:[#allocation7 + $0x488] sm:$0xff]  }
 0x4bf   : > { %v6840_v43 = vsel %vm22644_vm5, %v6835_v9, %v6839_v21  ;;  %v8402_v63 = vrot.slane %v8400_v28, 4  ;;  %v8405_v40 = vrot.slane %v8403_v42, 5  ;;  %v8411_v7 = vrot.slane %v8409_v11, 5  ;;  %v21397_v21 = vld [vmem:[#allocation7 + $0x488] sm:$0xff]   ;;  %v21403_v9 = vld [vmem:[#allocation7 + $0x4a0] sm:$0xff]   ;;  %v21402_v28 = vld [vmem:[#allocation7 + $0x498] sm:$0xff]  }
 0x4c0   : > { %v16836_v10 = vcombine.low %v6826_v41, %v6840_v43  ;;  %v8398_v47 = vsel %vm22644_vm5, %v8393_v49, %v8397_v3  ;;  %v6848_v57 = vor.u32 %v6847_v15, %v6844_v34  ;;  %v6861_v36 = vrot.slane %v6859_v38, 5  ;;  %v21396_v61 = vld [vmem:[#allocation2 + $0x20] ss:$8 sps:$4 sm:$0xff]  }
 0x4c1   : > { %v8406_v62 = vor.u32 %v8405_v40, %v8402_v63  ;;  %v6865_v37 = vshll.u32 %v16835_v55, 16  ;;  %v8363_v0 = vld [vmem:[#allocation2 + $0x30] sm:$0x1f]  ;;  %v16985_v32 = vcombine.low %v8364_v50, %v8364_v50  ;;  %v16986_v60 = vcombine.high %v8364_v50, %v8364_v50  ;;  %v21405_v42 = vld [vmem:[#allocation7 + $0x4a8] sm:$0xff]   ;;  %v21404_v11 = vld [vmem:[#allocation7 + $0x4a0] sm:$0xff]  }
 0x4c2   : > { %19377 = vmatprep.mubr.bf16.mxu0 %v16836_v10  ;;  %v6849_v20 = vrot.slane %v6848_v57, 4  ;;  %v6862_v24 = vor.u32 %v6861_v36, %v6858_v48  ;;  %v16983_v58 = vcombine.low %v8363_v0, %v8363_v0  ;;  %v16984_v18 = vcombine.high %v8363_v0, %v8363_v0  ;;  %v21401_v48 = vld [vmem:[#allocation7 + $0x498] sm:$0xff]   ;;  %v7100_v49 = vld [vmem:[#allocation2] sm:$0x1e]  ;;  %v7101_v34 = vld [vmem:[#allocation2 + $0x8] sm:$0x1e] }
 0x4c3   : > { %v8407_v14 = vrot.slane %v8406_v62, 4  ;;  %v6867_v30 = vrot.slane %v6865_v37, 5  ;;  %v8428_v53 = vshrl.u32 %v16985_v32, 16  ;;  %v8431_v39 = vshll.u32 %v16985_v32, 16  ;;  %v21406_v15 = vld [vmem:[#allocation7 + $0x4a8] sm:$0xff]   ;;  %v21409_v40 = vld [vmem:[#allocation7 + $0x4b8] sm:$0xff]  }
 0x4c4   : > { %v6854_v41 = vsel %vm22644_vm5, %v6849_v20, %v6853_v16  ;;  %v6863_v27 = vrot.slane %v6862_v24, 4  ;;  %v8414_v44 = vshrl.u32 %v16983_v58, 16  ;;  %v8417_v38 = vshll.u32 %v16983_v58, 16  ;;  %v8672_v10 = vld [vmem:[#allocation2 + $0x28] sm:$0x1e]  ;;  %v21412_v0 = vld [vmem:[#allocation7 + $0x500] sm:$0xff]  }
 0x4c5   : > { %v8412_v55 = vsel %vm22644_vm5, %v8407_v14, %v8411_v7  ;;  %v8423_v35 = vshll.u32 %v16984_v18, 16  ;;  %v8430_v19 = vrot.slane %v8428_v53, 4  ;;  %v8433_v54 = vrot.slane %v8431_v39, 5  ;;  %v8671_v7 = vld [vmem:[#allocation2 + $0x20] sm:$0x1e]  ;;  %v21410_v58 = vld [vmem:[#allocation7 + $0x4b8] sm:$0xff]  }
 0x4c6   : > { %v16987_v2 = vcombine.low %v8398_v47, %v8412_v55  ;;  %v6868_v22 = vsel %vm22644_vm5, %v6863_v27, %v6867_v30  ;;  %v8416_v17 = vrot.slane %v8414_v44, 4  ;;  %v8419_v5 = vrot.slane %v8417_v38, 5  ;;  %v21408_v47 = vld [vmem:[#allocation7 + $0x4b0] sm:$0xff]   ;;  %v21423_v30 = vld [vmem:[#allocation7 + $0x508] sm:$0xff]   ;;  %v21414_v55 = vld [vmem:[#allocation7 + $0x500] sm:$0xff]  }
 0x4c7   : > { %v16837_v33 = vcombine.low %v6854_v41, %v6868_v22  ;;  %v8434_v23 = vor.u32 %v8433_v54, %v8430_v19  ;;  %v8437_v8 = vshll.u32 %v16986_v60, 16  ;;  %v8425_v13 = vrot.slane %v8423_v35, 5  ;;  %v21411_v53 = vld [vmem:[#allocation2 + $0x10] ss:$8 sps:$4 sm:$0xff]   ;;  %v21424_v22 = vld [vmem:[#allocation7 + $0x508] sm:$0xff]  }
 0x4c8   : > { %19557 = vmatprep.mubr.bf16.mxu1 %v16987_v2  ;;  %v8420_v26 = vor.u32 %v8419_v5, %v8416_v17  ;;  %v16856_v16 = vcombine.low %v7100_v49, %v7100_v49  ;;  %v16857_v50 = vcombine.high %v7100_v49, %v7100_v49  ;;  %v16858_v43 = vcombine.low %v7101_v34, %v7101_v34  ;;  %v21425_v54 = vld [vmem:[#allocation7 + $0x510] sm:$0xff]   ;;  %v21427_v5 = vld [vmem:[#allocation7 + $0x518] sm:$0xff]  }
 0x4c9   : > { %19378 = vmatmul.mubr.bf16.vlgmr.msra.gmra.mrb[8].mxu0 %v16837_v33  ;;  %v8435_v51 = vrot.slane %v8434_v23, 4  ;;  %v8439_v56 = vrot.slane %v8437_v8, 5  ;;  %v16859_v63 = vcombine.high %v7101_v34, %v7101_v34  ;;  %v17007_v32 = vcombine.low %v8671_v7, %v8671_v7  ;;  %v21413_v2 = vld [vmem:[#allocation2 + $0x30] ss:$8 sps:$4 sm:$0xff]   ;;  %v21429_v23 = vld [vmem:[#allocation7 + $0x520] sm:$0xff]  }
 0x4ca   : > { %19382 = vmatpush3.bf16.msra.mxu0 %v23241_v45  ;;  %v8421_v3 = vrot.slane %v8420_v26, 4  ;;  %19397 = vmatprep.mubr.bf16.mxu0 %v21395_v6  ;;  %v21400_v45 = vld [vmem:[#allocation7 + $0x490] sm:$0xff]   ;;  %v16864_v57 = vrot.slane %v16856_v16, 9  ;;  %v7126_v36 = vrot.slane %v16857_v50, 5  ;;  %v16865_v62 = vrot.slane %v16858_v43, 9  ;;  %v21428_v8 = vld [vmem:[#allocation7 + $0x518] sm:$0xff]  }
 0x4cb   : > { %19383 = vmatprep.subr.bf16.mxu0 %v21397_v21  ;;  %v8440_v4 = vsel %vm22644_vm5, %v8435_v51, %v8439_v56  ;;  %v7130_v37 = vrot.slane %v16859_v63, 5  ;;  %v17008_v60 = vcombine.high %v8671_v7, %v8671_v7  ;;  %v17009_v20 = vcombine.low %v8672_v10, %v8672_v10  ;;  %v21426_v33 = vld [vmem:[#allocation7 + $0x510] sm:$0xff]   ;;  %v21430_v26 = vld [vmem:[#allocation7 + $0x520] sm:$0xff]   ;;  %v21436_v50 = vld [vmem:[#allocation7 + $0x538] sm:$0xff]  }
 0x4cc   : > { %v8426_v59 = vsel %vm22644_vm5, %v8421_v3, %v8425_v13  ;;  %v17010_v24 = vcombine.high %v8672_v10, %v8672_v10  ;;  %v7127_v18 = vsel %vm22668_vm8, %v16864_v57, %v7126_v36  ;;  %v17015_v39 = vrot.slane %v17007_v32, 9  ;;  %v7102_v6 = vld [vmem:[#allocation2 + $0x10] sm:$0x1e]  ;;  %v7103_v3 = vld [vmem:[#allocation2 + $0x18] sm:$0x1e]  ;;  %v21441_v34 = vld [vmem:[#allocation7 + $0x540] sm:$0xff]  }
 0x4cd   : > { %v16988_v46 = vcombine.low %v8426_v59, %v8440_v4  ;;  %v7131_v14 = vsel %vm22668_vm8, %v16865_v62, %v7130_v37  ;;  %v8697_v41 = vrot.slane %v17008_v60, 5  ;;  %v17016_v27 = vrot.slane %v17009_v20, 9  ;;  %v21433_v51 = vld [vmem:[#allocation7 + $0x530] sm:$0xff]   ;;  %v21449_v10 = vld [vmem:[#allocation7 + $0x548] sm:$0xff]   ;;  %v21446_v62 = vld [vmem:[#allocation7 + $0x540] sm:$0xff]  }
 0x4ce   : > { %19384 = vmatpush3.bf16.msra.mxu0 %v21397_v21  ;;  %v8701_v44 = vrot.slane %v17010_v24, 5  ;;  %v16868_v38 = vcombine.low %v7127_v18, %v7131_v14  ;;  %v21431_v21 = vld [vmem:[#allocation7 + $0x528] sm:$0xff]   ;;  %v16860_v13 = vcombine.low %v7102_v6, %v7102_v6  ;;  %v16861_v56 = vcombine.high %v7102_v6, %v7102_v6  ;;  %v21453_v18 = vld [vmem:[#allocation7 + $0x558] sm:$0xff]  }
 0x4cf   : > { %19558 = vmatmul.mubr.bf16.vlgmr.msra.gmra.mrb[8].mxu1 %v16988_v46  ;;  %19385 = vmatprep.subr.bf16.mxu0 %v21399_v1  ;;  %v8698_v35 = vsel %vm22668_vm8, %v17015_v39, %v8697_v41  ;;  %v16862_v59 = vcombine.low %v7103_v3, %v7103_v3  ;;  %v16863_v4 = vcombine.high %v7103_v3, %v7103_v3  ;;  %v21435_v46 = vld [vmem:[#allocation7 + $0x538] sm:$0xff]   ;;  %v21447_v36 = vld [vmem:[#allocation2 + $0x8] ss:$8 sps:$4 sm:$0xff]   ;;  %v21455_v39 = vld [vmem:[#allocation7 + $0x560] sm:$0xff]  }
 0x4d0   : > { %19562 = vmatpush3.bf16.msra.mxu1 %v23243_v31  ;;  %19577 = vmatprep.mubr.bf16.mxu1 %v21396_v61  ;;  %v21407_v31 = vld [vmem:[#allocation7 + $0x4b0] sm:$0xff]   ;;  %v8702_v19 = vsel %vm22668_vm8, %v17016_v27, %v8701_v44  ;;  %v16866_v61 = vrot.slane %v16860_v13, 9  ;;  %v21450_v20 = vld [vmem:[#allocation7 + $0x548] sm:$0xff]   ;;  %v21454_v44 = vld [vmem:[#allocation7 + $0x558] sm:$0xff]  }
 0x4d1   : > { %19563 = vmatprep.subr.bf16.mxu1 %v21398_v52  ;;  %v17019_v17 = vcombine.low %v8698_v35, %v8702_v19  ;;  %v21448_v24 = vld [vmem:[#allocation2 + $0x28] ss:$8 sps:$4 sm:$0xff]  }
 0x4d2   : > { %19386 = vmatpush3.bf16.msra.mxu0 %v21399_v1  ;;  %v21432_v1 = vld [vmem:[#allocation7 + $0x528] sm:$0xff]   ;;  %v8970_v27 = vld [vmem:[#allocation2 + $0x30] sm:$0x1f] }
 0x4d3   : > { %19387 = vmatprep.subr.bf16.mxu0 %v21401_v48  ;;  %v7400_v14 = vld [vmem:[#allocation2 + $0x8] sm:$0x1f] }
 0x4d4   : > { %19564 = vmatpush3.bf16.msra.mxu1 %v21398_v52  ;;  %v8673_v52 = vld [vmem:[#allocation2 + $0x30] sm:$0x1e]  ;;  %v16888_v41 = vcombine.low %v7400_v14, %v7400_v14  ;;  %v8969_v35 = vld [vmem:[#allocation2 + $0x28] sm:$0x1f]  ;;  %v16889_v13 = vcombine.high %v7400_v14, %v7400_v14 }
 0x4d5   : > { %19565 = vmatprep.subr.bf16.mxu1 %v21400_v45  ;;  %v17012_v49 = vcombine.high %v8673_v52, %v8673_v52  ;;  %v21457_v19 = vld [vmem:[#allocation7 + $0x568] sm:$0xff]   ;;  %v21477_v14 = vld [vmem:[#allocation7 + $0x590] sm:$0xff]  }
 0x4d6   : > { %19388 = vmatpush3.bf16.msra.mxu0 %v21401_v48  ;;  %v7134_v48 = vrot.slane %v16861_v56, 5  ;;  %v21458_v56 = vld [vmem:[#allocation7 + $0x568] sm:$0xff]  }
 0x4d7   : > { %19389 = vmatprep.subr.bf16.mxu0 %v21403_v9 }
 0x4d8   : > { %19566 = vmatpush3.bf16.msra.mxu1 %v21400_v45  ;;  %v21434_v45 = vld [vmem:[#allocation7 + $0x530] sm:$0xff]  }
 0x4d9   : > { %19567 = vmatprep.subr.bf16.mxu1 %v21402_v28 }
 0x4da   : > { %19390 = vmatpush3.bf16.msra.mxu0 %v21403_v9  ;;  %v8674_v9 = vld [vmem:[#allocation2 + $0x38] sm:$0x1e] }
 0x4db   : > { %19391 = vmatprep.subr.bf16.mxu0 %v21405_v42  ;;  %v17014_v16 = vcombine.high %v8674_v9, %v8674_v9 }
 0x4dc   : > { %19568 = vmatpush3.bf16.msra.mxu1 %v21402_v28  ;;  %v16867_v28 = vrot.slane %v16862_v59, 9 }
 0x4dd   : > { %19569 = vmatprep.subr.bf16.mxu1 %v21404_v11  ;;  %v8709_v57 = vrot.slane %v17014_v16, 5 }
 0x4de   : > { %19392 = vmatpush3.bf16.msra.mxu0 %v21405_v42  ;;  %v7138_v42 = vrot.slane %v16863_v4, 5 }
 0x4df   : > { %19393 = vmatprep.subr.bf16.mxu0 %v21407_v31 }
 0x4e0   : > { %19570 = vmatpush3.bf16.msra.mxu1 %v21404_v11  ;;  %v17011_v11 = vcombine.low %v8673_v52, %v8673_v52  ;;  %v7139_v43 = vsel %vm22668_vm8, %v16867_v28, %v7138_v42  ;;  %v21460_v28 = vld [vmem:[#allocation7 + $0x570] sm:$0xff]  }
 0x4e1   : > { %19571 = vmatprep.subr.bf16.mxu1 %v21406_v15 }
 0x4e2   : > { %19394 = vmatpush3.bf16.msra.mxu0 %v21407_v31  ;;  %v7135_v31 = vsel %vm22668_vm8, %v16866_v61, %v7134_v48  ;;  %v17017_v63 = vrot.slane %v17011_v11, 9  ;;  %v17042_v11 = vcombine.high %v8970_v27, %v8970_v27 }
 0x4e3   : > { %19395 = vmatprep.subr.bf16.mxu0 %v21409_v40  ;;  %v16869_v7 = vcombine.low %v7135_v31, %v7139_v43  ;;  %v21464_v31 = vld [vmem:[#allocation7 + $0x580] sm:$0xff]  }
 0x4e4   : > { %19572 = vmatpush3.bf16.msra.mxu1 %v21406_v15  ;;  %v17013_v15 = vcombine.low %v8674_v9, %v8674_v9  ;;  %v7434_v9 = vshll.u32 %v16889_v13, 16  ;;  %v21482_v13 = vld [vmem:[#allocation7 + $0x5a0] sm:$0xff]  }
 0x4e5   : > { %19573 = vmatprep.subr.bf16.mxu1 %v21408_v47 }
 0x4e6   : > { %19396 = vmatpush3.bf16.msra.mxu0 %v21409_v40  ;;  %v8705_v40 = vrot.slane %v17012_v49, 5 }
 0x4e7   : > { %19401 = vmatprep.subr.bf16.mxu0 %v21412_v0 }
 0x4e8   : > { %19574 = vmatpush3.bf16.msra.mxu1 %v21408_v47  ;;  %v17018_v47 = vrot.slane %v17013_v15, 9  ;;  %v8706_v37 = vsel %vm22668_vm8, %v17017_v63, %v8705_v40  ;;  %v21462_v63 = vld [vmem:[#allocation7 + $0x578] sm:$0xff]   ;;  %v7436_v40 = vrot.slane %v7434_v9, 5 }
 0x4e9   : > { %19575 = vmatprep.subr.bf16.mxu1 %v21410_v58  ;;  %19398 = vmatmul.mubr.bf16.vlgmr.msra.gmra.mrb[8].mxu0 %v21411_v53 }
 0x4ea   : > { %19402 = vmatpush3.bf16.msra.mxu0 %v21412_v0  ;;  %19417 = vmatprep.mubr.bf16.mxu0 %v16868_v38  ;;  %v21451_v0 = vld [vmem:[#allocation7 + $0x550] sm:$0xff]   ;;  %v8710_v32 = vsel %vm22668_vm8, %v17018_v47, %v8709_v57  ;;  %v9017_v47 = vshll.u32 %v17042_v11, 16  ;;  %v21463_v57 = vld [vmem:[#allocation2 + $0x18] ss:$8 sps:$4 sm:$0xff]   ;;  %v21484_v11 = vld [vmem:[#allocation7 + $0x5a8] sm:$0xff]  }
 0x4eb   : > { %19403 = vmatprep.subr.bf16.mxu0 %v21423_v30  ;;  %v17020_v60 = vcombine.low %v8706_v37, %v8710_v32 }
 0x4ec   : > { %19576 = vmatpush3.bf16.msra.mxu1 %v21410_v58  ;;  %v7401_v58 = vld [vmem:[#allocation2 + $0x10] sm:$0x1f] }
 0x4ed   : > { %19581 = vmatprep.subr.bf16.mxu1 %v21414_v55  ;;  %v16890_v53 = vcombine.low %v7401_v58, %v7401_v58 }
 0x4ee   : > { %19404 = vmatpush3.bf16.msra.mxu0 %v21423_v30  ;;  %v21452_v30 = vld [vmem:[#allocation7 + $0x550] sm:$0xff]  }
 0x4ef   : > { %19578 = vmatmul.mubr.bf16.vlgmr.msra.gmra.mrb[8].mxu1 %v21413_v2  ;;  %19405 = vmatprep.subr.bf16.mxu0 %v21425_v54  ;;  %v7439_v38 = vshrl.u32 %v16890_v53, 16  ;;  %v7428_v2 = vshll.u32 %v16888_v41, 16 }
 0x4f0   : > { %19582 = vmatpush3.bf16.msra.mxu1 %v21414_v55  ;;  %19597 = vmatprep.mubr.bf16.mxu1 %v17019_v17  ;;  %v7442_v55 = vshll.u32 %v16890_v53, 16  ;;  %v21456_v17 = vld [vmem:[#allocation7 + $0x560] sm:$0xff]  }
 0x4f1   : > { %19583 = vmatprep.subr.bf16.mxu1 %v21424_v22  ;;  %v7430_v6 = vrot.slane %v7428_v2, 5  ;;  %v23324_v2 = vld [vmem:[#allocation2 + $0x40] sm:$0x1f] }
 0x4f2   : > { %19406 = vmatpush3.bf16.msra.mxu0 %v21425_v54  ;;  %v7425_v54 = vshrl.u32 %v16888_v41, 16  ;;  %v7403_v41 = vld [vmem:[#allocation2 + $0x20] sm:$0x1f] }
 0x4f3   : > { %19407 = vmatprep.subr.bf16.mxu0 %v21427_v5 }
 0x4f4   : > { %19584 = vmatpush3.bf16.msra.mxu1 %v21424_v22  ;;  %v17041_v22 = vcombine.low %v8970_v27, %v8970_v27 }
 0x4f5   : > { %19585 = vmatprep.subr.bf16.mxu1 %v21426_v33 }
 0x4f6   : > { %19408 = vmatpush3.bf16.msra.mxu0 %v21427_v5  ;;  %v7441_v5 = vrot.slane %v7439_v38, 4  ;;  %v9011_v3 = vshll.u32 %v17041_v22, 16  ;;  %v7402_v38 = vld [vmem:[#allocation2 + $0x18] sm:$0x1f] }
 0x4f7   : > { %19409 = vmatprep.subr.bf16.mxu0 %v21429_v23 }
 0x4f8   : > { %19586 = vmatpush3.bf16.msra.mxu1 %v21426_v33  ;;  %v7444_v33 = vrot.slane %v7442_v55, 5  ;;  %v16894_v55 = vcombine.low %v7403_v41, %v7403_v41 }
 0x4f9   : > { %19587 = vmatprep.subr.bf16.mxu1 %v21428_v8 }
 0x4fa   : > { %19410 = vmatpush3.bf16.msra.mxu0 %v21429_v23  ;;  %v17039_v23 = vcombine.low %v8969_v35, %v8969_v35 }
 0x4fb   : > { %19411 = vmatprep.subr.bf16.mxu0 %v21431_v21 }
 0x4fc   : > { %19588 = vmatpush3.bf16.msra.mxu1 %v21428_v8  ;;  %v16891_v8 = vcombine.high %v7401_v58, %v7401_v58  ;;  %v8994_v59 = vshrl.u32 %v17039_v23, 16  ;;  %v8997_v4 = vshll.u32 %v17039_v23, 16 }
 0x4fd   : > { %19589 = vmatprep.subr.bf16.mxu1 %v21430_v26 }
 0x4fe   : > { %19412 = vmatpush3.bf16.msra.mxu0 %v21431_v21  ;;  %v21459_v21 = vld [vmem:[#allocation7 + $0x570] sm:$0xff]   ;;  %v7448_v61 = vshll.u32 %v16891_v8, 16  ;;  %v8996_v49 = vrot.slane %v8994_v59, 4 }
 0x4ff   : > { %19413 = vmatprep.subr.bf16.mxu0 %v21433_v51 }
 0x500   : > { %19590 = vmatpush3.bf16.msra.mxu1 %v21430_v26  ;;  %v7427_v26 = vrot.slane %v7425_v54, 4  ;;  %v7450_v16 = vrot.slane %v7448_v61, 5  ;;  %v21481_v54 = vld [vmem:[#allocation7 + $0x5a0] sm:$0xff]   ;;  %v21485_v61 = vld [vmem:[#allocation7 + $0x5b0] sm:$0xff]  }
 0x501   : > { %19591 = vmatprep.subr.bf16.mxu1 %v21432_v1 }
 0x502   : > { %19414 = vmatpush3.bf16.msra.mxu0 %v21433_v51  ;;  %v9008_v51 = vshrl.u32 %v17041_v22, 16  ;;  %v7431_v52 = vor.u32 %v7430_v6, %v7427_v26  ;;  %v7467_v22 = vshrl.u32 %v16894_v55, 16  ;;  %v21483_v26 = vld [vmem:[#allocation7 + $0x5a8] sm:$0xff]  }
 0x503   : > { %19415 = vmatprep.subr.bf16.mxu0 %v21435_v46 }
 0x504   : > { %19592 = vmatpush3.bf16.msra.mxu1 %v21432_v1  ;;  %v7445_v1 = vor.u32 %v7444_v33, %v7441_v5  ;;  %v9010_v48 = vrot.slane %v9008_v51, 4  ;;  %v7432_v15 = vrot.slane %v7431_v52, 4  ;;  %v21480_v5 = vld [vmem:[#allocation7 + $0x598] sm:$0xff]   ;;  %v7469_v6 = vrot.slane %v7467_v22, 4  ;;  %v7607_v52 = vld [vmem:[#allocation2 + $0x10] sm:$0x1e] }
 0x505   : > { %19593 = vmatprep.subr.bf16.mxu1 %v21434_v45  ;;  %v23326_v33 = vld [vmem:[#allocation2 + $0x38] sm:$0x1f] }
 0x506   : > { %19416 = vmatpush3.bf16.msra.mxu0 %v21435_v46  ;;  %v21461_v46 = vld [vmem:[#allocation7 + $0x578] sm:$0xff]   ;;  %v7446_v42 = vrot.slane %v7445_v1, 4 }
 0x507   : > { %19421 = vmatprep.subr.bf16.mxu0 %v21441_v34 }
 0x508   : > { %19594 = vmatpush3.bf16.msra.mxu1 %v21434_v45  ;;  %v9013_v45 = vrot.slane %v9011_v3, 5  ;;  %v17043_v3 = vcombine.low %v23326_v33, %v23326_v33 }
 0x509   : > { %19595 = vmatprep.subr.bf16.mxu1 %v21436_v50  ;;  %19418 = vmatmul.mubr.bf16.vlgmr.msra.gmra.mrb[8].mxu0 %v16869_v7  ;;  %v7451_v7 = vsel %vm22644_vm5, %v7446_v42, %v7450_v16  ;;  %v7606_v42 = vld [vmem:[#allocation2 + $0x8] sm:$0x1e] }
 0x50a   : > { %19422 = vmatpush3.bf16.msra.mxu0 %v21441_v34  ;;  %19437 = vmatprep.mubr.bf16.mxu0 %v21447_v36  ;;  %v8999_v34 = vrot.slane %v8997_v4, 5  ;;  %v9014_v43 = vor.u32 %v9013_v45, %v9010_v48  ;;  %v7437_v36 = vsel %vm22644_vm5, %v7432_v15, %v7436_v40  ;;  %v16893_v48 = vcombine.high %v7402_v38, %v7402_v38 }
 0x50b   : > { %19423 = vmatprep.subr.bf16.mxu0 %v21449_v10  ;;  %v16896_v32 = vcombine.low %v7437_v36, %v7451_v7  ;;  %v9022_v9 = vshrl.u32 %v17043_v3, 16  ;;  %v16906_v40 = vcombine.low %v7606_v42, %v7606_v42  ;;  %v16907_v7 = vcombine.high %v7606_v42, %v7606_v42  ;;  %v21511_v42 = vld [vmem:[#allocation7 + $0x5d8] sm:$0xff]  }
 0x50c   : > { %19596 = vmatpush3.bf16.msra.mxu1 %v21436_v50  ;;  %v17040_v50 = vcombine.high %v8969_v35, %v8969_v35  ;;  %v9015_v37 = vrot.slane %v9014_v43, 4  ;;  %v21478_v35 = vld [vmem:[#allocation7 + $0x590] sm:$0xff]   ;;  %v21487_v43 = vld [vmem:[#allocation7 + $0x5b8] sm:$0xff]  }
 0x50d   : > { %19601 = vmatprep.subr.bf16.mxu1 %v21446_v62 }
 0x50e   : > { %19424 = vmatpush3.bf16.msra.mxu0 %v21449_v10  ;;  %v9000_v10 = vor.u32 %v8999_v34, %v8996_v49  ;;  %v16908_v49 = vcombine.low %v7607_v52, %v7607_v52  ;;  %v16909_v34 = vcombine.high %v7607_v52, %v7607_v52  ;;  %v21509_v52 = vld [vmem:[#allocation7 + $0x5d0] sm:$0xff]  }
 0x50f   : > { %19598 = vmatmul.mubr.bf16.vlgmr.msra.gmra.mrb[8].mxu1 %v17020_v60  ;;  %19425 = vmatprep.subr.bf16.mxu0 %v21451_v0  ;;  %v21466_v60 = vld [vmem:[#allocation7 + $0x580] sm:$0xff]  }
 0x510   : > { %19602 = vmatpush3.bf16.msra.mxu1 %v21446_v62  ;;  %19617 = vmatprep.mubr.bf16.mxu1 %v21448_v24  ;;  %v9003_v62 = vshll.u32 %v17040_v50, 16  ;;  %v9019_v24 = vrot.slane %v9017_v47, 5  ;;  %v17046_v47 = vcombine.high %v23324_v2, %v23324_v2 }
 0x511   : > { %19603 = vmatprep.subr.bf16.mxu1 %v21450_v20 }
 0x512   : > { %19426 = vmatpush3.bf16.msra.mxu0 %v21451_v0  ;;  %v21475_v0 = vld [vmem:[#allocation7 + $0x588] sm:$0xff]   ;;  %v9005_v58 = vrot.slane %v9003_v62, 5  ;;  %v9175_v62 = vld [vmem:[#allocation2 + $0x30] sm:$0x1e] }
 0x513   : > { %19427 = vmatprep.subr.bf16.mxu0 %v21453_v18 }
 0x514   : > { %19604 = vmatpush3.bf16.msra.mxu1 %v21450_v20  ;;  %v9001_v20 = vrot.slane %v9000_v10, 4 }
 0x515   : > { %19605 = vmatprep.subr.bf16.mxu1 %v21452_v30 }
 0x516   : > { %19428 = vmatpush3.bf16.msra.mxu0 %v21453_v18  ;;  %v9020_v18 = vsel %vm22644_vm5, %v9015_v37, %v9019_v24  ;;  %v9006_v53 = vsel %vm22644_vm5, %v9001_v20, %v9005_v58  ;;  %v21486_v37 = vld [vmem:[#allocation7 + $0x5b0] sm:$0xff]   ;;  %v17044_v24 = vcombine.high %v23326_v33, %v23326_v33 }
 0x517   : > { %19429 = vmatprep.subr.bf16.mxu0 %v21455_v39  ;;  %v17047_v27 = vcombine.low %v9006_v53, %v9020_v18  ;;  %v9174_v18 = vld [vmem:[#allocation2 + $0x28] sm:$0x1e]  ;;  %v7632_v53 = vrot.slane %v16907_v7, 5 }
 0x518   : > { %19606 = vmatpush3.bf16.msra.mxu1 %v21452_v30  ;;  %v21465_v30 = vld [vmem:[#allocation2 + $0x38] ss:$8 sps:$4 sm:$0xff]   ;;  %v21516_v7 = vld [vmem:[#allocation7 + $0x5e8] sm:$0xff]  }
 0x519   : > { %19607 = vmatprep.subr.bf16.mxu1 %v21454_v44 }
 0x51a   : > { %19430 = vmatpush3.bf16.msra.mxu0 %v21455_v39  ;;  %v21476_v39 = vld [vmem:[#allocation7 + $0x588] sm:$0xff]  }
 0x51b   : > { %19431 = vmatprep.subr.bf16.mxu0 %v21457_v19 }
 0x51c   : > { %19608 = vmatpush3.bf16.msra.mxu1 %v21454_v44  ;;  %v21479_v44 = vld [vmem:[#allocation7 + $0x598] sm:$0xff]  }
 0x51d   : > { %19609 = vmatprep.subr.bf16.mxu1 %v21456_v17 }
 0x51e   : > { %19432 = vmatpush3.bf16.msra.mxu0 %v21457_v19  ;;  %v16892_v19 = vcombine.low %v7402_v38, %v7402_v38 }
 0x51f   : > { %19433 = vmatprep.subr.bf16.mxu0 %v21459_v21 }
 0x520   : > { %19610 = vmatpush3.bf16.msra.mxu1 %v21456_v17  ;;  %v7470_v17 = vshll.u32 %v16894_v55, 16  ;;  %v7453_v23 = vshrl.u32 %v16892_v19, 16  ;;  %v7456_v8 = vshll.u32 %v16892_v19, 16  ;;  %v9045_v55 = vshll.u32 %v17046_v47, 16 }
 0x521   : > { %19611 = vmatprep.subr.bf16.mxu1 %v21458_v56 }
 0x522   : > { %19434 = vmatpush3.bf16.msra.mxu0 %v21459_v21  ;;  %v17045_v21 = vcombine.low %v23324_v2, %v23324_v2  ;;  %v7472_v51 = vrot.slane %v7470_v17, 5  ;;  %v7455_v1 = vrot.slane %v7453_v23, 4  ;;  %v7458_v59 = vrot.slane %v7456_v8, 5 }
 0x523   : > { %19435 = vmatprep.subr.bf16.mxu0 %v21461_v46  ;;  %v17058_v2 = vcombine.high %v9174_v18, %v9174_v18  ;;  %v9031_v17 = vshll.u32 %v17044_v24, 16 }
 0x524   : > { %19612 = vmatpush3.bf16.msra.mxu1 %v21458_v56  ;;  %v16895_v56 = vcombine.high %v7403_v41, %v7403_v41  ;;  %v9036_v4 = vshrl.u32 %v17045_v21, 16  ;;  %v7473_v45 = vor.u32 %v7472_v51, %v7469_v6  ;;  %v17060_v41 = vcombine.high %v9175_v62, %v9175_v62 }
 0x525   : > { %19613 = vmatprep.subr.bf16.mxu1 %v21460_v28  ;;  %v9047_v51 = vrot.slane %v9045_v55, 5  ;;  %v21533_v55 = vld [vmem:[#allocation7 + $0x608] sm:$0xff]  }
 0x526   : > { %19436 = vmatpush3.bf16.msra.mxu0 %v21461_v46  ;;  %v9039_v46 = vshll.u32 %v17045_v21, 16  ;;  %v7476_v15 = vshll.u32 %v16895_v56, 16  ;;  %v9038_v16 = vrot.slane %v9036_v4, 4  ;;  %v7474_v10 = vrot.slane %v7473_v45, 4 }
 0x527   : > { %19441 = vmatprep.subr.bf16.mxu0 %v21464_v31  ;;  %v9204_v21 = vrot.slane %v17060_v41, 5 }
 0x528   : > { %19614 = vmatpush3.bf16.msra.mxu1 %v21460_v28  ;;  %v9025_v28 = vshll.u32 %v17043_v3, 16  ;;  %v9041_v50 = vrot.slane %v9039_v46, 5  ;;  %v7478_v20 = vrot.slane %v7476_v15, 5  ;;  %v21514_v15 = vld [vmem:[#allocation7 + $0x5e0] sm:$0xff]  }
 0x529   : > { %19615 = vmatprep.subr.bf16.mxu1 %v21462_v63  ;;  %19438 = vmatmul.mubr.bf16.vlgmr.msra.gmra.mrb[8].mxu0 %v21463_v57  ;;  %v9024_v57 = vrot.slane %v9022_v9, 4  ;;  %v21508_v9 = vld [vmem:[#allocation7 + $0x5c8] sm:$0xff]  }
 0x52a   : > { %19442 = vmatpush3.bf16.msra.mxu0 %v21464_v31  ;;  %19457 = vmatprep.mubr.bf16.mxu0 %v16896_v32  ;;  %v7459_v31 = vor.u32 %v7458_v59, %v7455_v1  ;;  %v9027_v36 = vrot.slane %v9025_v28, 5  ;;  %v7636_v32 = vrot.slane %v16909_v34, 5  ;;  %v9042_v58 = vor.u32 %v9041_v50, %v9038_v16  ;;  %v21512_v34 = vld [vmem:[#allocation7 + $0x5d8] sm:$0xff]   ;;  %v7609_v16 = vld [vmem:[#allocation2 + $0x20] sm:$0x1e]  ;;  %v21517_v50 = vld [vmem:[#allocation7 + $0x5f0] sm:$0xff]  }
 0x52b   : > { %19443 = vmatprep.subr.bf16.mxu0 %v21475_v0  ;;  %v9200_v1 = vrot.slane %v17058_v2, 5  ;;  %v9033_v59 = vrot.slane %v9031_v17, 5  ;;  %v21530_v2 = vld [vmem:[#allocation7 + $0x600] sm:$0xff]   ;;  %v21535_v17 = vld [vmem:[#allocation7 + $0x610] sm:$0xff]  }
 0x52c   : > { %19616 = vmatpush3.bf16.msra.mxu1 %v21462_v63  ;;  %v7462_v63 = vshll.u32 %v16893_v48, 16  ;;  %v9028_v38 = vor.u32 %v9027_v36, %v9024_v57  ;;  %v21519_v57 = vld [vmem:[#allocation7 + $0x5f8] sm:$0xff]   ;;  %v9177_v36 = vld [vmem:[#allocation2 + $0x40] sm:$0x1e] }
 0x52d   : > { %19621 = vmatprep.subr.bf16.mxu1 %v21466_v60  ;;  %v17063_v24 = vcombine.low %v9177_v36, %v9177_v36 }
 0x52e   : > { %19444 = vmatpush3.bf16.msra.mxu0 %v21475_v0  ;;  %v16915_v0 = vrot.slane %v16908_v49, 9  ;;  %v9029_v6 = vrot.slane %v9028_v38, 4  ;;  %v21513_v49 = vld [vmem:[#allocation7 + $0x5e0] sm:$0xff]  }
 0x52f   : > { %19618 = vmatmul.mubr.bf16.vlgmr.msra.gmra.mrb[8].mxu1 %v21465_v30  ;;  %19445 = vmatprep.subr.bf16.mxu0 %v21477_v14  ;;  %v16914_v30 = vrot.slane %v16906_v40, 9  ;;  %v16913_v40 = vcombine.high %v7609_v16, %v7609_v16 }
 0x530   : > { %19622 = vmatpush3.bf16.msra.mxu1 %v21466_v60  ;;  %19637 = vmatprep.mubr.bf16.mxu1 %v17047_v27  ;;  %v7460_v60 = vrot.slane %v7459_v31, 4  ;;  %v7464_v27 = vrot.slane %v7462_v63, 5  ;;  %v7637_v19 = vsel %vm22668_vm8, %v16915_v0, %v7636_v32  ;;  %v21515_v31 = vld [vmem:[#allocation7 + $0x5e8] sm:$0xff]   ;;  %v16912_v63 = vcombine.low %v7609_v16, %v7609_v16  ;;  %v21518_v0 = vld [vmem:[#allocation7 + $0x5f0] sm:$0xff]   ;;  %v9176_v32 = vld [vmem:[#allocation2 + $0x38] sm:$0x1e] }
 0x531   : > { %19623 = vmatprep.subr.bf16.mxu1 %v21476_v39  ;;  %v7633_v23 = vsel %vm22668_vm8, %v16914_v30, %v7632_v53  ;;  %v17061_v30 = vcombine.low %v9176_v32, %v9176_v32  ;;  %v17062_v53 = vcombine.high %v9176_v32, %v9176_v32 }
 0x532   : > { %19446 = vmatpush3.bf16.msra.mxu0 %v21477_v14  ;;  %v21493_v14 = vld [vmem:[#allocation7 + $0x5c0] sm:$0xff]   ;;  %v7465_v22 = vsel %vm22644_vm5, %v7460_v60, %v7464_v27  ;;  %v16918_v3 = vcombine.low %v7633_v23, %v7637_v19  ;;  %v17068_v27 = vrot.slane %v17063_v24, 9  ;;  %v21534_v23 = vld [vmem:[#allocation7 + $0x608] sm:$0xff]  }
 0x533   : > { %19447 = vmatprep.subr.bf16.mxu0 %v21479_v44  ;;  %v9208_v19 = vrot.slane %v17062_v53, 5 }
 0x534   : > { %19624 = vmatpush3.bf16.msra.mxu1 %v21476_v39  ;;  %v17059_v39 = vcombine.low %v9175_v62, %v9175_v62  ;;  %v16917_v62 = vrot.slane %v16912_v63, 9 }
 0x535   : > { %19625 = vmatprep.subr.bf16.mxu1 %v21478_v35 }
 0x536   : > { %19448 = vmatpush3.bf16.msra.mxu0 %v21479_v44  ;;  %v7479_v44 = vsel %vm22644_vm5, %v7474_v10, %v7478_v20  ;;  %v17066_v8 = vrot.slane %v17059_v39, 9  ;;  %v21520_v39 = vld [vmem:[#allocation7 + $0x5f8] sm:$0xff]  }
 0x537   : > { %19449 = vmatprep.subr.bf16.mxu0 %v21481_v54  ;;  %v16897_v33 = vcombine.low %v7465_v22, %v7479_v44 }
 0x538   : > { %19626 = vmatpush3.bf16.msra.mxu1 %v21478_v35  ;;  %v21488_v35 = vld [vmem:[#allocation7 + $0x5b8] sm:$0xff]   ;;  %v9205_v46 = vsel %vm22668_vm8, %v17066_v8, %v9204_v21  ;;  %v7906_v21 = vld [vmem:[#allocation2 + $0x10] sm:$0x1f] }
 0x539   : > { %19627 = vmatprep.subr.bf16.mxu1 %v21480_v5  ;;  %v21532_v8 = vld [vmem:[#allocation2 + $0x30] ss:$8 sps:$4 sm:$0xff]  }
 0x53a   : > { %19450 = vmatpush3.bf16.msra.mxu0 %v21481_v54  ;;  %v17057_v54 = vcombine.low %v9174_v18, %v9174_v18  ;;  %v21525_v18 = vld [vmem:[#allocation7 + $0x600] sm:$0xff]  }
 0x53b   : > { %19451 = vmatprep.subr.bf16.mxu0 %v21483_v26 }
 0x53c   : > { %19628 = vmatpush3.bf16.msra.mxu1 %v21480_v5  ;;  %v9043_v5 = vrot.slane %v9042_v58, 4  ;;  %v17065_v56 = vrot.slane %v17057_v54, 9  ;;  %v17064_v58 = vcombine.high %v9177_v36, %v9177_v36  ;;  %v21531_v54 = vld [vmem:[#allocation2 + $0x10] ss:$8 sps:$4 sm:$0xff]  }
 0x53d   : > { %19629 = vmatprep.subr.bf16.mxu1 %v21482_v13 }
 0x53e   : > { %19452 = vmatpush3.bf16.msra.mxu0 %v21483_v26  ;;  %v21507_v26 = vld [vmem:[#allocation7 + $0x5c8] sm:$0xff]   ;;  %v9048_v4 = vsel %vm22644_vm5, %v9043_v5, %v9047_v51  ;;  %v9201_v45 = vsel %vm22668_vm8, %v17065_v56, %v9200_v1  ;;  %v9212_v44 = vrot.slane %v17064_v58, 5  ;;  %v21536_v51 = vld [vmem:[#allocation7 + $0x610] sm:$0xff]  }
 0x53f   : > { %19453 = vmatprep.subr.bf16.mxu0 %v21485_v61  ;;  %v17069_v28 = vcombine.low %v9201_v45, %v9205_v46  ;;  %v9472_v1 = vld [vmem:[#allocation2 + $0x30] sm:$0x1f] }
 0x540   : > { %19630 = vmatpush3.bf16.msra.mxu1 %v21482_v13  ;;  %v21498_v13 = vld [vmem:[#allocation7 + $0x5c0] sm:$0xff]   ;;  %v9213_v22 = vsel %vm22668_vm8, %v17068_v27, %v9212_v44  ;;  %v17090_v24 = vcombine.high %v9472_v1, %v9472_v1  ;;  %v21546_v27 = vld [vmem:[#allocation7 + $0x638] sm:$0xff]  }
 0x541   : > { %19631 = vmatprep.subr.bf16.mxu1 %v21484_v11 }
 0x542   : > { %19454 = vmatpush3.bf16.msra.mxu0 %v21485_v61  ;;  %v9034_v61 = vsel %vm22644_vm5, %v9029_v6, %v9033_v59  ;;  %v7907_v6 = vld [vmem:[#allocation2 + $0x18] sm:$0x1f] }
 0x543   : > { %19455 = vmatprep.subr.bf16.mxu0 %v21487_v43  ;;  %v17048_v48 = vcombine.low %v9034_v61, %v9048_v4  ;;  %v16940_v56 = vcombine.low %v7907_v6, %v7907_v6  ;;  %v21538_v59 = vld [vmem:[#allocation7 + $0x618] sm:$0xff]   ;;  %v21541_v61 = vld [vmem:[#allocation7 + $0x628] sm:$0xff]   ;;  %v16941_v63 = vcombine.high %v7907_v6, %v7907_v6  ;;  %v21561_v6 = vld [vmem:[#allocation7 + $0x650] sm:$0xff]  }
 0x544   : > { %19632 = vmatpush3.bf16.msra.mxu1 %v21484_v11  ;;  %v21510_v11 = vld [vmem:[#allocation7 + $0x5d0] sm:$0xff]  }
 0x545   : > { %19633 = vmatprep.subr.bf16.mxu1 %v21486_v37  ;;  %v7948_v45 = vshll.u32 %v16940_v56, 16  ;;  %v7954_v32 = vshll.u32 %v16941_v63, 16 }
 0x546   : > { %19456 = vmatpush3.bf16.msra.mxu0 %v21487_v43  ;;  %v7608_v43 = vld [vmem:[#allocation2 + $0x18] sm:$0x1e] }
 0x547   : > { %19461 = vmatprep.subr.bf16.mxu0 %v21493_v14  ;;  %v16910_v10 = vcombine.low %v7608_v43, %v7608_v43  ;;  %v16911_v47 = vcombine.high %v7608_v43, %v7608_v43  ;;  %v7950_v16 = vrot.slane %v7948_v45, 5  ;;  %v21565_v45 = vld [vmem:[#allocation7 + $0x660] sm:$0xff]  }
 0x548   : > { %19634 = vmatpush3.bf16.msra.mxu1 %v21486_v37  ;;  %v7644_v37 = vrot.slane %v16913_v40, 5  ;;  %v21542_v40 = vld [vmem:[#allocation7 + $0x628] sm:$0xff]  }
 0x549   : > { %19635 = vmatprep.subr.bf16.mxu1 %v21488_v35  ;;  %19458 = vmatmul.mubr.bf16.vlgmr.msra.gmra.mrb[8].mxu0 %v16897_v33  ;;  %v16916_v60 = vrot.slane %v16910_v10, 9  ;;  %v7640_v20 = vrot.slane %v16911_v47, 5 }
 0x54a   : > { %19462 = vmatpush3.bf16.msra.mxu0 %v21493_v14  ;;  %19477 = vmatprep.mubr.bf16.mxu0 %v16918_v3  ;;  %v7645_v14 = vsel %vm22668_vm8, %v16917_v62, %v7644_v37  ;;  %v16938_v3 = vcombine.low %v7906_v21, %v7906_v21 }
 0x54b   : > { %19463 = vmatprep.subr.bf16.mxu0 %v21507_v26  ;;  %v7641_v41 = vsel %vm22668_vm8, %v16916_v60, %v7640_v20  ;;  %v21544_v60 = vld [vmem:[#allocation7 + $0x630] sm:$0xff]  }
 0x54c   : > { %19636 = vmatpush3.bf16.msra.mxu1 %v21488_v35  ;;  %v16919_v38 = vcombine.low %v7641_v41, %v7645_v14  ;;  %v17067_v35 = vrot.slane %v17061_v30, 9  ;;  %v7931_v4 = vshrl.u32 %v16938_v3, 16  ;;  %v7934_v46 = vshll.u32 %v16938_v3, 16  ;;  %v21548_v14 = vld [vmem:[#allocation7 + $0x640] sm:$0xff]  }
 0x54d   : > { %19641 = vmatprep.subr.bf16.mxu1 %v21498_v13 }
 0x54e   : > { %19464 = vmatpush3.bf16.msra.mxu0 %v21507_v26  ;;  %v9209_v5 = vsel %vm22668_vm8, %v17067_v35, %v9208_v19  ;;  %v21537_v26 = vld [vmem:[#allocation7 + $0x618] sm:$0xff]   ;;  %v21547_v19 = vld [vmem:[#allocation2 + $0x20] ss:$8 sps:$4 sm:$0xff]  }
 0x54f   : > { %19638 = vmatmul.mubr.bf16.vlgmr.msra.gmra.mrb[8].mxu1 %v17048_v48  ;;  %19465 = vmatprep.subr.bf16.mxu0 %v21509_v52  ;;  %v17070_v33 = vcombine.low %v9209_v5, %v9213_v22  ;;  %v7945_v48 = vshrl.u32 %v16940_v56, 16  ;;  %v7908_v56 = vld [vmem:[#allocation2 + $0x20] sm:$0x1f] }
 0x550   : > { %19642 = vmatpush3.bf16.msra.mxu1 %v21498_v13  ;;  %19657 = vmatprep.mubr.bf16.mxu1 %v17069_v28  ;;  %v21539_v13 = vld [vmem:[#allocation7 + $0x620] sm:$0xff]  }
 0x551   : > { %19643 = vmatprep.subr.bf16.mxu1 %v21508_v9  ;;  %v21540_v28 = vld [vmem:[#allocation7 + $0x620] sm:$0xff]  }
 0x552   : > { %19466 = vmatpush3.bf16.msra.mxu0 %v21509_v52  ;;  %v9473_v52 = vld [vmem:[#allocation2 + $0x38] sm:$0x1f] }
 0x553   : > { %19467 = vmatprep.subr.bf16.mxu0 %v21511_v42 }
 0x554   : > { %19644 = vmatpush3.bf16.msra.mxu1 %v21508_v9  ;;  %v17089_v9 = vcombine.low %v9472_v1, %v9472_v1  ;;  %v7909_v1 = vld [vmem:[#allocation2 + $0x28] sm:$0x1f] }
 0x555   : > { %19645 = vmatprep.subr.bf16.mxu1 %v21510_v11 }
 0x556   : > { %19468 = vmatpush3.bf16.msra.mxu0 %v21511_v42  ;;  %v7933_v42 = vrot.slane %v7931_v4, 4  ;;  %v9500_v43 = vshll.u32 %v17089_v9, 16  ;;  %v21563_v4 = vld [vmem:[#allocation7 + $0x658] sm:$0xff]  }
 0x557   : > { %19469 = vmatprep.subr.bf16.mxu0 %v21513_v49 }
 0x558   : > { %19646 = vmatpush3.bf16.msra.mxu1 %v21510_v11  ;;  %v7936_v11 = vrot.slane %v7934_v46, 5  ;;  %v16942_v46 = vcombine.low %v7908_v56, %v7908_v56 }
 0x559   : > { %19647 = vmatprep.subr.bf16.mxu1 %v21512_v34 }
 0x55a   : > { %19470 = vmatpush3.bf16.msra.mxu0 %v21513_v49  ;;  %v17091_v49 = vcombine.low %v9473_v52, %v9473_v52 }
 0x55b   : > { %19471 = vmatprep.subr.bf16.mxu0 %v21515_v31 }
 0x55c   : > { %19648 = vmatpush3.bf16.msra.mxu1 %v21512_v34  ;;  %v16939_v34 = vcombine.high %v7906_v21, %v7906_v21  ;;  %v9511_v10 = vshrl.u32 %v17091_v49, 16  ;;  %v9514_v47 = vshll.u32 %v17091_v49, 16 }
 0x55d   : > { %19649 = vmatprep.subr.bf16.mxu1 %v21514_v15 }
 0x55e   : > { %19472 = vmatpush3.bf16.msra.mxu0 %v21515_v31  ;;  %v21543_v31 = vld [vmem:[#allocation7 + $0x630] sm:$0xff]   ;;  %v7940_v36 = vshll.u32 %v16939_v34, 16  ;;  %v9513_v58 = vrot.slane %v9511_v10, 4  ;;  %v21564_v34 = vld [vmem:[#allocation7 + $0x658] sm:$0xff]  }
 0x55f   : > { %19473 = vmatprep.subr.bf16.mxu0 %v21517_v50 }
 0x560   : > { %19650 = vmatpush3.bf16.msra.mxu1 %v21514_v15  ;;  %v7947_v15 = vrot.slane %v7945_v48, 4  ;;  %v7942_v30 = vrot.slane %v7940_v36, 5  ;;  %v23368_v48 = vld [vmem:[#allocation2 + $0x48] sm:$0x1f]  ;;  %v16945_v36 = vcombine.high %v7909_v1, %v7909_v1 }
 0x561   : > { %19651 = vmatprep.subr.bf16.mxu1 %v21516_v7 }
 0x562   : > { %19474 = vmatpush3.bf16.msra.mxu0 %v21517_v50  ;;  %v9497_v50 = vshrl.u32 %v17089_v9, 16  ;;  %v7951_v62 = vor.u32 %v7950_v16, %v7947_v15  ;;  %v23370_v9 = vld [vmem:[#allocation2 + $0x40] sm:$0x1f]  ;;  %v21567_v16 = vld [vmem:[#allocation7 + $0x668] sm:$0xff]  }
 0x563   : > { %19475 = vmatprep.subr.bf16.mxu0 %v21519_v57  ;;  %v17093_v15 = vcombine.low %v23370_v9, %v23370_v9 }
 0x564   : > { %19652 = vmatpush3.bf16.msra.mxu1 %v21516_v7  ;;  %v7937_v7 = vor.u32 %v7936_v11, %v7933_v42  ;;  %v9499_v37 = vrot.slane %v9497_v50, 4  ;;  %v7952_v53 = vrot.slane %v7951_v62, 4  ;;  %v7962_v42 = vshll.u32 %v16942_v46, 16 }
 0x565   : > { %19653 = vmatprep.subr.bf16.mxu1 %v21518_v0  ;;  %v9525_v62 = vshrl.u32 %v17093_v15, 16 }
 0x566   : > { %19476 = vmatpush3.bf16.msra.mxu0 %v21519_v57  ;;  %v21545_v57 = vld [vmem:[#allocation7 + $0x638] sm:$0xff]   ;;  %v7938_v20 = vrot.slane %v7937_v7, 4  ;;  %v21566_v7 = vld [vmem:[#allocation7 + $0x660] sm:$0xff]  }
 0x567   : > { %19481 = vmatprep.subr.bf16.mxu0 %v21525_v18 }
 0x568   : > { %19654 = vmatpush3.bf16.msra.mxu1 %v21518_v0  ;;  %v9502_v0 = vrot.slane %v9500_v43, 5  ;;  %v7943_v44 = vsel %vm22644_vm5, %v7938_v20, %v7942_v30  ;;  %v7964_v43 = vrot.slane %v7962_v42, 5 }
 0x569   : > { %19655 = vmatprep.subr.bf16.mxu1 %v21520_v39  ;;  %19478 = vmatmul.mubr.bf16.vlgmr.msra.gmra.mrb[8].mxu0 %v16919_v38  ;;  %v7956_v38 = vrot.slane %v7954_v32, 5  ;;  %v21569_v32 = vld [vmem:[#allocation7 + $0x670] sm:$0xff]  }
 0x56a   : > { %19482 = vmatpush3.bf16.msra.mxu0 %v21525_v18  ;;  %19497 = vmatprep.mubr.bf16.mxu0 %v21531_v54  ;;  %v9516_v18 = vrot.slane %v9514_v47, 5  ;;  %v9503_v41 = vor.u32 %v9502_v0, %v9499_v37  ;;  %v9528_v37 = vshll.u32 %v17093_v15, 16  ;;  %v8112_v0 = vld [vmem:[#allocation2 + $0x10] sm:$0x1e] }
 0x56b   : > { %19483 = vmatprep.subr.bf16.mxu0 %v21533_v55  ;;  %v7957_v54 = vsel %vm22644_vm5, %v7952_v53, %v7956_v38  ;;  %v16956_v53 = vcombine.low %v8112_v0, %v8112_v0 }
 0x56c   : > { %19656 = vmatpush3.bf16.msra.mxu1 %v21520_v39  ;;  %v17092_v39 = vcombine.high %v9473_v52, %v9473_v52  ;;  %v9517_v35 = vor.u32 %v9516_v18, %v9513_v58  ;;  %v16946_v5 = vcombine.low %v7943_v44, %v7957_v54  ;;  %v16944_v52 = vcombine.low %v7909_v1, %v7909_v1  ;;  %v8113_v58 = vld [vmem:[#allocation2 + $0x18] sm:$0x1e]  ;;  %v21568_v18 = vld [vmem:[#allocation7 + $0x668] sm:$0xff]  }
 0x56d   : > { %19661 = vmatprep.subr.bf16.mxu1 %v21530_v2  ;;  %v9527_v44 = vrot.slane %v9525_v62, 4  ;;  %v9530_v38 = vrot.slane %v9528_v37, 5  ;;  %v21593_v62 = vld [vmem:[#allocation7 + $0x690] sm:$0xff]  }
 0x56e   : > { %19484 = vmatpush3.bf16.msra.mxu0 %v21533_v55  ;;  %v9506_v55 = vshll.u32 %v17090_v24, 16  ;;  %v9520_v22 = vshll.u32 %v17092_v39, 16  ;;  %v7973_v11 = vshrl.u32 %v16944_v52, 16  ;;  %v7976_v49 = vshll.u32 %v16944_v52, 16 }
 0x56f   : > { %19658 = vmatmul.mubr.bf16.vlgmr.msra.gmra.mrb[8].mxu1 %v17070_v33  ;;  %19485 = vmatprep.subr.bf16.mxu0 %v21535_v17  ;;  %v21550_v33 = vld [vmem:[#allocation7 + $0x640] sm:$0xff]   ;;  %v17096_v24 = vcombine.high %v23368_v48, %v23368_v48  ;;  %v16957_v39 = vcombine.high %v8112_v0, %v8112_v0 }
 0x570   : > { %19662 = vmatpush3.bf16.msra.mxu1 %v21530_v2  ;;  %19677 = vmatprep.mubr.bf16.mxu1 %v21532_v8  ;;  %v9504_v2 = vrot.slane %v9503_v41, 4  ;;  %v9518_v8 = vrot.slane %v9517_v35, 4  ;;  %v7975_v63 = vrot.slane %v7973_v11, 4  ;;  %v16958_v35 = vcombine.low %v8113_v58, %v8113_v58 }
 0x571   : > { %19663 = vmatprep.subr.bf16.mxu1 %v21534_v23 }
 0x572   : > { %19486 = vmatpush3.bf16.msra.mxu0 %v21535_v17  ;;  %v21559_v17 = vld [vmem:[#allocation7 + $0x648] sm:$0xff]  }
 0x573   : > { %19487 = vmatprep.subr.bf16.mxu0 %v21537_v26 }
 0x574   : > { %19664 = vmatpush3.bf16.msra.mxu1 %v21534_v23  ;;  %v9508_v23 = vrot.slane %v9506_v55, 5  ;;  %v21571_v55 = vld [vmem:[#allocation7 + $0x678] sm:$0xff]  }
 0x575   : > { %19665 = vmatprep.subr.bf16.mxu1 %v21536_v51 }
 0x576   : > { %19488 = vmatpush3.bf16.msra.mxu0 %v21537_v26  ;;  %v9509_v21 = vsel %vm22644_vm5, %v9504_v2, %v9508_v23  ;;  %v9522_v26 = vrot.slane %v9520_v22, 5  ;;  %v17094_v22 = vcombine.high %v23370_v9, %v23370_v9  ;;  %v16964_v23 = vrot.slane %v16956_v53, 9  ;;  %v8114_v53 = vld [vmem:[#allocation2 + $0x20] sm:$0x1e] }
 0x577   : > { %19489 = vmatprep.subr.bf16.mxu0 %v21539_v13 }
 0x578   : > { %19666 = vmatpush3.bf16.msra.mxu1 %v21536_v51  ;;  %v21549_v51 = vld [vmem:[#allocation2 + $0x40] ss:$8 sps:$4 sm:$0xff]   ;;  %v9523_v3 = vsel %vm22644_vm5, %v9518_v8, %v9522_v26  ;;  %v8138_v8 = vrot.slane %v16957_v39, 5 }
 0x579   : > { %19667 = vmatprep.subr.bf16.mxu1 %v21538_v59  ;;  %v8115_v39 = vld [vmem:[#allocation2 + $0x28] sm:$0x1e] }
 0x57a   : > { %19490 = vmatpush3.bf16.msra.mxu0 %v21539_v13  ;;  %v21560_v13 = vld [vmem:[#allocation7 + $0x648] sm:$0xff]  }
 0x57b   : > { %19491 = vmatprep.subr.bf16.mxu0 %v21541_v61 }
 0x57c   : > { %19668 = vmatpush3.bf16.msra.mxu1 %v21538_v59  ;;  %v17097_v59 = vcombine.low %v9509_v21, %v9523_v3  ;;  %v9678_v3 = vld [vmem:[#allocation2 + $0x38] sm:$0x1e] }
 0x57d   : > { %19669 = vmatprep.subr.bf16.mxu1 %v21540_v28  ;;  %v17109_v9 = vcombine.low %v9678_v3, %v9678_v3 }
 0x57e   : > { %19492 = vmatpush3.bf16.msra.mxu0 %v21541_v61  ;;  %v21562_v61 = vld [vmem:[#allocation7 + $0x650] sm:$0xff]  }
 0x57f   : > { %19493 = vmatprep.subr.bf16.mxu0 %v21543_v31 }
 0x580   : > { %19670 = vmatpush3.bf16.msra.mxu1 %v21540_v28  ;;  %v7959_v28 = vshrl.u32 %v16942_v46, 16 }
 0x581   : > { %19671 = vmatprep.subr.bf16.mxu1 %v21542_v40 }
 0x582   : > { %19494 = vmatpush3.bf16.msra.mxu0 %v21543_v31  ;;  %v17095_v31 = vcombine.low %v23368_v48, %v23368_v48  ;;  %v7961_v50 = vrot.slane %v7959_v28, 4  ;;  %v21572_v48 = vld [vmem:[#allocation7 + $0x678] sm:$0xff]   ;;  %v17110_v28 = vcombine.high %v9678_v3, %v9678_v3 }
 0x583   : > { %19495 = vmatprep.subr.bf16.mxu0 %v21545_v57 }
 0x584   : > { %19672 = vmatpush3.bf16.msra.mxu1 %v21542_v40  ;;  %v7978_v40 = vrot.slane %v7976_v49, 5  ;;  %v9539_v10 = vshrl.u32 %v17095_v31, 16  ;;  %v9542_v47 = vshll.u32 %v17095_v31, 16 }
 0x585   : > { %19673 = vmatprep.subr.bf16.mxu1 %v21544_v60 }
 0x586   : > { %19496 = vmatpush3.bf16.msra.mxu0 %v21545_v57  ;;  %v16943_v57 = vcombine.high %v7908_v56, %v7908_v56  ;;  %v7979_v20 = vor.u32 %v7978_v40, %v7975_v63  ;;  %v9544_v30 = vrot.slane %v9542_v47, 5  ;;  %v16965_v56 = vrot.slane %v16958_v35, 9  ;;  %v21582_v40 = vld [vmem:[#allocation7 + $0x680] sm:$0xff]   ;;  %v21600_v35 = vld [vmem:[#allocation7 + $0x6a8] sm:$0xff]  }
 0x587   : > { %19501 = vmatprep.subr.bf16.mxu0 %v21548_v14 }
 0x588   : > { %19674 = vmatpush3.bf16.msra.mxu1 %v21544_v60  ;;  %v7965_v60 = vor.u32 %v7964_v43, %v7961_v50  ;;  %v7968_v41 = vshll.u32 %v16943_v57, 16  ;;  %v7980_v2 = vrot.slane %v7979_v20, 4  ;;  %v21591_v50 = vld [vmem:[#allocation7 + $0x688] sm:$0xff]   ;;  %v21595_v20 = vld [vmem:[#allocation7 + $0x698] sm:$0xff]  }
 0x589   : > { %19675 = vmatprep.subr.bf16.mxu1 %v21546_v27  ;;  %19498 = vmatmul.mubr.bf16.vlgmr.msra.gmra.mrb[8].mxu0 %v21547_v19  ;;  %v16959_v19 = vcombine.high %v8113_v58, %v8113_v58  ;;  %v21597_v58 = vld [vmem:[#allocation7 + $0x6a0] sm:$0xff]  }
 0x58a   : > { %19502 = vmatpush3.bf16.msra.mxu0 %v21548_v14  ;;  %19517 = vmatprep.mubr.bf16.mxu0 %v16946_v5  ;;  %v9541_v14 = vrot.slane %v9539_v10, 4  ;;  %v7966_v54 = vrot.slane %v7965_v60, 4  ;;  %v21570_v5 = vld [vmem:[#allocation7 + $0x670] sm:$0xff]   ;;  %v7970_v21 = vrot.slane %v7968_v41, 5  ;;  %v9707_v10 = vrot.slane %v17110_v28, 5  ;;  %v21615_v28 = vld [vmem:[#allocation7 + $0x708] sm:$0xff]  }
 0x58b   : > { %19503 = vmatprep.subr.bf16.mxu0 %v21559_v17  ;;  %v8142_v1 = vrot.slane %v16959_v19, 5  ;;  %v21601_v41 = vld [vmem:[#allocation7 + $0x6b0] sm:$0xff]   ;;  %v21603_v19 = vld [vmem:[#allocation7 + $0x6b8] sm:$0xff]  }
 0x58c   : > { %19676 = vmatpush3.bf16.msra.mxu1 %v21546_v27  ;;  %v7982_v27 = vshll.u32 %v16945_v36, 16  ;;  %v7971_v46 = vsel %vm22644_vm5, %v7966_v54, %v7970_v21  ;;  %v9679_v54 = vld [vmem:[#allocation2 + $0x40] sm:$0x1e] }
 0x58d   : > { %19681 = vmatprep.subr.bf16.mxu1 %v21550_v33  ;;  %v8143_v31 = vsel %vm22668_vm8, %v16965_v56, %v8142_v1  ;;  %v17112_v21 = vcombine.high %v9679_v54, %v9679_v54 }
 0x58e   : > { %19504 = vmatpush3.bf16.msra.mxu0 %v21559_v17  ;;  %v9677_v17 = vld [vmem:[#allocation2 + $0x30] sm:$0x1e]  ;;  %v7984_v26 = vrot.slane %v7982_v27, 5  ;;  %v16960_v27 = vcombine.low %v8114_v53, %v8114_v53 }
 0x58f   : > { %19678 = vmatmul.mubr.bf16.vlgmr.msra.gmra.mrb[8].mxu1 %v21549_v51  ;;  %19505 = vmatprep.subr.bf16.mxu0 %v21561_v6  ;;  %v9548_v51 = vshll.u32 %v17096_v24, 16  ;;  %v21594_v24 = vld [vmem:[#allocation7 + $0x690] sm:$0xff]   ;;  %v9711_v1 = vrot.slane %v17112_v21, 5 }
 0x590   : > { %19682 = vmatpush3.bf16.msra.mxu1 %v21550_v33  ;;  %19697 = vmatprep.mubr.bf16.mxu1 %v17097_v59  ;;  %v9545_v33 = vor.u32 %v9544_v30, %v9541_v14  ;;  %v17107_v59 = vcombine.low %v9677_v17, %v9677_v17  ;;  %v7985_v52 = vsel %vm22644_vm5, %v7980_v2, %v7984_v26  ;;  %v21599_v14 = vld [vmem:[#allocation7 + $0x6a8] sm:$0xff]   ;;  %v21598_v30 = vld [vmem:[#allocation7 + $0x6a0] sm:$0xff]  }
 0x591   : > { %19683 = vmatprep.subr.bf16.mxu1 %v21560_v13  ;;  %v9550_v49 = vrot.slane %v9548_v51, 5  ;;  %v9680_v2 = vld [vmem:[#allocation2 + $0x48] sm:$0x1e] }
 0x592   : > { %19506 = vmatpush3.bf16.msra.mxu0 %v21561_v6  ;;  %v9531_v6 = vor.u32 %v9530_v38, %v9527_v44  ;;  %v9546_v11 = vrot.slane %v9545_v33, 4  ;;  %v17115_v15 = vrot.slane %v17107_v59, 9  ;;  %v16961_v44 = vcombine.high %v8114_v53, %v8114_v53 }
 0x593   : > { %19507 = vmatprep.subr.bf16.mxu0 %v21563_v4  ;;  %v16962_v38 = vcombine.low %v8115_v39, %v8115_v39  ;;  %v17113_v26 = vcombine.low %v9680_v2, %v9680_v2 }
 0x594   : > { %19684 = vmatpush3.bf16.msra.mxu1 %v21560_v13  ;;  %v21577_v13 = vld [vmem:[#allocation7 + $0x680] sm:$0xff]   ;;  %v9532_v42 = vrot.slane %v9531_v6, 4  ;;  %v9551_v57 = vsel %vm22644_vm5, %v9546_v11, %v9550_v49  ;;  %v17114_v6 = vcombine.high %v9680_v2, %v9680_v2  ;;  %v21617_v11 = vld [vmem:[#allocation7 + $0x710] sm:$0xff]  }
 0x595   : > { %19685 = vmatprep.subr.bf16.mxu1 %v21562_v61  ;;  %v17118_v59 = vrot.slane %v17113_v26, 9  ;;  %v21618_v49 = vld [vmem:[#allocation7 + $0x710] sm:$0xff]  }
 0x596   : > { %19508 = vmatpush3.bf16.msra.mxu0 %v21563_v4  ;;  %v17108_v4 = vcombine.high %v9677_v17, %v9677_v17  ;;  %v8146_v17 = vrot.slane %v16961_v44, 5 }
 0x597   : > { %19509 = vmatprep.subr.bf16.mxu0 %v21565_v45 }
 0x598   : > { %19686 = vmatpush3.bf16.msra.mxu1 %v21562_v61  ;;  %v9534_v61 = vshll.u32 %v17094_v22, 16  ;;  %v16966_v22 = vrot.slane %v16960_v27, 9 }
 0x599   : > { %19687 = vmatprep.subr.bf16.mxu1 %v21564_v34 }
 0x59a   : > { %19510 = vmatpush3.bf16.msra.mxu0 %v21565_v45  ;;  %v8139_v45 = vsel %vm22668_vm8, %v16964_v23, %v8138_v8  ;;  %v9536_v43 = vrot.slane %v9534_v61, 5  ;;  %v21602_v23 = vld [vmem:[#allocation7 + $0x6b0] sm:$0xff]   ;;  %v17111_v8 = vcombine.low %v9679_v54, %v9679_v54  ;;  %v8147_v51 = vsel %vm22668_vm8, %v16966_v22, %v8146_v17 }
 0x59b   : > { %19511 = vmatprep.subr.bf16.mxu0 %v21567_v16  ;;  %v16968_v63 = vcombine.low %v8139_v45, %v8143_v31  ;;  %v21613_v45 = vld [vmem:[#allocation7 + $0x700] sm:$0xff]   ;;  %v21620_v31 = vld [vmem:[#allocation7 + $0x718] sm:$0xff]  }
 0x59c   : > { %19688 = vmatpush3.bf16.msra.mxu1 %v21564_v34  ;;  %v16947_v34 = vcombine.low %v7971_v46, %v7985_v52  ;;  %v9537_v47 = vsel %vm22644_vm5, %v9532_v42, %v9536_v43  ;;  %v17117_v56 = vrot.slane %v17111_v8, 9  ;;  %v21616_v42 = vld [vmem:[#allocation7 + $0x708] sm:$0xff]  }
 0x59d   : > { %19689 = vmatprep.subr.bf16.mxu1 %v21566_v7  ;;  %v17098_v37 = vcombine.low %v9537_v47, %v9551_v57  ;;  %v21624_v43 = vld [vmem:[#allocation7 + $0x728] sm:$0xff]   ;;  %v23404_v47 = vld [vmem:[#allocation7 + $0x6c0] sm:$0xff]  }
 0x59e   : > { %19512 = vmatpush3.bf16.msra.mxu0 %v21567_v16  ;;  %v9703_v16 = vrot.slane %v17108_v4, 5  ;;  %v9715_v4 = vrot.slane %v17114_v6, 5  ;;  %v9712_v52 = vsel %vm22668_vm8, %v17117_v56, %v9711_v1  ;;  %v23406_v57 = vld [vmem:[#allocation7 + $0x6c0] sm:$0xff]  }
 0x59f   : > { %19513 = vmatprep.subr.bf16.mxu0 %v21569_v32 }
 0x5a0   : > { %19690 = vmatpush3.bf16.msra.mxu1 %v21566_v7  ;;  %v17116_v7 = vrot.slane %v17109_v9, 9  ;;  %v9704_v36 = vsel %vm22668_vm8, %v17115_v15, %v9703_v16  ;;  %v9716_v61 = vsel %vm22668_vm8, %v17118_v59, %v9715_v4  ;;  %v21614_v9 = vld [vmem:[#allocation7 + $0x700] sm:$0xff]  }
 0x5a1   : > { %19691 = vmatprep.subr.bf16.mxu1 %v21568_v18  ;;  %v21621_v15 = vld [vmem:[#allocation7 + $0x720] sm:$0xff]  }
 0x5a2   : > { %19514 = vmatpush3.bf16.msra.mxu0 %v21569_v32  ;;  %v9708_v0 = vsel %vm22668_vm8, %v17116_v7, %v9707_v10  ;;  %v21592_v32 = vld [vmem:[#allocation7 + $0x688] sm:$0xff]   ;;  %v21622_v16 = vld [vmem:[#allocation7 + $0x720] sm:$0xff]   ;;  %v21627_v7 = vld [vmem:[#allocation7 + $0x738] sm:$0xff]  }
 0x5a3   : > { %19515 = vmatprep.subr.bf16.mxu0 %v21571_v55  ;;  %v17119_v60 = vcombine.low %v9704_v36, %v9708_v0  ;;  %v21628_v10 = vld [vmem:[#allocation7 + $0x738] sm:$0xff]   ;;  %v9927_v36 = vld [vmem:[#allocation3] sm:$0x1f] }
 0x5a4   : > { %19692 = vmatpush3.bf16.msra.mxu1 %v21568_v18  ;;  %v21596_v18 = vld [vmem:[#allocation7 + $0x698] sm:$0xff]  }
 0x5a5   : > { %19693 = vmatprep.subr.bf16.mxu1 %v21570_v5 }
 0x5a6   : > { %19516 = vmatpush3.bf16.msra.mxu0 %v21571_v55  ;;  %v16963_v55 = vcombine.high %v8115_v39, %v8115_v39 }
 0x5a7   : > { %19521 = vmatprep.subr.bf16.mxu0 %v21577_v13 }
 0x5a8   : > { %19694 = vmatpush3.bf16.msra.mxu1 %v21570_v5  ;;  %v16967_v5 = vrot.slane %v16962_v38, 9  ;;  %v8150_v33 = vrot.slane %v16963_v55, 5 }
 0x5a9   : > { %19695 = vmatprep.subr.bf16.mxu1 %v21572_v48  ;;  %19518 = vmatmul.mubr.bf16.vlgmr.msra.gmra.mrb[8].mxu0 %v16947_v34  ;;  %v21619_v34 = vld [vmem:[#allocation7 + $0x718] sm:$0xff]  }
 0x5aa   : > { %19522 = vmatpush3.bf16.msra.mxu0 %v21577_v13  ;;  %19537 = vmatprep.mubr.bf16.mxu0 %v16968_v63  ;;  %v8151_v3 = vsel %vm22668_vm8, %v16967_v5, %v8150_v33  ;;  %v21604_v13 = vld [vmem:[#allocation7 + $0x6b8] sm:$0xff]   ;;  %v21625_v63 = vld [vmem:[#allocation7 + $0x730] sm:$0xff]  }
 0x5ab   : > { %19523 = vmatprep.subr.bf16.mxu0 %v21591_v50  ;;  %v16969_v46 = vcombine.low %v8147_v51, %v8151_v3 }
 0x5ac   : > { %19696 = vmatpush3.bf16.msra.mxu1 %v21572_v48  ;;  %v17120_v48 = vcombine.low %v9712_v52, %v9716_v61 }
 0x5ad   : > { %19701 = vmatprep.subr.bf16.mxu1 %v21582_v40 }
 0x5ae   : > { %19524 = vmatpush3.bf16.msra.mxu0 %v21591_v50  ;;  %v21623_v50 = vld [vmem:[#allocation7 + $0x728] sm:$0xff]  }
 0x5af   : > { %19698 = vmatmul.mubr.bf16.vlgmr.msra.gmra.mrb[8].mxu1 %v17098_v37  ;;  %19525 = vmatprep.subr.bf16.mxu0 %v21593_v62  ;;  %v23410_v37 = vld [vmem:[#allocation9 + $0x2] ss:$0 sm:$0xff] }
 0x5b0   : > { %19702 = vmatpush3.bf16.msra.mxu1 %v21582_v40  ;;  %19717 = vmatprep.mubr.bf16.mxu1 %v17119_v60  ;;  %v21626_v40 = vld [vmem:[#allocation7 + $0x730] sm:$0xff]  }
 0x5b1   : > { %19703 = vmatprep.subr.bf16.mxu1 %v21592_v32 }
 0x5b2   : > { %19526 = vmatpush3.bf16.msra.mxu0 %v21593_v62  ;;  %v17130_v62 = vcombine.low %v9927_v36, %v9927_v36 }
 0x5b3   : > { %19527 = vmatprep.subr.bf16.mxu0 %v21595_v20 }
 0x5b4   : > { %19704 = vmatpush3.bf16.msra.mxu1 %v21592_v32  ;;  %v9952_v0 = vshrl.u32 %v17130_v62, 16  ;;  %v9955_v32 = vshll.u32 %v17130_v62, 16  ;;  %v8337_v62 = vld [vmem:[#allocation3 + $0x20] sm:$0x1f] }
 0x5b5   : > { %19705 = vmatprep.subr.bf16.mxu1 %v21594_v24 }
 0x5b6   : > { %19528 = vmatpush3.bf16.msra.mxu0 %v21595_v20  ;;  %v23417_v27 = vrot.slane %v9955_v32, 5 }
 0x5b7   : > { %19529 = vmatprep.subr.bf16.mxu0 %v21597_v58 }
 0x5b8   : > { %19706 = vmatpush3.bf16.msra.mxu1 %v21594_v24 }
 0x5b9   : > { %19707 = vmatprep.subr.bf16.mxu1 %v21596_v18 }
 0x5ba   : > { %19530 = vmatpush3.bf16.msra.mxu0 %v21597_v58 }
 0x5bb   : > { %19531 = vmatprep.subr.bf16.mxu0 %v21599_v14 }
 0x5bc   : > { %19708 = vmatpush3.bf16.msra.mxu1 %v21596_v18 }
 0x5bd   : > { %19709 = vmatprep.subr.bf16.mxu1 %v21598_v30 }
 0x5be   : > { %19532 = vmatpush3.bf16.msra.mxu0 %v21599_v14  ;;  %v17131_v14 = vcombine.high %v9927_v36, %v9927_v36 }
 0x5bf   : > { %19533 = vmatprep.subr.bf16.mxu0 %v21601_v41 }
 0x5c0   : > { %19710 = vmatpush3.bf16.msra.mxu1 %v21598_v30  ;;  %v23420_v22 = vshll.u32 %v17131_v14, 16 }
 0x5c1   : > { %19711 = vmatprep.subr.bf16.mxu1 %v21600_v35 }
 0x5c2   : > { %19534 = vmatpush3.bf16.msra.mxu0 %v21601_v41  ;;  %v23415_v41 = vrot.slane %v9952_v0, 4 }
 0x5c3   : > { %19535 = vmatprep.subr.bf16.mxu0 %v21603_v19 }
 0x5c4   : > { %19712 = vmatpush3.bf16.msra.mxu1 %v21600_v35  ;;  %v9958_v8 = vor.u32 %v23417_v27, %v23415_v41  ;;  %v9963_v27 = vrot.slane %v23420_v22, 5 }
 0x5c5   : > { %19713 = vmatprep.subr.bf16.mxu1 %v21602_v23 }
 0x5c6   : > { %19536 = vmatpush3.bf16.msra.mxu0 %v21603_v19 }
 0x5c7   : > { %19721 = vmatprep.subr.bf16.mxu0 %v21613_v45 }
 0x5c8   : > { %19714 = vmatpush3.bf16.msra.mxu1 %v21602_v23 }
 0x5c9   : > { %19715 = vmatprep.subr.bf16.mxu1 %v21604_v13  ;;  %19538 = vmatmul.mubr.bf16.vlgmr.msra.gmra.mrb[8].mxu0 %v16969_v46 }
 0x5ca   : > { %19722 = vmatpush3.bf16.msra.mxu0 %v21613_v45 }
 0x5cb   : > { %19723 = vmatprep.subr.bf16.mxu0 %v21615_v28 }
 0x5cc   : > { %19716 = vmatpush3.bf16.msra.mxu1 %v21604_v13 }
 0x5cd   : > { %19901 = vmatprep.subr.bf16.mxu1 %v21614_v9 }
 0x5ce   : > { %19724 = vmatpush3.bf16.msra.mxu0 %v21615_v28 }
 0x5cf   : > { %19718 = vmatmul.mubr.bf16.vlgmr.msra.gmra.mrb[8].mxu1 %v17120_v48  ;;  %19725 = vmatprep.subr.bf16.mxu0 %v21617_v11 }
 0x5d0   : > { %19902 = vmatpush3.bf16.msra.mxu1 %v21614_v9 }
 0x5d1   : > { %19903 = vmatprep.subr.bf16.mxu1 %v21616_v42 }
 0x5d2   : > { %19726 = vmatpush3.bf16.msra.mxu0 %v21617_v11  ;;  %v8334_v11 = vld [vmem:[#allocation3 + $0x18] sm:$0x1f] }
 0x5d3   : > { %19727 = vmatprep.subr.bf16.mxu0 %v21619_v34 }
 0x5d4   : > { %19904 = vmatpush3.bf16.msra.mxu1 %v21616_v42 }
 0x5d5   : > { %19905 = vmatprep.subr.bf16.mxu1 %v21618_v49 }
 0x5d6   : > { %19728 = vmatpush3.bf16.msra.mxu0 %v21619_v34 }
 0x5d7   : > { %19729 = vmatprep.subr.bf16.mxu0 %v21621_v15 }
 0x5d8   : > { %19906 = vmatpush3.bf16.msra.mxu1 %v21618_v49 }
 0x5d9   : > { %19907 = vmatprep.subr.bf16.mxu1 %v21620_v31 }
 0x5da   : > { %19730 = vmatpush3.bf16.msra.mxu0 %v21621_v15 }
 0x5db   : > { %19731 = vmatprep.subr.bf16.mxu0 %v21623_v50 }
 0x5dc   : > { %19908 = vmatpush3.bf16.msra.mxu1 %v21620_v31 }
 0x5dd   : > { %19909 = vmatprep.subr.bf16.mxu1 %v21622_v16 }
 0x5de   : > { %19732 = vmatpush3.bf16.msra.mxu0 %v21623_v50 }
 0x5df   : > { %19733 = vmatprep.subr.bf16.mxu0 %v21625_v63 }
 0x5e0   : > { %19910 = vmatpush3.bf16.msra.mxu1 %v21622_v16 }
 0x5e1   : > { %19911 = vmatprep.subr.bf16.mxu1 %v21624_v43 }
 0x5e2   : > { %19734 = vmatpush3.bf16.msra.mxu0 %v21625_v63 }
 0x5e3   : > { %19735 = vmatprep.subr.bf16.mxu0 %v21627_v7 }
 0x5e4   : > { %19912 = vmatpush3.bf16.msra.mxu1 %v21624_v43  ;;  %v8328_v43 = vld [vmem:[#allocation3 + $0x8] sm:$0x1f] }
 0x5e5   : > { %19913 = vmatprep.subr.bf16.mxu1 %v21626_v40 }
 0x5e6   : > { %19736 = vmatpush3.bf16.msra.mxu0 %v21627_v7 }
 0x5e7   : > { %19741 = vmatprep.subr.bf16.mxu0 %v23404_v47 }
 0x5e8   : > { %19914 = vmatpush3.bf16.msra.mxu1 %v21626_v40 }
 0x5e9   : > { %19915 = vmatprep.subr.bf16.mxu1 %v21628_v10 }
 0x5ec   : > { %19916 = vmatpush3.bf16.msra.mxu1 %v21628_v10 }
 0x5ed   : > { %19921 = vmatprep.subr.bf16.mxu1 %v23406_v57 }
 0x69c   : > { %v19539_v60 = vpop.f32.mrb[8].mxu0 }
 0x69d   : > { %v8286_v20 = vadd.f32 %v19539_v60, %v23410_v37  ;;  %v8259_v24 = vpop.f32.mrb[9].mxu0 }
 0x69e   : > { %v8284_v58 = vadd.f32 %v23410_v37, %v8259_v24  ;;  %v19540_v18 = vpop.f32.mrb[10].mxu0 }
 0x69f   : > { %v8290_v30 = vmax.f32 %v8286_v20, 0.0  ;;  %v8287_v53 = vadd.f32 %v19540_v18, %v23410_v37  ;;  %v8262_v39 = vpop.f32.mrb[11].mxu0 }
 0x6a0   : > { %v8288_v44 = vmax.f32 %v8284_v58, 0.0  ;;  %v8285_v38 = vadd.f32 %v23410_v37, %v8262_v39 }
 0x6a1   : > { %v8294_v55 = vpack.c.bf16 %v8290_v30, %v8290_v30  ;;  %v8291_v35 = vmax.f32 %v8287_v53, 0.0  ;;  %v8331_v30 = vld [vmem:[#allocation3 + $0x10] sm:$0x1f] }
 0x6a2   : > { %v19719_v19 = vpop.f32.mrb[8].mxu1  ;;  %v8292_v54 = vpack.c.bf16 %v8288_v44, %v8288_v44  ;;  %v8289_v2 = vmax.f32 %v8285_v38, 0.0  ;;  %v9898_v44 = vld [vmem:[#allocation3 + $0x38] sm:$0x1f] }
 0x6a3   : > { %v8311_v17 = vshrl.u32 %v8294_v55, 16  ;;  %v9850_v5 = vadd.f32 %v19719_v19, %v23410_v37  ;;  %v9823_v33 = vpop.f32.mrb[9].mxu1  ;;  %v8295_v23 = vpack.c.bf16 %v8291_v35, %v8291_v35  ;;  %v8314_v21 = vshll.u32 %v8294_v55, 16 }
 0x6a4   : > { %v8297_v26 = vshrl.u32 %v8292_v54, 16  ;;  %v9848_v6 = vadd.f32 %v23410_v37, %v9823_v33  ;;  %v19720_v51 = vpop.f32.mrb[10].mxu1  ;;  %v8293_v3 = vpack.c.bf16 %v8289_v2, %v8289_v2  ;;  %v8300_v1 = vshll.u32 %v8292_v54, 16  ;;  %v9892_v54 = vld [vmem:[#allocation3 + $0x28] sm:$0x1f] }
 0x6a5   : > { %v8313_v13 = vrot.slane %v8311_v17, 7  ;;  %v9854_v56 = vmax.f32 %v9850_v5, 0.0  ;;  %v8318_v59 = vshrl.u32 %v8295_v23, 16  ;;  %v9826_v4 = vpop.f32.mrb[11].mxu1  ;;  %v9851_v61 = vadd.f32 %v19720_v51, %v23410_v37  ;;  %v9901_v33 = vld [vmem:[#allocation3 + $0x40] sm:$0x1f] }
 0x6a6   : > { %v8299_v46 = vrot.slane %v8297_v26, 7  ;;  %v9852_v52 = vmax.f32 %v9848_v6, 0.0  ;;  %v8304_v48 = vshrl.u32 %v8293_v3, 16  ;;  %v8321_v42 = vshll.u32 %v8295_v23, 16 }
 0x6a7   : > { %v8316_v45 = vor.u32 %v8314_v21, %v8313_v13  ;;  %v9858_v9 = vpack.c.bf16 %v9854_v56, %v9854_v56  ;;  %v8320_v28 = vrot.slane %v8318_v59, 7  ;;  %v9855_v31 = vmax.f32 %v9851_v61, 0.0 }
 0x6a8   : > { %v8302_v49 = vor.u32 %v8300_v1, %v8299_v46  ;;  %v9856_v34 = vpack.c.bf16 %v9852_v52, %v9852_v52  ;;  %v8306_v15 = vrot.slane %v8304_v48, 7  ;;  %v8307_v40 = vshll.u32 %v8293_v3, 16 }
 0x6a9   : > { %v8335_v16 = vsel %vm23019_vm0, %v8316_v45, %v8334_v11  ;;  %v9875_v50 = vshrl.u32 %v9858_v9, 16  ;;  %v8323_v63 = vor.u32 %v8321_v42, %v8320_v28  ;;  %v9878_v7 = vshll.u32 %v9858_v9, 16 }
 0x6aa   : > { %8336 = vst [vmem:[#allocation3 + $0x18] sm:$0x1f] %v8335_v16  ;;  %v8329_v10 = vsel %vm23019_vm0, %v8302_v49, %v8328_v43  ;;  %v9861_v36 = vshrl.u32 %v9856_v34, 16  ;;  %v9859_v0 = vpack.c.bf16 %v9855_v31, %v9855_v31  ;;  %v8309_v20 = vor.u32 %v8307_v40, %v8306_v15 }
 0x6ab   : > { %v9877_v32 = vrot.slane %v9875_v50, 7  ;;  %8330 = vst [vmem:[#allocation3 + $0x8] sm:$0x1f] %v8329_v10  ;;  %v8338_v60 = vsel %vm23019_vm0, %v8323_v63, %v8337_v62  ;;  %v9849_v24 = vadd.f32 %v23410_v37, %v9826_v4  ;;  %v9864_v18 = vshll.u32 %v9856_v34, 16  ;;  %v9895_v4 = vld [vmem:[#allocation3 + $0x30] sm:$0x1f] }
 0x6ac   : > { %v9863_v58 = vrot.slane %v9861_v36, 7  ;;  %8339 = vst [vmem:[#allocation3 + $0x20] sm:$0x1f] %v8338_v60  ;;  %v9882_v14 = vshrl.u32 %v9859_v0, 16  ;;  %v8332_v39 = vsel %vm23019_vm0, %v8309_v20, %v8331_v30  ;;  %v9885_v35 = vshll.u32 %v9859_v0, 16 }
 0x6ad   : > { %v9880_v53 = vor.u32 %v9878_v7, %v9877_v32  ;;  %v9853_v41 = vmax.f32 %v9849_v24, 0.0  ;;  %8333 = vst [vmem:[#allocation3 + $0x10] sm:$0x1f] %v8332_v39  ;;  %v9959_v19 = vrot.slane %v9958_v8, 4 }
 0x6ae   : > { %v9866_v38 = vor.u32 %v9864_v18, %v9863_v58  ;;  %v9884_v55 = vrot.slane %v9882_v14, 7 }
 0x6af   : > { %v9899_v37 = vsel %vm23019_vm0, %v9880_v53, %v9898_v44  ;;  %v9857_v2 = vpack.c.bf16 %v9853_v41, %v9853_v41  ;;  %v9964_v8 = vsel %vm22644_vm5, %v9959_v19, %v9963_v27 }
 0x6b0   : > { %9900 = vst [vmem:[#allocation3 + $0x38] sm:$0x1f] %v9899_v37  ;;  %v9893_v17 = vsel %vm23019_vm0, %v9866_v38, %v9892_v54  ;;  %v9887_v5 = vor.u32 %v9885_v35, %v9884_v55 }
 0x6b1   : > { %9894 = vst [vmem:[#allocation3 + $0x28] sm:$0x1f] %v9893_v17  ;;  %v9868_v23 = vshrl.u32 %v9857_v2, 16  ;;  %v9930_v22 = vld [vmem:[#allocation3 + $0x18] sm:$0x1f]  ;;  %v9871_v26 = vshll.u32 %v9857_v2, 16 }
 0x6b2   : > { %v9902_v21 = vsel %vm23019_vm0, %v9887_v5, %v9901_v33  ;;  %v9928_v6 = vld [vmem:[#allocation3 + $0x8] sm:$0x1f]  ;;  %v17136_v51 = vcombine.low %v9930_v22, %v9930_v22  ;;  %v17137_v59 = vcombine.high %v9930_v22, %v9930_v22 }
 0x6b3   : > { %9903 = vst [vmem:[#allocation3 + $0x40] sm:$0x1f] %v9902_v21  ;;  %v9870_v3 = vrot.slane %v9868_v23, 7  ;;  %v17132_v13 = vcombine.low %v9928_v6, %v9928_v6  ;;  %v17133_v56 = vcombine.high %v9928_v6, %v9928_v6  ;;  %v11499_v1 = vld [vmem:[#allocation3 + $0x20] sm:$0x1f] }
 0x6b4   : > { %v17281_v46 = vcombine.low %v11499_v1, %v11499_v1  ;;  %v17282_v52 = vcombine.high %v11499_v1, %v11499_v1  ;;  %v9994_v61 = vshrl.u32 %v17136_v51, 16  ;;  %v9997_v48 = vshll.u32 %v17136_v51, 16  ;;  %v9929_v11 = vld [vmem:[#allocation3 + $0x10] sm:$0x1f] }
 0x6b5   : > { %v9873_v45 = vor.u32 %v9871_v26, %v9870_v3  ;;  %v9966_v9 = vshrl.u32 %v17132_v13, 16  ;;  %v9969_v28 = vshll.u32 %v17132_v13, 16  ;;  %v9975_v42 = vshll.u32 %v17133_v56, 16 }
 0x6b6   : > { %v11524_v49 = vshrl.u32 %v17281_v46, 16  ;;  %v11527_v34 = vshll.u32 %v17281_v46, 16  ;;  %v11533_v31 = vshll.u32 %v17282_v52, 16  ;;  %v17134_v15 = vcombine.low %v9929_v11, %v9929_v11 }
 0x6b7   : > { %v9896_v16 = vsel %vm23019_vm0, %v9873_v45, %v9895_v4  ;;  %v9968_v50 = vrot.slane %v9966_v9, 4  ;;  %v9971_v43 = vrot.slane %v9969_v28, 5  ;;  %v9977_v63 = vrot.slane %v9975_v42, 5  ;;  %v11502_v35 = vld [vmem:[#allocation3 + $0x38] sm:$0x1f] }
 0x6b8   : > { %9897 = vst [vmem:[#allocation3 + $0x30] sm:$0x1f] %v9896_v16  ;;  %v11500_v40 = vld [vmem:[#allocation3 + $0x28] sm:$0x1f]  ;;  %v11526_v7 = vrot.slane %v11524_v49, 4  ;;  %v11529_v10 = vrot.slane %v11527_v34, 5  ;;  %v17135_v62 = vcombine.high %v9929_v11, %v9929_v11  ;;  %v17287_v6 = vcombine.low %v11502_v35, %v11502_v35 }
 0x6b9   : > { %v11535_v36 = vrot.slane %v11533_v31, 5  ;;  %v9972_v0 = vor.u32 %v9971_v43, %v9968_v50  ;;  %v17283_v32 = vcombine.low %v11500_v40, %v11500_v40  ;;  %v17284_v60 = vcombine.high %v11500_v40, %v11500_v40 }
 0x6ba   : > { %v9980_v20 = vshrl.u32 %v17134_v15, 16  ;;  %v11530_v24 = vor.u32 %v11529_v10, %v11526_v7  ;;  %v9983_v58 = vshll.u32 %v17134_v15, 16  ;;  %v9989_v18 = vshll.u32 %v17135_v62, 16  ;;  %v21647_v7 = vld [vmem:[#allocation3] ss:$8 sps:$4 sm:$0xff]  }
 0x6bb   : > { %v9996_v14 = vrot.slane %v9994_v61, 4  ;;  %v9973_v30 = vrot.slane %v9972_v0, 4  ;;  %v11538_v53 = vshrl.u32 %v17283_v32, 16  ;;  %v11541_v39 = vshll.u32 %v17283_v32, 16  ;;  %v21651_v32 = vld [vmem:[#allocation7 + $0x6d0] sm:$0xff]  }
 0x6bc   : > { %v11547_v41 = vshll.u32 %v17284_v60, 16  ;;  %v11531_v27 = vrot.slane %v11530_v24, 4  ;;  %v9982_v44 = vrot.slane %v9980_v20, 4  ;;  %v9985_v38 = vrot.slane %v9983_v58, 5  ;;  %v21650_v58 = vld [vmem:[#allocation7 + $0x6c8] sm:$0xff]  }
 0x6bd   : > { %v9991_v55 = vrot.slane %v9989_v18, 5  ;;  %v9978_v19 = vsel %vm22644_vm5, %v9973_v30, %v9977_v63  ;;  %v11540_v37 = vrot.slane %v11538_v53, 4  ;;  %v11543_v54 = vrot.slane %v11541_v39, 5  ;;  %v21649_v63 = vld [vmem:[#allocation7 + $0x6c8] sm:$0xff]   ;;  %v21648_v18 = vld [vmem:[#allocation3 + $0x20] ss:$8 sps:$4 sm:$0xff]  }
 0x6be   : > { %v11549_v2 = vrot.slane %v11547_v41, 5  ;;  %v17138_v17 = vcombine.low %v9964_v8, %v9978_v19  ;;  %v11536_v5 = vsel %vm22644_vm5, %v11531_v27, %v11535_v36  ;;  %v9986_v33 = vor.u32 %v9985_v38, %v9982_v44  ;;  %v21655_v30 = vld [vmem:[#allocation7 + $0x6e0] sm:$0xff]   ;;  %v21654_v53 = vld [vmem:[#allocation7 + $0x6d8] sm:$0xff]   ;;  %v21657_v39 = vld [vmem:[#allocation7 + $0x6e8] sm:$0xff]  }
 0x6bf   : > { %v9999_v23 = vrot.slane %v9997_v48, 5  ;;  %v11544_v22 = vor.u32 %v11543_v54, %v11540_v37  ;;  %v10003_v21 = vshll.u32 %v17137_v59, 16  ;;  %v11501_v26 = vld [vmem:[#allocation3 + $0x30] sm:$0x1f]  ;;  %v17288_v51 = vcombine.high %v11502_v35, %v11502_v35  ;;  %v10238_v27 = vld [vmem:[#allocation3] sm:$0x1e] }
 0x6c0   : > { %19737 = vmatprep.mubr.bf16.mxu0 %v17138_v17  ;;  %v9987_v3 = vrot.slane %v9986_v33, 4  ;;  %v17285_v56 = vcombine.low %v11501_v26, %v11501_v26  ;;  %v17286_v1 = vcombine.high %v11501_v26, %v11501_v26  ;;  %v11566_v52 = vshrl.u32 %v17287_v6, 16  ;;  %v21656_v41 = vld [vmem:[#allocation7 + $0x6e0] sm:$0xff]   ;;  %v10239_v44 = vld [vmem:[#allocation3 + $0x8] sm:$0x1e]  ;;  %v21658_v38 = vld [vmem:[#allocation7 + $0x6e8] sm:$0xff]  }
 0x6c1   : > { %v10000_v13 = vor.u32 %v9999_v23, %v9996_v14  ;;  %v11545_v4 = vrot.slane %v11544_v22, 4  ;;  %v10005_v46 = vrot.slane %v10003_v21, 5  ;;  %v11569_v61 = vshll.u32 %v17287_v6, 16  ;;  %v21653_v14 = vld [vmem:[#allocation7 + $0x6d8] sm:$0xff]   ;;  %v21664_v26 = vld [vmem:[#allocation7 + $0x740] sm:$0xff]  }
 0x6c2   : > { %v9992_v8 = vsel %vm22644_vm5, %v9987_v3, %v9991_v55  ;;  %v11552_v9 = vshrl.u32 %v17285_v56, 16  ;;  %v11555_v48 = vshll.u32 %v17285_v56, 16  ;;  %v11561_v28 = vshll.u32 %v17286_v1, 16  ;;  %v21661_v54 = vld [vmem:[#allocation7 + $0x6f8] sm:$0xff]  }
 0x6c3   : > { %v10001_v45 = vrot.slane %v10000_v13, 4  ;;  %v11550_v59 = vsel %vm22644_vm5, %v11545_v4, %v11549_v2  ;;  %v11568_v42 = vrot.slane %v11566_v52, 4  ;;  %v11571_v11 = vrot.slane %v11569_v61, 5  ;;  %v11809_v2 = vld [vmem:[#allocation3 + $0x20] sm:$0x1e]  ;;  %v21662_v56 = vld [vmem:[#allocation7 + $0x6f8] sm:$0xff]  }
 0x6c4   : > { %v17289_v49 = vcombine.low %v11536_v5, %v11550_v59  ;;  %v11554_v31 = vrot.slane %v11552_v9, 4  ;;  %v11557_v15 = vrot.slane %v11555_v48, 5  ;;  %v11575_v43 = vshll.u32 %v17288_v51, 16  ;;  %v11810_v17 = vld [vmem:[#allocation3 + $0x28] sm:$0x1e]  ;;  %v21660_v5 = vld [vmem:[#allocation7 + $0x6f0] sm:$0xff]  }
 0x6c5   : > { %v10006_v34 = vsel %vm22644_vm5, %v10001_v45, %v10005_v46  ;;  %v11572_v50 = vor.u32 %v11571_v11, %v11568_v42  ;;  %v11563_v62 = vrot.slane %v11561_v28, 5  ;;  %v17158_v55 = vcombine.low %v10238_v27, %v10238_v27  ;;  %v21675_v46 = vld [vmem:[#allocation7 + $0x748] sm:$0xff]   ;;  %v21666_v59 = vld [vmem:[#allocation7 + $0x740] sm:$0xff]   ;;  %v21677_v11 = vld [vmem:[#allocation7 + $0x750] sm:$0xff]  }
 0x6c6   : > { %v17139_v16 = vcombine.low %v9992_v8, %v10006_v34  ;;  %19917 = vmatprep.mubr.bf16.mxu1 %v17289_v49  ;;  %v11558_v40 = vor.u32 %v11557_v15, %v11554_v31  ;;  %v11577_v0 = vrot.slane %v11575_v43, 5  ;;  %v17159_v35 = vcombine.high %v10238_v27, %v10238_v27  ;;  %v21663_v52 = vld [vmem:[#allocation3 + $0x10] ss:$8 sps:$4 sm:$0xff]   ;;  %v21679_v15 = vld [vmem:[#allocation7 + $0x758] sm:$0xff]  }
 0x6c7   : > { %v11573_v10 = vrot.slane %v11572_v50, 4  ;;  %v17160_v19 = vcombine.low %v10239_v44, %v10239_v44  ;;  %v17161_v37 = vcombine.high %v10239_v44, %v10239_v44  ;;  %v17166_v33 = vrot.slane %v17158_v55, 9  ;;  %v21665_v49 = vld [vmem:[#allocation3 + $0x30] ss:$8 sps:$4 sm:$0xff]   ;;  %v21680_v43 = vld [vmem:[#allocation7 + $0x758] sm:$0xff]  }
 0x6c8   : > { %19738 = vmatmul.mubr.bf16.vlgmr.msra.gmra.mrb[12].mxu0 %v17139_v16  ;;  %v11559_v36 = vrot.slane %v11558_v40, 4  ;;  %v10264_v23 = vrot.slane %v17159_v35, 5  ;;  %v17309_v6 = vcombine.low %v11809_v2, %v11809_v2  ;;  %v17310_v51 = vcombine.high %v11809_v2, %v11809_v2  ;;  %v21676_v34 = vld [vmem:[#allocation7 + $0x748] sm:$0xff]   ;;  %v21678_v16 = vld [vmem:[#allocation7 + $0x750] sm:$0xff]   ;;  %v21681_v50 = vld [vmem:[#allocation7 + $0x760] sm:$0xff]  }
 0x6c9   : > { %19742 = vmatpush3.bf16.msra.mxu0 %v23404_v47  ;;  %19757 = vmatprep.mubr.bf16.mxu0 %v21647_v7  ;;  %v11578_v20 = vsel %vm22644_vm5, %v11573_v10, %v11577_v0  ;;  %v21652_v47 = vld [vmem:[#allocation7 + $0x6d0] sm:$0xff]   ;;  %v17167_v22 = vrot.slane %v17160_v19, 9  ;;  %v10268_v21 = vrot.slane %v17161_v37, 5  ;;  %v17311_v3 = vcombine.low %v11810_v17, %v11810_v17  ;;  %v21682_v40 = vld [vmem:[#allocation7 + $0x760] sm:$0xff]   ;;  %v21688_v35 = vld [vmem:[#allocation7 + $0x778] sm:$0xff]  }
 0x6ca   : > { %19743 = vmatprep.subr.bf16.mxu0 %v21649_v63  ;;  %v11564_v60 = vsel %vm22644_vm5, %v11559_v36, %v11563_v62  ;;  %v17312_v13 = vcombine.high %v11810_v17, %v11810_v17  ;;  %v10265_v1 = vsel %vm22668_vm8, %v17166_v33, %v10264_v23  ;;  %v17317_v61 = vrot.slane %v17309_v6, 9  ;;  %v10240_v7 = vld [vmem:[#allocation3 + $0x10] sm:$0x1e]  ;;  %v21685_v10 = vld [vmem:[#allocation7 + $0x770] sm:$0xff]   ;;  %v10241_v36 = vld [vmem:[#allocation3 + $0x18] sm:$0x1e] }
 0x6cb   : > { %v17290_v24 = vcombine.low %v11564_v60, %v11578_v20  ;;  %v10269_v4 = vsel %vm22668_vm8, %v17167_v22, %v10268_v21  ;;  %v11835_v8 = vrot.slane %v17310_v51, 5  ;;  %v17318_v45 = vrot.slane %v17311_v3, 9  ;;  %v21693_v44 = vld [vmem:[#allocation7 + $0x780] sm:$0xff]   ;;  %v21701_v17 = vld [vmem:[#allocation7 + $0x788] sm:$0xff]  }
 0x6cc   : > { %v11839_v9 = vrot.slane %v17312_v13, 5  ;;  %v17170_v48 = vcombine.low %v10265_v1, %v10269_v4  ;;  %v17162_v62 = vcombine.low %v10240_v7, %v10240_v7  ;;  %v17163_v0 = vcombine.high %v10240_v7, %v10240_v7  ;;  %v21699_v23 = vld [vmem:[#allocation3 + $0x8] ss:$8 sps:$4 sm:$0xff]   ;;  %v21702_v3 = vld [vmem:[#allocation7 + $0x788] sm:$0xff]  }
 0x6cd   : > { %19744 = vmatpush3.bf16.msra.mxu0 %v21649_v63  ;;  %19918 = vmatmul.mubr.bf16.vlgmr.msra.gmra.mrb[12].mxu1 %v17290_v24  ;;  %v11836_v28 = vsel %vm22668_vm8, %v17317_v61, %v11835_v8  ;;  %v21683_v63 = vld [vmem:[#allocation7 + $0x768] sm:$0xff]   ;;  %v17164_v60 = vcombine.low %v10241_v36, %v10241_v36  ;;  %v17165_v20 = vcombine.high %v10241_v36, %v10241_v36  ;;  %v21687_v24 = vld [vmem:[#allocation7 + $0x778] sm:$0xff]   ;;  %v21698_v22 = vld [vmem:[#allocation7 + $0x780] sm:$0xff]  }
 0x6ce   : > { %19745 = vmatprep.subr.bf16.mxu0 %v21651_v32  ;;  %19922 = vmatpush3.bf16.msra.mxu1 %v23406_v57  ;;  %v21659_v57 = vld [vmem:[#allocation7 + $0x6f0] sm:$0xff]   ;;  %v11840_v42 = vsel %vm22668_vm8, %v17318_v45, %v11839_v9  ;;  %v21700_v13 = vld [vmem:[#allocation3 + $0x28] ss:$8 sps:$4 sm:$0xff]  }
 0x6cf   : > { %19937 = vmatprep.mubr.bf16.mxu1 %v21648_v18  ;;  %19923 = vmatprep.subr.bf16.mxu1 %v21650_v58  ;;  %v17321_v31 = vcombine.low %v11836_v28, %v11840_v42  ;;  %v17168_v18 = vrot.slane %v17162_v62, 9  ;;  %v21705_v1 = vld [vmem:[#allocation7 + $0x798] sm:$0xff]   ;;  %v21707_v61 = vld [vmem:[#allocation7 + $0x7a0] sm:$0xff]   ;;  %v21709_v42 = vld [vmem:[#allocation7 + $0x7a8] sm:$0xff]  }
 0x6d0   : > { %v10538_v4 = vld [vmem:[#allocation3 + $0x8] sm:$0x1f]  ;;  %v12108_v45 = vld [vmem:[#allocation3 + $0x30] sm:$0x1f] }
 0x6d1   : > { %19746 = vmatpush3.bf16.msra.mxu0 %v21651_v32  ;;  %v21684_v32 = vld [vmem:[#allocation7 + $0x768] sm:$0xff]   ;;  %v17190_v8 = vcombine.low %v10538_v4, %v10538_v4  ;;  %v21706_v9 = vld [vmem:[#allocation7 + $0x798] sm:$0xff]   ;;  %v17191_v62 = vcombine.high %v10538_v4, %v10538_v4  ;;  %v21729_v4 = vld [vmem:[#allocation7 + $0x7d0] sm:$0xff]  }
 0x6d2   : > { %19747 = vmatprep.subr.bf16.mxu0 %v21653_v14  ;;  %19924 = vmatpush3.bf16.msra.mxu1 %v21650_v58  ;;  %v11811_v58 = vld [vmem:[#allocation3 + $0x30] sm:$0x1e]  ;;  %v12107_v28 = vld [vmem:[#allocation3 + $0x28] sm:$0x1f] }
 0x6d3   : > { %19925 = vmatprep.subr.bf16.mxu1 %v21652_v47  ;;  %v17314_v27 = vcombine.high %v11811_v58, %v11811_v58 }
 0x6d5   : > { %19748 = vmatpush3.bf16.msra.mxu0 %v21653_v14  ;;  %v10272_v14 = vrot.slane %v17163_v0, 5  ;;  %v21710_v0 = vld [vmem:[#allocation7 + $0x7a8] sm:$0xff]  }
 0x6d6   : > { %19749 = vmatprep.subr.bf16.mxu0 %v21655_v30  ;;  %19926 = vmatpush3.bf16.msra.mxu1 %v21652_v47  ;;  %v21686_v47 = vld [vmem:[#allocation7 + $0x770] sm:$0xff]  }
 0x6d7   : > { %19927 = vmatprep.subr.bf16.mxu1 %v21654_v53 }
 0x6d9   : > { %19750 = vmatpush3.bf16.msra.mxu0 %v21655_v30  ;;  %v11812_v30 = vld [vmem:[#allocation3 + $0x38] sm:$0x1e] }
 0x6da   : > { %19751 = vmatprep.subr.bf16.mxu0 %v21657_v39  ;;  %19928 = vmatpush3.bf16.msra.mxu1 %v21654_v53  ;;  %v17169_v53 = vrot.slane %v17164_v60, 9  ;;  %v17316_v55 = vcombine.high %v11812_v30, %v11812_v30 }
 0x6db   : > { %19929 = vmatprep.subr.bf16.mxu1 %v21656_v41 }
 0x6dc   : > { %v11847_v33 = vrot.slane %v17316_v55, 5 }
 0x6dd   : > { %19752 = vmatpush3.bf16.msra.mxu0 %v21657_v39  ;;  %v10276_v39 = vrot.slane %v17165_v20, 5 }
 0x6de   : > { %19753 = vmatprep.subr.bf16.mxu0 %v21659_v57  ;;  %19930 = vmatpush3.bf16.msra.mxu1 %v21656_v41  ;;  %v17313_v41 = vcombine.low %v11811_v58, %v11811_v58 }
 0x6df   : > { %19931 = vmatprep.subr.bf16.mxu1 %v21658_v38  ;;  %v10277_v19 = vsel %vm22668_vm8, %v17169_v53, %v10276_v39  ;;  %v21712_v53 = vld [vmem:[#allocation7 + $0x7b0] sm:$0xff]  }
 0x6e0   : > { %v17319_v37 = vrot.slane %v17313_v41, 9  ;;  %v17344_v41 = vcombine.high %v12108_v45, %v12108_v45 }
 0x6e1   : > { %19754 = vmatpush3.bf16.msra.mxu0 %v21659_v57  ;;  %v10273_v57 = vsel %vm22668_vm8, %v17168_v18, %v10272_v14 }
 0x6e2   : > { %19755 = vmatprep.subr.bf16.mxu0 %v21661_v54  ;;  %19932 = vmatpush3.bf16.msra.mxu1 %v21658_v38  ;;  %v17315_v38 = vcombine.low %v11812_v30, %v11812_v30  ;;  %v17171_v2 = vcombine.low %v10273_v57, %v10277_v19  ;;  %v10572_v30 = vshll.u32 %v17191_v62, 16  ;;  %v21716_v57 = vld [vmem:[#allocation7 + $0x7c0] sm:$0xff]  }
 0x6e3   : > { %19933 = vmatprep.subr.bf16.mxu1 %v21660_v5  ;;  %v21734_v62 = vld [vmem:[#allocation7 + $0x7e0] sm:$0xff]  }
 0x6e5   : > { %19756 = vmatpush3.bf16.msra.mxu0 %v21661_v54  ;;  %v11843_v54 = vrot.slane %v17314_v27, 5 }
 0x6e6   : > { %19761 = vmatprep.subr.bf16.mxu0 %v21664_v26  ;;  %19934 = vmatpush3.bf16.msra.mxu1 %v21660_v5  ;;  %v17320_v5 = vrot.slane %v17315_v38, 9 }
 0x6e7   : > { %19935 = vmatprep.subr.bf16.mxu1 %v21662_v56  ;;  %v11844_v21 = vsel %vm22668_vm8, %v17319_v37, %v11843_v54  ;;  %v21714_v37 = vld [vmem:[#allocation7 + $0x7b8] sm:$0xff]   ;;  %v10574_v54 = vrot.slane %v10572_v30, 5 }
 0x6e8   : > { %19758 = vmatmul.mubr.bf16.vlgmr.msra.gmra.mrb[12].mxu0 %v21663_v52  ;;  %v11848_v6 = vsel %vm22668_vm8, %v17320_v5, %v11847_v33  ;;  %v12155_v5 = vshll.u32 %v17344_v41, 16  ;;  %v21715_v33 = vld [vmem:[#allocation3 + $0x18] ss:$8 sps:$4 sm:$0xff]  }
 0x6e9   : > { %19762 = vmatpush3.bf16.msra.mxu0 %v21664_v26  ;;  %19777 = vmatprep.mubr.bf16.mxu0 %v17170_v48  ;;  %v21703_v26 = vld [vmem:[#allocation7 + $0x790] sm:$0xff]   ;;  %v17322_v51 = vcombine.low %v11844_v21, %v11848_v6  ;;  %v21736_v41 = vld [vmem:[#allocation7 + $0x7e8] sm:$0xff]  }
 0x6ea   : > { %19763 = vmatprep.subr.bf16.mxu0 %v21675_v46  ;;  %19936 = vmatpush3.bf16.msra.mxu1 %v21662_v56  ;;  %v10539_v56 = vld [vmem:[#allocation3 + $0x10] sm:$0x1f] }
 0x6eb   : > { %19941 = vmatprep.subr.bf16.mxu1 %v21666_v59  ;;  %v17192_v52 = vcombine.low %v10539_v56, %v10539_v56 }
 0x6ed   : > { %19764 = vmatpush3.bf16.msra.mxu0 %v21675_v46  ;;  %19938 = vmatmul.mubr.bf16.vlgmr.msra.gmra.mrb[12].mxu1 %v21665_v49  ;;  %v21704_v46 = vld [vmem:[#allocation7 + $0x790] sm:$0xff]   ;;  %v10577_v48 = vshrl.u32 %v17192_v52, 16  ;;  %v10566_v49 = vshll.u32 %v17190_v8, 16 }
 0x6ee   : > { %19765 = vmatprep.subr.bf16.mxu0 %v21677_v11  ;;  %19942 = vmatpush3.bf16.msra.mxu1 %v21666_v59  ;;  %v10580_v59 = vshll.u32 %v17192_v52, 16 }
 0x6ef   : > { %19957 = vmatprep.mubr.bf16.mxu1 %v17321_v31  ;;  %19943 = vmatprep.subr.bf16.mxu1 %v21676_v34  ;;  %v21708_v31 = vld [vmem:[#allocation7 + $0x7a0] sm:$0xff]   ;;  %v10568_v7 = vrot.slane %v10566_v49, 5  ;;  %v23487_v49 = vld [vmem:[#allocation3 + $0x40] sm:$0x1f] }
 0x6f1   : > { %19766 = vmatpush3.bf16.msra.mxu0 %v21677_v11  ;;  %v10563_v11 = vshrl.u32 %v17190_v8, 16  ;;  %v10541_v8 = vld [vmem:[#allocation3 + $0x20] sm:$0x1f] }
 0x6f2   : > { %19767 = vmatprep.subr.bf16.mxu0 %v21679_v15  ;;  %19944 = vmatpush3.bf16.msra.mxu1 %v21676_v34  ;;  %v17343_v34 = vcombine.low %v12108_v45, %v12108_v45 }
 0x6f3   : > { %19945 = vmatprep.subr.bf16.mxu1 %v21678_v16 }
 0x6f4   : > { %v12149_v36 = vshll.u32 %v17343_v34, 16 }
 0x6f5   : > { %19768 = vmatpush3.bf16.msra.mxu0 %v21679_v15  ;;  %v10579_v15 = vrot.slane %v10577_v48, 4  ;;  %v10540_v48 = vld [vmem:[#allocation3 + $0x18] sm:$0x1f] }
 0x6f6   : > { %19769 = vmatprep.subr.bf16.mxu0 %v21681_v50  ;;  %19946 = vmatpush3.bf16.msra.mxu1 %v21678_v16  ;;  %v10582_v16 = vrot.slane %v10580_v59, 5  ;;  %v17196_v59 = vcombine.low %v10541_v8, %v10541_v8 }
 0x6f7   : > { %19947 = vmatprep.subr.bf16.mxu1 %v21680_v43 }
 0x6f9   : > { %19770 = vmatpush3.bf16.msra.mxu0 %v21681_v50  ;;  %v17341_v50 = vcombine.low %v12107_v28, %v12107_v28 }
 0x6fa   : > { %19771 = vmatprep.subr.bf16.mxu0 %v21683_v63  ;;  %19948 = vmatpush3.bf16.msra.mxu1 %v21680_v43  ;;  %v17193_v43 = vcombine.high %v10539_v56, %v10539_v56 }
 0x6fb   : > { %19949 = vmatprep.subr.bf16.mxu1 %v21682_v40  ;;  %v12132_v60 = vshrl.u32 %v17341_v50, 16  ;;  %v12135_v20 = vshll.u32 %v17341_v50, 16 }
 0x6fc   : > { %v10586_v18 = vshll.u32 %v17193_v43, 16 }
 0x6fd   : > { %19772 = vmatpush3.bf16.msra.mxu0 %v21683_v63  ;;  %v21711_v63 = vld [vmem:[#allocation7 + $0x7b0] sm:$0xff]   ;;  %v12134_v27 = vrot.slane %v12132_v60, 4 }
 0x6fe   : > { %19773 = vmatprep.subr.bf16.mxu0 %v21685_v10  ;;  %19950 = vmatpush3.bf16.msra.mxu1 %v21682_v40  ;;  %v10565_v40 = vrot.slane %v10563_v11, 4  ;;  %v10588_v55 = vrot.slane %v10586_v18, 5  ;;  %v21733_v11 = vld [vmem:[#allocation7 + $0x7e0] sm:$0xff]   ;;  %v21737_v18 = vld [vmem:[#allocation7 + $0x7f0] sm:$0xff]  }
 0x6ff   : > { %19951 = vmatprep.subr.bf16.mxu1 %v21684_v32 }
 0x700   : > { %v10569_v58 = vor.u32 %v10568_v7, %v10565_v40  ;;  %v21735_v40 = vld [vmem:[#allocation7 + $0x7e8] sm:$0xff]  }
 0x701   : > { %19774 = vmatpush3.bf16.msra.mxu0 %v21685_v10  ;;  %v12146_v10 = vshrl.u32 %v17343_v34, 16  ;;  %v10605_v34 = vshrl.u32 %v17196_v59, 16 }
 0x702   : > { %19775 = vmatprep.subr.bf16.mxu0 %v21687_v24  ;;  %19952 = vmatpush3.bf16.msra.mxu1 %v21684_v32  ;;  %v10583_v32 = vor.u32 %v10582_v16, %v10579_v15  ;;  %v10570_v38 = vrot.slane %v10569_v58, 4  ;;  %v21732_v15 = vld [vmem:[#allocation7 + $0x7d8] sm:$0xff]   ;;  %v23489_v16 = vld [vmem:[#allocation3 + $0x38] sm:$0x1f]  ;;  %v10745_v58 = vld [vmem:[#allocation3 + $0x10] sm:$0x1e] }
 0x703   : > { %19953 = vmatprep.subr.bf16.mxu1 %v21686_v47  ;;  %v12148_v14 = vrot.slane %v12146_v10, 4  ;;  %v10607_v7 = vrot.slane %v10605_v34, 4 }
 0x704   : > { %v10584_v39 = vrot.slane %v10583_v32, 4 }
 0x705   : > { %19776 = vmatpush3.bf16.msra.mxu0 %v21687_v24  ;;  %v21713_v24 = vld [vmem:[#allocation7 + $0x7b8] sm:$0xff]  }
 0x706   : > { %19781 = vmatprep.subr.bf16.mxu0 %v21693_v44  ;;  %19954 = vmatpush3.bf16.msra.mxu1 %v21686_v47  ;;  %v12151_v47 = vrot.slane %v12149_v36, 5  ;;  %v17345_v36 = vcombine.low %v23489_v16, %v23489_v16 }
 0x707   : > { %19955 = vmatprep.subr.bf16.mxu1 %v21688_v35 }
 0x708   : > { %19778 = vmatmul.mubr.bf16.vlgmr.msra.gmra.mrb[12].mxu0 %v17171_v2  ;;  %v12152_v19 = vor.u32 %v12151_v47, %v12148_v14  ;;  %v10589_v2 = vsel %vm22644_vm5, %v10584_v39, %v10588_v55  ;;  %v17195_v14 = vcombine.high %v10540_v48, %v10540_v48  ;;  %v12160_v30 = vshrl.u32 %v17345_v36, 16  ;;  %v10744_v39 = vld [vmem:[#allocation3 + $0x8] sm:$0x1e] }
 0x709   : > { %19782 = vmatpush3.bf16.msra.mxu0 %v21693_v44  ;;  %19797 = vmatprep.mubr.bf16.mxu0 %v21699_v23  ;;  %v12137_v44 = vrot.slane %v12135_v20, 5  ;;  %v10575_v23 = vsel %vm22644_vm5, %v10570_v38, %v10574_v54  ;;  %v17208_v54 = vcombine.low %v10744_v39, %v10744_v39 }
 0x70a   : > { %19783 = vmatprep.subr.bf16.mxu0 %v21701_v17  ;;  %19956 = vmatpush3.bf16.msra.mxu1 %v21688_v35  ;;  %v17342_v35 = vcombine.high %v12107_v28, %v12107_v28  ;;  %v12153_v21 = vrot.slane %v12152_v19, 4  ;;  %v17198_v6 = vcombine.low %v10575_v23, %v10589_v2  ;;  %v21730_v28 = vld [vmem:[#allocation7 + $0x7d0] sm:$0xff]   ;;  %v21739_v19 = vld [vmem:[#allocation7 + $0x7f8] sm:$0xff]   ;;  %v17209_v2 = vcombine.high %v10744_v39, %v10744_v39 }
 0x70b   : > { %19961 = vmatprep.subr.bf16.mxu1 %v21698_v22  ;;  %v21763_v39 = vld [vmem:[#allocation7 + $0x818] sm:$0xff]  }
 0x70d   : > { %19784 = vmatpush3.bf16.msra.mxu0 %v21701_v17  ;;  %19958 = vmatmul.mubr.bf16.vlgmr.msra.gmra.mrb[12].mxu1 %v17322_v51  ;;  %v12138_v17 = vor.u32 %v12137_v44, %v12134_v27  ;;  %v21718_v51 = vld [vmem:[#allocation7 + $0x7c0] sm:$0xff]   ;;  %v17210_v27 = vcombine.low %v10745_v58, %v10745_v58  ;;  %v17211_v44 = vcombine.high %v10745_v58, %v10745_v58  ;;  %v21761_v58 = vld [vmem:[#allocation7 + $0x810] sm:$0xff]  }
 0x70e   : > { %19785 = vmatprep.subr.bf16.mxu0 %v21703_v26  ;;  %19962 = vmatpush3.bf16.msra.mxu1 %v21698_v22  ;;  %v12141_v22 = vshll.u32 %v17342_v35, 16 }
 0x70f   : > { %19977 = vmatprep.mubr.bf16.mxu1 %v21700_v13  ;;  %19963 = vmatprep.subr.bf16.mxu1 %v21702_v3  ;;  %v12157_v13 = vrot.slane %v12155_v5, 5  ;;  %v17348_v5 = vcombine.high %v23487_v49, %v23487_v49 }
 0x710   : > { %v12143_v56 = vrot.slane %v12141_v22, 5  ;;  %v12313_v22 = vld [vmem:[#allocation3 + $0x30] sm:$0x1e] }
 0x711   : > { %19786 = vmatpush3.bf16.msra.mxu0 %v21703_v26  ;;  %v21727_v26 = vld [vmem:[#allocation7 + $0x7c8] sm:$0xff]  }
 0x712   : > { %19787 = vmatprep.subr.bf16.mxu0 %v21705_v1  ;;  %19964 = vmatpush3.bf16.msra.mxu1 %v21702_v3  ;;  %v12139_v3 = vrot.slane %v12138_v17, 4 }
 0x713   : > { %19965 = vmatprep.subr.bf16.mxu1 %v21704_v46 }
 0x714   : > { %v12144_v52 = vsel %vm22644_vm5, %v12139_v3, %v12143_v56 }
 0x715   : > { %19788 = vmatpush3.bf16.msra.mxu0 %v21705_v1  ;;  %v12158_v1 = vsel %vm22644_vm5, %v12153_v21, %v12157_v13  ;;  %v21738_v21 = vld [vmem:[#allocation7 + $0x7f0] sm:$0xff]   ;;  %v17346_v13 = vcombine.high %v23489_v16, %v23489_v16 }
 0x716   : > { %19789 = vmatprep.subr.bf16.mxu0 %v21707_v61  ;;  %19966 = vmatpush3.bf16.msra.mxu1 %v21704_v46  ;;  %v21717_v46 = vld [vmem:[#allocation3 + $0x38] ss:$8 sps:$4 sm:$0xff]   ;;  %v17349_v45 = vcombine.low %v12144_v52, %v12158_v1  ;;  %v12312_v1 = vld [vmem:[#allocation3 + $0x28] sm:$0x1e]  ;;  %v10770_v52 = vrot.slane %v17209_v2, 5 }
 0x717   : > { %19967 = vmatprep.subr.bf16.mxu1 %v21706_v9  ;;  %v21768_v2 = vld [vmem:[#allocation7 + $0x828] sm:$0xff]  }
 0x719   : > { %19790 = vmatpush3.bf16.msra.mxu0 %v21707_v61  ;;  %v21728_v61 = vld [vmem:[#allocation7 + $0x7c8] sm:$0xff]  }
 0x71a   : > { %19791 = vmatprep.subr.bf16.mxu0 %v21709_v42  ;;  %19968 = vmatpush3.bf16.msra.mxu1 %v21706_v9  ;;  %v21731_v9 = vld [vmem:[#allocation7 + $0x7d8] sm:$0xff]  }
 0x71b   : > { %19969 = vmatprep.subr.bf16.mxu1 %v21708_v31 }
 0x71d   : > { %19792 = vmatpush3.bf16.msra.mxu0 %v21709_v42  ;;  %v17194_v42 = vcombine.low %v10540_v48, %v10540_v48 }
 0x71e   : > { %19793 = vmatprep.subr.bf16.mxu0 %v21711_v63  ;;  %19970 = vmatpush3.bf16.msra.mxu1 %v21708_v31  ;;  %v10608_v31 = vshll.u32 %v17196_v59, 16  ;;  %v12183_v59 = vshll.u32 %v17348_v5, 16 }
 0x71f   : > { %19971 = vmatprep.subr.bf16.mxu1 %v21710_v0  ;;  %v10591_v50 = vshrl.u32 %v17194_v42, 16  ;;  %v10594_v43 = vshll.u32 %v17194_v42, 16 }
 0x720   : > { %v10610_v10 = vrot.slane %v10608_v31, 5  ;;  %v12169_v31 = vshll.u32 %v17346_v13, 16 }
 0x721   : > { %19794 = vmatpush3.bf16.msra.mxu0 %v21711_v63  ;;  %v17347_v63 = vcombine.low %v23487_v49, %v23487_v49  ;;  %v10593_v32 = vrot.slane %v10591_v50, 4  ;;  %v10596_v60 = vrot.slane %v10594_v43, 5  ;;  %v17360_v49 = vcombine.high %v12312_v1, %v12312_v1 }
 0x722   : > { %19795 = vmatprep.subr.bf16.mxu0 %v21713_v24  ;;  %19972 = vmatpush3.bf16.msra.mxu1 %v21710_v0  ;;  %v17197_v0 = vcombine.high %v10541_v8, %v10541_v8  ;;  %v10611_v47 = vor.u32 %v10610_v10, %v10607_v7  ;;  %v17362_v8 = vcombine.high %v12313_v22, %v12313_v22  ;;  %v12185_v10 = vrot.slane %v12183_v59, 5  ;;  %v21785_v59 = vld [vmem:[#allocation7 + $0x848] sm:$0xff]  }
 0x723   : > { %19973 = vmatprep.subr.bf16.mxu1 %v21712_v53  ;;  %v12174_v20 = vshrl.u32 %v17347_v63, 16 }
 0x724   : > { %v10614_v38 = vshll.u32 %v17197_v0, 16  ;;  %v10612_v17 = vrot.slane %v10611_v47, 4 }
 0x725   : > { %19796 = vmatpush3.bf16.msra.mxu0 %v21713_v24  ;;  %v12177_v24 = vshll.u32 %v17347_v63, 16  ;;  %v12176_v55 = vrot.slane %v12174_v20, 4  ;;  %v12342_v63 = vrot.slane %v17362_v8, 5 }
 0x726   : > { %19801 = vmatprep.subr.bf16.mxu0 %v21716_v57  ;;  %19974 = vmatpush3.bf16.msra.mxu1 %v21712_v53  ;;  %v12163_v53 = vshll.u32 %v17345_v36, 16  ;;  %v10616_v3 = vrot.slane %v10614_v38, 5  ;;  %v21766_v38 = vld [vmem:[#allocation7 + $0x820] sm:$0xff]  }
 0x727   : > { %19975 = vmatprep.subr.bf16.mxu1 %v21714_v37  ;;  %v12179_v35 = vrot.slane %v12177_v24, 5 }
 0x728   : > { %19798 = vmatmul.mubr.bf16.vlgmr.msra.gmra.mrb[12].mxu0 %v21715_v33  ;;  %v12162_v33 = vrot.slane %v12160_v30, 4  ;;  %v12165_v23 = vrot.slane %v12163_v53, 5  ;;  %v21760_v30 = vld [vmem:[#allocation7 + $0x808] sm:$0xff]  }
 0x729   : > { %19802 = vmatpush3.bf16.msra.mxu0 %v21716_v57  ;;  %19817 = vmatprep.mubr.bf16.mxu0 %v17198_v6  ;;  %v10597_v57 = vor.u32 %v10596_v60, %v10593_v32  ;;  %v10774_v6 = vrot.slane %v17211_v44, 5  ;;  %v12180_v56 = vor.u32 %v12179_v35, %v12176_v55  ;;  %v12338_v32 = vrot.slane %v17360_v49, 5  ;;  %v21764_v44 = vld [vmem:[#allocation7 + $0x818] sm:$0xff]   ;;  %v10747_v55 = vld [vmem:[#allocation3 + $0x20] sm:$0x1e]  ;;  %v21782_v49 = vld [vmem:[#allocation7 + $0x840] sm:$0xff]  }
 0x72a   : > { %19803 = vmatprep.subr.bf16.mxu0 %v21727_v26  ;;  %19976 = vmatpush3.bf16.msra.mxu1 %v21714_v37  ;;  %v10600_v37 = vshll.u32 %v17195_v14, 16  ;;  %v12166_v48 = vor.u32 %v12165_v23, %v12162_v33  ;;  %v12171_v60 = vrot.slane %v12169_v31, 5  ;;  %v21769_v35 = vld [vmem:[#allocation7 + $0x830] sm:$0xff]   ;;  %v21771_v33 = vld [vmem:[#allocation7 + $0x838] sm:$0xff]  }
 0x72b   : > { %19981 = vmatprep.subr.bf16.mxu1 %v21718_v51  ;;  %v12315_v23 = vld [vmem:[#allocation3 + $0x40] sm:$0x1e] }
 0x72c   : > { %v12167_v7 = vrot.slane %v12166_v48, 4  ;;  %v17365_v13 = vcombine.low %v12315_v23, %v12315_v23  ;;  %v21787_v31 = vld [vmem:[#allocation7 + $0x850] sm:$0xff]  }
 0x72d   : > { %19804 = vmatpush3.bf16.msra.mxu0 %v21727_v26  ;;  %19978 = vmatmul.mubr.bf16.vlgmr.msra.gmra.mrb[12].mxu1 %v21717_v46  ;;  %v17217_v26 = vrot.slane %v17210_v27, 9  ;;  %v17216_v46 = vrot.slane %v17208_v54, 9  ;;  %v21765_v27 = vld [vmem:[#allocation7 + $0x820] sm:$0xff]   ;;  %v17215_v54 = vcombine.high %v10747_v55, %v10747_v55 }
 0x72e   : > { %19805 = vmatprep.subr.bf16.mxu0 %v21729_v4  ;;  %19982 = vmatpush3.bf16.msra.mxu1 %v21718_v51  ;;  %v10598_v51 = vrot.slane %v10597_v57, 4  ;;  %v21767_v57 = vld [vmem:[#allocation7 + $0x828] sm:$0xff]  }
 0x72f   : > { %19997 = vmatprep.mubr.bf16.mxu1 %v17349_v45  ;;  %19983 = vmatprep.subr.bf16.mxu1 %v21728_v61  ;;  %v10602_v45 = vrot.slane %v10600_v37, 5  ;;  %v10775_v42 = vsel %vm22668_vm8, %v17217_v26, %v10774_v6  ;;  %v10771_v50 = vsel %vm22668_vm8, %v17216_v46, %v10770_v52  ;;  %v17214_v37 = vcombine.low %v10747_v55, %v10747_v55  ;;  %v21770_v26 = vld [vmem:[#allocation7 + $0x830] sm:$0xff]   ;;  %v12314_v6 = vld [vmem:[#allocation3 + $0x38] sm:$0x1e] }
 0x730   : > { %v17220_v36 = vcombine.low %v10771_v50, %v10775_v42  ;;  %v17363_v46 = vcombine.low %v12314_v6, %v12314_v6  ;;  %v17364_v52 = vcombine.high %v12314_v6, %v12314_v6  ;;  %v21786_v50 = vld [vmem:[#allocation7 + $0x848] sm:$0xff]  }
 0x731   : > { %19806 = vmatpush3.bf16.msra.mxu0 %v21729_v4  ;;  %v21745_v4 = vld [vmem:[#allocation7 + $0x800] sm:$0xff]   ;;  %v10603_v34 = vsel %vm22644_vm5, %v10598_v51, %v10602_v45  ;;  %v17370_v45 = vrot.slane %v17365_v13, 9 }
 0x732   : > { %19807 = vmatprep.subr.bf16.mxu0 %v21731_v9  ;;  %19984 = vmatpush3.bf16.msra.mxu1 %v21728_v61  ;;  %v17361_v61 = vcombine.low %v12313_v22, %v12313_v22  ;;  %v17219_v22 = vrot.slane %v17214_v37, 9  ;;  %v12346_v42 = vrot.slane %v17364_v52, 5 }
 0x733   : > { %19985 = vmatprep.subr.bf16.mxu1 %v21730_v28 }
 0x734   : > { %v17368_v43 = vrot.slane %v17361_v61, 9  ;;  %v21772_v61 = vld [vmem:[#allocation7 + $0x838] sm:$0xff]  }
 0x735   : > { %19808 = vmatpush3.bf16.msra.mxu0 %v21731_v9  ;;  %v10617_v9 = vsel %vm22644_vm5, %v10612_v17, %v10616_v3 }
 0x736   : > { %19809 = vmatprep.subr.bf16.mxu0 %v21733_v11  ;;  %19986 = vmatpush3.bf16.msra.mxu1 %v21730_v28  ;;  %v21740_v28 = vld [vmem:[#allocation7 + $0x7f8] sm:$0xff]   ;;  %v17199_v16 = vcombine.low %v10603_v34, %v10617_v9  ;;  %v12343_v24 = vsel %vm22668_vm8, %v17368_v43, %v12342_v63  ;;  %v21784_v43 = vld [vmem:[#allocation3 + $0x30] ss:$8 sps:$4 sm:$0xff]  }
 0x737   : > { %19987 = vmatprep.subr.bf16.mxu1 %v21732_v15  ;;  %v11044_v63 = vld [vmem:[#allocation3 + $0x10] sm:$0x1f] }
 0x739   : > { %19810 = vmatpush3.bf16.msra.mxu0 %v21733_v11  ;;  %v17359_v11 = vcombine.low %v12312_v1, %v12312_v1  ;;  %v21777_v1 = vld [vmem:[#allocation7 + $0x840] sm:$0xff]  }
 0x73a   : > { %19811 = vmatprep.subr.bf16.mxu0 %v21735_v40  ;;  %19988 = vmatpush3.bf16.msra.mxu1 %v21732_v15  ;;  %v12181_v15 = vrot.slane %v12180_v56, 4  ;;  %v17366_v56 = vcombine.high %v12315_v23, %v12315_v23 }
 0x73b   : > { %19989 = vmatprep.subr.bf16.mxu1 %v21734_v62  ;;  %v17367_v0 = vrot.slane %v17359_v11, 9  ;;  %v21783_v11 = vld [vmem:[#allocation3 + $0x10] ss:$8 sps:$4 sm:$0xff]  }
 0x73c   : > { %v12186_v20 = vsel %vm22644_vm5, %v12181_v15, %v12185_v10  ;;  %v12350_v9 = vrot.slane %v17366_v56, 5  ;;  %v21788_v10 = vld [vmem:[#allocation7 + $0x850] sm:$0xff]  }
 0x73d   : > { %19812 = vmatpush3.bf16.msra.mxu0 %v21735_v40  ;;  %v21759_v40 = vld [vmem:[#allocation7 + $0x808] sm:$0xff]   ;;  %v12339_v47 = vsel %vm22668_vm8, %v17367_v0, %v12338_v32  ;;  %v12610_v32 = vld [vmem:[#allocation3 + $0x30] sm:$0x1f] }
 0x73e   : > { %19813 = vmatprep.subr.bf16.mxu0 %v21737_v18  ;;  %19990 = vmatpush3.bf16.msra.mxu1 %v21734_v62  ;;  %v21750_v62 = vld [vmem:[#allocation7 + $0x800] sm:$0xff]   ;;  %v17371_v53 = vcombine.low %v12339_v47, %v12343_v24  ;;  %v12351_v34 = vsel %vm22668_vm8, %v17370_v45, %v12350_v9  ;;  %v17392_v13 = vcombine.high %v12610_v32, %v12610_v32  ;;  %v21798_v45 = vld [vmem:[#allocation7 + $0x878] sm:$0xff]  }
 0x73f   : > { %19991 = vmatprep.subr.bf16.mxu1 %v21736_v41 }
 0x741   : > { %19814 = vmatpush3.bf16.msra.mxu0 %v21737_v18  ;;  %v12172_v18 = vsel %vm22644_vm5, %v12167_v7, %v12171_v60  ;;  %v11045_v7 = vld [vmem:[#allocation3 + $0x18] sm:$0x1f]  ;;  %v21790_v60 = vld [vmem:[#allocation7 + $0x858] sm:$0xff]  }
 0x742   : > { %19815 = vmatprep.subr.bf16.mxu0 %v21739_v19  ;;  %19992 = vmatpush3.bf16.msra.mxu1 %v21736_v41  ;;  %v17350_v14 = vcombine.low %v12172_v18, %v12186_v20  ;;  %v21762_v41 = vld [vmem:[#allocation7 + $0x810] sm:$0xff]   ;;  %v17242_v0 = vcombine.low %v11045_v7, %v11045_v7  ;;  %v21793_v18 = vld [vmem:[#allocation7 + $0x868] sm:$0xff]   ;;  %v17243_v37 = vcombine.high %v11045_v7, %v11045_v7 }
 0x743   : > { %19993 = vmatprep.subr.bf16.mxu1 %v21738_v21  ;;  %v21813_v7 = vld [vmem:[#allocation7 + $0x890] sm:$0xff]  }
 0x744   : > { %v11086_v47 = vshll.u32 %v17242_v0, 16  ;;  %v11092_v6 = vshll.u32 %v17243_v37, 16 }
 0x745   : > { %19816 = vmatpush3.bf16.msra.mxu0 %v21739_v19  ;;  %v10746_v19 = vld [vmem:[#allocation3 + $0x18] sm:$0x1e] }
 0x746   : > { %19821 = vmatprep.subr.bf16.mxu0 %v21745_v4  ;;  %19994 = vmatpush3.bf16.msra.mxu1 %v21738_v21  ;;  %v17212_v17 = vcombine.low %v10746_v19, %v10746_v19  ;;  %v17213_v5 = vcombine.high %v10746_v19, %v10746_v19  ;;  %v10782_v21 = vrot.slane %v17215_v54, 5  ;;  %v11088_v55 = vrot.slane %v11086_v47, 5  ;;  %v21794_v54 = vld [vmem:[#allocation7 + $0x868] sm:$0xff]   ;;  %v21817_v47 = vld [vmem:[#allocation7 + $0x8a0] sm:$0xff]  }
 0x747   : > { %19995 = vmatprep.subr.bf16.mxu1 %v21740_v28 }
 0x748   : > { %19818 = vmatmul.mubr.bf16.vlgmr.msra.gmra.mrb[12].mxu0 %v17199_v16  ;;  %v17218_v51 = vrot.slane %v17212_v17, 9  ;;  %v10778_v3 = vrot.slane %v17213_v5, 5 }
 0x749   : > { %19822 = vmatpush3.bf16.msra.mxu0 %v21745_v4  ;;  %19837 = vmatprep.mubr.bf16.mxu0 %v17220_v36  ;;  %v10783_v4 = vsel %vm22668_vm8, %v17219_v22, %v10782_v21  ;;  %v17240_v36 = vcombine.low %v11044_v63, %v11044_v63 }
 0x74a   : > { %19823 = vmatprep.subr.bf16.mxu0 %v21759_v40  ;;  %19996 = vmatpush3.bf16.msra.mxu1 %v21740_v28  ;;  %v10779_v8 = vsel %vm22668_vm8, %v17218_v51, %v10778_v3  ;;  %v17369_v28 = vrot.slane %v17363_v46, 9  ;;  %v21796_v51 = vld [vmem:[#allocation7 + $0x870] sm:$0xff]  }
 0x74b   : > { %20001 = vmatprep.subr.bf16.mxu1 %v21750_v62  ;;  %v17221_v48 = vcombine.low %v10779_v8, %v10783_v4  ;;  %v11069_v20 = vshrl.u32 %v17240_v36, 16  ;;  %v11072_v24 = vshll.u32 %v17240_v36, 16  ;;  %v21800_v4 = vld [vmem:[#allocation7 + $0x880] sm:$0xff]  }
 0x74c   : > { %v12347_v15 = vsel %vm22668_vm8, %v17369_v28, %v12346_v42  ;;  %v21799_v42 = vld [vmem:[#allocation3 + $0x20] ss:$8 sps:$4 sm:$0xff]  }
 0x74d   : > { %19824 = vmatpush3.bf16.msra.mxu0 %v21759_v40  ;;  %19998 = vmatmul.mubr.bf16.vlgmr.msra.gmra.mrb[12].mxu1 %v17350_v14  ;;  %v17372_v16 = vcombine.low %v12347_v15, %v12351_v34  ;;  %v21789_v40 = vld [vmem:[#allocation7 + $0x858] sm:$0xff]   ;;  %v11083_v14 = vshrl.u32 %v17242_v0, 16  ;;  %v11046_v0 = vld [vmem:[#allocation3 + $0x20] sm:$0x1f] }
 0x74e   : > { %19825 = vmatprep.subr.bf16.mxu0 %v21761_v58  ;;  %20002 = vmatpush3.bf16.msra.mxu1 %v21750_v62  ;;  %v21791_v62 = vld [vmem:[#allocation7 + $0x860] sm:$0xff]  }
 0x74f   : > { %20017 = vmatprep.mubr.bf16.mxu1 %v17371_v53  ;;  %20003 = vmatprep.subr.bf16.mxu1 %v21760_v30  ;;  %v21792_v53 = vld [vmem:[#allocation7 + $0x860] sm:$0xff]  }
 0x751   : > { %19826 = vmatpush3.bf16.msra.mxu0 %v21761_v58  ;;  %v12611_v58 = vld [vmem:[#allocation3 + $0x38] sm:$0x1f] }
 0x752   : > { %19827 = vmatprep.subr.bf16.mxu0 %v21763_v39  ;;  %20004 = vmatpush3.bf16.msra.mxu1 %v21760_v30  ;;  %v17391_v30 = vcombine.low %v12610_v32, %v12610_v32  ;;  %v11047_v32 = vld [vmem:[#allocation3 + $0x28] sm:$0x1f] }
 0x753   : > { %20005 = vmatprep.subr.bf16.mxu1 %v21762_v41 }
 0x754   : > { %v12638_v19 = vshll.u32 %v17391_v30, 16 }
 0x755   : > { %19828 = vmatpush3.bf16.msra.mxu0 %v21763_v39  ;;  %v11071_v39 = vrot.slane %v11069_v20, 4  ;;  %v21815_v20 = vld [vmem:[#allocation7 + $0x898] sm:$0xff]  }
 0x756   : > { %19829 = vmatprep.subr.bf16.mxu0 %v21765_v27  ;;  %20006 = vmatpush3.bf16.msra.mxu1 %v21762_v41  ;;  %v11074_v41 = vrot.slane %v11072_v24, 5  ;;  %v17244_v24 = vcombine.low %v11046_v0, %v11046_v0 }
 0x757   : > { %20007 = vmatprep.subr.bf16.mxu1 %v21764_v44 }
 0x759   : > { %19830 = vmatpush3.bf16.msra.mxu0 %v21765_v27  ;;  %v17393_v27 = vcombine.low %v12611_v58, %v12611_v58 }
 0x75a   : > { %19831 = vmatprep.subr.bf16.mxu0 %v21767_v57  ;;  %20008 = vmatpush3.bf16.msra.mxu1 %v21764_v44  ;;  %v17241_v44 = vcombine.high %v11044_v63, %v11044_v63 }
 0x75b   : > { %20009 = vmatprep.subr.bf16.mxu1 %v21766_v38  ;;  %v12649_v17 = vshrl.u32 %v17393_v27, 16  ;;  %v12652_v5 = vshll.u32 %v17393_v27, 16 }
 0x75c   : > { %v11078_v23 = vshll.u32 %v17241_v44, 16  ;;  %v21816_v44 = vld [vmem:[#allocation7 + $0x898] sm:$0xff]  }
 0x75d   : > { %19832 = vmatpush3.bf16.msra.mxu0 %v21767_v57  ;;  %v21795_v57 = vld [vmem:[#allocation7 + $0x870] sm:$0xff]   ;;  %v12651_v56 = vrot.slane %v12649_v17, 4 }
 0x75e   : > { %19833 = vmatprep.subr.bf16.mxu0 %v21769_v35  ;;  %20010 = vmatpush3.bf16.msra.mxu1 %v21766_v38  ;;  %v11085_v38 = vrot.slane %v11083_v14, 4  ;;  %v11080_v46 = vrot.slane %v11078_v23, 5  ;;  %v23531_v14 = vld [vmem:[#allocation3 + $0x48] sm:$0x1f]  ;;  %v17247_v23 = vcombine.high %v11047_v32, %v11047_v32 }
 0x75f   : > { %20011 = vmatprep.subr.bf16.mxu1 %v21768_v2 }
 0x760   : > { %v11089_v22 = vor.u32 %v11088_v55, %v11085_v38  ;;  %v21819_v55 = vld [vmem:[#allocation7 + $0x8a8] sm:$0xff]  }
 0x761   : > { %19834 = vmatpush3.bf16.msra.mxu0 %v21769_v35  ;;  %v12635_v35 = vshrl.u32 %v17391_v30, 16  ;;  %v23533_v30 = vld [vmem:[#allocation3 + $0x40] sm:$0x1f] }
 0x762   : > { %19835 = vmatprep.subr.bf16.mxu0 %v21771_v33  ;;  %20012 = vmatpush3.bf16.msra.mxu1 %v21768_v2  ;;  %v11075_v2 = vor.u32 %v11074_v41, %v11071_v39  ;;  %v11090_v52 = vrot.slane %v11089_v22, 4  ;;  %v11100_v39 = vshll.u32 %v17244_v24, 16  ;;  %v17395_v38 = vcombine.low %v23533_v30, %v23533_v30 }
 0x763   : > { %20013 = vmatprep.subr.bf16.mxu1 %v21770_v26  ;;  %v12637_v21 = vrot.slane %v12635_v35, 4 }
 0x764   : > { %v11076_v3 = vrot.slane %v11075_v2, 4  ;;  %v21818_v2 = vld [vmem:[#allocation7 + $0x8a0] sm:$0xff]   ;;  %v12663_v22 = vshrl.u32 %v17395_v38, 16 }
 0x765   : > { %19836 = vmatpush3.bf16.msra.mxu0 %v21771_v33  ;;  %v21797_v33 = vld [vmem:[#allocation7 + $0x878] sm:$0xff]  }
 0x766   : > { %19841 = vmatprep.subr.bf16.mxu0 %v21777_v1  ;;  %20014 = vmatpush3.bf16.msra.mxu1 %v21770_v26  ;;  %v12640_v26 = vrot.slane %v12638_v19, 5  ;;  %v11081_v9 = vsel %vm22644_vm5, %v11076_v3, %v11080_v46  ;;  %v11102_v19 = vrot.slane %v11100_v39, 5 }
 0x767   : > { %20015 = vmatprep.subr.bf16.mxu1 %v21772_v61 }
 0x768   : > { %19838 = vmatmul.mubr.bf16.vlgmr.msra.gmra.mrb[12].mxu0 %v17221_v48  ;;  %v12641_v8 = vor.u32 %v12640_v26, %v12637_v21  ;;  %v11094_v48 = vrot.slane %v11092_v6, 5  ;;  %v12666_v21 = vshll.u32 %v17395_v38, 16  ;;  %v11250_v26 = vld [vmem:[#allocation3 + $0x10] sm:$0x1e]  ;;  %v21821_v6 = vld [vmem:[#allocation7 + $0x8b0] sm:$0xff]  }
 0x769   : > { %19842 = vmatpush3.bf16.msra.mxu0 %v21777_v1  ;;  %19857 = vmatprep.mubr.bf16.mxu0 %v21783_v11  ;;  %v12654_v1 = vrot.slane %v12652_v5, 5 }
 0x76a   : > { %19843 = vmatprep.subr.bf16.mxu0 %v21785_v59  ;;  %20016 = vmatpush3.bf16.msra.mxu1 %v21772_v61  ;;  %v17394_v61 = vcombine.high %v12611_v58, %v12611_v58  ;;  %v11095_v11 = vsel %vm22644_vm5, %v11090_v52, %v11094_v48  ;;  %v17246_v58 = vcombine.low %v11047_v32, %v11047_v32  ;;  %v12668_v48 = vrot.slane %v12666_v21, 5 }
 0x76b   : > { %20021 = vmatprep.subr.bf16.mxu1 %v21782_v49  ;;  %v12655_v28 = vor.u32 %v12654_v1, %v12651_v56  ;;  %v17248_v15 = vcombine.low %v11081_v9, %v11095_v11  ;;  %v11251_v56 = vld [vmem:[#allocation3 + $0x18] sm:$0x1e]  ;;  %v17258_v52 = vcombine.low %v11250_v26, %v11250_v26  ;;  %v12665_v9 = vrot.slane %v12663_v22, 4  ;;  %v21845_v22 = vld [vmem:[#allocation7 + $0x8d0] sm:$0xff]  }
 0x76c   : > { %v12658_v34 = vshll.u32 %v17394_v61, 16  ;;  %v11111_v41 = vshrl.u32 %v17246_v58, 16  ;;  %v11114_v27 = vshll.u32 %v17246_v58, 16  ;;  %v21820_v1 = vld [vmem:[#allocation7 + $0x8a8] sm:$0xff]   ;;  %v17259_v61 = vcombine.high %v11250_v26, %v11250_v26 }
 0x76d   : > { %19844 = vmatpush3.bf16.msra.mxu0 %v21785_v59  ;;  %20018 = vmatmul.mubr.bf16.vlgmr.msra.gmra.mrb[12].mxu1 %v17372_v16  ;;  %v12644_v59 = vshll.u32 %v17392_v13, 16  ;;  %v21802_v16 = vld [vmem:[#allocation7 + $0x880] sm:$0xff]   ;;  %v17398_v13 = vcombine.high %v23531_v14, %v23531_v14 }
 0x76e   : > { %19845 = vmatprep.subr.bf16.mxu0 %v21787_v31  ;;  %20022 = vmatpush3.bf16.msra.mxu1 %v21782_v49  ;;  %v12642_v49 = vrot.slane %v12641_v8, 4  ;;  %v11113_v37 = vrot.slane %v11111_v41, 4 }
 0x76f   : > { %20037 = vmatprep.mubr.bf16.mxu1 %v21784_v43  ;;  %20023 = vmatprep.subr.bf16.mxu1 %v21786_v50  ;;  %v12656_v43 = vrot.slane %v12655_v28, 4  ;;  %v17260_v28 = vcombine.low %v11251_v56, %v11251_v56 }
 0x771   : > { %19846 = vmatpush3.bf16.msra.mxu0 %v21787_v31  ;;  %v21811_v31 = vld [vmem:[#allocation7 + $0x888] sm:$0xff]  }
 0x772   : > { %19847 = vmatprep.subr.bf16.mxu0 %v21789_v40  ;;  %20024 = vmatpush3.bf16.msra.mxu1 %v21786_v50  ;;  %v12646_v50 = vrot.slane %v12644_v59, 5  ;;  %v21823_v59 = vld [vmem:[#allocation7 + $0x8b8] sm:$0xff]  }
 0x773   : > { %20025 = vmatprep.subr.bf16.mxu1 %v21788_v10 }
 0x774   : > { %v12647_v63 = vsel %vm22644_vm5, %v12642_v49, %v12646_v50  ;;  %v17266_v50 = vrot.slane %v17258_v52, 9  ;;  %v11252_v52 = vld [vmem:[#allocation3 + $0x20] sm:$0x1e] }
 0x775   : > { %19848 = vmatpush3.bf16.msra.mxu0 %v21789_v40  ;;  %v12660_v40 = vrot.slane %v12658_v34, 5  ;;  %v17396_v34 = vcombine.high %v23533_v30, %v23533_v30 }
 0x776   : > { %19849 = vmatprep.subr.bf16.mxu0 %v21791_v62  ;;  %20026 = vmatpush3.bf16.msra.mxu1 %v21788_v10  ;;  %v21801_v10 = vld [vmem:[#allocation3 + $0x40] ss:$8 sps:$4 sm:$0xff]  }
 0x777   : > { %20027 = vmatprep.subr.bf16.mxu1 %v21790_v60  ;;  %v12661_v36 = vsel %vm22644_vm5, %v12656_v43, %v12660_v40  ;;  %v11276_v43 = vrot.slane %v17259_v61, 5  ;;  %v11253_v61 = vld [vmem:[#allocation3 + $0x28] sm:$0x1e] }
 0x779   : > { %19850 = vmatpush3.bf16.msra.mxu0 %v21791_v62  ;;  %v21812_v62 = vld [vmem:[#allocation7 + $0x888] sm:$0xff]  }
 0x77a   : > { %19851 = vmatprep.subr.bf16.mxu0 %v21793_v18  ;;  %20028 = vmatpush3.bf16.msra.mxu1 %v21790_v60  ;;  %v17399_v60 = vcombine.low %v12647_v63, %v12661_v36  ;;  %v12816_v36 = vld [vmem:[#allocation3 + $0x38] sm:$0x1e] }
 0x77b   : > { %20029 = vmatprep.subr.bf16.mxu1 %v21792_v53  ;;  %v17411_v30 = vcombine.low %v12816_v36, %v12816_v36 }
 0x77d   : > { %19852 = vmatpush3.bf16.msra.mxu0 %v21793_v18  ;;  %v21814_v18 = vld [vmem:[#allocation7 + $0x890] sm:$0xff]  }
 0x77e   : > { %19853 = vmatprep.subr.bf16.mxu0 %v21795_v57  ;;  %20030 = vmatpush3.bf16.msra.mxu1 %v21792_v53  ;;  %v11097_v53 = vshrl.u32 %v17244_v24, 16 }
 0x77f   : > { %20031 = vmatprep.subr.bf16.mxu1 %v21794_v54 }
 0x780   : > { %v11099_v35 = vrot.slane %v11097_v53, 4  ;;  %v17412_v53 = vcombine.high %v12816_v36, %v12816_v36 }
 0x781   : > { %19854 = vmatpush3.bf16.msra.mxu0 %v21795_v57  ;;  %v17397_v57 = vcombine.low %v23531_v14, %v23531_v14  ;;  %v21824_v14 = vld [vmem:[#allocation7 + $0x8b8] sm:$0xff]  }
 0x782   : > { %19855 = vmatprep.subr.bf16.mxu0 %v21797_v33  ;;  %20032 = vmatpush3.bf16.msra.mxu1 %v21794_v54  ;;  %v11116_v54 = vrot.slane %v11114_v27, 5 }
 0x783   : > { %20033 = vmatprep.subr.bf16.mxu1 %v21796_v51  ;;  %v12677_v17 = vshrl.u32 %v17397_v57, 16  ;;  %v12680_v5 = vshll.u32 %v17397_v57, 16 }
 0x784   : > { %v11117_v3 = vor.u32 %v11116_v54, %v11113_v37  ;;  %v21834_v54 = vld [vmem:[#allocation7 + $0x8c0] sm:$0xff]  }
 0x785   : > { %19856 = vmatpush3.bf16.msra.mxu0 %v21797_v33  ;;  %v17245_v33 = vcombine.high %v11046_v0, %v11046_v0  ;;  %v12682_v46 = vrot.slane %v12680_v5, 5  ;;  %v17267_v0 = vrot.slane %v17260_v28, 9  ;;  %v21852_v28 = vld [vmem:[#allocation7 + $0x8e8] sm:$0xff]  }
 0x786   : > { %19861 = vmatprep.subr.bf16.mxu0 %v21800_v4  ;;  %20034 = vmatpush3.bf16.msra.mxu1 %v21796_v51  ;;  %v11103_v51 = vor.u32 %v11102_v19, %v11099_v35  ;;  %v11118_v49 = vrot.slane %v11117_v3, 4  ;;  %v21843_v35 = vld [vmem:[#allocation7 + $0x8c8] sm:$0xff]   ;;  %v21847_v3 = vld [vmem:[#allocation7 + $0x8d8] sm:$0xff]  }
 0x787   : > { %20035 = vmatprep.subr.bf16.mxu1 %v21798_v45  ;;  %v11106_v8 = vshll.u32 %v17245_v33, 16 }
 0x788   : > { %19858 = vmatmul.mubr.bf16.vlgmr.msra.gmra.mrb[12].mxu0 %v21799_v42  ;;  %v17261_v42 = vcombine.high %v11251_v56, %v11251_v56  ;;  %v11104_v11 = vrot.slane %v11103_v51, 4  ;;  %v21849_v56 = vld [vmem:[#allocation7 + $0x8e0] sm:$0xff]  }
 0x789   : > { %19862 = vmatpush3.bf16.msra.mxu0 %v21800_v4  ;;  %19877 = vmatprep.mubr.bf16.mxu0 %v17248_v15  ;;  %v12679_v4 = vrot.slane %v12677_v17, 4  ;;  %v21822_v15 = vld [vmem:[#allocation7 + $0x8b0] sm:$0xff]   ;;  %v11108_v63 = vrot.slane %v11106_v8, 5  ;;  %v12845_v17 = vrot.slane %v17412_v53, 5 }
 0x78a   : > { %19863 = vmatprep.subr.bf16.mxu0 %v21811_v31  ;;  %20036 = vmatpush3.bf16.msra.mxu1 %v21798_v45  ;;  %v11120_v45 = vshll.u32 %v17247_v23, 16  ;;  %v11280_v32 = vrot.slane %v17261_v42, 5  ;;  %v21853_v8 = vld [vmem:[#allocation7 + $0x8f0] sm:$0xff]   ;;  %v21855_v42 = vld [vmem:[#allocation7 + $0x8f8] sm:$0xff]  }
 0x78b   : > { %20041 = vmatprep.subr.bf16.mxu1 %v21802_v16  ;;  %v11109_v24 = vsel %vm22644_vm5, %v11104_v11, %v11108_v63  ;;  %v12817_v11 = vld [vmem:[#allocation3 + $0x40] sm:$0x1e] }
 0x78c   : > { %v11122_v40 = vrot.slane %v11120_v45, 5  ;;  %v11281_v57 = vsel %vm22668_vm8, %v17267_v0, %v11280_v32  ;;  %v17262_v45 = vcombine.low %v11252_v52, %v11252_v52  ;;  %v17414_v63 = vcombine.high %v12817_v11, %v12817_v11  ;;  %v21867_v53 = vld [vmem:[#allocation10 + $0x48] sm:$0xff]  }
 0x78d   : > { %19864 = vmatpush3.bf16.msra.mxu0 %v21811_v31  ;;  %20038 = vmatmul.mubr.bf16.vlgmr.msra.gmra.mrb[12].mxu1 %v21801_v10  ;;  %v12815_v31 = vld [vmem:[#allocation3 + $0x30] sm:$0x1e]  ;;  %v12686_v10 = vshll.u32 %v17398_v13, 16  ;;  %v21846_v13 = vld [vmem:[#allocation7 + $0x8d0] sm:$0xff]  }
 0x78e   : > { %19865 = vmatprep.subr.bf16.mxu0 %v21813_v7  ;;  %20042 = vmatpush3.bf16.msra.mxu1 %v21802_v16  ;;  %v12683_v16 = vor.u32 %v12682_v46, %v12679_v4  ;;  %v11123_v58 = vsel %vm22644_vm5, %v11118_v49, %v11122_v40  ;;  %v21851_v4 = vld [vmem:[#allocation7 + $0x8e8] sm:$0xff]   ;;  %v21850_v46 = vld [vmem:[#allocation7 + $0x8e0] sm:$0xff]   ;;  %v12818_v49 = vld [vmem:[#allocation3 + $0x48] sm:$0x1e]  ;;  %v12849_v32 = vrot.slane %v17414_v63, 5 }
 0x78f   : > { %20057 = vmatprep.mubr.bf16.mxu1 %v17399_v60  ;;  %20043 = vmatprep.subr.bf16.mxu1 %v21812_v62  ;;  %v17409_v60 = vcombine.low %v12815_v31, %v12815_v31  ;;  %v12688_v27 = vrot.slane %v12686_v10, 5  ;;  %v17415_v40 = vcombine.low %v12818_v49, %v12818_v49 }
 0x790   : > { %v12684_v41 = vrot.slane %v12683_v16, 4 }
 0x791   : > { %19866 = vmatpush3.bf16.msra.mxu0 %v21813_v7  ;;  %v12669_v7 = vor.u32 %v12668_v48, %v12665_v9  ;;  %v17417_v38 = vrot.slane %v17409_v60, 9  ;;  %v17263_v9 = vcombine.high %v11252_v52, %v11252_v52  ;;  %v17264_v48 = vcombine.low %v11253_v61, %v11253_v61 }
 0x792   : > { %19867 = vmatprep.subr.bf16.mxu0 %v21815_v20  ;;  %20044 = vmatpush3.bf16.msra.mxu1 %v21812_v62  ;;  %v21829_v62 = vld [vmem:[#allocation7 + $0x8c0] sm:$0xff]   ;;  %v12689_v33 = vsel %vm22644_vm5, %v12684_v41, %v12688_v27  ;;  %v17420_v60 = vrot.slane %v17415_v40, 9  ;;  %v21869_v41 = vld [vmem:[#allocation10 + $0x50] sm:$0xff]  }
 0x793   : > { %20045 = vmatprep.subr.bf16.mxu1 %v21814_v18  ;;  %v12670_v39 = vrot.slane %v12669_v7, 4  ;;  %v17416_v7 = vcombine.high %v12818_v49, %v12818_v49  ;;  %v21870_v27 = vld [vmem:[#allocation10 + $0x50] sm:$0xff]  }
 0x795   : > { %19868 = vmatpush3.bf16.msra.mxu0 %v21815_v20  ;;  %v17410_v20 = vcombine.high %v12815_v31, %v12815_v31  ;;  %v11284_v31 = vrot.slane %v17263_v9, 5 }
 0x796   : > { %19869 = vmatprep.subr.bf16.mxu0 %v21817_v47  ;;  %20046 = vmatpush3.bf16.msra.mxu1 %v21814_v18  ;;  %v12672_v18 = vshll.u32 %v17396_v34, 16  ;;  %v17268_v34 = vrot.slane %v17262_v45, 9 }
 0x797   : > { %20047 = vmatprep.subr.bf16.mxu1 %v21816_v44 }
 0x798   : > { %v12674_v19 = vrot.slane %v12672_v18, 5  ;;  %v11285_v10 = vsel %vm22668_vm8, %v17268_v34, %v11284_v31 }
 0x799   : > { %19870 = vmatpush3.bf16.msra.mxu0 %v21817_v47  ;;  %v11277_v47 = vsel %vm22668_vm8, %v17266_v50, %v11276_v43  ;;  %v21854_v50 = vld [vmem:[#allocation7 + $0x8f0] sm:$0xff]   ;;  %v17413_v43 = vcombine.low %v12817_v11, %v12817_v11 }
 0x79a   : > { %19871 = vmatprep.subr.bf16.mxu0 %v21819_v55  ;;  %20048 = vmatpush3.bf16.msra.mxu1 %v21816_v44  ;;  %v17249_v44 = vcombine.low %v11109_v24, %v11123_v58  ;;  %v17270_v37 = vcombine.low %v11277_v47, %v11281_v57  ;;  %v12675_v5 = vsel %vm22644_vm5, %v12670_v39, %v12674_v19  ;;  %v21865_v47 = vld [vmem:[#allocation10 + $0x40] sm:$0xff]   ;;  %v21868_v39 = vld [vmem:[#allocation10 + $0x48] sm:$0xff]   ;;  %v21872_v57 = vld [vmem:[#allocation10 + $0x58] sm:$0xff]  }
 0x79b   : > { %20049 = vmatprep.subr.bf16.mxu1 %v21818_v2  ;;  %v17400_v21 = vcombine.low %v12675_v5, %v12689_v33  ;;  %v17419_v0 = vrot.slane %v17413_v43, 9  ;;  %v21876_v19 = vld [vmem:[#allocation10 + $0x68] sm:$0xff]   ;;  %v23567_v5 = vld [vmem:[#allocation10] sm:$0xff]  }
 0x79c   : > { %v23569_v33 = vld [vmem:[#allocation10] sm:$0xff]  }
 0x79d   : > { %19872 = vmatpush3.bf16.msra.mxu0 %v21819_v55  ;;  %v12841_v55 = vrot.slane %v17410_v20, 5  ;;  %v12853_v20 = vrot.slane %v17416_v7, 5  ;;  %v12850_v58 = vsel %vm22668_vm8, %v17419_v0, %v12849_v32 }
 0x79e   : > { %19873 = vmatprep.subr.bf16.mxu0 %v21821_v6  ;;  %20050 = vmatpush3.bf16.msra.mxu1 %v21818_v2  ;;  %v17418_v2 = vrot.slane %v17411_v30, 9  ;;  %v21866_v30 = vld [vmem:[#allocation10 + $0x40] sm:$0xff]  }
 0x79f   : > { %20051 = vmatprep.subr.bf16.mxu1 %v21820_v1  ;;  %v12842_v23 = vsel %vm22668_vm8, %v17417_v38, %v12841_v55  ;;  %v12854_v18 = vsel %vm22668_vm8, %v17420_v60, %v12853_v20  ;;  %v21873_v38 = vld [vmem:[#allocation10 + $0x60] sm:$0xff]  }
 0x7a0   : > { %v12846_v26 = vsel %vm22668_vm8, %v17418_v2, %v12845_v17  ;;  %v21874_v55 = vld [vmem:[#allocation10 + $0x60] sm:$0xff]   ;;  %v21879_v2 = vld [vmem:[#allocation10 + $0x78] sm:$0xff]  }
 0x7a1   : > { %19874 = vmatpush3.bf16.msra.mxu0 %v21821_v6  ;;  %v21844_v6 = vld [vmem:[#allocation7 + $0x8c8] sm:$0xff]   ;;  %v17421_v51 = vcombine.low %v12842_v23, %v12846_v26  ;;  %v21880_v17 = vld [vmem:[#allocation10 + $0x78] sm:$0xff]  }
 0x7a2   : > { %19875 = vmatprep.subr.bf16.mxu0 %v21823_v59  ;;  %20052 = vmatpush3.bf16.msra.mxu1 %v21820_v1  ;;  %v21848_v1 = vld [vmem:[#allocation7 + $0x8d8] sm:$0xff]   ;;  %v13063_v23 = vld [vmem:[#allocation2] sm:$0x1f] }
 0x7a3   : > { %20053 = vmatprep.subr.bf16.mxu1 %v21822_v15 }
 0x7a5   : > { %19876 = vmatpush3.bf16.msra.mxu0 %v21823_v59  ;;  %v17265_v59 = vcombine.high %v11253_v61, %v11253_v61 }
 0x7a6   : > { %19881 = vmatprep.subr.bf16.mxu0 %v21829_v62  ;;  %20054 = vmatpush3.bf16.msra.mxu1 %v21822_v15  ;;  %v17269_v15 = vrot.slane %v17264_v48, 9 }
 0x7a7   : > { %20055 = vmatprep.subr.bf16.mxu1 %v21824_v14  ;;  %v11288_v16 = vrot.slane %v17265_v59, 5 }
 0x7a8   : > { %19878 = vmatmul.mubr.bf16.vlgmr.msra.gmra.mrb[12].mxu0 %v17249_v44  ;;  %v21871_v44 = vld [vmem:[#allocation10 + $0x58] sm:$0xff]  }
 0x7a9   : > { %19882 = vmatpush3.bf16.msra.mxu0 %v21829_v62  ;;  %19897 = vmatprep.mubr.bf16.mxu0 %v17270_v37  ;;  %v11289_v36 = vsel %vm22668_vm8, %v17269_v15, %v11288_v16  ;;  %v21856_v62 = vld [vmem:[#allocation7 + $0x8f8] sm:$0xff]  }
 0x7aa   : > { %19883 = vmatprep.subr.bf16.mxu0 %v21843_v35  ;;  %20056 = vmatpush3.bf16.msra.mxu1 %v21824_v14  ;;  %v17271_v24 = vcombine.low %v11285_v10, %v11289_v36  ;;  %v17422_v14 = vcombine.low %v12850_v58, %v12854_v18  ;;  %v21877_v37 = vld [vmem:[#allocation10 + $0x70] sm:$0xff]  }
 0x7ab   : > { %20061 = vmatprep.subr.bf16.mxu1 %v21834_v54 }
 0x7ad   : > { %19884 = vmatpush3.bf16.msra.mxu0 %v21843_v35  ;;  %20058 = vmatmul.mubr.bf16.vlgmr.msra.gmra.mrb[12].mxu1 %v17400_v21  ;;  %v21875_v35 = vld [vmem:[#allocation10 + $0x68] sm:$0xff]   ;;  %v23573_v21 = vld [vmem:[#allocation9 + $0x3] ss:$0 sm:$0xff] }
 0x7ae   : > { %19885 = vmatprep.subr.bf16.mxu0 %v21845_v22  ;;  %20062 = vmatpush3.bf16.msra.mxu1 %v21834_v54  ;;  %v21878_v54 = vld [vmem:[#allocation10 + $0x70] sm:$0xff]  }
 0x7af   : > { %20077 = vmatprep.mubr.bf16.mxu1 %v17421_v51  ;;  %20063 = vmatprep.subr.bf16.mxu1 %v21844_v6 }
 0x7b1   : > { %19886 = vmatpush3.bf16.msra.mxu0 %v21845_v22  ;;  %v17432_v22 = vcombine.low %v13063_v23, %v13063_v23 }
 0x7b2   : > { %19887 = vmatprep.subr.bf16.mxu0 %v21847_v3  ;;  %20064 = vmatpush3.bf16.msra.mxu1 %v21844_v6 }
 0x7b3   : > { %20065 = vmatprep.subr.bf16.mxu1 %v21846_v13  ;;  %v13088_v26 = vshrl.u32 %v17432_v22, 16  ;;  %v13091_v6 = vshll.u32 %v17432_v22, 16  ;;  %v11475_v22 = vld [vmem:[#allocation2 + $0x20] sm:$0x1f] }
 0x7b5   : > { %19888 = vmatpush3.bf16.msra.mxu0 %v21847_v3  ;;  %v23580_v45 = vrot.slane %v13091_v6, 5 }
 0x7b6   : > { %19889 = vmatprep.subr.bf16.mxu0 %v21849_v56  ;;  %20066 = vmatpush3.bf16.msra.mxu1 %v21846_v13 }
 0x7b7   : > { %20067 = vmatprep.subr.bf16.mxu1 %v21848_v1 }
 0x7b9   : > { %19890 = vmatpush3.bf16.msra.mxu0 %v21849_v56 }
 0x7ba   : > { %19891 = vmatprep.subr.bf16.mxu0 %v21851_v4  ;;  %20068 = vmatpush3.bf16.msra.mxu1 %v21848_v1 }
 0x7bb   : > { %20069 = vmatprep.subr.bf16.mxu1 %v21850_v46 }
 0x7bd   : > { %19892 = vmatpush3.bf16.msra.mxu0 %v21851_v4  ;;  %v17433_v4 = vcombine.high %v13063_v23, %v13063_v23 }
 0x7be   : > { %19893 = vmatprep.subr.bf16.mxu0 %v21853_v8  ;;  %20070 = vmatpush3.bf16.msra.mxu1 %v21850_v46 }
 0x7bf   : > { %20071 = vmatprep.subr.bf16.mxu1 %v21852_v28  ;;  %v23583_v34 = vshll.u32 %v17433_v4, 16 }
 0x7c1   : > { %19894 = vmatpush3.bf16.msra.mxu0 %v21853_v8  ;;  %v23578_v8 = vrot.slane %v13088_v26, 4 }
 0x7c2   : > { %19895 = vmatprep.subr.bf16.mxu0 %v21855_v42  ;;  %20072 = vmatpush3.bf16.msra.mxu1 %v21852_v28 }
 0x7c3   : > { %20073 = vmatprep.subr.bf16.mxu1 %v21854_v50  ;;  %v13094_v43 = vor.u32 %v23580_v45, %v23578_v8  ;;  %v13099_v45 = vrot.slane %v23583_v34, 5 }
 0x7c5   : > { %19896 = vmatpush3.bf16.msra.mxu0 %v21855_v42 }
 0x7c6   : > { %20074 = vmatpush3.bf16.msra.mxu1 %v21854_v50  ;;  %20081 = vmatprep.subr.bf16.mxu0 %v21865_v47 }
 0x7c7   : > { %20075 = vmatprep.subr.bf16.mxu1 %v21856_v62 }
 0x7c8   : > { %19898 = vmatmul.mubr.bf16.vlgmr.msra.gmra.mrb[12].mxu0 %v17271_v24 }
 0x7c9   : > { %20082 = vmatpush3.bf16.msra.mxu0 %v21865_v47 }
 0x7ca   : > { %20076 = vmatpush3.bf16.msra.mxu1 %v21856_v62  ;;  %20083 = vmatprep.subr.bf16.mxu0 %v21867_v53 }
 0x7cb   : > { %20261 = vmatprep.subr.bf16.mxu1 %v21866_v30 }
 0x7cd   : > { %20078 = vmatmul.mubr.bf16.vlgmr.msra.gmra.mrb[12].mxu1 %v17422_v14  ;;  %20084 = vmatpush3.bf16.msra.mxu0 %v21867_v53 }
 0x7ce   : > { %20262 = vmatpush3.bf16.msra.mxu1 %v21866_v30  ;;  %20085 = vmatprep.subr.bf16.mxu0 %v21869_v41 }
 0x7cf   : > { %20263 = vmatprep.subr.bf16.mxu1 %v21868_v39 }
 0x7d1   : > { %20086 = vmatpush3.bf16.msra.mxu0 %v21869_v41  ;;  %v11472_v41 = vld [vmem:[#allocation2 + $0x18] sm:$0x1f] }
 0x7d2   : > { %20264 = vmatpush3.bf16.msra.mxu1 %v21868_v39  ;;  %20087 = vmatprep.subr.bf16.mxu0 %v21871_v44 }
 0x7d3   : > { %20265 = vmatprep.subr.bf16.mxu1 %v21870_v27 }
 0x7d5   : > { %20088 = vmatpush3.bf16.msra.mxu0 %v21871_v44 }
 0x7d6   : > { %20266 = vmatpush3.bf16.msra.mxu1 %v21870_v27  ;;  %20089 = vmatprep.subr.bf16.mxu0 %v21873_v38 }
 0x7d7   : > { %20267 = vmatprep.subr.bf16.mxu1 %v21872_v57 }
 0x7d9   : > { %20090 = vmatpush3.bf16.msra.mxu0 %v21873_v38 }
 0x7da   : > { %20268 = vmatpush3.bf16.msra.mxu1 %v21872_v57  ;;  %20091 = vmatprep.subr.bf16.mxu0 %v21875_v35 }
 0x7db   : > { %20269 = vmatprep.subr.bf16.mxu1 %v21874_v55 }
 0x7dd   : > { %20092 = vmatpush3.bf16.msra.mxu0 %v21875_v35 }
 0x7de   : > { %20270 = vmatpush3.bf16.msra.mxu1 %v21874_v55  ;;  %20093 = vmatprep.subr.bf16.mxu0 %v21877_v37 }
 0x7df   : > { %20271 = vmatprep.subr.bf16.mxu1 %v21876_v19 }
 0x7e1   : > { %20094 = vmatpush3.bf16.msra.mxu0 %v21877_v37 }
 0x7e2   : > { %20272 = vmatpush3.bf16.msra.mxu1 %v21876_v19  ;;  %20095 = vmatprep.subr.bf16.mxu0 %v21879_v2  ;;  %v11466_v19 = vld [vmem:[#allocation2 + $0x8] sm:$0x1f] }
 0x7e3   : > { %20273 = vmatprep.subr.bf16.mxu1 %v21878_v54 }
 0x7e5   : > { %20096 = vmatpush3.bf16.msra.mxu0 %v21879_v2 }
 0x7e6   : > { %20274 = vmatpush3.bf16.msra.mxu1 %v21878_v54  ;;  %20101 = vmatprep.subr.bf16.mxu0 %v23567_v5 }
 0x7e7   : > { %20275 = vmatprep.subr.bf16.mxu1 %v21880_v17 }
 0x7ea   : > { %20276 = vmatpush3.bf16.msra.mxu1 %v21880_v17 }
 0x7eb   : > { %20281 = vmatprep.subr.bf16.mxu1 %v23569_v33 }
 0x89b   : > { %v19899_v51 = vpop.f32.mrb[12].mxu0 }
 0x89c   : > { %v11424_v3 = vadd.f32 %v19899_v51, %v23573_v21  ;;  %v11397_v13 = vpop.f32.mrb[13].mxu0 }
 0x89d   : > { %v11422_v56 = vadd.f32 %v23573_v21, %v11397_v13  ;;  %v19900_v1 = vpop.f32.mrb[14].mxu0 }
 0x89e   : > { %v11428_v46 = vmax.f32 %v11424_v3, 0.0  ;;  %v11425_v52 = vadd.f32 %v19900_v1, %v23573_v21  ;;  %v11400_v61 = vpop.f32.mrb[15].mxu0 }
 0x89f   : > { %v11426_v9 = vmax.f32 %v11422_v56, 0.0  ;;  %v11423_v48 = vadd.f32 %v23573_v21, %v11400_v61 }
 0x8a0   : > { %v11432_v59 = vpack.c.bf16 %v11428_v46, %v11428_v46  ;;  %v11429_v28 = vmax.f32 %v11425_v52, 0.0  ;;  %v20079_v42 = vpop.f32.mrb[12].mxu1  ;;  %v11469_v46 = vld [vmem:[#allocation2 + $0x10] sm:$0x1f] }
 0x8a1   : > { %v11430_v11 = vpack.c.bf16 %v11426_v9, %v11426_v9  ;;  %v11427_v49 = vmax.f32 %v11423_v48, 0.0  ;;  %v12988_v15 = vadd.f32 %v20079_v42, %v23573_v21  ;;  %v12961_v16 = vpop.f32.mrb[13].mxu1  ;;  %v13036_v9 = vld [vmem:[#allocation2 + $0x38] sm:$0x1f]  ;;  %v13095_v42 = vrot.slane %v13094_v43, 4 }
 0x8a2   : > { %v11449_v31 = vshrl.u32 %v11432_v59, 16  ;;  %v11433_v50 = vpack.c.bf16 %v11429_v28, %v11429_v28  ;;  %v11452_v63 = vshll.u32 %v11432_v59, 16  ;;  %v12986_v7 = vadd.f32 %v23573_v21, %v12961_v16  ;;  %v20080_v10 = vpop.f32.mrb[14].mxu1  ;;  %v13039_v16 = vld [vmem:[#allocation2 + $0x40] sm:$0x1f] }
 0x8a3   : > { %v11435_v40 = vshrl.u32 %v11430_v11, 16  ;;  %v11431_v36 = vpack.c.bf16 %v11427_v49, %v11427_v49  ;;  %v12992_v0 = vmax.f32 %v12988_v15, 0.0  ;;  %v11438_v32 = vshll.u32 %v11430_v11, 16  ;;  %v12964_v20 = vpop.f32.mrb[15].mxu1  ;;  %v13030_v11 = vld [vmem:[#allocation2 + $0x28] sm:$0x1f] }
 0x8a4   : > { %v11451_v62 = vrot.slane %v11449_v31, 7  ;;  %v11456_v60 = vshrl.u32 %v11433_v50, 16  ;;  %v12990_v58 = vmax.f32 %v12986_v7, 0.0  ;;  %v12989_v18 = vadd.f32 %v20080_v10, %v23573_v21 }
 0x8a5   : > { %v11437_v24 = vrot.slane %v11435_v40, 7  ;;  %v11442_v14 = vshrl.u32 %v11431_v36, 16  ;;  %v12996_v30 = vpack.c.bf16 %v12992_v0, %v12992_v0  ;;  %v11459_v39 = vshll.u32 %v11433_v50, 16 }
 0x8a6   : > { %v11454_v47 = vor.u32 %v11452_v63, %v11451_v62  ;;  %v11458_v53 = vrot.slane %v11456_v60, 7  ;;  %v12994_v44 = vpack.c.bf16 %v12990_v58, %v12990_v58  ;;  %v12993_v57 = vmax.f32 %v12989_v18, 0.0 }
 0x8a7   : > { %v11440_v27 = vor.u32 %v11438_v32, %v11437_v24  ;;  %v11444_v38 = vrot.slane %v11442_v14, 7  ;;  %v13013_v35 = vshrl.u32 %v12996_v30, 16  ;;  %v11445_v54 = vshll.u32 %v11431_v36, 16 }
 0x8a8   : > { %v11473_v55 = vsel %vm23019_vm0, %v11454_v47, %v11472_v41  ;;  %v11461_v37 = vor.u32 %v11459_v39, %v11458_v53  ;;  %v13016_v2 = vshll.u32 %v12996_v30, 16  ;;  %v12999_v23 = vshrl.u32 %v12994_v44, 16 }
 0x8a9   : > { %11474 = vst [vmem:[#allocation2 + $0x18] sm:$0x1f] %v11473_v55  ;;  %v11467_v17 = vsel %vm23019_vm0, %v11440_v27, %v11466_v19  ;;  %v12997_v26 = vpack.c.bf16 %v12993_v57, %v12993_v57  ;;  %v13015_v6 = vrot.slane %v13013_v35, 7  ;;  %v11447_v3 = vor.u32 %v11445_v54, %v11444_v38 }
 0x8aa   : > { %11468 = vst [vmem:[#allocation2 + $0x8] sm:$0x1f] %v11467_v17  ;;  %v11476_v51 = vsel %vm23019_vm0, %v11461_v37, %v11475_v22  ;;  %v12987_v13 = vadd.f32 %v23573_v21, %v12964_v20  ;;  %v13001_v56 = vrot.slane %v12999_v23, 7  ;;  %v13002_v1 = vshll.u32 %v12994_v44, 16  ;;  %v13033_v20 = vld [vmem:[#allocation2 + $0x30] sm:$0x1f] }
 0x8ab   : > { %11477 = vst [vmem:[#allocation2 + $0x20] sm:$0x1f] %v11476_v51  ;;  %v13020_v4 = vshrl.u32 %v12997_v26, 16  ;;  %v13018_v52 = vor.u32 %v13016_v2, %v13015_v6  ;;  %v11470_v61 = vsel %vm23019_vm0, %v11447_v3, %v11469_v46  ;;  %v13023_v28 = vshll.u32 %v12997_v26, 16 }
 0x8ac   : > { %v12991_v8 = vmax.f32 %v12987_v13, 0.0  ;;  %v13004_v48 = vor.u32 %v13002_v1, %v13001_v56  ;;  %11471 = vst [vmem:[#allocation2 + $0x10] sm:$0x1f] %v11470_v61  ;;  %v13100_v43 = vsel %vm22644_vm5, %v13095_v42, %v13099_v45 }
 0x8ad   : > { %v13022_v59 = vrot.slane %v13020_v4, 7  ;;  %v13037_v21 = vsel %vm23019_vm0, %v13018_v52, %v13036_v9 }
 0x8ae   : > { %v12995_v49 = vpack.c.bf16 %v12991_v8, %v12991_v8  ;;  %13038 = vst [vmem:[#allocation2 + $0x38] sm:$0x1f] %v13037_v21  ;;  %v13031_v31 = vsel %vm23019_vm0, %v13004_v48, %v13030_v11 }
 0x8af   : > { %v13025_v15 = vor.u32 %v13023_v28, %v13022_v59  ;;  %13032 = vst [vmem:[#allocation2 + $0x28] sm:$0x1f] %v13031_v31 }
 0x8b0   : > { %v13006_v50 = vshrl.u32 %v12995_v49, 16  ;;  %v13066_v34 = vld [vmem:[#allocation2 + $0x18] sm:$0x1f]  ;;  %v13009_v40 = vshll.u32 %v12995_v49, 16 }
 0x8b1   : > { %v13040_v63 = vsel %vm23019_vm0, %v13025_v15, %v13039_v16  ;;  %v13064_v7 = vld [vmem:[#allocation2 + $0x8] sm:$0x1f]  ;;  %v17438_v10 = vcombine.low %v13066_v34, %v13066_v34  ;;  %v17439_v60 = vcombine.high %v13066_v34, %v13066_v34 }
 0x8b2   : > { %13041 = vst [vmem:[#allocation2 + $0x40] sm:$0x1f] %v13040_v63  ;;  %v13008_v36 = vrot.slane %v13006_v50, 7  ;;  %v17434_v62 = vcombine.low %v13064_v7, %v13064_v7  ;;  %v17435_v0 = vcombine.high %v13064_v7, %v13064_v7  ;;  %v14587_v32 = vld [vmem:[#allocation2 + $0x20] sm:$0x1f] }
 0x8b3   : > { %v17583_v24 = vcombine.low %v14587_v32, %v14587_v32  ;;  %v17584_v58 = vcombine.high %v14587_v32, %v14587_v32  ;;  %v13130_v18 = vshrl.u32 %v17438_v10, 16  ;;  %v13133_v14 = vshll.u32 %v17438_v10, 16  ;;  %v13065_v41 = vld [vmem:[#allocation2 + $0x10] sm:$0x1f] }
 0x8b4   : > { %v13011_v47 = vor.u32 %v13009_v40, %v13008_v36  ;;  %v13102_v30 = vshrl.u32 %v17434_v62, 16  ;;  %v13105_v53 = vshll.u32 %v17434_v62, 16  ;;  %v13111_v39 = vshll.u32 %v17435_v0, 16 }
 0x8b5   : > { %v14612_v27 = vshrl.u32 %v17583_v24, 16  ;;  %v14615_v44 = vshll.u32 %v17583_v24, 16  ;;  %v14621_v57 = vshll.u32 %v17584_v58, 16  ;;  %v17436_v38 = vcombine.low %v13065_v41, %v13065_v41  ;;  %v14590_v59 = vld [vmem:[#allocation2 + $0x38] sm:$0x1f] }
 0x8b6   : > { %v13034_v55 = vsel %vm23019_vm0, %v13011_v47, %v13033_v20  ;;  %v13104_v35 = vrot.slane %v13102_v30, 4  ;;  %v13107_v19 = vrot.slane %v13105_v53, 5  ;;  %v13113_v37 = vrot.slane %v13111_v39, 5  ;;  %v14588_v54 = vld [vmem:[#allocation2 + $0x28] sm:$0x1f] }
 0x8b7   : > { %13035 = vst [vmem:[#allocation2 + $0x30] sm:$0x1f] %v13034_v55  ;;  %v14614_v2 = vrot.slane %v14612_v27, 4  ;;  %v14617_v17 = vrot.slane %v14615_v44, 5  ;;  %v14623_v23 = vrot.slane %v14621_v57, 5  ;;  %v17437_v22 = vcombine.high %v13065_v41, %v13065_v41 }
 0x8b8   : > { %v13108_v26 = vor.u32 %v13107_v19, %v13104_v35  ;;  %v17585_v6 = vcombine.low %v14588_v54, %v14588_v54  ;;  %v17586_v51 = vcombine.high %v14588_v54, %v14588_v54  ;;  %v13116_v3 = vshrl.u32 %v17436_v38, 16  ;;  %v21901_v19 = vld [vmem:[#allocation10 + $0x8] sm:$0xff]   ;;  %v21899_v54 = vld [vmem:[#allocation2] ss:$8 sps:$4 sm:$0xff]  }
 0x8b9   : > { %v14618_v13 = vor.u32 %v14617_v17, %v14614_v2  ;;  %v13119_v56 = vshll.u32 %v17436_v38, 16  ;;  %v13125_v1 = vshll.u32 %v17437_v22, 16  ;;  %v13132_v4 = vrot.slane %v13130_v18, 4 }
 0x8ba   : > { %v13109_v46 = vrot.slane %v13108_v26, 4  ;;  %v14626_v29 = vshrl.u32 %v17585_v6, 16  ;;  %v14629_v52 = vshll.u32 %v17585_v6, 16  ;;  %v14635_v61 = vshll.u32 %v17586_v51, 16  ;;  %v21903_v26 = vld [vmem:[#allocation10 + $0x10] sm:$0xff]  }
 0x8bb   : > { %v14619_v8 = vrot.slane %v14618_v13, 4  ;;  %v13118_v45 = vrot.slane %v13116_v3, 4  ;;  %v13121_v9 = vrot.slane %v13119_v56, 5  ;;  %v13127_v48 = vrot.slane %v13125_v1, 5  ;;  %v21902_v13 = vld [vmem:[#allocation10 + $0x8] sm:$0xff]   ;;  %v21905_v1 = vld [vmem:[#allocation10 + $0x18] sm:$0xff]  }
 0x8bc   : > { %v13114_v28 = vsel %vm22644_vm5, %v13109_v46, %v13113_v37  ;;  %v14628_v42 = vrot.slane %v14626_v29, 4  ;;  %v14631_v21 = vrot.slane %v14629_v52, 5  ;;  %v14637_v11 = vrot.slane %v14635_v61, 5  ;;  %v21900_v56 = vld [vmem:[#allocation2 + $0x20] ss:$8 sps:$4 sm:$0xff]   ;;  %v21909_v29 = vld [vmem:[#allocation10 + $0x28] sm:$0xff]  }
 0x8bd   : > { %v17440_v49 = vcombine.low %v13100_v43, %v13114_v28  ;;  %v14624_v31 = vsel %vm22644_vm5, %v14619_v8, %v14623_v23  ;;  %v13122_v15 = vor.u32 %v13121_v9, %v13118_v45  ;;  %v13135_v16 = vrot.slane %v13133_v14, 5  ;;  %v21906_v46 = vld [vmem:[#allocation10 + $0x18] sm:$0xff]   ;;  %v21908_v52 = vld [vmem:[#allocation10 + $0x20] sm:$0xff]   ;;  %v21910_v45 = vld [vmem:[#allocation10 + $0x28] sm:$0xff]  }
 0x8be   : > { %v14632_v50 = vor.u32 %v14631_v21, %v14628_v42  ;;  %v13139_v34 = vshll.u32 %v17439_v60, 16  ;;  %v14589_v63 = vld [vmem:[#allocation2 + $0x30] sm:$0x1f]  ;;  %v17589_v40 = vcombine.low %v14590_v59, %v14590_v59  ;;  %v17590_v7 = vcombine.high %v14590_v59, %v14590_v59  ;;  %v13374_v61 = vld [vmem:[#allocation2] sm:$0x1e] }
 0x8bf   : > { %20097 = vmatprep.mubr.bf16.mxu0 %v17440_v49  ;;  %v13123_v10 = vrot.slane %v13122_v15, 4  ;;  %v13136_v36 = vor.u32 %v13135_v16, %v13132_v4  ;;  %v17587_v62 = vcombine.low %v14589_v63, %v14589_v63  ;;  %v17588_v0 = vcombine.high %v14589_v63, %v14589_v63  ;;  %v21907_v4 = vld [vmem:[#allocation10 + $0x20] sm:$0xff]   ;;  %v21913_v42 = vld [vmem:[#allocation10 + $0x38] sm:$0xff]   ;;  %v21912_v49 = vld [vmem:[#allocation10 + $0x30] sm:$0xff]  }
 0x8c0   : > { %v14633_v32 = vrot.slane %v14632_v50, 4  ;;  %v13141_v20 = vrot.slane %v13139_v34, 5  ;;  %v14654_v24 = vshrl.u32 %v17589_v40, 16  ;;  %v14657_v58 = vshll.u32 %v17589_v40, 16  ;;  %v13375_v8 = vld [vmem:[#allocation2 + $0x8] sm:$0x1e] }
 0x8c1   : > { %v13128_v43 = vsel %vm22644_vm5, %v13123_v10, %v13127_v48  ;;  %v13137_v18 = vrot.slane %v13136_v36, 4  ;;  %v14640_v47 = vshrl.u32 %v17587_v62, 16  ;;  %v14643_v14 = vshll.u32 %v17587_v62, 16  ;;  %v14897_v21 = vld [vmem:[#allocation2 + $0x20] sm:$0x1e] }
 0x8c2   : > { %v14638_v60 = vsel %vm22644_vm5, %v14633_v32, %v14637_v11  ;;  %v14649_v30 = vshll.u32 %v17588_v0, 16  ;;  %v14656_v53 = vrot.slane %v14654_v24, 4  ;;  %v14659_v39 = vrot.slane %v14657_v58, 5  ;;  %v14898_v11 = vld [vmem:[#allocation2 + $0x28] sm:$0x1e]  ;;  %v21914_v36 = vld [vmem:[#allocation10 + $0x38] sm:$0xff]  }
 0x8c3   : > { %v17591_v41 = vcombine.low %v14624_v31, %v14638_v60  ;;  %v13142_v27 = vsel %vm22644_vm5, %v13137_v18, %v13141_v20  ;;  %v14642_v44 = vrot.slane %v14640_v47, 4  ;;  %v14645_v57 = vrot.slane %v14643_v14, 5  ;;  %v21916_v34 = vld [vmem:[#allocation10 + $0x80] sm:$0xff]   ;;  %v21927_v32 = vld [vmem:[#allocation10 + $0x88] sm:$0xff]  }
 0x8c4   : > { %v17441_v38 = vcombine.low %v13128_v43, %v13142_v27  ;;  %v14660_v55 = vor.u32 %v14659_v39, %v14656_v53  ;;  %v14663_v35 = vshll.u32 %v17590_v7, 16  ;;  %v14651_v23 = vrot.slane %v14649_v30, 5  ;;  %v21915_v20 = vld [vmem:[#allocation2 + $0x10] ss:$8 sps:$4 sm:$0xff]   ;;  %v21918_v14 = vld [vmem:[#allocation10 + $0x80] sm:$0xff]  }
 0x8c5   : > { %20277 = vmatprep.mubr.bf16.mxu1 %v17591_v41  ;;  %v14646_v37 = vor.u32 %v14645_v57, %v14642_v44  ;;  %v17460_v9 = vcombine.low %v13374_v61, %v13374_v61  ;;  %v17461_v48 = vcombine.high %v13374_v61, %v13374_v61  ;;  %v17462_v59 = vcombine.low %v13375_v8, %v13375_v8  ;;  %v21929_v53 = vld [vmem:[#allocation10 + $0x90] sm:$0xff]   ;;  %v21928_v41 = vld [vmem:[#allocation10 + $0x88] sm:$0xff]   ;;  %v21931_v44 = vld [vmem:[#allocation10 + $0x98] sm:$0xff]  }
 0x8c6   : > { %20098 = vmatmul.mubr.bf16.vlgmr.msra.gmra.mrb[16].mxu0 %v17441_v38  ;;  %v14661_v2 = vrot.slane %v14660_v55, 4  ;;  %v14665_v22 = vrot.slane %v14663_v35, 5  ;;  %v17463_v28 = vcombine.high %v13375_v8, %v13375_v8  ;;  %v17611_v63 = vcombine.low %v14897_v21, %v14897_v21  ;;  %v21917_v39 = vld [vmem:[#allocation2 + $0x30] ss:$8 sps:$4 sm:$0xff]   ;;  %v21933_v38 = vld [vmem:[#allocation10 + $0xa0] sm:$0xff]   ;;  %v21932_v55 = vld [vmem:[#allocation10 + $0x98] sm:$0xff]  }
 0x8c7   : > { %20102 = vmatpush3.bf16.msra.mxu0 %v23567_v5  ;;  %v14647_v17 = vrot.slane %v14646_v37, 4  ;;  %20117 = vmatprep.mubr.bf16.mxu0 %v21899_v54  ;;  %v21904_v5 = vld [vmem:[#allocation10 + $0x10] sm:$0xff]   ;;  %v17468_v31 = vrot.slane %v17460_v9, 9  ;;  %v13400_v15 = vrot.slane %v17461_v48, 5  ;;  %v17469_v16 = vrot.slane %v17462_v59, 9  ;;  %v21935_v35 = vld [vmem:[#allocation10 + $0xa8] sm:$0xff]  }
 0x8c8   : > { %20103 = vmatprep.subr.bf16.mxu0 %v21901_v19  ;;  %v14666_v51 = vsel %vm22644_vm5, %v14661_v2, %v14665_v22  ;;  %v13404_v50 = vrot.slane %v17463_v28, 5  ;;  %v17612_v40 = vcombine.high %v14897_v21, %v14897_v21  ;;  %v17613_v7 = vcombine.low %v14898_v11, %v14898_v11  ;;  %v21930_v57 = vld [vmem:[#allocation10 + $0x90] sm:$0xff]   ;;  %v21936_v22 = vld [vmem:[#allocation10 + $0xa8] sm:$0xff]   ;;  %v21945_v61 = vld [vmem:[#allocation10 + $0xc0] sm:$0xff]  }
 0x8c9   : > { %v14652_v6 = vsel %vm22644_vm5, %v14647_v17, %v14651_v23  ;;  %v17614_v10 = vcombine.high %v14898_v11, %v14898_v11  ;;  %v13401_v62 = vsel %vm22668_vm8, %v17468_v31, %v13400_v15  ;;  %v17619_v24 = vrot.slane %v17611_v63, 9  ;;  %v13376_v37 = vld [vmem:[#allocation2 + $0x10] sm:$0x1e]  ;;  %v13377_v2 = vld [vmem:[#allocation2 + $0x18] sm:$0x1e]  ;;  %v21950_v15 = vld [vmem:[#allocation10 + $0xc0] sm:$0xff]  }
 0x8ca   : > { %v17592_v3 = vcombine.low %v14652_v6, %v14666_v51  ;;  %v13405_v0 = vsel %vm22668_vm8, %v17469_v16, %v13404_v50  ;;  %v14923_v58 = vrot.slane %v17612_v40, 5  ;;  %v17620_v43 = vrot.slane %v17613_v7, 9  ;;  %v21937_v54 = vld [vmem:[#allocation10 + $0xb0] sm:$0xff]   ;;  %v21939_v51 = vld [vmem:[#allocation10 + $0xb8] sm:$0xff]   ;;  %v21953_v21 = vld [vmem:[#allocation10 + $0xc8] sm:$0xff]  }
 0x8cb   : > { %20104 = vmatpush3.bf16.msra.mxu0 %v21901_v19  ;;  %v14927_v18 = vrot.slane %v17614_v10, 5  ;;  %v17472_v47 = vcombine.low %v13401_v62, %v13405_v0  ;;  %v21934_v19 = vld [vmem:[#allocation10 + $0xa0] sm:$0xff]   ;;  %v17464_v17 = vcombine.low %v13376_v37, %v13376_v37  ;;  %v17465_v23 = vcombine.high %v13376_v37, %v13376_v37  ;;  %v21940_v9 = vld [vmem:[#allocation10 + $0xb8] sm:$0xff]   ;;  %v21955_v50 = vld [vmem:[#allocation10 + $0xd0] sm:$0xff]  }
 0x8cc   : > { %20278 = vmatmul.mubr.bf16.vlgmr.msra.gmra.mrb[16].mxu1 %v17592_v3  ;;  %20105 = vmatprep.subr.bf16.mxu0 %v21903_v26  ;;  %v14924_v60 = vsel %vm22668_vm8, %v17619_v24, %v14923_v58  ;;  %v17467_v6 = vcombine.high %v13377_v2, %v13377_v2  ;;  %v14899_v3 = vld [vmem:[#allocation2 + $0x30] sm:$0x1e]  ;;  %v13674_v62 = vld [vmem:[#allocation2 + $0x8] sm:$0x1f] }
 0x8cd   : > { %20282 = vmatpush3.bf16.msra.mxu1 %v23569_v33  ;;  %20297 = vmatprep.mubr.bf16.mxu1 %v21900_v56  ;;  %v21911_v33 = vld [vmem:[#allocation10 + $0x30] sm:$0xff]   ;;  %v14928_v30 = vsel %vm22668_vm8, %v17620_v43, %v14927_v18  ;;  %v13408_v56 = vrot.slane %v17465_v23, 5  ;;  %v21951_v31 = vld [vmem:[#allocation2 + $0x8] ss:$8 sps:$4 sm:$0xff]   ;;  %v17492_v24 = vcombine.low %v13674_v62, %v13674_v62  ;;  %v21958_v43 = vld [vmem:[#allocation10 + $0xd8] sm:$0xff]  }
 0x8ce   : > { %20283 = vmatprep.subr.bf16.mxu1 %v21902_v13  ;;  %v17623_v27 = vcombine.low %v14924_v60, %v14928_v30  ;;  %v21954_v40 = vld [vmem:[#allocation10 + $0xc8] sm:$0xff]   ;;  %v21956_v0 = vld [vmem:[#allocation10 + $0xd0] sm:$0xff]  }
 0x8cf   : > { %20106 = vmatpush3.bf16.msra.mxu0 %v21903_v26  ;;  %v17466_v26 = vcombine.low %v13377_v2, %v13377_v2  ;;  %v21952_v7 = vld [vmem:[#allocation2 + $0x28] ss:$8 sps:$4 sm:$0xff]   ;;  %v13699_v30 = vshrl.u32 %v17492_v24, 16  ;;  %v17493_v2 = vcombine.high %v13674_v62, %v13674_v62  ;;  %v21969_v62 = vld [vmem:[#allocation2 + $0x38] ss:$8 sps:$4 sm:$0xff]  }
 0x8d0   : > { %20107 = vmatprep.subr.bf16.mxu0 %v21905_v1  ;;  %v13675_v10 = vld [vmem:[#allocation2 + $0x10] sm:$0x1f] }
 0x8d1   : > { %20284 = vmatpush3.bf16.msra.mxu1 %v21902_v13  ;;  %v17470_v13 = vrot.slane %v17464_v17, 9  ;;  %v15196_v58 = vld [vmem:[#allocation2 + $0x30] sm:$0x1f] }
 0x8d2   : > { %20285 = vmatprep.subr.bf16.mxu1 %v21904_v5  ;;  %v21961_v60 = vld [vmem:[#allocation10 + $0xe8] sm:$0xff]  }
 0x8d3   : > { %20108 = vmatpush3.bf16.msra.mxu0 %v21905_v1  ;;  %v21938_v1 = vld [vmem:[#allocation10 + $0xb0] sm:$0xff]   ;;  %v13409_v8 = vsel %vm22668_vm8, %v17470_v13, %v13408_v56  ;;  %v21962_v17 = vld [vmem:[#allocation10 + $0xe8] sm:$0xff]  }
 0x8d4   : > { %20109 = vmatprep.subr.bf16.mxu0 %v21907_v4 }
 0x8d5   : > { %20286 = vmatpush3.bf16.msra.mxu1 %v21904_v5  ;;  %v14900_v5 = vld [vmem:[#allocation2 + $0x38] sm:$0x1e] }
 0x8d6   : > { %20287 = vmatprep.subr.bf16.mxu1 %v21906_v46 }
 0x8d7   : > { %20110 = vmatpush3.bf16.msra.mxu0 %v21907_v4  ;;  %v17471_v4 = vrot.slane %v17466_v26, 9 }
 0x8d8   : > { %20111 = vmatprep.subr.bf16.mxu0 %v21909_v29 }
 0x8d9   : > { %20288 = vmatpush3.bf16.msra.mxu1 %v21906_v46  ;;  %v13412_v46 = vrot.slane %v17467_v6, 5  ;;  %v21965_v6 = vld [vmem:[#allocation10 + $0xf8] sm:$0xff]  }
 0x8da   : > { %20289 = vmatprep.subr.bf16.mxu1 %v21908_v52 }
 0x8db   : > { %20112 = vmatpush3.bf16.msra.mxu0 %v21909_v29  ;;  %v17615_v29 = vcombine.low %v14899_v3, %v14899_v3  ;;  %v13413_v48 = vsel %vm22668_vm8, %v17471_v4, %v13412_v46  ;;  %v17646_v46 = vcombine.high %v15196_v58, %v15196_v58 }
 0x8dc   : > { %20113 = vmatprep.subr.bf16.mxu0 %v21911_v33 }
 0x8dd   : > { %20290 = vmatpush3.bf16.msra.mxu1 %v21908_v52  ;;  %v17616_v52 = vcombine.high %v14899_v3, %v14899_v3  ;;  %v17621_v59 = vrot.slane %v17615_v29, 9 }
 0x8de   : > { %20291 = vmatprep.subr.bf16.mxu1 %v21910_v45 }
 0x8df   : > { %20114 = vmatpush3.bf16.msra.mxu0 %v21911_v33  ;;  %v17617_v33 = vcombine.low %v14900_v5, %v14900_v5  ;;  %v14931_v28 = vrot.slane %v17616_v52, 5 }
 0x8e0   : > { %20115 = vmatprep.subr.bf16.mxu0 %v21913_v42 }
 0x8e1   : > { %20292 = vmatpush3.bf16.msra.mxu1 %v21910_v45  ;;  %v17618_v45 = vcombine.high %v14900_v5, %v14900_v5  ;;  %v17622_v11 = vrot.slane %v17617_v33, 9  ;;  %v14932_v16 = vsel %vm22668_vm8, %v17621_v59, %v14931_v28  ;;  %v21964_v5 = vld [vmem:[#allocation10 + $0xf0] sm:$0xff]  }
 0x8e2   : > { %20293 = vmatprep.subr.bf16.mxu1 %v21912_v49 }
 0x8e3   : > { %20116 = vmatpush3.bf16.msra.mxu0 %v21913_v42  ;;  %v17473_v42 = vcombine.low %v13409_v8, %v13413_v48  ;;  %v21966_v48 = vld [vmem:[#allocation10 + $0xf8] sm:$0xff]  }
 0x8e4   : > { %20121 = vmatprep.subr.bf16.mxu0 %v21916_v34 }
 0x8e5   : > { %20294 = vmatpush3.bf16.msra.mxu1 %v21912_v49  ;;  %v14935_v49 = vrot.slane %v17618_v45, 5 }
 0x8e6   : > { %20295 = vmatprep.subr.bf16.mxu1 %v21914_v36  ;;  %20118 = vmatmul.mubr.bf16.vlgmr.msra.gmra.mrb[16].mxu0 %v21915_v20  ;;  %v21959_v20 = vld [vmem:[#allocation10 + $0xe0] sm:$0xff]  }
 0x8e7   : > { %20122 = vmatpush3.bf16.msra.mxu0 %v21916_v34  ;;  %20137 = vmatprep.mubr.bf16.mxu0 %v17472_v47  ;;  %v14936_v34 = vsel %vm22668_vm8, %v17622_v11, %v14935_v49  ;;  %v21967_v11 = vld [vmem:[#allocation2 + $0x18] ss:$8 sps:$4 sm:$0xff]  }
 0x8e8   : > { %20123 = vmatprep.subr.bf16.mxu0 %v21927_v32  ;;  %v17624_v63 = vcombine.low %v14932_v16, %v14936_v34  ;;  %v21979_v16 = vld [vmem:[#allocation10 + $0x108] sm:$0xff]   ;;  %v21970_v34 = vld [vmem:[#allocation10 + $0x100] sm:$0xff]  }
 0x8e9   : > { %20296 = vmatpush3.bf16.msra.mxu1 %v21914_v36  ;;  %v21957_v36 = vld [vmem:[#allocation10 + $0xd8] sm:$0xff]  }
 0x8ea   : > { %20301 = vmatprep.subr.bf16.mxu1 %v21918_v14 }
 0x8eb   : > { %20124 = vmatpush3.bf16.msra.mxu0 %v21927_v32  ;;  %v17494_v32 = vcombine.low %v13675_v10, %v13675_v10 }
 0x8ec   : > { %20298 = vmatmul.mubr.bf16.vlgmr.msra.gmra.mrb[16].mxu1 %v21917_v39  ;;  %20125 = vmatprep.subr.bf16.mxu0 %v21929_v53  ;;  %v17645_v39 = vcombine.low %v15196_v58, %v15196_v58  ;;  %v21983_v58 = vld [vmem:[#allocation10 + $0x118] sm:$0xff]  }
 0x8ed   : > { %20302 = vmatpush3.bf16.msra.mxu1 %v21918_v14  ;;  %20317 = vmatprep.mubr.bf16.mxu1 %v17623_v27  ;;  %v13713_v18 = vshrl.u32 %v17494_v32, 16  ;;  %v13716_v47 = vshll.u32 %v17494_v32, 16  ;;  %v15195_v14 = vld [vmem:[#allocation2 + $0x28] sm:$0x1f] }
 0x8ee   : > { %20303 = vmatprep.subr.bf16.mxu1 %v21928_v41  ;;  %v15234_v37 = vshrl.u32 %v17645_v39, 16  ;;  %v17644_v45 = vcombine.high %v15195_v14, %v15195_v14  ;;  %v21980_v32 = vld [vmem:[#allocation10 + $0x108] sm:$0xff]  }
 0x8ef   : > { %20126 = vmatpush3.bf16.msra.mxu0 %v21929_v53  ;;  %v13702_v53 = vshll.u32 %v17492_v24, 16  ;;  %v13715_v27 = vrot.slane %v13713_v18, 4 }
 0x8f0   : > { %20127 = vmatprep.subr.bf16.mxu0 %v21931_v44  ;;  %v15236_v13 = vrot.slane %v15234_v37, 4 }
 0x8f1   : > { %20304 = vmatpush3.bf16.msra.mxu1 %v21928_v41  ;;  %v21960_v41 = vld [vmem:[#allocation10 + $0xe0] sm:$0xff]  }
 0x8f2   : > { %20305 = vmatprep.subr.bf16.mxu1 %v21930_v57 }
 0x8f3   : > { %20128 = vmatpush3.bf16.msra.mxu0 %v21931_v44  ;;  %v13718_v44 = vrot.slane %v13716_v47, 5  ;;  %v21982_v47 = vld [vmem:[#allocation10 + $0x110] sm:$0xff]  }
 0x8f4   : > { %20129 = vmatprep.subr.bf16.mxu0 %v21933_v38 }
 0x8f5   : > { %20306 = vmatpush3.bf16.msra.mxu1 %v21930_v57  ;;  %v17643_v57 = vcombine.low %v15195_v14, %v15195_v14  ;;  %v13719_v23 = vor.u32 %v13718_v44, %v13715_v27  ;;  %v23652_v27 = vld [vmem:[#allocation2 + $0x38] sm:$0x1f] }
 0x8f6   : > { %20307 = vmatprep.subr.bf16.mxu1 %v21932_v55  ;;  %v17647_v37 = vcombine.low %v23652_v27, %v23652_v27 }
 0x8f7   : > { %20130 = vmatpush3.bf16.msra.mxu0 %v21933_v38  ;;  %v17495_v38 = vcombine.high %v13675_v10, %v13675_v10  ;;  %v15223_v26 = vshll.u32 %v17643_v57, 16  ;;  %v13720_v4 = vrot.slane %v13719_v23, 4 }
 0x8f8   : > { %20131 = vmatprep.subr.bf16.mxu0 %v21935_v35 }
 0x8f9   : > { %20308 = vmatpush3.bf16.msra.mxu1 %v21932_v55  ;;  %v21963_v55 = vld [vmem:[#allocation10 + $0xf0] sm:$0xff]   ;;  %v13722_v3 = vshll.u32 %v17495_v38, 16  ;;  %v15225_v52 = vrot.slane %v15223_v26, 5 }
 0x8fa   : > { %20309 = vmatprep.subr.bf16.mxu1 %v21934_v19 }
 0x8fb   : > { %20132 = vmatpush3.bf16.msra.mxu0 %v21935_v35  ;;  %v13701_v35 = vrot.slane %v13699_v30, 4  ;;  %v13724_v33 = vrot.slane %v13722_v3, 5  ;;  %v23650_v30 = vld [vmem:[#allocation2 + $0x40] sm:$0x1f] }
 0x8fc   : > { %20133 = vmatprep.subr.bf16.mxu0 %v21937_v54  ;;  %v17649_v38 = vcombine.low %v23650_v30, %v23650_v30 }
 0x8fd   : > { %20310 = vmatpush3.bf16.msra.mxu1 %v21934_v19  ;;  %v13704_v19 = vrot.slane %v13702_v53, 5  ;;  %v13725_v28 = vsel %vm22644_vm5, %v13720_v4, %v13724_v33  ;;  %v21988_v4 = vld [vmem:[#allocation10 + $0x128] sm:$0xff]  }
 0x8fe   : > { %20311 = vmatprep.subr.bf16.mxu1 %v21936_v22  ;;  %v15265_v26 = vshll.u32 %v17649_v38, 16 }
 0x8ff   : > { %20134 = vmatpush3.bf16.msra.mxu0 %v21937_v54  ;;  %v15237_v54 = vshll.u32 %v17645_v39, 16 }
 0x900   : > { %20135 = vmatprep.subr.bf16.mxu0 %v21939_v51  ;;  %v15267_v33 = vrot.slane %v15265_v26, 5  ;;  %v22013_v26 = vld [vmem:[#allocation10 + $0x150] sm:$0xff]  }
 0x901   : > { %20312 = vmatpush3.bf16.msra.mxu1 %v21936_v22  ;;  %v15220_v22 = vshrl.u32 %v17643_v57, 16  ;;  %v15239_v56 = vrot.slane %v15237_v54, 5  ;;  %v21986_v54 = vld [vmem:[#allocation10 + $0x120] sm:$0xff]  }
 0x902   : > { %20313 = vmatprep.subr.bf16.mxu1 %v21938_v1 }
 0x903   : > { %20136 = vmatpush3.bf16.msra.mxu0 %v21939_v51  ;;  %v13705_v51 = vor.u32 %v13704_v19, %v13701_v35  ;;  %v15222_v29 = vrot.slane %v15220_v22, 4  ;;  %v15262_v22 = vshrl.u32 %v17649_v38, 16  ;;  %v22011_v38 = vld [vmem:[#allocation10 + $0x148] sm:$0xff]  }
 0x904   : > { %20141 = vmatprep.subr.bf16.mxu0 %v21945_v61 }
 0x905   : > { %20314 = vmatpush3.bf16.msra.mxu1 %v21938_v1  ;;  %v13708_v1 = vshll.u32 %v17493_v2, 16  ;;  %v13706_v8 = vrot.slane %v13705_v51, 4  ;;  %v21989_v51 = vld [vmem:[#allocation10 + $0x130] sm:$0xff]  }
 0x906   : > { %20315 = vmatprep.subr.bf16.mxu1 %v21940_v9  ;;  %20138 = vmatmul.mubr.bf16.vlgmr.msra.gmra.mrb[16].mxu0 %v17473_v42  ;;  %v15226_v42 = vor.u32 %v15225_v52, %v15222_v29 }
 0x907   : > { %20142 = vmatpush3.bf16.msra.mxu0 %v21945_v61  ;;  %20157 = vmatprep.mubr.bf16.mxu0 %v21951_v31  ;;  %v21968_v61 = vld [vmem:[#allocation10 + $0x100] sm:$0xff]   ;;  %v13710_v59 = vrot.slane %v13708_v1, 5  ;;  %v15229_v31 = vshll.u32 %v17644_v45, 16  ;;  %v15251_v1 = vshll.u32 %v17647_v37, 16  ;;  %v21991_v45 = vld [vmem:[#allocation10 + $0x138] sm:$0xff]  }
 0x908   : > { %20143 = vmatprep.subr.bf16.mxu0 %v21953_v21 }
 0x909   : > { %20316 = vmatpush3.bf16.msra.mxu1 %v21940_v9  ;;  %v15240_v9 = vor.u32 %v15239_v56, %v15236_v13  ;;  %v13711_v49 = vsel %vm22644_vm5, %v13706_v8, %v13710_v59  ;;  %v15248_v56 = vshrl.u32 %v17647_v37, 16  ;;  %v15264_v8 = vrot.slane %v15262_v22, 4  ;;  %v22002_v37 = vld [vmem:[#allocation10 + $0x140] sm:$0xff]  }
 0x90a   : > { %20321 = vmatprep.subr.bf16.mxu1 %v21950_v15 }
 0x90b   : > { %20144 = vmatpush3.bf16.msra.mxu0 %v21953_v21  ;;  %v15243_v21 = vshll.u32 %v17646_v46, 16 }
 0x90c   : > { %20318 = vmatmul.mubr.bf16.vlgmr.msra.gmra.mrb[16].mxu1 %v17624_v63  ;;  %20145 = vmatprep.subr.bf16.mxu0 %v21955_v50  ;;  %v15227_v63 = vrot.slane %v15226_v42, 4  ;;  %v17650_v42 = vcombine.high %v23650_v30, %v23650_v30 }
 0x90d   : > { %20322 = vmatpush3.bf16.msra.mxu1 %v21950_v15  ;;  %20337 = vmatprep.mubr.bf16.mxu1 %v21952_v7  ;;  %v15241_v15 = vrot.slane %v15240_v9, 4  ;;  %v15231_v7 = vrot.slane %v15229_v31, 5  ;;  %v21990_v31 = vld [vmem:[#allocation10 + $0x130] sm:$0xff]  }
 0x90e   : > { %20323 = vmatprep.subr.bf16.mxu1 %v21954_v40 }
 0x90f   : > { %20146 = vmatpush3.bf16.msra.mxu0 %v21955_v50  ;;  %v17500_v50 = vcombine.low %v13711_v49, %v13725_v28  ;;  %v15401_v49 = vld [vmem:[#allocation2 + $0x30] sm:$0x1e] }
 0x910   : > { %20147 = vmatprep.subr.bf16.mxu0 %v21957_v36 }
 0x911   : > { %20324 = vmatpush3.bf16.msra.mxu1 %v21954_v40  ;;  %v15245_v40 = vrot.slane %v15243_v21, 5  ;;  %v15250_v21 = vrot.slane %v15248_v56, 4 }
 0x912   : > { %20325 = vmatprep.subr.bf16.mxu1 %v21956_v0 }
 0x913   : > { %20148 = vmatpush3.bf16.msra.mxu0 %v21957_v36  ;;  %v15246_v10 = vsel %vm22644_vm5, %v15241_v15, %v15245_v40  ;;  %v21981_v36 = vld [vmem:[#allocation10 + $0x110] sm:$0xff]   ;;  %v15268_v40 = vor.u32 %v15267_v33, %v15264_v8 }
 0x914   : > { %20149 = vmatprep.subr.bf16.mxu0 %v21959_v20  ;;  %v22021_v8 = vld [vmem:[#allocation10 + $0x170] sm:$0xff]  }
 0x915   : > { %20326 = vmatpush3.bf16.msra.mxu1 %v21956_v0  ;;  %v15232_v0 = vsel %vm22644_vm5, %v15227_v63, %v15231_v7  ;;  %v17648_v63 = vcombine.high %v23652_v27, %v23652_v27  ;;  %v15400_v7 = vld [vmem:[#allocation2 + $0x28] sm:$0x1e]  ;;  %v13882_v33 = vld [vmem:[#allocation2 + $0x18] sm:$0x1e] }
 0x916   : > { %20327 = vmatprep.subr.bf16.mxu1 %v21958_v43  ;;  %v17651_v24 = vcombine.low %v15232_v0, %v15246_v10  ;;  %v21997_v10 = vld [vmem:[#allocation10 + $0x140] sm:$0xff]   ;;  %v17663_v0 = vcombine.low %v15401_v49, %v15401_v49 }
 0x917   : > { %20150 = vmatpush3.bf16.msra.mxu0 %v21959_v20  ;;  %v13677_v20 = vld [vmem:[#allocation2 + $0x20] sm:$0x1f] }
 0x918   : > { %20151 = vmatprep.subr.bf16.mxu0 %v21961_v60  ;;  %v17498_v18 = vcombine.low %v13677_v20, %v13677_v20  ;;  %v17499_v2 = vcombine.high %v13677_v20, %v13677_v20 }
 0x919   : > { %20328 = vmatpush3.bf16.msra.mxu1 %v21958_v43  ;;  %v13676_v43 = vld [vmem:[#allocation2 + $0x18] sm:$0x1f] }
 0x91a   : > { %20329 = vmatprep.subr.bf16.mxu1 %v21960_v41  ;;  %v17496_v14 = vcombine.low %v13676_v43, %v13676_v43  ;;  %v13741_v53 = vshrl.u32 %v17498_v18, 16  ;;  %v13744_v39 = vshll.u32 %v17498_v18, 16  ;;  %v17497_v3 = vcombine.high %v13676_v43, %v13676_v43  ;;  %v21992_v18 = vld [vmem:[#allocation10 + $0x138] sm:$0xff]  }
 0x91b   : > { %20152 = vmatpush3.bf16.msra.mxu0 %v21961_v60  ;;  %v21985_v60 = vld [vmem:[#allocation10 + $0x120] sm:$0xff]   ;;  %v15271_v43 = vshll.u32 %v17650_v42, 16  ;;  %v22023_v42 = vld [vmem:[#allocation10 + $0x178] sm:$0xff]  }
 0x91c   : > { %20153 = vmatprep.subr.bf16.mxu0 %v21963_v55  ;;  %v13727_v44 = vshrl.u32 %v17496_v14, 16  ;;  %v13730_v57 = vshll.u32 %v17496_v14, 16  ;;  %v13743_v35 = vrot.slane %v13741_v53, 4  ;;  %v13746_v19 = vrot.slane %v13744_v39, 5 }
 0x91d   : > { %20330 = vmatpush3.bf16.msra.mxu1 %v21960_v41  ;;  %v21984_v41 = vld [vmem:[#allocation10 + $0x118] sm:$0xff]   ;;  %v13736_v9 = vshll.u32 %v17497_v3, 16  ;;  %v17661_v14 = vcombine.low %v15400_v7, %v15400_v7  ;;  %v15257_v53 = vshll.u32 %v17648_v63, 16  ;;  %v15269_v39 = vrot.slane %v15268_v40, 4  ;;  %v22029_v40 = vld [vmem:[#allocation10 + $0x180] sm:$0xff]  }
 0x91e   : > { %20331 = vmatprep.subr.bf16.mxu1 %v21962_v17  ;;  %v13732_v23 = vrot.slane %v13730_v57, 5  ;;  %v13747_v13 = vor.u32 %v13746_v19, %v13743_v35  ;;  %v15273_v35 = vrot.slane %v15271_v43, 5 }
 0x91f   : > { %20154 = vmatpush3.bf16.msra.mxu0 %v21963_v55  ;;  %v21987_v55 = vld [vmem:[#allocation10 + $0x128] sm:$0xff]   ;;  %v13738_v20 = vrot.slane %v13736_v9, 5 }
 0x920   : > { %20155 = vmatprep.subr.bf16.mxu0 %v21965_v6  ;;  %v13748_v28 = vrot.slane %v13747_v13, 4  ;;  %v22012_v13 = vld [vmem:[#allocation10 + $0x148] sm:$0xff]  }
 0x921   : > { %20332 = vmatpush3.bf16.msra.mxu1 %v21962_v17  ;;  %v13729_v17 = vrot.slane %v13727_v44, 4  ;;  %v17670_v44 = vrot.slane %v17663_v0, 9 }
 0x922   : > { %20333 = vmatprep.subr.bf16.mxu1 %v21964_v5 }
 0x923   : > { %20156 = vmatpush3.bf16.msra.mxu0 %v21965_v6  ;;  %v13881_v6 = vld [vmem:[#allocation2 + $0x10] sm:$0x1e]  ;;  %v13733_v52 = vor.u32 %v13732_v23, %v13729_v17  ;;  %v15259_v17 = vrot.slane %v15257_v53, 5  ;;  %v15274_v23 = vsel %vm22644_vm5, %v15269_v39, %v15273_v35 }
 0x924   : > { %20161 = vmatprep.subr.bf16.mxu0 %v21968_v61  ;;  %v17512_v46 = vcombine.low %v13881_v6, %v13881_v6  ;;  %v17513_v29 = vcombine.high %v13881_v6, %v13881_v6 }
 0x925   : > { %20334 = vmatpush3.bf16.msra.mxu1 %v21964_v5  ;;  %v13880_v5 = vld [vmem:[#allocation2 + $0x8] sm:$0x1e] }
 0x926   : > { %20335 = vmatprep.subr.bf16.mxu1 %v21966_v48  ;;  %20158 = vmatmul.mubr.bf16.vlgmr.msra.gmra.mrb[16].mxu0 %v21967_v11  ;;  %v17511_v59 = vcombine.high %v13880_v5, %v13880_v5  ;;  %v15253_v11 = vrot.slane %v15251_v1, 5  ;;  %v17519_v15 = vrot.slane %v17512_v46, 9  ;;  %v22015_v1 = vld [vmem:[#allocation10 + $0x158] sm:$0xff]  }
 0x927   : > { %20162 = vmatpush3.bf16.msra.mxu0 %v21968_v61  ;;  %20177 = vmatprep.mubr.bf16.mxu0 %v17500_v50  ;;  %v13750_v61 = vshll.u32 %v17499_v2, 16  ;;  %v13734_v50 = vrot.slane %v13733_v52, 4  ;;  %v22016_v46 = vld [vmem:[#allocation10 + $0x158] sm:$0xff]   ;;  %v22018_v52 = vld [vmem:[#allocation10 + $0x160] sm:$0xff]  }
 0x928   : > { %20163 = vmatprep.subr.bf16.mxu0 %v21979_v16 }
 0x929   : > { %20336 = vmatpush3.bf16.msra.mxu1 %v21966_v48  ;;  %v17510_v48 = vcombine.low %v13880_v5, %v13880_v5  ;;  %v13739_v30 = vsel %vm22644_vm5, %v13734_v50, %v13738_v20  ;;  %v22014_v5 = vld [vmem:[#allocation10 + $0x150] sm:$0xff]  }
 0x92a   : > { %20341 = vmatprep.subr.bf16.mxu1 %v21970_v34 }
 0x92b   : > { %20164 = vmatpush3.bf16.msra.mxu0 %v21979_v16  ;;  %v13910_v16 = vrot.slane %v17513_v29, 5  ;;  %v22019_v29 = vld [vmem:[#allocation10 + $0x168] sm:$0xff]  }
 0x92c   : > { %20338 = vmatmul.mubr.bf16.vlgmr.msra.gmra.mrb[16].mxu1 %v21969_v62  ;;  %20165 = vmatprep.subr.bf16.mxu0 %v21981_v36  ;;  %v13906_v62 = vrot.slane %v17511_v59, 5  ;;  %v17514_v59 = vcombine.low %v13882_v33, %v13882_v33 }
 0x92d   : > { %20342 = vmatpush3.bf16.msra.mxu1 %v21970_v34  ;;  %20357 = vmatprep.mubr.bf16.mxu1 %v17651_v24  ;;  %v13752_v34 = vrot.slane %v13750_v61, 5  ;;  %v13883_v61 = vld [vmem:[#allocation2 + $0x20] sm:$0x1e] }
 0x92e   : > { %20343 = vmatprep.subr.bf16.mxu1 %v21980_v32  ;;  %v17517_v9 = vcombine.high %v13883_v61, %v13883_v61 }
 0x92f   : > { %20166 = vmatpush3.bf16.msra.mxu0 %v21981_v36  ;;  %v17518_v36 = vrot.slane %v17510_v48, 9  ;;  %v13753_v24 = vsel %vm22644_vm5, %v13748_v28, %v13752_v34  ;;  %v22020_v48 = vld [vmem:[#allocation10 + $0x168] sm:$0xff]   ;;  %v17515_v28 = vcombine.high %v13882_v33, %v13882_v33 }
 0x930   : > { %20167 = vmatprep.subr.bf16.mxu0 %v21983_v58 }
 0x931   : > { %20344 = vmatpush3.bf16.msra.mxu1 %v21980_v32  ;;  %v17664_v32 = vcombine.high %v15401_v49, %v15401_v49  ;;  %v13907_v27 = vsel %vm22668_vm8, %v17518_v36, %v13906_v62  ;;  %v13918_v49 = vrot.slane %v17517_v9, 5  ;;  %v13914_v50 = vrot.slane %v17515_v28, 5  ;;  %v22024_v62 = vld [vmem:[#allocation10 + $0x178] sm:$0xff]  }
 0x932   : > { %20345 = vmatprep.subr.bf16.mxu1 %v21982_v47  ;;  %v22049_v28 = vld [vmem:[#allocation10 + $0x1b8] sm:$0xff]  }
 0x933   : > { %20168 = vmatpush3.bf16.msra.mxu0 %v21983_v58  ;;  %v15254_v58 = vor.u32 %v15253_v11, %v15250_v21  ;;  %v15430_v57 = vrot.slane %v17664_v32, 5  ;;  %v15403_v21 = vld [vmem:[#allocation2 + $0x40] sm:$0x1e] }
 0x934   : > { %20169 = vmatprep.subr.bf16.mxu0 %v21985_v60  ;;  %v17667_v34 = vcombine.low %v15403_v21, %v15403_v21  ;;  %v17668_v63 = vcombine.high %v15403_v21, %v15403_v21 }
 0x935   : > { %20346 = vmatpush3.bf16.msra.mxu1 %v21982_v47  ;;  %v13911_v47 = vsel %vm22668_vm8, %v17519_v15, %v13910_v16  ;;  %v15431_v22 = vsel %vm22668_vm8, %v17670_v44, %v15430_v57  ;;  %v15402_v15 = vld [vmem:[#allocation2 + $0x38] sm:$0x1e]  ;;  %v17520_v16 = vrot.slane %v17514_v59, 9  ;;  %v14180_v44 = vld [vmem:[#allocation2 + $0x10] sm:$0x1f] }
 0x936   : > { %20347 = vmatprep.subr.bf16.mxu1 %v21984_v41  ;;  %v17522_v19 = vcombine.low %v13907_v27, %v13911_v47  ;;  %v17666_v36 = vcombine.high %v15402_v15, %v15402_v15  ;;  %v17672_v32 = vrot.slane %v17667_v34, 9  ;;  %v15438_v20 = vrot.slane %v17668_v63, 5  ;;  %v22035_v47 = vld [vmem:[#allocation2 + $0x10] ss:$8 sps:$4 sm:$0xff]   ;;  %v22041_v57 = vld [vmem:[#allocation10 + $0x198] sm:$0xff]  }
 0x937   : > { %20170 = vmatpush3.bf16.msra.mxu0 %v21985_v60  ;;  %v17662_v60 = vcombine.high %v15400_v7, %v15400_v7  ;;  %v13915_v0 = vsel %vm22668_vm8, %v17520_v16, %v13914_v50  ;;  %v22036_v27 = vld [vmem:[#allocation2 + $0x30] ss:$8 sps:$4 sm:$0xff]   ;;  %v17542_v35 = vcombine.low %v14180_v44, %v14180_v44 }
 0x938   : > { %20171 = vmatprep.subr.bf16.mxu0 %v21987_v55 }
 0x939   : > { %20348 = vmatpush3.bf16.msra.mxu1 %v21984_v41  ;;  %v17501_v41 = vcombine.low %v13739_v30, %v13753_v24  ;;  %v15426_v2 = vrot.slane %v17662_v60, 5  ;;  %v15439_v60 = vsel %vm22668_vm8, %v17672_v32, %v15438_v20  ;;  %v22039_v30 = vld [vmem:[#allocation10 + $0x190] sm:$0xff]  }
 0x93a   : > { %20349 = vmatprep.subr.bf16.mxu1 %v21986_v54 }
 0x93b   : > { %20172 = vmatpush3.bf16.msra.mxu0 %v21987_v55  ;;  %v15255_v55 = vrot.slane %v15254_v58, 4  ;;  %v22037_v58 = vld [vmem:[#allocation10 + $0x188] sm:$0xff]  }
 0x93c   : > { %20173 = vmatprep.subr.bf16.mxu0 %v21989_v51 }
 0x93d   : > { %20350 = vmatpush3.bf16.msra.mxu1 %v21986_v54  ;;  %v17669_v54 = vrot.slane %v17661_v14, 9  ;;  %v15260_v6 = vsel %vm22644_vm5, %v15255_v55, %v15259_v17  ;;  %v22034_v14 = vld [vmem:[#allocation10 + $0x180] sm:$0xff]   ;;  %v22040_v55 = vld [vmem:[#allocation10 + $0x190] sm:$0xff]   ;;  %v14205_v17 = vshrl.u32 %v17542_v35, 16 }
 0x93e   : > { %20351 = vmatprep.subr.bf16.mxu1 %v21988_v4 }
 0x93f   : > { %20174 = vmatpush3.bf16.msra.mxu0 %v21989_v51  ;;  %v17652_v51 = vcombine.low %v15260_v6, %v15274_v23  ;;  %v15427_v3 = vsel %vm22668_vm8, %v17669_v54, %v15426_v2  ;;  %v15698_v54 = vld [vmem:[#allocation2 + $0x30] sm:$0x1f]  ;;  %v22042_v2 = vld [vmem:[#allocation10 + $0x198] sm:$0xff]   ;;  %v14208_v23 = vshll.u32 %v17542_v35, 16 }
 0x940   : > { %20175 = vmatprep.subr.bf16.mxu0 %v21991_v45  ;;  %v17673_v56 = vcombine.low %v15427_v3, %v15431_v22  ;;  %v15699_v22 = vld [vmem:[#allocation2 + $0x38] sm:$0x1f]  ;;  %v17693_v3 = vcombine.low %v15698_v54, %v15698_v54  ;;  %v17694_v50 = vcombine.high %v15698_v54, %v15698_v54  ;;  %v22064_v35 = vld [vmem:[#allocation10 + $0x1c8] sm:$0xff]  }
 0x941   : > { %20352 = vmatpush3.bf16.msra.mxu1 %v21988_v4  ;;  %v22017_v4 = vld [vmem:[#allocation10 + $0x160] sm:$0xff]  }
 0x942   : > { %20353 = vmatprep.subr.bf16.mxu1 %v21990_v31 }
 0x943   : > { %20176 = vmatpush3.bf16.msra.mxu0 %v21991_v45  ;;  %v17516_v45 = vcombine.low %v13883_v61, %v13883_v61  ;;  %v15723_v61 = vshrl.u32 %v17693_v3, 16 }
 0x944   : > { %20181 = vmatprep.subr.bf16.mxu0 %v21997_v10 }
 0x945   : > { %20354 = vmatpush3.bf16.msra.mxu1 %v21990_v31  ;;  %v17521_v11 = vrot.slane %v17516_v45, 9  ;;  %v22022_v31 = vld [vmem:[#allocation10 + $0x170] sm:$0xff]   ;;  %v22046_v45 = vld [vmem:[#allocation10 + $0x1a8] sm:$0xff]  }
 0x946   : > { %20355 = vmatprep.subr.bf16.mxu1 %v21992_v18  ;;  %20178 = vmatmul.mubr.bf16.vlgmr.msra.gmra.mrb[16].mxu0 %v17501_v41  ;;  %v22038_v41 = vld [vmem:[#allocation10 + $0x188] sm:$0xff]  }
 0x947   : > { %20182 = vmatpush3.bf16.msra.mxu0 %v21997_v10  ;;  %20197 = vmatprep.mubr.bf16.mxu0 %v17522_v19  ;;  %v13919_v7 = vsel %vm22668_vm8, %v17521_v11, %v13918_v49  ;;  %v17665_v10 = vcombine.low %v15402_v15, %v15402_v15  ;;  %v22043_v19 = vld [vmem:[#allocation10 + $0x1a0] sm:$0xff]   ;;  %v15725_v11 = vrot.slane %v15723_v61, 4  ;;  %v22048_v15 = vld [vmem:[#allocation10 + $0x1b0] sm:$0xff]  }
 0x948   : > { %20183 = vmatprep.subr.bf16.mxu0 %v22011_v38  ;;  %v17523_v24 = vcombine.low %v13915_v0, %v13919_v7  ;;  %v22050_v0 = vld [vmem:[#allocation10 + $0x1b8] sm:$0xff]  }
 0x949   : > { %20356 = vmatpush3.bf16.msra.mxu1 %v21992_v18  ;;  %v17671_v43 = vrot.slane %v17665_v10, 9  ;;  %v15434_v18 = vrot.slane %v17666_v36, 5  ;;  %v17696_v36 = vcombine.high %v15699_v22, %v15699_v22 }
 0x94a   : > { %20361 = vmatprep.subr.bf16.mxu1 %v22002_v37 }
 0x94b   : > { %20184 = vmatpush3.bf16.msra.mxu0 %v22011_v38  ;;  %v15435_v53 = vsel %vm22668_vm8, %v17671_v43, %v15434_v18  ;;  %v14181_v38 = vld [vmem:[#allocation2 + $0x18] sm:$0x1f]  ;;  %v22051_v43 = vld [vmem:[#allocation2 + $0x20] ss:$8 sps:$4 sm:$0xff]  }
 0x94c   : > { %20358 = vmatmul.mubr.bf16.vlgmr.msra.gmra.mrb[16].mxu1 %v17652_v51  ;;  %20185 = vmatprep.subr.bf16.mxu0 %v22013_v26  ;;  %v17674_v39 = vcombine.low %v15435_v53, %v15439_v60  ;;  %v17545_v33 = vcombine.high %v14181_v38, %v14181_v38  ;;  %v22063_v60 = vld [vmem:[#allocation10 + $0x1c8] sm:$0xff]   ;;  %v22054_v53 = vld [vmem:[#allocation10 + $0x1c0] sm:$0xff]  }
 0x94d   : > { %20362 = vmatpush3.bf16.msra.mxu1 %v22002_v37  ;;  %20377 = vmatprep.mubr.bf16.mxu1 %v17673_v56  ;;  %v17544_v37 = vcombine.low %v14181_v38, %v14181_v38  ;;  %v14207_v56 = vrot.slane %v14205_v17, 4  ;;  %v22053_v38 = vld [vmem:[#allocation2 + $0x40] ss:$8 sps:$4 sm:$0xff]  }
 0x94e   : > { %20363 = vmatprep.subr.bf16.mxu1 %v22012_v13 }
 0x94f   : > { %20186 = vmatpush3.bf16.msra.mxu0 %v22013_v26  ;;  %v22045_v26 = vld [vmem:[#allocation10 + $0x1a8] sm:$0xff]   ;;  %v14219_v6 = vshrl.u32 %v17544_v37, 16  ;;  %v14222_v51 = vshll.u32 %v17544_v37, 16 }
 0x950   : > { %20187 = vmatprep.subr.bf16.mxu0 %v22015_v1  ;;  %v14183_v37 = vld [vmem:[#allocation2 + $0x28] sm:$0x1f] }
 0x951   : > { %20364 = vmatpush3.bf16.msra.mxu1 %v22012_v13  ;;  %v22044_v13 = vld [vmem:[#allocation10 + $0x1a0] sm:$0xff]  }
 0x952   : > { %20365 = vmatprep.subr.bf16.mxu1 %v22014_v5 }
 0x953   : > { %20188 = vmatpush3.bf16.msra.mxu0 %v22015_v1  ;;  %v14210_v1 = vrot.slane %v14208_v23, 5  ;;  %v17548_v23 = vcombine.low %v14183_v37, %v14183_v37 }
 0x954   : > { %20189 = vmatprep.subr.bf16.mxu0 %v22017_v4 }
 0x955   : > { %20366 = vmatpush3.bf16.msra.mxu1 %v22014_v5  ;;  %v17695_v5 = vcombine.low %v15699_v22, %v15699_v22  ;;  %v14211_v9 = vor.u32 %v14210_v1, %v14207_v56  ;;  %v22066_v22 = vld [vmem:[#allocation10 + $0x1d0] sm:$0xff]   ;;  %v14247_v56 = vshrl.u32 %v17548_v23, 16  ;;  %v14250_v1 = vshll.u32 %v17548_v23, 16 }
 0x956   : > { %20367 = vmatprep.subr.bf16.mxu1 %v22016_v46 }
 0x957   : > { %20190 = vmatpush3.bf16.msra.mxu0 %v22017_v4  ;;  %v17543_v4 = vcombine.high %v14180_v44, %v14180_v44  ;;  %v15740_v59 = vshll.u32 %v17695_v5, 16  ;;  %v14212_v16 = vrot.slane %v14211_v9, 4 }
 0x958   : > { %20191 = vmatprep.subr.bf16.mxu0 %v22019_v29 }
 0x959   : > { %20368 = vmatpush3.bf16.msra.mxu1 %v22016_v46  ;;  %v22047_v46 = vld [vmem:[#allocation10 + $0x1b0] sm:$0xff]   ;;  %v15742_v63 = vrot.slane %v15740_v59, 5 }
 0x95a   : > { %20369 = vmatprep.subr.bf16.mxu1 %v22018_v52 }
 0x95b   : > { %20192 = vmatpush3.bf16.msra.mxu0 %v22019_v29  ;;  %v14221_v29 = vrot.slane %v14219_v6, 4  ;;  %v22069_v6 = vld [vmem:[#allocation10 + $0x1e0] sm:$0xff]  }
 0x95c   : > { %20193 = vmatprep.subr.bf16.mxu0 %v22021_v8 }
 0x95d   : > { %20370 = vmatpush3.bf16.msra.mxu1 %v22018_v52  ;;  %v14224_v52 = vrot.slane %v14222_v51, 5  ;;  %v23696_v51 = vld [vmem:[#allocation2 + $0x40] sm:$0x1f] }
 0x95e   : > { %20371 = vmatprep.subr.bf16.mxu1 %v22020_v48 }
 0x95f   : > { %20194 = vmatpush3.bf16.msra.mxu0 %v22021_v8  ;;  %v15726_v8 = vshll.u32 %v17693_v3, 16  ;;  %v14225_v21 = vor.u32 %v14224_v52, %v14221_v29  ;;  %v22071_v29 = vld [vmem:[#allocation10 + $0x1e8] sm:$0xff]  }
 0x960   : > { %20195 = vmatprep.subr.bf16.mxu0 %v22023_v42 }
 0x961   : > { %20372 = vmatpush3.bf16.msra.mxu1 %v22020_v48  ;;  %v15737_v48 = vshrl.u32 %v17695_v5, 16  ;;  %v15728_v49 = vrot.slane %v15726_v8, 5  ;;  %v14226_v10 = vrot.slane %v14225_v21, 4  ;;  %v22068_v5 = vld [vmem:[#allocation10 + $0x1d8] sm:$0xff]   ;;  %v14249_v8 = vrot.slane %v14247_v56, 4 }
 0x962   : > { %20373 = vmatprep.subr.bf16.mxu1 %v22022_v31 }
 0x963   : > { %20196 = vmatpush3.bf16.msra.mxu0 %v22023_v42  ;;  %v14214_v42 = vshll.u32 %v17543_v4, 16  ;;  %v15739_v34 = vrot.slane %v15737_v48, 4 }
 0x964   : > { %20201 = vmatprep.subr.bf16.mxu0 %v22029_v40 }
 0x965   : > { %20374 = vmatpush3.bf16.msra.mxu1 %v22022_v31  ;;  %v14228_v31 = vshll.u32 %v17545_v33, 16  ;;  %v14216_v7 = vrot.slane %v14214_v42, 5  ;;  %v14252_v33 = vrot.slane %v14250_v1, 5 }
 0x966   : > { %20375 = vmatprep.subr.bf16.mxu1 %v22024_v62  ;;  %20198 = vmatmul.mubr.bf16.vlgmr.msra.gmra.mrb[16].mxu0 %v17523_v24  ;;  %v15732_v24 = vshll.u32 %v17694_v50, 16  ;;  %v14387_v50 = vld [vmem:[#allocation2 + $0x18] sm:$0x1e] }
 0x967   : > { %20202 = vmatpush3.bf16.msra.mxu0 %v22029_v40  ;;  %20217 = vmatprep.mubr.bf16.mxu0 %v22035_v47  ;;  %v22052_v40 = vld [vmem:[#allocation10 + $0x1c0] sm:$0xff]   ;;  %v14217_v32 = vsel %vm22644_vm5, %v14212_v16, %v14216_v7  ;;  %v14230_v20 = vrot.slane %v14228_v31, 5 }
 0x968   : > { %20203 = vmatprep.subr.bf16.mxu0 %v22037_v58 }
 0x969   : > { %20376 = vmatpush3.bf16.msra.mxu1 %v22024_v62  ;;  %v15729_v62 = vor.u32 %v15728_v49, %v15725_v11  ;;  %v14231_v18 = vsel %vm22644_vm5, %v14226_v10, %v14230_v20  ;;  %v14386_v11 = vld [vmem:[#allocation2 + $0x10] sm:$0x1e]  ;;  %v22075_v20 = vld [vmem:[#allocation10 + $0x1f8] sm:$0xff]  }
 0x96a   : > { %20381 = vmatprep.subr.bf16.mxu1 %v22034_v14  ;;  %v22073_v49 = vld [vmem:[#allocation10 + $0x1f0] sm:$0xff]   ;;  %v17560_v7 = vcombine.low %v14386_v11, %v14386_v11  ;;  %v17561_v10 = vcombine.high %v14386_v11, %v14386_v11  ;;  %v22096_v11 = vld [vmem:[#allocation10 + $0x208] sm:$0xff]  }
 0x96b   : > { %20204 = vmatpush3.bf16.msra.mxu0 %v22037_v58  ;;  %v15743_v58 = vor.u32 %v15742_v63, %v15739_v34  ;;  %v15730_v47 = vrot.slane %v15729_v62, 4  ;;  %v22072_v34 = vld [vmem:[#allocation10 + $0x1e8] sm:$0xff]  }
 0x96c   : > { %20378 = vmatmul.mubr.bf16.vlgmr.msra.gmra.mrb[16].mxu1 %v17674_v39  ;;  %20205 = vmatprep.subr.bf16.mxu0 %v22039_v30  ;;  %v15734_v39 = vrot.slane %v15732_v24, 5  ;;  %v17562_v24 = vcombine.low %v14387_v50, %v14387_v50 }
 0x96d   : > { %20382 = vmatpush3.bf16.msra.mxu1 %v22034_v14  ;;  %20397 = vmatprep.mubr.bf16.mxu1 %v22036_v27  ;;  %v15746_v14 = vshll.u32 %v17696_v36, 16 }
 0x96e   : > { %20383 = vmatprep.subr.bf16.mxu1 %v22038_v41  ;;  %v15735_v27 = vsel %vm22644_vm5, %v15730_v47, %v15734_v39  ;;  %v17698_v47 = vcombine.high %v23696_v51, %v23696_v51  ;;  %v14412_v39 = vrot.slane %v17561_v10, 5 }
 0x96f   : > { %20206 = vmatpush3.bf16.msra.mxu0 %v22039_v30  ;;  %v17550_v30 = vcombine.low %v14217_v32, %v14231_v18  ;;  %v15748_v44 = vrot.slane %v15746_v14, 5  ;;  %v15903_v14 = vld [vmem:[#allocation2 + $0x30] sm:$0x1e] }
 0x970   : > { %20207 = vmatprep.subr.bf16.mxu0 %v22041_v57  ;;  %v15760_v23 = vshll.u32 %v17698_v47, 16 }
 0x971   : > { %20384 = vmatpush3.bf16.msra.mxu1 %v22038_v41  ;;  %v15744_v41 = vrot.slane %v15743_v58, 4  ;;  %v17563_v58 = vcombine.high %v14387_v50, %v14387_v50  ;;  %v22103_v50 = vld [vmem:[#allocation10 + $0x228] sm:$0xff]  }
 0x972   : > { %20385 = vmatprep.subr.bf16.mxu1 %v22040_v55 }
 0x973   : > { %20208 = vmatpush3.bf16.msra.mxu0 %v22041_v57  ;;  %v22065_v57 = vld [vmem:[#allocation10 + $0x1d0] sm:$0xff]  }
 0x974   : > { %20209 = vmatprep.subr.bf16.mxu0 %v22043_v19 }
 0x975   : > { %20386 = vmatpush3.bf16.msra.mxu1 %v22040_v55  ;;  %v15749_v55 = vsel %vm22644_vm5, %v15744_v41, %v15748_v44 }
 0x976   : > { %20387 = vmatprep.subr.bf16.mxu1 %v22042_v2  ;;  %v17701_v54 = vcombine.low %v15735_v27, %v15749_v55  ;;  %v22081_v55 = vld [vmem:[#allocation10 + $0x200] sm:$0xff]  }
 0x977   : > { %20210 = vmatpush3.bf16.msra.mxu0 %v22043_v19  ;;  %v14182_v19 = vld [vmem:[#allocation2 + $0x20] sm:$0x1f] }
 0x978   : > { %20211 = vmatprep.subr.bf16.mxu0 %v22045_v26  ;;  %v17546_v17 = vcombine.low %v14182_v19, %v14182_v19  ;;  %v17547_v59 = vcombine.high %v14182_v19, %v14182_v19  ;;  %v14416_v19 = vrot.slane %v17563_v58, 5  ;;  %v15906_v58 = vld [vmem:[#allocation2 + $0x48] sm:$0x1e] }
 0x979   : > { %20388 = vmatpush3.bf16.msra.mxu1 %v22042_v2  ;;  %v22067_v2 = vld [vmem:[#allocation10 + $0x1d8] sm:$0xff]  }
 0x97a   : > { %20389 = vmatprep.subr.bf16.mxu1 %v22044_v13  ;;  %v14233_v3 = vshrl.u32 %v17546_v17, 16  ;;  %v14242_v36 = vshll.u32 %v17547_v59, 16 }
 0x97b   : > { %20212 = vmatpush3.bf16.msra.mxu0 %v22045_v26  ;;  %v23694_v26 = vld [vmem:[#allocation2 + $0x48] sm:$0x1f] }
 0x97c   : > { %20213 = vmatprep.subr.bf16.mxu0 %v22047_v46  ;;  %v17699_v4 = vcombine.low %v23694_v26, %v23694_v26  ;;  %v14235_v52 = vrot.slane %v14233_v3, 4  ;;  %v17700_v16 = vcombine.high %v23694_v26, %v23694_v26  ;;  %v14244_v41 = vrot.slane %v14242_v36, 5 }
 0x97d   : > { %20390 = vmatpush3.bf16.msra.mxu1 %v22044_v13  ;;  %v14236_v13 = vshll.u32 %v17546_v17, 16 }
 0x97e   : > { %20391 = vmatprep.subr.bf16.mxu1 %v22046_v45  ;;  %v15765_v9 = vshrl.u32 %v17699_v4, 16  ;;  %v15768_v48 = vshll.u32 %v17699_v4, 16 }
 0x97f   : > { %20214 = vmatpush3.bf16.msra.mxu0 %v22047_v46  ;;  %v17697_v46 = vcombine.low %v23696_v51, %v23696_v51  ;;  %v14238_v61 = vrot.slane %v14236_v13, 5 }
 0x980   : > { %20215 = vmatprep.subr.bf16.mxu0 %v22049_v28  ;;  %v15767_v63 = vrot.slane %v15765_v9, 4 }
 0x981   : > { %20392 = vmatpush3.bf16.msra.mxu1 %v22046_v45  ;;  %v22070_v45 = vld [vmem:[#allocation10 + $0x1e0] sm:$0xff]   ;;  %v15751_v42 = vshrl.u32 %v17697_v46, 16  ;;  %v15754_v21 = vshll.u32 %v17697_v46, 16  ;;  %v14239_v31 = vor.u32 %v14238_v61, %v14235_v52  ;;  %v15762_v52 = vrot.slane %v15760_v23, 5 }
 0x982   : > { %20393 = vmatprep.subr.bf16.mxu1 %v22048_v15  ;;  %v17582_v23 = vld [vmem:[#allocation12] ss:$0 sm:$0xff] }
 0x983   : > { %20216 = vmatpush3.bf16.msra.mxu0 %v22049_v28  ;;  %v17549_v28 = vcombine.high %v14183_v37, %v14183_v37  ;;  %v15756_v32 = vrot.slane %v15754_v21, 5  ;;  %v17711_v37 = vcombine.low %v15903_v14, %v15903_v14 }
 0x984   : > { %20221 = vmatprep.subr.bf16.mxu0 %v22052_v40 }
 0x985   : > { %20394 = vmatpush3.bf16.msra.mxu1 %v22048_v15  ;;  %v14253_v15 = vor.u32 %v14252_v33, %v14249_v8  ;;  %v14256_v62 = vshll.u32 %v17549_v28, 16  ;;  %v17719_v4 = vrot.slane %v17711_v37, 9  ;;  %v22086_v8 = vld [vmem:[#allocation10 + $0x200] sm:$0xff]   ;;  %v22097_v28 = vld [vmem:[#allocation10 + $0x210] sm:$0xff]  }
 0x986   : > { %20395 = vmatprep.subr.bf16.mxu1 %v22050_v0  ;;  %20218 = vmatmul.mubr.bf16.vlgmr.msra.gmra.mrb[16].mxu0 %v22051_v43  ;;  %v14240_v43 = vrot.slane %v14239_v31, 4  ;;  %v22098_v31 = vld [vmem:[#allocation10 + $0x210] sm:$0xff]  }
 0x987   : > { %20222 = vmatpush3.bf16.msra.mxu0 %v22052_v40  ;;  %20237 = vmatprep.mubr.bf16.mxu0 %v17550_v30  ;;  %v15770_v40 = vrot.slane %v15768_v48, 5  ;;  %v14254_v18 = vrot.slane %v14253_v15, 4  ;;  %v14258_v27 = vrot.slane %v14256_v62, 5  ;;  %v22101_v15 = vld [vmem:[#allocation10 + $0x220] sm:$0xff]  }
 0x988   : > { %20223 = vmatprep.subr.bf16.mxu0 %v22063_v60 }
 0x989   : > { %20396 = vmatpush3.bf16.msra.mxu1 %v22050_v0  ;;  %v15753_v0 = vrot.slane %v15751_v42, 4  ;;  %v15771_v30 = vor.u32 %v15770_v40, %v15767_v63  ;;  %v14259_v17 = vsel %vm22644_vm5, %v14254_v18, %v14258_v27  ;;  %v14388_v63 = vld [vmem:[#allocation2 + $0x20] sm:$0x1e]  ;;  %v14389_v40 = vld [vmem:[#allocation2 + $0x28] sm:$0x1e] }
 0x98a   : > { %20401 = vmatprep.subr.bf16.mxu1 %v22054_v53  ;;  %v17564_v10 = vcombine.low %v14388_v63, %v14388_v63  ;;  %v17565_v36 = vcombine.high %v14388_v63, %v14388_v63  ;;  %v17566_v62 = vcombine.low %v14389_v40, %v14389_v40 }
 0x98b   : > { %20224 = vmatpush3.bf16.msra.mxu0 %v22063_v60  ;;  %v22074_v60 = vld [vmem:[#allocation10 + $0x1f0] sm:$0xff]   ;;  %v15757_v44 = vor.u32 %v15756_v32, %v15753_v0  ;;  %v15772_v13 = vrot.slane %v15771_v30, 4  ;;  %v17567_v0 = vcombine.high %v14389_v40, %v14389_v40  ;;  %v22104_v32 = vld [vmem:[#allocation10 + $0x228] sm:$0xff]  }
 0x98c   : > { %20398 = vmatmul.mubr.bf16.vlgmr.msra.gmra.mrb[16].mxu1 %v22053_v38  ;;  %20225 = vmatprep.subr.bf16.mxu0 %v22065_v57  ;;  %v15904_v38 = vld [vmem:[#allocation2 + $0x38] sm:$0x1e]  ;;  %v14420_v18 = vrot.slane %v17565_v36, 5  ;;  %v17571_v47 = vrot.slane %v17566_v62, 9 }
 0x98d   : > { %20402 = vmatpush3.bf16.msra.mxu1 %v22054_v53  ;;  %20417 = vmatprep.mubr.bf16.mxu1 %v17701_v54  ;;  %v17568_v53 = vrot.slane %v17560_v7, 9  ;;  %v17712_v54 = vcombine.high %v15903_v14, %v15903_v14  ;;  %v17714_v51 = vcombine.high %v15904_v38, %v15904_v38  ;;  %v15758_v3 = vrot.slane %v15757_v44, 4  ;;  %v22105_v7 = vld [vmem:[#allocation10 + $0x230] sm:$0xff]  }
 0x98e   : > { %20403 = vmatprep.subr.bf16.mxu1 %v22064_v35  ;;  %v14424_v14 = vrot.slane %v17567_v0, 5 }
 0x98f   : > { %20226 = vmatpush3.bf16.msra.mxu0 %v22065_v57  ;;  %v15774_v57 = vshll.u32 %v17700_v16, 16  ;;  %v14413_v26 = vsel %vm22668_vm8, %v17568_v53, %v14412_v39  ;;  %v15929_v46 = vrot.slane %v17712_v54, 5  ;;  %v15763_v9 = vsel %vm22644_vm5, %v15758_v3, %v15762_v52  ;;  %v22100_v16 = vld [vmem:[#allocation10 + $0x218] sm:$0xff]  }
 0x990   : > { %20227 = vmatprep.subr.bf16.mxu0 %v22067_v2  ;;  %v17717_v39 = vcombine.low %v15906_v58, %v15906_v58  ;;  %v14425_v44 = vsel %vm22668_vm8, %v17571_v47, %v14424_v14 }
 0x991   : > { %20404 = vmatpush3.bf16.msra.mxu1 %v22064_v35  ;;  %v17569_v35 = vrot.slane %v17562_v24, 9  ;;  %v15776_v56 = vrot.slane %v15774_v57, 5  ;;  %v15930_v59 = vsel %vm22668_vm8, %v17719_v4, %v15929_v46  ;;  %v15905_v24 = vld [vmem:[#allocation2 + $0x40] sm:$0x1e] }
 0x992   : > { %20405 = vmatprep.subr.bf16.mxu1 %v22066_v22  ;;  %v17715_v30 = vcombine.low %v15905_v24, %v15905_v24  ;;  %v17716_v53 = vcombine.high %v15905_v24, %v15905_v24  ;;  %v22108_v57 = vld [vmem:[#allocation10 + $0x238] sm:$0xff]  }
 0x993   : > { %20228 = vmatpush3.bf16.msra.mxu0 %v22067_v2  ;;  %v14245_v2 = vsel %vm22644_vm5, %v14240_v43, %v14244_v41  ;;  %v15777_v48 = vsel %vm22644_vm5, %v15772_v13, %v15776_v56  ;;  %v17570_v43 = vrot.slane %v17564_v10, 9  ;;  %v17718_v41 = vcombine.high %v15906_v58, %v15906_v58 }
 0x994   : > { %20229 = vmatprep.subr.bf16.mxu0 %v22069_v6  ;;  %v17551_v1 = vcombine.low %v14245_v2, %v14259_v17  ;;  %v17702_v42 = vcombine.low %v15763_v9, %v15777_v48 }
 0x995   : > { %20406 = vmatpush3.bf16.msra.mxu1 %v22066_v22  ;;  %v22076_v22 = vld [vmem:[#allocation10 + $0x1f8] sm:$0xff]   ;;  %v14421_v27 = vsel %vm22668_vm8, %v17570_v43, %v14420_v18 }
 0x996   : > { %20407 = vmatprep.subr.bf16.mxu1 %v22068_v5  ;;  %v17573_v37 = vcombine.low %v14421_v27, %v14425_v44 }
 0x997   : > { %20230 = vmatpush3.bf16.msra.mxu0 %v22069_v6  ;;  %v17713_v6 = vcombine.low %v15904_v38, %v15904_v38  ;;  %v17721_v38 = vrot.slane %v17715_v30, 9 }
 0x998   : > { %20231 = vmatprep.subr.bf16.mxu0 %v22071_v29 }
 0x999   : > { %20408 = vmatpush3.bf16.msra.mxu1 %v22068_v5  ;;  %v14417_v5 = vsel %vm22668_vm8, %v17569_v35, %v14416_v19  ;;  %v17720_v33 = vrot.slane %v17713_v6, 9  ;;  %v17722_v35 = vrot.slane %v17717_v39, 9  ;;  %v15941_v19 = vrot.slane %v17718_v41, 5 }
 0x99a   : > { %20409 = vmatprep.subr.bf16.mxu1 %v22070_v45  ;;  %v17572_v61 = vcombine.low %v14413_v26, %v14417_v5 }
 0x99b   : > { %20232 = vmatpush3.bf16.msra.mxu0 %v22071_v29  ;;  %v22095_v29 = vld [vmem:[#allocation10 + $0x208] sm:$0xff]   ;;  %v15942_v2 = vsel %vm22668_vm8, %v17722_v35, %v15941_v19 }
 0x99c   : > { %20233 = vmatprep.subr.bf16.mxu0 %v22073_v49 }
 0x99d   : > { %20410 = vmatpush3.bf16.msra.mxu1 %v22070_v45  ;;  %v15933_v45 = vrot.slane %v17714_v51, 5 }
 0x99e   : > { %20411 = vmatprep.subr.bf16.mxu1 %v22072_v34 }
 0x99f   : > { %20234 = vmatpush3.bf16.msra.mxu0 %v22073_v49  ;;  %v15934_v21 = vsel %vm22668_vm8, %v17720_v33, %v15933_v45 }
 0x9a0   : > { %20235 = vmatprep.subr.bf16.mxu0 %v22075_v20  ;;  %v17723_v49 = vcombine.low %v15930_v59, %v15934_v21 }
 0x9a1   : > { %20412 = vmatpush3.bf16.msra.mxu1 %v22072_v34  ;;  %v22102_v34 = vld [vmem:[#allocation10 + $0x220] sm:$0xff]  }
 0x9a2   : > { %20413 = vmatprep.subr.bf16.mxu1 %v22074_v60 }
 0x9a3   : > { %20236 = vmatpush3.bf16.msra.mxu0 %v22075_v20  ;;  %v22107_v20 = vld [vmem:[#allocation10 + $0x238] sm:$0xff]  }
 0x9a4   : > { %20241 = vmatprep.subr.bf16.mxu0 %v22081_v55 }
 0x9a5   : > { %20414 = vmatpush3.bf16.msra.mxu1 %v22074_v60  ;;  %v22106_v60 = vld [vmem:[#allocation10 + $0x230] sm:$0xff]  }
 0x9a6   : > { %20415 = vmatprep.subr.bf16.mxu1 %v22076_v22  ;;  %20238 = vmatmul.mubr.bf16.vlgmr.msra.gmra.mrb[16].mxu0 %v17551_v1 }
 0x9a7   : > { %20242 = vmatpush3.bf16.msra.mxu0 %v22081_v55  ;;  %20257 = vmatprep.mubr.bf16.mxu0 %v17572_v61  ;;  %v15937_v55 = vrot.slane %v17716_v53, 5 }
 0x9a8   : > { %20243 = vmatprep.subr.bf16.mxu0 %v22095_v29 }
 0x9a9   : > { %20416 = vmatpush3.bf16.msra.mxu1 %v22076_v22  ;;  %v15938_v54 = vsel %vm22668_vm8, %v17721_v38, %v15937_v55 }
 0x9aa   : > { %20421 = vmatprep.subr.bf16.mxu1 %v22086_v8  ;;  %v17724_v17 = vcombine.low %v15938_v54, %v15942_v2 }
 0x9ab   : > { %20244 = vmatpush3.bf16.msra.mxu0 %v22095_v29 }
 0x9ac   : > { %20418 = vmatmul.mubr.bf16.vlgmr.msra.gmra.mrb[16].mxu1 %v17702_v42  ;;  %20245 = vmatprep.subr.bf16.mxu0 %v22097_v28 }
 0x9ad   : > { %20422 = vmatpush3.bf16.msra.mxu1 %v22086_v8  ;;  %20437 = vmatprep.mubr.bf16.mxu1 %v17723_v49 }
 0x9ae   : > { %20423 = vmatprep.subr.bf16.mxu1 %v22096_v11 }
 0x9af   : > { %20246 = vmatpush3.bf16.msra.mxu0 %v22097_v28 }
 0x9b0   : > { %20247 = vmatprep.subr.bf16.mxu0 %v22099_v25 }
 0x9b1   : > { %20424 = vmatpush3.bf16.msra.mxu1 %v22096_v11 }
 0x9b2   : > { %20425 = vmatprep.subr.bf16.mxu1 %v22098_v31 }
 0x9b3   : > { %20248 = vmatpush3.bf16.msra.mxu0 %v22099_v25 }
 0x9b4   : > { %20249 = vmatprep.subr.bf16.mxu0 %v22101_v15 }
 0x9b5   : > { %20426 = vmatpush3.bf16.msra.mxu1 %v22098_v31 }
 0x9b6   : > { %20427 = vmatprep.subr.bf16.mxu1 %v22100_v16 }
 0x9b7   : > { %20250 = vmatpush3.bf16.msra.mxu0 %v22101_v15 }
 0x9b8   : > { %20251 = vmatprep.subr.bf16.mxu0 %v22103_v50 }
 0x9b9   : > { %20428 = vmatpush3.bf16.msra.mxu1 %v22100_v16 }
 0x9ba   : > { %20429 = vmatprep.subr.bf16.mxu1 %v22102_v34 }
 0x9bb   : > { %20252 = vmatpush3.bf16.msra.mxu0 %v22103_v50 }
 0x9bc   : > { %20253 = vmatprep.subr.bf16.mxu0 %v22105_v7 }
 0x9bd   : > { %20430 = vmatpush3.bf16.msra.mxu1 %v22102_v34 }
 0x9be   : > { %20431 = vmatprep.subr.bf16.mxu1 %v22104_v32 }
 0x9bf   : > { %20254 = vmatpush3.bf16.msra.mxu0 %v22105_v7 }
 0x9c0   : > { %20255 = vmatprep.subr.bf16.mxu0 %v22107_v20 }
 0x9c1   : > { %20432 = vmatpush3.bf16.msra.mxu1 %v22104_v32 }
 0x9c2   : > { %20433 = vmatprep.subr.bf16.mxu1 %v22106_v60 }
 0x9c3   : > { %20256 = vmatpush3.bf16.msra.mxu0 %v22107_v20 }
 0x9c5   : > { %20434 = vmatpush3.bf16.msra.mxu1 %v22106_v60 }
 0x9c6   : > { %20435 = vmatprep.subr.bf16.mxu1 %v22108_v57  ;;  %20258 = vmatmul.mubr.bf16.vlgmr.msra.gmra.mrb[16].mxu0 %v17573_v37 }
 0x9c9   : > { %20436 = vmatpush3.bf16.msra.mxu1 %v22108_v57 }
 0x9cc   : > { %20438 = vmatmul.mubr.bf16.vlgmr.msra.gmra.mrb[16].mxu1 %v17724_v17 }
 0xa99   : > { %v20259_v22 = vpop.f32.mrb[16].mxu0 }
 0xa9a   : > { %v14560_v26 = vadd.f32 %v20259_v22, %v17582_v23  ;;  %v14533_v6 = vpop.f32.mrb[17].mxu0 }
 0xa9b   : > { %v14558_v51 = vadd.f32 %v17582_v23, %v14533_v6  ;;  %v20260_v3 = vpop.f32.mrb[18].mxu0 }
 0xa9c   : > { %14564 = vst [vmem:[%s298_s24 + $0x10] sm:$0xff] %v14560_v26  ;;  %v14561_v13 = vadd.f32 %v20260_v3, %v17582_v23  ;;  %v14536_v56 = vpop.f32.mrb[19].mxu0 }
 0xa9d   : > { %14562 = vst [vmem:[%s298_s24] sm:$0xff] %v14558_v51  ;;  %v14559_v1 = vadd.f32 %v17582_v23, %v14536_v56 }
 0xa9e   : > { %14565 = vst [vmem:[%s298_s24 + $0x18] sm:$0xff] %v14561_v13 }
 0xa9f   : > { %v20439_v12 = vpop.f32.mrb[16].mxu1  ;;  %14563 = vst [vmem:[%s298_s24 + $0x8] sm:$0xff] %v14559_v1 }
 0xaa0   : > { %v16076_v5 = vadd.f32 %v20439_v12, %v17582_v23  ;;  %v16049_v4 = vpop.f32.mrb[17].mxu1 }
 0xaa1   : > { %v16074_v46 = vadd.f32 %v17582_v23, %v16049_v4  ;;  %v20440_v29 = vpop.f32.mrb[18].mxu1 }
 0xaa2   : > { %16080 = vst [vmem:[%s298_s24 + $0x30] sm:$0xff] %v16076_v5  ;;  %v16077_v52 = vadd.f32 %v20440_v29, %v17582_v23  ;;  %v16052_v61 = vpop.f32.mrb[19].mxu1 }
 0xaa3   : > { %16078 = vst [vmem:[%s298_s24 + $0x20] sm:$0xff] %v16074_v46  ;;  %v16075_v8 = vadd.f32 %v17582_v23, %v16052_v61 }
 0xaa4   : > { %16081 = vst [vmem:[%s298_s24 + $0x38] sm:$0xff] %v16077_v52 }
 0xaa5   : > { %16079 = vst [vmem:[%s298_s24 + $0x28] sm:$0xff] %v16075_v8 }
 0xaa6   : > { %22272 = shalt.err (!%p22269_p13)
}
 0xaa7   : > { %s22273_s6 = scalar_lea.hbm %s23738_s16, 1024  ;;  %s22277_s9 = scalar_lea.hbm %s23787_s5, 2048 }
 0xaa8   : > { %p22274_p9 = scmp.ne.s32.totalorder %s23738_s16, %s22273_s6  ;;  %p22278_p4 = scmp.lt.u32.totalorder %s23738_s16, %s23787_s5 }
 0xaa9   : > { %p22279_p8 = scmp.lt.u32.totalorder %s22277_s9, %s22273_s6  ;;  %p22281_p3 = scmp.lt.u32.totalorder %s22273_s6, %s23738_s16 }
 0xaaa   : > { %p22275_p0 = pnand %p22274_p9, %p22539_p10 }
 0xaab   : > { %p22280_p6 = por %p22279_p8, %p22278_p4 }
 0xaac   : > { %p22276_p11 = pneg %p22275_p0 }
 0xaad   : > { %p22282_p5 = por %p22281_p3, %p22280_p6 }
 0xaaf   : > { %p22283_p7 = pnand %p22282_p5, %p22276_p11 }
 0xab1   : > { %22286 = shalt.err (!%p22283_p7)
}
 0xab2   : > { %s22348_s12 = smov 128   ;;  %s22349_s15 = smov 8  }
 0xab3   : > { %20779 = dma.vmem_to_hbm [thread:$0]  (%p22539_p10), %s23733_s26, 1024, %s23738_s16, %s16083_s22, %s22348_s12, %s22348_s12, %s22349_s15  }
 0xab4 PF: > { %s16111_s8 = sand.u32 1, %s22321_s18   ;;  %p23817_p12 = scmp.ne.s32.totalorder %s23792_s25, 0 }
 0xab5   : > { %p23818_p2 = scmp.ge.s32.totalorder %s22333_s21, 2  ;;  %s16112_s7 = scalar_lea.sflag [#allocation6], %s16111_s8 }
 0xab7   : > { %p20799_p1 = pnand %p23818_p2, %p23817_p12 }
 0xab9   : > { %22316 = dma.done.wait (!%p20799_p1), %s16112_s7, 1024  }
 0xaba   : > { %22318 = vsyncadd (!%p20799_p1), %s16112_s7, 4294966272  ;;  %p20_p13 = scmp.ge.s32.totalorder %s22529_s14, 4   ;;  %s23819_s18 = smov %s22325_s19 }
 0xabb   : > { %s23820_s19 = smov %s22329_s20  ;;  %s23821_s20 = smov %s22545_s17 }
 0xabc   : > { %s23822_s21 = smov %s22529_s14  ;;  %22 = sbr.rel (!%p20_p13) target bundleno = 7 (0x7), region = 158 }
 0xac3   :  { %16117 = vsyncpa [#allocation5], 1 }
 0xac4   :  { %16119 = vsyncpa [#allocation5 + $0x1], 1 }
 0xac5   :  { %16120 = vsyncpa [#allocation8], 1 }
 0xac6   :  { %16121 = vsyncpa [#allocation11], 1 }
 0xac7   :  { %16122 = vsyncpa [#allocation6], 1 }
 0xac8   :  { %16124 = vsyncpa [#allocation6 + $0x1], 1 }

</bundles_post_ra>
